<compile_context>
chip_gen: v7x
topology: tpu7x:2x2x1
jax: 0.10.0
libtpu: 0.0.40
codegen_flags: <defaults>
</compile_context>

<pallas_src>
import functools
from itertools import product

import jax
import jax.numpy as jnp
from jax.experimental import pallas as pl
from jax.experimental.pallas import tpu as pltpu


# ----------------------------------------------------------------------------
# Pallas kernel: 3x3x3 conv via in-kernel tap expansion + folded-BN bias + ReLU
# ----------------------------------------------------------------------------
def _conv3d_taps_kernel(x_ref, w_ref, b_ref, o_ref, *, relu, taps_off, lout):
    # x_ref : (1, 1, Cin, Lsrc)  bf16  flat padded d-slab tile (incl. halo)
    # w_ref : (27, Cout, Cin)    bf16  per-tap weights, BN scale folded in
    # b_ref : (Cout, 1)          f32   bias*scale + shift
    # o_ref : (1, 1, Cout, Lout) f32   flat output tile (lane-dense, Lout%128==0)
    x = x_ref[0, 0]                     # (Cin, Lsrc)
    cout = w_ref.shape[1]
    acc = jnp.zeros((cout, lout), jnp.float32)
    # 27 taps = static lane shifts of the flat padded volume; each tap is one
    # MXU matmul contracting over Cin, accumulated in f32 (stays in registers
    # at these tile sizes).
    for t, off in enumerate(taps_off):
        acc = acc + jnp.dot(w_ref[t], x[:, off:off + lout],
                            preferred_element_type=jnp.float32)
    y = acc + b_ref[...]
    if relu:
        y = jnp.maximum(y, 0.0)
    o_ref[0, 0] = y.astype(o_ref.dtype)


def _vmem_budget_bytes():
    """Generation-aware VMEM budget (v5e/v6e: 128 MiB total, v7x: 64 MiB)."""
    try:
        cap = int(pltpu.get_tpu_info().vmem_capacity_bytes)
    except Exception:
        cap = 64 << 20                  # conservative (v7x-sized) fallback
    return max(16 << 20, min(cap // 2, 64 << 20))


def conv3d_bn_act(x, w, b, scale, shift, *, relu, row_tile_lanes=2048):
    """Fused Conv3d(3x3x3, pad=1, stride=1) + bias + inference BN + optional ReLU.

    x: (N, Cin, D, H, W) f32.  w: (3, 3, 3, Cin, Cout).  Returns (N, Cout, D, H, W) f32.
    The 27 taps are expanded inside the kernel from a flat padded (Cin, Lsrc)
    d-slab tile -- no 27x im2col tensor ever touches HBM.
    """
    N, Cin, D, H, W = x.shape
    Cout = w.shape[-1]
    Hp, Wp = H + 2, W + 2
    HWp = Hp * Wp
    maxoff = 2 * HWp + 2 * Wp + 2       # largest tap offset (kd=kh=kw=2)

    def plan(td):
        ltile = td * HWp                              # valid output lanes / tile
        lout = ((ltile + 127) // 128) * 128           # lane-dense output width
        n_halo = -(-(lout - ltile + maxoff) // HWp)   # extra d-slabs (>= 3)
        lsrc = ltile + n_halo * HWp                   # input lanes / tile
        return ltile, lout, n_halo, lsrc

    def vmem_bytes(td):
        _, lout, _, lsrc = plan(td)
        return (2 * Cin * lsrc * 2            # x tile, double-buffered, bf16
                + 2 * 27 * Cout * Cin * 2     # weights (resident)
                + 2 * Cout * 4                # bias
                + 2 * Cout * lout * 4         # out tile, double-buffered, f32
                + Cout * lout * 4)            # f32 accumulator

    # d-slab tile: target ~row_tile_lanes output lanes per grid step, then
    # shrink until the double-buffered estimate fits the VMEM budget.
    # TODO(synk): for very large Cin, add a K-axis grid with an f32 VMEM
    # accumulator instead of shrinking the tile.
    budget = _vmem_budget_bytes()
    TD = max(1, min(D, max(1, row_tile_lanes // HWp)))
    while TD > 1 and vmem_bytes(TD) > budget:
        TD -= 1
    n_dt = pl.cdiv(D, TD)
    Ltile, Lout, n_halo, Lsrc = plan(TD)
    Dpp = n_dt * TD + n_halo              # padded depth (>= D + 2 since n_halo >= 3)

    # Fold inference BN scale and the conv bias into the weights (f32 math),
    # tap-major (kd, kh, kw) ordering; feed the MXU in bf16.
    wt = jnp.transpose(w, (0, 1, 2, 4, 3)) * scale[None, None, None, :, None]
    wt = wt.reshape(27, Cout, Cin).astype(jnp.bfloat16)
    bvec = (b * scale + shift).reshape(Cout, 1).astype(jnp.float32)

    # bf16 BEFORE padding / halo duplication: every wrapper copy moves half the
    # bytes, and the kernel reads ~(1 + n_halo/TD)x the activation, not 27x.
    xb = x.astype(jnp.bfloat16)
    xp = jnp.pad(xb, ((0, 0), (0, 0), (1, Dpp - D - 1), (1, 1), (1, 1)))
    xsrc = jnp.stack([xp[:, :, t * TD:t * TD + TD + n_halo] for t in range(n_dt)],
                     axis=1)                             # (N, n_dt, Cin, TD+halo, Hp, Wp)
    xsrc = xsrc.reshape(N, n_dt, Cin, Lsrc)

    taps_off = tuple(kd * HWp + kh * Wp + kw
                     for kd, kh, kw in product(range(3), repeat=3))
    kernel = functools.partial(_conv3d_taps_kernel, relu=relu,
                               taps_off=taps_off, lout=Lout)

    flops = 2 * N * n_dt * 27 * Cout * Cin * Lout
    bytes_accessed = (N * n_dt * Cin * Lsrc * 2 + 27 * Cout * Cin * 2 + Cout * 4
                      + N * n_dt * Cout * Lout * 4)

    out = pl.pallas_call(
        kernel,
        out_shape=jax.ShapeDtypeStruct((N, n_dt, Cout, Lout), jnp.float32),
        grid_spec=pltpu.PrefetchScalarGridSpec(
            num_scalar_prefetch=0,
            grid=(N, n_dt),
            in_specs=[
                pl.BlockSpec((1, 1, Cin, Lsrc), lambda n, t: (n, t, 0, 0)),
                # Constant index maps -> weights/bias stay VMEM-resident across
                # the whole grid (no per-tile re-DMA).  (Single-buffering them
                # only matters for very large Cin; left double-buffered here.)
                pl.BlockSpec((27, Cout, Cin), lambda n, t: (0, 0, 0)),
                pl.BlockSpec((Cout, 1), lambda n, t: (0, 0)),
            ],
            out_specs=pl.BlockSpec((1, 1, Cout, Lout), lambda n, t: (n, t, 0, 0)),
        ),
        compiler_params=pltpu.CompilerParams(
            dimension_semantics=("parallel", "parallel"),
            vmem_limit_bytes=budget),
        cost_estimate=pl.CostEstimate(
            flops=flops, transcendentals=0, bytes_accessed=bytes_accessed),
    )(xsrc, wt, bvec)

    # Unflatten and keep only the valid (d, h, w) voxels.
    y = out[:, :, :, :Ltile].reshape(N, n_dt, Cout, TD, Hp, Wp)
    y = jnp.transpose(y, (0, 2, 1, 3, 4, 5)).reshape(N, Cout, n_dt * TD, Hp, Wp)
    return y[:, :, :D, :H, :W]


# ----------------------------------------------------------------------------
# JAX glue: avg pool, trilinear upsample (align_corners=True), forward graph
# ----------------------------------------------------------------------------
def avg_pool3d(x, s):
    if s == 1:                               # AvgPool3d(1) is identity
        return x
    N, C, D, H, W = x.shape
    Df, Hf, Wf = (D // s) * s, (H // s) * s, (W // s) * s   # PyTorch floors
    x = x[:, :, :Df, :Hf, :Wf]
    x = x.reshape(N, C, Df // s, s, Hf // s, s, Wf // s, s)
    return x.mean(axis=(3, 5, 7))


def _interp_axis(x, axis, out_size):
    in_size = x.shape[axis]
    if in_size == out_size:
        return x
    if out_size == 1:
        pos = jnp.zeros((1,), jnp.float32)
    else:
        pos = jnp.arange(out_size, dtype=jnp.float32) * (in_size - 1) / (out_size - 1)
    lo = jnp.clip(jnp.floor(pos).astype(jnp.int32), 0, max(in_size - 2, 0))
    hi = jnp.clip(lo + 1, 0, in_size - 1)
    frac = pos - lo.astype(jnp.float32)
    xl = jnp.take(x, lo, axis=axis)
    xh = jnp.take(x, hi, axis=axis)
    shape = [1] * x.ndim
    shape[axis] = out_size
    frac = frac.reshape(shape)
    return xl * (1.0 - frac) + xh * frac


def upsample_trilinear(x, size):
    # x: (N, C, D, H, W); separable linear interpolation == trilinear
    x = _interp_axis(x, 2, size[0])
    x = _interp_axis(x, 3, size[1])
    x = _interp_axis(x, 4, size[2])
    return x


def conv3d_bn_act_ref(x, w, b, scale, shift, *, relu):
    """Pure-JAX reference (lax.conv) with the same bf16 operands, for verification."""
    Cout = w.shape[-1]
    wf = (w.reshape(-1, Cout) * scale[None, :]).reshape(w.shape).astype(jnp.bfloat16)
    bf = (b * scale + shift).astype(jnp.float32)
    y = jax.lax.conv_general_dilated(
        x.astype(jnp.bfloat16), wf,
        window_strides=(1, 1, 1), padding=((1, 1), (1, 1), (1, 1)),
        dimension_numbers=("NCDHW", "DHWIO", "NCDHW"),
        preferred_element_type=jnp.float32)
    y = y + bf[None, :, None, None, None]
    if relu:
        y = jnp.maximum(y, 0.0)
    return y


def init_params(key, in_chan, out_chan):
    inter = out_chan // 4
    keys = jax.random.split(key, 4)

    def conv_params(k, cin, cout):
        fan_in = cin * 27
        w = jax.random.normal(k, (3, 3, 3, cin, cout), jnp.float32) * jnp.sqrt(2.0 / fan_in)
        b = jnp.zeros((cout,), jnp.float32)
        return w, b

    # BatchNorm3d in inference mode with PyTorch default init:
    # gamma=1, beta=0, running_mean=0, running_var=1, eps=1e-5.
    # TODO(synk): training-mode BN (batch statistics) is not reproduced.
    eps = 1e-5

    def bn_params(c):
        gamma = jnp.ones((c,), jnp.float32)
        beta = jnp.zeros((c,), jnp.float32)
        mean = jnp.zeros((c,), jnp.float32)
        var = jnp.ones((c,), jnp.float32)
        scale = gamma / jnp.sqrt(var + eps)
        shift = beta - mean * scale
        return scale, shift

    return {
        "conv1": conv_params(keys[0], in_chan, inter * 2),
        "conv2": conv_params(keys[1], in_chan, inter),
        "conv3": conv_params(keys[2], in_chan, inter),
        "out":   conv_params(keys[3], out_chan, out_chan),
        "bn1": bn_params(inter * 2),
        "bn2": bn_params(inter),
        "bn3": bn_params(inter),
    }


def ppm_forward(params, x, size, conv_fn=conv3d_bn_act):
    # x: (N, C, D, H, W)  (NCDHW, matching the PyTorch module)
    out1 = avg_pool3d(x, 4)
    out2 = avg_pool3d(x, 2)
    out3 = avg_pool3d(x, 1)

    w1, b1 = params["conv1"]; s1, t1 = params["bn1"]
    w2, b2 = params["conv2"]; s2, t2 = params["bn2"]
    w3, b3 = params["conv3"]; s3, t3 = params["bn3"]

    # TODO(synk): conv2/conv3 share shapes and could be fused into one
    # pallas_call (concatenated rows + stacked weights); kept separate here.
    out1 = conv_fn(out1, w1, b1, s1, t1, relu=True)
    out2 = conv_fn(out2, w2, b2, s2, t2, relu=True)
    out3 = conv_fn(out3, w3, b3, s3, t3, relu=True)

    out1 = upsample_trilinear(out1, size)
    out2 = upsample_trilinear(out2, size)
    out3 = upsample_trilinear(out3, size)

    out5 = jnp.concatenate([out1, out2, out3], axis=1)

    wo, bo = params["out"]
    co = out5.shape[1]
    ident_scale = jnp.ones((co,), jnp.float32)
    ident_shift = jnp.zeros((co,), jnp.float32)
    out = conv_fn(out5, wo, bo, ident_scale, ident_shift, relu=False)
    # self.out ends with AvgPool3d(1) == identity.
    return out


if __name__ == "__main__":
    key = jax.random.PRNGKey(0)
    kx, kp = jax.random.split(key)

    N, in_chan, D, H, W = 2, 4, 8, 8, 8
    out_chan = 8
    size = (D, H, W)

    x = jax.random.normal(kx, (N, in_chan, D, H, W), jnp.float32)
    params = init_params(kp, in_chan, out_chan)

    fwd = jax.jit(functools.partial(ppm_forward, size=size))
    y = jax.block_until_ready(fwd(params, x))
    assert y.shape == (N, out_chan, D, H, W), y.shape

    # Verify against a pure-JAX reference (lax.conv, same bf16 operands).
    fwd_ref = jax.jit(functools.partial(ppm_forward, size=size,
                                        conv_fn=conv3d_bn_act_ref))
    y_ref = jax.block_until_ready(fwd_ref(params, x))
    max_err = float(jnp.max(jnp.abs(y - y_ref)))
    assert jnp.allclose(y, y_ref, rtol=2e-2, atol=2e-2), max_err

    print("KERNEL_OK")
</pallas_src>

<mosaic_0001>
module attributes {stable_mosaic.version = 11 : i64} {
  func.func @_conv3d_taps_kernel(%arg0: i32, %arg1: i32, %arg2: memref<1x1x4x1200xbf16, #tpu.memory_space<vmem>>, %arg3: memref<27x2x4xbf16, #tpu.memory_space<vmem>>, %arg4: memref<2x1xf32, #tpu.memory_space<vmem>>, %arg5: memref<1x1x2x896xf32, #tpu.memory_space<vmem>>) attributes {dimension_semantics = [#tpu.dimension_semantics<parallel>, #tpu.dimension_semantics<parallel>], iteration_bounds = array<i64: 2, 1>, scalar_prefetch = 0 : i64, scratch_operands = 0 : i64, tpu.core_type = #tpu.core_type<tc>, window_params = [{transform_indices = @transform_0, window_bounds = array<i64: 1, 1, 4, 1200>}, {pipeline_mode = #tpu.pipeline_mode<synchronous>, transform_indices = @transform_1, window_bounds = array<i64: 27, 2, 4>}, {pipeline_mode = #tpu.pipeline_mode<synchronous>, transform_indices = @transform_2, window_bounds = array<i64: 2, 1>}, {transform_indices = @transform_3, window_bounds = array<i64: 1, 1, 2, 896>}]} {
    %c0 = arith.constant 0 : index
    %c0_0 = arith.constant 0 : index
    %c0_1 = arith.constant 0 : index
    %c0_2 = arith.constant 0 : index
    %0 = vector.load %arg2[%c0, %c0_0, %c0_1, %c0_2] : memref<1x1x4x1200xbf16, #tpu.memory_space<vmem>>, vector<1x1x4x1200xbf16>
    %1 = vector.shape_cast %0 : vector<1x1x4x1200xbf16> to vector<4x1200xbf16>
    %cst = arith.constant 0.000000e+00 : f32
    %2 = vector.broadcast %cst : f32 to vector<2x896xf32>
    %c0_3 = arith.constant 0 : index
    %c0_4 = arith.constant 0 : index
    %c0_5 = arith.constant 0 : index
    %3 = vector.load %arg3[%c0_3, %c0_4, %c0_5] : memref<27x2x4xbf16, #tpu.memory_space<vmem>>, vector<1x2x4xbf16>
    %4 = vector.shape_cast %3 : vector<1x2x4xbf16> to vector<2x4xbf16>
    %5 = vector.extract_strided_slice %1 {offsets = [0, 0], sizes = [4, 896], strides = [1, 1]} : vector<4x1200xbf16> to vector<4x896xbf16>
    %cst_6 = arith.constant dense<0.000000e+00> : vector<2x896xf32>
    %6 = tpu.matmul %4, %5, %cst_6 {dimension_numbers = #tpu.dot_dimension_numbers<[1], [0], [0], [1], [0, 0, 1, 1], [], []>} : vector<2x4xbf16>, vector<4x896xbf16>, vector<2x896xf32> -> vector<2x896xf32>
    %7 = arith.addf %2, %6 : vector<2x896xf32>
    %c1 = arith.constant 1 : index
    %c0_7 = arith.constant 0 : index
    %c0_8 = arith.constant 0 : index
    %8 = vector.load %arg3[%c1, %c0_7, %c0_8] : memref<27x2x4xbf16, #tpu.memory_space<vmem>>, vector<1x2x4xbf16>
    %9 = vector.shape_cast %8 : vector<1x2x4xbf16> to vector<2x4xbf16>
    %10 = vector.extract_strided_slice %1 {offsets = [0, 1], sizes = [4, 896], strides = [1, 1]} : vector<4x1200xbf16> to vector<4x896xbf16>
    %cst_9 = arith.constant dense<0.000000e+00> : vector<2x896xf32>
    %11 = tpu.matmul %9, %10, %cst_9 {dimension_numbers = #tpu.dot_dimension_numbers<[1], [0], [0], [1], [0, 0, 1, 1], [], []>} : vector<2x4xbf16>, vector<4x896xbf16>, vector<2x896xf32> -> vector<2x896xf32>
    %12 = arith.addf %7, %11 : vector<2x896xf32>
    %c2 = arith.constant 2 : index
    %c0_10 = arith.constant 0 : index
    %c0_11 = arith.constant 0 : index
    %13 = vector.load %arg3[%c2, %c0_10, %c0_11] : memref<27x2x4xbf16, #tpu.memory_space<vmem>>, vector<1x2x4xbf16>
    %14 = vector.shape_cast %13 : vector<1x2x4xbf16> to vector<2x4xbf16>
    %15 = vector.extract_strided_slice %1 {offsets = [0, 2], sizes = [4, 896], strides = [1, 1]} : vector<4x1200xbf16> to vector<4x896xbf16>
    %cst_12 = arith.constant dense<0.000000e+00> : vector<2x896xf32>
    %16 = tpu.matmul %14, %15, %cst_12 {dimension_numbers = #tpu.dot_dimension_numbers<[1], [0], [0], [1], [0, 0, 1, 1], [], []>} : vector<2x4xbf16>, vector<4x896xbf16>, vector<2x896xf32> -> vector<2x896xf32>
    %17 = arith.addf %12, %16 : vector<2x896xf32>
    %c3 = arith.constant 3 : index
    %c0_13 = arith.constant 0 : index
    %c0_14 = arith.constant 0 : index
    %18 = vector.load %arg3[%c3, %c0_13, %c0_14] : memref<27x2x4xbf16, #tpu.memory_space<vmem>>, vector<1x2x4xbf16>
    %19 = vector.shape_cast %18 : vector<1x2x4xbf16> to vector<2x4xbf16>
    %20 = vector.extract_strided_slice %1 {offsets = [0, 10], sizes = [4, 896], strides = [1, 1]} : vector<4x1200xbf16> to vector<4x896xbf16>
    %cst_15 = arith.constant dense<0.000000e+00> : vector<2x896xf32>
    %21 = tpu.matmul %19, %20, %cst_15 {dimension_numbers = #tpu.dot_dimension_numbers<[1], [0], [0], [1], [0, 0, 1, 1], [], []>} : vector<2x4xbf16>, vector<4x896xbf16>, vector<2x896xf32> -> vector<2x896xf32>
    %22 = arith.addf %17, %21 : vector<2x896xf32>
    %c4 = arith.constant 4 : index
    %c0_16 = arith.constant 0 : index
    %c0_17 = arith.constant 0 : index
    %23 = vector.load %arg3[%c4, %c0_16, %c0_17] : memref<27x2x4xbf16, #tpu.memory_space<vmem>>, vector<1x2x4xbf16>
    %24 = vector.shape_cast %23 : vector<1x2x4xbf16> to vector<2x4xbf16>
    %25 = vector.extract_strided_slice %1 {offsets = [0, 11], sizes = [4, 896], strides = [1, 1]} : vector<4x1200xbf16> to vector<4x896xbf16>
    %cst_18 = arith.constant dense<0.000000e+00> : vector<2x896xf32>
    %26 = tpu.matmul %24, %25, %cst_18 {dimension_numbers = #tpu.dot_dimension_numbers<[1], [0], [0], [1], [0, 0, 1, 1], [], []>} : vector<2x4xbf16>, vector<4x896xbf16>, vector<2x896xf32> -> vector<2x896xf32>
    %27 = arith.addf %22, %26 : vector<2x896xf32>
    %c5 = arith.constant 5 : index
    %c0_19 = arith.constant 0 : index
    %c0_20 = arith.constant 0 : index
    %28 = vector.load %arg3[%c5, %c0_19, %c0_20] : memref<27x2x4xbf16, #tpu.memory_space<vmem>>, vector<1x2x4xbf16>
    %29 = vector.shape_cast %28 : vector<1x2x4xbf16> to vector<2x4xbf16>
    %30 = vector.extract_strided_slice %1 {offsets = [0, 12], sizes = [4, 896], strides = [1, 1]} : vector<4x1200xbf16> to vector<4x896xbf16>
    %cst_21 = arith.constant dense<0.000000e+00> : vector<2x896xf32>
    %31 = tpu.matmul %29, %30, %cst_21 {dimension_numbers = #tpu.dot_dimension_numbers<[1], [0], [0], [1], [0, 0, 1, 1], [], []>} : vector<2x4xbf16>, vector<4x896xbf16>, vector<2x896xf32> -> vector<2x896xf32>
    %32 = arith.addf %27, %31 : vector<2x896xf32>
    %c6 = arith.constant 6 : index
    %c0_22 = arith.constant 0 : index
    %c0_23 = arith.constant 0 : index
    %33 = vector.load %arg3[%c6, %c0_22, %c0_23] : memref<27x2x4xbf16, #tpu.memory_space<vmem>>, vector<1x2x4xbf16>
    %34 = vector.shape_cast %33 : vector<1x2x4xbf16> to vector<2x4xbf16>
    %35 = vector.extract_strided_slice %1 {offsets = [0, 20], sizes = [4, 896], strides = [1, 1]} : vector<4x1200xbf16> to vector<4x896xbf16>
    %cst_24 = arith.constant dense<0.000000e+00> : vector<2x896xf32>
    %36 = tpu.matmul %34, %35, %cst_24 {dimension_numbers = #tpu.dot_dimension_numbers<[1], [0], [0], [1], [0, 0, 1, 1], [], []>} : vector<2x4xbf16>, vector<4x896xbf16>, vector<2x896xf32> -> vector<2x896xf32>
    %37 = arith.addf %32, %36 : vector<2x896xf32>
    %c7 = arith.constant 7 : index
    %c0_25 = arith.constant 0 : index
    %c0_26 = arith.constant 0 : index
    %38 = vector.load %arg3[%c7, %c0_25, %c0_26] : memref<27x2x4xbf16, #tpu.memory_space<vmem>>, vector<1x2x4xbf16>
    %39 = vector.shape_cast %38 : vector<1x2x4xbf16> to vector<2x4xbf16>
    %40 = vector.extract_strided_slice %1 {offsets = [0, 21], sizes = [4, 896], strides = [1, 1]} : vector<4x1200xbf16> to vector<4x896xbf16>
    %cst_27 = arith.constant dense<0.000000e+00> : vector<2x896xf32>
    %41 = tpu.matmul %39, %40, %cst_27 {dimension_numbers = #tpu.dot_dimension_numbers<[1], [0], [0], [1], [0, 0, 1, 1], [], []>} : vector<2x4xbf16>, vector<4x896xbf16>, vector<2x896xf32> -> vector<2x896xf32>
    %42 = arith.addf %37, %41 : vector<2x896xf32>
    %c8 = arith.constant 8 : index
    %c0_28 = arith.constant 0 : index
    %c0_29 = arith.constant 0 : index
    %43 = vector.load %arg3[%c8, %c0_28, %c0_29] : memref<27x2x4xbf16, #tpu.memory_space<vmem>>, vector<1x2x4xbf16>
    %44 = vector.shape_cast %43 : vector<1x2x4xbf16> to vector<2x4xbf16>
    %45 = vector.extract_strided_slice %1 {offsets = [0, 22], sizes = [4, 896], strides = [1, 1]} : vector<4x1200xbf16> to vector<4x896xbf16>
    %cst_30 = arith.constant dense<0.000000e+00> : vector<2x896xf32>
    %46 = tpu.matmul %44, %45, %cst_30 {dimension_numbers = #tpu.dot_dimension_numbers<[1], [0], [0], [1], [0, 0, 1, 1], [], []>} : vector<2x4xbf16>, vector<4x896xbf16>, vector<2x896xf32> -> vector<2x896xf32>
    %47 = arith.addf %42, %46 : vector<2x896xf32>
    %c9 = arith.constant 9 : index
    %c0_31 = arith.constant 0 : index
    %c0_32 = arith.constant 0 : index
    %48 = vector.load %arg3[%c9, %c0_31, %c0_32] : memref<27x2x4xbf16, #tpu.memory_space<vmem>>, vector<1x2x4xbf16>
    %49 = vector.shape_cast %48 : vector<1x2x4xbf16> to vector<2x4xbf16>
    %50 = vector.extract_strided_slice %1 {offsets = [0, 100], sizes = [4, 896], strides = [1, 1]} : vector<4x1200xbf16> to vector<4x896xbf16>
    %cst_33 = arith.constant dense<0.000000e+00> : vector<2x896xf32>
    %51 = tpu.matmul %49, %50, %cst_33 {dimension_numbers = #tpu.dot_dimension_numbers<[1], [0], [0], [1], [0, 0, 1, 1], [], []>} : vector<2x4xbf16>, vector<4x896xbf16>, vector<2x896xf32> -> vector<2x896xf32>
    %52 = arith.addf %47, %51 : vector<2x896xf32>
    %c10 = arith.constant 10 : index
    %c0_34 = arith.constant 0 : index
    %c0_35 = arith.constant 0 : index
    %53 = vector.load %arg3[%c10, %c0_34, %c0_35] : memref<27x2x4xbf16, #tpu.memory_space<vmem>>, vector<1x2x4xbf16>
    %54 = vector.shape_cast %53 : vector<1x2x4xbf16> to vector<2x4xbf16>
    %55 = vector.extract_strided_slice %1 {offsets = [0, 101], sizes = [4, 896], strides = [1, 1]} : vector<4x1200xbf16> to vector<4x896xbf16>
    %cst_36 = arith.constant dense<0.000000e+00> : vector<2x896xf32>
    %56 = tpu.matmul %54, %55, %cst_36 {dimension_numbers = #tpu.dot_dimension_numbers<[1], [0], [0], [1], [0, 0, 1, 1], [], []>} : vector<2x4xbf16>, vector<4x896xbf16>, vector<2x896xf32> -> vector<2x896xf32>
    %57 = arith.addf %52, %56 : vector<2x896xf32>
    %c11 = arith.constant 11 : index
    %c0_37 = arith.constant 0 : index
    %c0_38 = arith.constant 0 : index
    %58 = vector.load %arg3[%c11, %c0_37, %c0_38] : memref<27x2x4xbf16, #tpu.memory_space<vmem>>, vector<1x2x4xbf16>
    %59 = vector.shape_cast %58 : vector<1x2x4xbf16> to vector<2x4xbf16>
    %60 = vector.extract_strided_slice %1 {offsets = [0, 102], sizes = [4, 896], strides = [1, 1]} : vector<4x1200xbf16> to vector<4x896xbf16>
    %cst_39 = arith.constant dense<0.000000e+00> : vector<2x896xf32>
    %61 = tpu.matmul %59, %60, %cst_39 {dimension_numbers = #tpu.dot_dimension_numbers<[1], [0], [0], [1], [0, 0, 1, 1], [], []>} : vector<2x4xbf16>, vector<4x896xbf16>, vector<2x896xf32> -> vector<2x896xf32>
    %62 = arith.addf %57, %61 : vector<2x896xf32>
    %c12 = arith.constant 12 : index
    %c0_40 = arith.constant 0 : index
    %c0_41 = arith.constant 0 : index
    %63 = vector.load %arg3[%c12, %c0_40, %c0_41] : memref<27x2x4xbf16, #tpu.memory_space<vmem>>, vector<1x2x4xbf16>
    %64 = vector.shape_cast %63 : vector<1x2x4xbf16> to vector<2x4xbf16>
    %65 = vector.extract_strided_slice %1 {offsets = [0, 110], sizes = [4, 896], strides = [1, 1]} : vector<4x1200xbf16> to vector<4x896xbf16>
    %cst_42 = arith.constant dense<0.000000e+00> : vector<2x896xf32>
    %66 = tpu.matmul %64, %65, %cst_42 {dimension_numbers = #tpu.dot_dimension_numbers<[1], [0], [0], [1], [0, 0, 1, 1], [], []>} : vector<2x4xbf16>, vector<4x896xbf16>, vector<2x896xf32> -> vector<2x896xf32>
    %67 = arith.addf %62, %66 : vector<2x896xf32>
    %c13 = arith.constant 13 : index
    %c0_43 = arith.constant 0 : index
    %c0_44 = arith.constant 0 : index
    %68 = vector.load %arg3[%c13, %c0_43, %c0_44] : memref<27x2x4xbf16, #tpu.memory_space<vmem>>, vector<1x2x4xbf16>
    %69 = vector.shape_cast %68 : vector<1x2x4xbf16> to vector<2x4xbf16>
    %70 = vector.extract_strided_slice %1 {offsets = [0, 111], sizes = [4, 896], strides = [1, 1]} : vector<4x1200xbf16> to vector<4x896xbf16>
    %cst_45 = arith.constant dense<0.000000e+00> : vector<2x896xf32>
    %71 = tpu.matmul %69, %70, %cst_45 {dimension_numbers = #tpu.dot_dimension_numbers<[1], [0], [0], [1], [0, 0, 1, 1], [], []>} : vector<2x4xbf16>, vector<4x896xbf16>, vector<2x896xf32> -> vector<2x896xf32>
    %72 = arith.addf %67, %71 : vector<2x896xf32>
    %c14 = arith.constant 14 : index
    %c0_46 = arith.constant 0 : index
    %c0_47 = arith.constant 0 : index
    %73 = vector.load %arg3[%c14, %c0_46, %c0_47] : memref<27x2x4xbf16, #tpu.memory_space<vmem>>, vector<1x2x4xbf16>
    %74 = vector.shape_cast %73 : vector<1x2x4xbf16> to vector<2x4xbf16>
    %75 = vector.extract_strided_slice %1 {offsets = [0, 112], sizes = [4, 896], strides = [1, 1]} : vector<4x1200xbf16> to vector<4x896xbf16>
    %cst_48 = arith.constant dense<0.000000e+00> : vector<2x896xf32>
    %76 = tpu.matmul %74, %75, %cst_48 {dimension_numbers = #tpu.dot_dimension_numbers<[1], [0], [0], [1], [0, 0, 1, 1], [], []>} : vector<2x4xbf16>, vector<4x896xbf16>, vector<2x896xf32> -> vector<2x896xf32>
    %77 = arith.addf %72, %76 : vector<2x896xf32>
    %c15 = arith.constant 15 : index
    %c0_49 = arith.constant 0 : index
    %c0_50 = arith.constant 0 : index
    %78 = vector.load %arg3[%c15, %c0_49, %c0_50] : memref<27x2x4xbf16, #tpu.memory_space<vmem>>, vector<1x2x4xbf16>
    %79 = vector.shape_cast %78 : vector<1x2x4xbf16> to vector<2x4xbf16>
    %80 = vector.extract_strided_slice %1 {offsets = [0, 120], sizes = [4, 896], strides = [1, 1]} : vector<4x1200xbf16> to vector<4x896xbf16>
    %cst_51 = arith.constant dense<0.000000e+00> : vector<2x896xf32>
    %81 = tpu.matmul %79, %80, %cst_51 {dimension_numbers = #tpu.dot_dimension_numbers<[1], [0], [0], [1], [0, 0, 1, 1], [], []>} : vector<2x4xbf16>, vector<4x896xbf16>, vector<2x896xf32> -> vector<2x896xf32>
    %82 = arith.addf %77, %81 : vector<2x896xf32>
    %c16 = arith.constant 16 : index
    %c0_52 = arith.constant 0 : index
    %c0_53 = arith.constant 0 : index
    %83 = vector.load %arg3[%c16, %c0_52, %c0_53] : memref<27x2x4xbf16, #tpu.memory_space<vmem>>, vector<1x2x4xbf16>
    %84 = vector.shape_cast %83 : vector<1x2x4xbf16> to vector<2x4xbf16>
    %85 = vector.extract_strided_slice %1 {offsets = [0, 121], sizes = [4, 896], strides = [1, 1]} : vector<4x1200xbf16> to vector<4x896xbf16>
    %cst_54 = arith.constant dense<0.000000e+00> : vector<2x896xf32>
    %86 = tpu.matmul %84, %85, %cst_54 {dimension_numbers = #tpu.dot_dimension_numbers<[1], [0], [0], [1], [0, 0, 1, 1], [], []>} : vector<2x4xbf16>, vector<4x896xbf16>, vector<2x896xf32> -> vector<2x896xf32>
    %87 = arith.addf %82, %86 : vector<2x896xf32>
    %c17 = arith.constant 17 : index
    %c0_55 = arith.constant 0 : index
    %c0_56 = arith.constant 0 : index
    %88 = vector.load %arg3[%c17, %c0_55, %c0_56] : memref<27x2x4xbf16, #tpu.memory_space<vmem>>, vector<1x2x4xbf16>
    %89 = vector.shape_cast %88 : vector<1x2x4xbf16> to vector<2x4xbf16>
    %90 = vector.extract_strided_slice %1 {offsets = [0, 122], sizes = [4, 896], strides = [1, 1]} : vector<4x1200xbf16> to vector<4x896xbf16>
    %cst_57 = arith.constant dense<0.000000e+00> : vector<2x896xf32>
    %91 = tpu.matmul %89, %90, %cst_57 {dimension_numbers = #tpu.dot_dimension_numbers<[1], [0], [0], [1], [0, 0, 1, 1], [], []>} : vector<2x4xbf16>, vector<4x896xbf16>, vector<2x896xf32> -> vector<2x896xf32>
    %92 = arith.addf %87, %91 : vector<2x896xf32>
    %c18 = arith.constant 18 : index
    %c0_58 = arith.constant 0 : index
    %c0_59 = arith.constant 0 : index
    %93 = vector.load %arg3[%c18, %c0_58, %c0_59] : memref<27x2x4xbf16, #tpu.memory_space<vmem>>, vector<1x2x4xbf16>
    %94 = vector.shape_cast %93 : vector<1x2x4xbf16> to vector<2x4xbf16>
    %95 = vector.extract_strided_slice %1 {offsets = [0, 200], sizes = [4, 896], strides = [1, 1]} : vector<4x1200xbf16> to vector<4x896xbf16>
    %cst_60 = arith.constant dense<0.000000e+00> : vector<2x896xf32>
    %96 = tpu.matmul %94, %95, %cst_60 {dimension_numbers = #tpu.dot_dimension_numbers<[1], [0], [0], [1], [0, 0, 1, 1], [], []>} : vector<2x4xbf16>, vector<4x896xbf16>, vector<2x896xf32> -> vector<2x896xf32>
    %97 = arith.addf %92, %96 : vector<2x896xf32>
    %c19 = arith.constant 19 : index
    %c0_61 = arith.constant 0 : index
    %c0_62 = arith.constant 0 : index
    %98 = vector.load %arg3[%c19, %c0_61, %c0_62] : memref<27x2x4xbf16, #tpu.memory_space<vmem>>, vector<1x2x4xbf16>
    %99 = vector.shape_cast %98 : vector<1x2x4xbf16> to vector<2x4xbf16>
    %100 = vector.extract_strided_slice %1 {offsets = [0, 201], sizes = [4, 896], strides = [1, 1]} : vector<4x1200xbf16> to vector<4x896xbf16>
    %cst_63 = arith.constant dense<0.000000e+00> : vector<2x896xf32>
    %101 = tpu.matmul %99, %100, %cst_63 {dimension_numbers = #tpu.dot_dimension_numbers<[1], [0], [0], [1], [0, 0, 1, 1], [], []>} : vector<2x4xbf16>, vector<4x896xbf16>, vector<2x896xf32> -> vector<2x896xf32>
    %102 = arith.addf %97, %101 : vector<2x896xf32>
    %c20 = arith.constant 20 : index
    %c0_64 = arith.constant 0 : index
    %c0_65 = arith.constant 0 : index
    %103 = vector.load %arg3[%c20, %c0_64, %c0_65] : memref<27x2x4xbf16, #tpu.memory_space<vmem>>, vector<1x2x4xbf16>
    %104 = vector.shape_cast %103 : vector<1x2x4xbf16> to vector<2x4xbf16>
    %105 = vector.extract_strided_slice %1 {offsets = [0, 202], sizes = [4, 896], strides = [1, 1]} : vector<4x1200xbf16> to vector<4x896xbf16>
    %cst_66 = arith.constant dense<0.000000e+00> : vector<2x896xf32>
    %106 = tpu.matmul %104, %105, %cst_66 {dimension_numbers = #tpu.dot_dimension_numbers<[1], [0], [0], [1], [0, 0, 1, 1], [], []>} : vector<2x4xbf16>, vector<4x896xbf16>, vector<2x896xf32> -> vector<2x896xf32>
    %107 = arith.addf %102, %106 : vector<2x896xf32>
    %c21 = arith.constant 21 : index
    %c0_67 = arith.constant 0 : index
    %c0_68 = arith.constant 0 : index
    %108 = vector.load %arg3[%c21, %c0_67, %c0_68] : memref<27x2x4xbf16, #tpu.memory_space<vmem>>, vector<1x2x4xbf16>
    %109 = vector.shape_cast %108 : vector<1x2x4xbf16> to vector<2x4xbf16>
    %110 = vector.extract_strided_slice %1 {offsets = [0, 210], sizes = [4, 896], strides = [1, 1]} : vector<4x1200xbf16> to vector<4x896xbf16>
    %cst_69 = arith.constant dense<0.000000e+00> : vector<2x896xf32>
    %111 = tpu.matmul %109, %110, %cst_69 {dimension_numbers = #tpu.dot_dimension_numbers<[1], [0], [0], [1], [0, 0, 1, 1], [], []>} : vector<2x4xbf16>, vector<4x896xbf16>, vector<2x896xf32> -> vector<2x896xf32>
    %112 = arith.addf %107, %111 : vector<2x896xf32>
    %c22 = arith.constant 22 : index
    %c0_70 = arith.constant 0 : index
    %c0_71 = arith.constant 0 : index
    %113 = vector.load %arg3[%c22, %c0_70, %c0_71] : memref<27x2x4xbf16, #tpu.memory_space<vmem>>, vector<1x2x4xbf16>
    %114 = vector.shape_cast %113 : vector<1x2x4xbf16> to vector<2x4xbf16>
    %115 = vector.extract_strided_slice %1 {offsets = [0, 211], sizes = [4, 896], strides = [1, 1]} : vector<4x1200xbf16> to vector<4x896xbf16>
    %cst_72 = arith.constant dense<0.000000e+00> : vector<2x896xf32>
    %116 = tpu.matmul %114, %115, %cst_72 {dimension_numbers = #tpu.dot_dimension_numbers<[1], [0], [0], [1], [0, 0, 1, 1], [], []>} : vector<2x4xbf16>, vector<4x896xbf16>, vector<2x896xf32> -> vector<2x896xf32>
    %117 = arith.addf %112, %116 : vector<2x896xf32>
    %c23 = arith.constant 23 : index
    %c0_73 = arith.constant 0 : index
    %c0_74 = arith.constant 0 : index
    %118 = vector.load %arg3[%c23, %c0_73, %c0_74] : memref<27x2x4xbf16, #tpu.memory_space<vmem>>, vector<1x2x4xbf16>
    %119 = vector.shape_cast %118 : vector<1x2x4xbf16> to vector<2x4xbf16>
    %120 = vector.extract_strided_slice %1 {offsets = [0, 212], sizes = [4, 896], strides = [1, 1]} : vector<4x1200xbf16> to vector<4x896xbf16>
    %cst_75 = arith.constant dense<0.000000e+00> : vector<2x896xf32>
    %121 = tpu.matmul %119, %120, %cst_75 {dimension_numbers = #tpu.dot_dimension_numbers<[1], [0], [0], [1], [0, 0, 1, 1], [], []>} : vector<2x4xbf16>, vector<4x896xbf16>, vector<2x896xf32> -> vector<2x896xf32>
    %122 = arith.addf %117, %121 : vector<2x896xf32>
    %c24 = arith.constant 24 : index
    %c0_76 = arith.constant 0 : index
    %c0_77 = arith.constant 0 : index
    %123 = vector.load %arg3[%c24, %c0_76, %c0_77] : memref<27x2x4xbf16, #tpu.memory_space<vmem>>, vector<1x2x4xbf16>
    %124 = vector.shape_cast %123 : vector<1x2x4xbf16> to vector<2x4xbf16>
    %125 = vector.extract_strided_slice %1 {offsets = [0, 220], sizes = [4, 896], strides = [1, 1]} : vector<4x1200xbf16> to vector<4x896xbf16>
    %cst_78 = arith.constant dense<0.000000e+00> : vector<2x896xf32>
    %126 = tpu.matmul %124, %125, %cst_78 {dimension_numbers = #tpu.dot_dimension_numbers<[1], [0], [0], [1], [0, 0, 1, 1], [], []>} : vector<2x4xbf16>, vector<4x896xbf16>, vector<2x896xf32> -> vector<2x896xf32>
    %127 = arith.addf %122, %126 : vector<2x896xf32>
    %c25 = arith.constant 25 : index
    %c0_79 = arith.constant 0 : index
    %c0_80 = arith.constant 0 : index
    %128 = vector.load %arg3[%c25, %c0_79, %c0_80] : memref<27x2x4xbf16, #tpu.memory_space<vmem>>, vector<1x2x4xbf16>
    %129 = vector.shape_cast %128 : vector<1x2x4xbf16> to vector<2x4xbf16>
    %130 = vector.extract_strided_slice %1 {offsets = [0, 221], sizes = [4, 896], strides = [1, 1]} : vector<4x1200xbf16> to vector<4x896xbf16>
    %cst_81 = arith.constant dense<0.000000e+00> : vector<2x896xf32>
    %131 = tpu.matmul %129, %130, %cst_81 {dimension_numbers = #tpu.dot_dimension_numbers<[1], [0], [0], [1], [0, 0, 1, 1], [], []>} : vector<2x4xbf16>, vector<4x896xbf16>, vector<2x896xf32> -> vector<2x896xf32>
    %132 = arith.addf %127, %131 : vector<2x896xf32>
    %c26 = arith.constant 26 : index
    %c0_82 = arith.constant 0 : index
    %c0_83 = arith.constant 0 : index
    %133 = vector.load %arg3[%c26, %c0_82, %c0_83] : memref<27x2x4xbf16, #tpu.memory_space<vmem>>, vector<1x2x4xbf16>
    %134 = vector.shape_cast %133 : vector<1x2x4xbf16> to vector<2x4xbf16>
    %135 = vector.extract_strided_slice %1 {offsets = [0, 222], sizes = [4, 896], strides = [1, 1]} : vector<4x1200xbf16> to vector<4x896xbf16>
    %cst_84 = arith.constant dense<0.000000e+00> : vector<2x896xf32>
    %136 = tpu.matmul %134, %135, %cst_84 {dimension_numbers = #tpu.dot_dimension_numbers<[1], [0], [0], [1], [0, 0, 1, 1], [], []>} : vector<2x4xbf16>, vector<4x896xbf16>, vector<2x896xf32> -> vector<2x896xf32>
    %137 = arith.addf %132, %136 : vector<2x896xf32>
    %c0_85 = arith.constant 0 : index
    %c0_86 = arith.constant 0 : index
    %138 = vector.load %arg4[%c0_85, %c0_86] : memref<2x1xf32, #tpu.memory_space<vmem>>, vector<2x1xf32>
    %139 = vector.broadcast %138 : vector<2x1xf32> to vector<2x896xf32>
    %140 = arith.addf %137, %139 : vector<2x896xf32>
    %cst_87 = arith.constant 0.000000e+00 : f32
    %141 = vector.broadcast %cst_87 : f32 to vector<2x896xf32>
    %142 = arith.maximumf %140, %141 : vector<2x896xf32>
    %c0_88 = arith.constant 0 : index
    %c0_89 = arith.constant 0 : index
    %c0_90 = arith.constant 0 : index
    %c0_91 = arith.constant 0 : index
    %143 = vector.load %arg5[%c0_88, %c0_89, %c0_90, %c0_91] : memref<1x1x2x896xf32, #tpu.memory_space<vmem>>, vector<1x1x2x896xf32>
    %144 = vector.shape_cast %143 : vector<1x1x2x896xf32> to vector<2x896xf32>
    %145 = vector.shape_cast %142 : vector<2x896xf32> to vector<1x1x2x896xf32>
    tpu.vector_store %arg5[%c0_88, %c0_89, %c0_90, %c0_91], %145 {strides = array<i32>} : memref<1x1x2x896xf32, #tpu.memory_space<vmem>>, vector<1x1x2x896xf32>,
    return
  }
  func.func @transform_0(%arg0: i32, %arg1: i32) -> (i32, i32, i32, i32) {
    %c0_i32 = arith.constant 0 : i32
    %c0_i32_0 = arith.constant 0 : i32
    %c0_i32_1 = arith.constant 0 : i32
    return %arg0, %arg1, %c0_i32, %c0_i32_0 : i32, i32, i32, i32
  }
  func.func @transform_1(%arg0: i32, %arg1: i32) -> (i32, i32, i32) {
    %c0_i32 = arith.constant 0 : i32
    %c0_i32_0 = arith.constant 0 : i32
    %c0_i32_1 = arith.constant 0 : i32
    %c0_i32_2 = arith.constant 0 : i32
    return %c0_i32, %c0_i32_0, %c0_i32_1 : i32, i32, i32
  }
  func.func @transform_2(%arg0: i32, %arg1: i32) -> (i32, i32) {
    %c0_i32 = arith.constant 0 : i32
    %c0_i32_0 = arith.constant 0 : i32
    %c0_i32_1 = arith.constant 0 : i32
    return %c0_i32, %c0_i32_0 : i32, i32
  }
  func.func @transform_3(%arg0: i32, %arg1: i32) -> (i32, i32, i32, i32) {
    %c0_i32 = arith.constant 0 : i32
    %c0_i32_0 = arith.constant 0 : i32
    %c0_i32_1 = arith.constant 0 : i32
    return %arg0, %arg1, %c0_i32, %c0_i32_0 : i32, i32, i32, i32
  }
}

module attributes {stable_mosaic.version = 11 : i64} {
  func.func @_conv3d_taps_kernel(%arg0: i32, %arg1: i32, %arg2: memref<1x1x4x360xbf16, #tpu.memory_space<vmem>>, %arg3: memref<27x2x4xbf16, #tpu.memory_space<vmem>>, %arg4: memref<2x1xf32, #tpu.memory_space<vmem>>, %arg5: memref<1x1x2x256xf32, #tpu.memory_space<vmem>>) attributes {dimension_semantics = [#tpu.dimension_semantics<parallel>, #tpu.dimension_semantics<parallel>], iteration_bounds = array<i64: 2, 1>, scalar_prefetch = 0 : i64, scratch_operands = 0 : i64, tpu.core_type = #tpu.core_type<tc>, window_params = [{transform_indices = @transform_0, window_bounds = array<i64: 1, 1, 4, 360>}, {pipeline_mode = #tpu.pipeline_mode<synchronous>, transform_indices = @transform_1, window_bounds = array<i64: 27, 2, 4>}, {pipeline_mode = #tpu.pipeline_mode<synchronous>, transform_indices = @transform_2, window_bounds = array<i64: 2, 1>}, {transform_indices = @transform_3, window_bounds = array<i64: 1, 1, 2, 256>}]} {
    %c0 = arith.constant 0 : index
    %c0_0 = arith.constant 0 : index
    %c0_1 = arith.constant 0 : index
    %c0_2 = arith.constant 0 : index
    %0 = vector.load %arg2[%c0, %c0_0, %c0_1, %c0_2] : memref<1x1x4x360xbf16, #tpu.memory_space<vmem>>, vector<1x1x4x360xbf16>
    %1 = vector.shape_cast %0 : vector<1x1x4x360xbf16> to vector<4x360xbf16>
    %cst = arith.constant 0.000000e+00 : f32
    %2 = vector.broadcast %cst : f32 to vector<2x256xf32>
    %c0_3 = arith.constant 0 : index
    %c0_4 = arith.constant 0 : index
    %c0_5 = arith.constant 0 : index
    %3 = vector.load %arg3[%c0_3, %c0_4, %c0_5] : memref<27x2x4xbf16, #tpu.memory_space<vmem>>, vector<1x2x4xbf16>
    %4 = vector.shape_cast %3 : vector<1x2x4xbf16> to vector<2x4xbf16>
    %5 = vector.extract_strided_slice %1 {offsets = [0, 0], sizes = [4, 256], strides = [1, 1]} : vector<4x360xbf16> to vector<4x256xbf16>
    %cst_6 = arith.constant dense<0.000000e+00> : vector<2x256xf32>
    %6 = tpu.matmul %4, %5, %cst_6 {dimension_numbers = #tpu.dot_dimension_numbers<[1], [0], [0], [1], [0, 0, 1, 1], [], []>} : vector<2x4xbf16>, vector<4x256xbf16>, vector<2x256xf32> -> vector<2x256xf32>
    %7 = arith.addf %2, %6 : vector<2x256xf32>
    %c1 = arith.constant 1 : index
    %c0_7 = arith.constant 0 : index
    %c0_8 = arith.constant 0 : index
    %8 = vector.load %arg3[%c1, %c0_7, %c0_8] : memref<27x2x4xbf16, #tpu.memory_space<vmem>>, vector<1x2x4xbf16>
    %9 = vector.shape_cast %8 : vector<1x2x4xbf16> to vector<2x4xbf16>
    %10 = vector.extract_strided_slice %1 {offsets = [0, 1], sizes = [4, 256], strides = [1, 1]} : vector<4x360xbf16> to vector<4x256xbf16>
    %cst_9 = arith.constant dense<0.000000e+00> : vector<2x256xf32>
    %11 = tpu.matmul %9, %10, %cst_9 {dimension_numbers = #tpu.dot_dimension_numbers<[1], [0], [0], [1], [0, 0, 1, 1], [], []>} : vector<2x4xbf16>, vector<4x256xbf16>, vector<2x256xf32> -> vector<2x256xf32>
    %12 = arith.addf %7, %11 : vector<2x256xf32>
    %c2 = arith.constant 2 : index
    %c0_10 = arith.constant 0 : index
    %c0_11 = arith.constant 0 : index
    %13 = vector.load %arg3[%c2, %c0_10, %c0_11] : memref<27x2x4xbf16, #tpu.memory_space<vmem>>, vector<1x2x4xbf16>
    %14 = vector.shape_cast %13 : vector<1x2x4xbf16> to vector<2x4xbf16>
    %15 = vector.extract_strided_slice %1 {offsets = [0, 2], sizes = [4, 256], strides = [1, 1]} : vector<4x360xbf16> to vector<4x256xbf16>
    %cst_12 = arith.constant dense<0.000000e+00> : vector<2x256xf32>
    %16 = tpu.matmul %14, %15, %cst_12 {dimension_numbers = #tpu.dot_dimension_numbers<[1], [0], [0], [1], [0, 0, 1, 1], [], []>} : vector<2x4xbf16>, vector<4x256xbf16>, vector<2x256xf32> -> vector<2x256xf32>
    %17 = arith.addf %12, %16 : vector<2x256xf32>
    %c3 = arith.constant 3 : index
    %c0_13 = arith.constant 0 : index
    %c0_14 = arith.constant 0 : index
    %18 = vector.load %arg3[%c3, %c0_13, %c0_14] : memref<27x2x4xbf16, #tpu.memory_space<vmem>>, vector<1x2x4xbf16>
    %19 = vector.shape_cast %18 : vector<1x2x4xbf16> to vector<2x4xbf16>
    %20 = vector.extract_strided_slice %1 {offsets = [0, 6], sizes = [4, 256], strides = [1, 1]} : vector<4x360xbf16> to vector<4x256xbf16>
    %cst_15 = arith.constant dense<0.000000e+00> : vector<2x256xf32>
    %21 = tpu.matmul %19, %20, %cst_15 {dimension_numbers = #tpu.dot_dimension_numbers<[1], [0], [0], [1], [0, 0, 1, 1], [], []>} : vector<2x4xbf16>, vector<4x256xbf16>, vector<2x256xf32> -> vector<2x256xf32>
    %22 = arith.addf %17, %21 : vector<2x256xf32>
    %c4 = arith.constant 4 : index
    %c0_16 = arith.constant 0 : index
    %c0_17 = arith.constant 0 : index
    %23 = vector.load %arg3[%c4, %c0_16, %c0_17] : memref<27x2x4xbf16, #tpu.memory_space<vmem>>, vector<1x2x4xbf16>
    %24 = vector.shape_cast %23 : vector<1x2x4xbf16> to vector<2x4xbf16>
    %25 = vector.extract_strided_slice %1 {offsets = [0, 7], sizes = [4, 256], strides = [1, 1]} : vector<4x360xbf16> to vector<4x256xbf16>
    %cst_18 = arith.constant dense<0.000000e+00> : vector<2x256xf32>
    %26 = tpu.matmul %24, %25, %cst_18 {dimension_numbers = #tpu.dot_dimension_numbers<[1], [0], [0], [1], [0, 0, 1, 1], [], []>} : vector<2x4xbf16>, vector<4x256xbf16>, vector<2x256xf32> -> vector<2x256xf32>
    %27 = arith.addf %22, %26 : vector<2x256xf32>
    %c5 = arith.constant 5 : index
    %c0_19 = arith.constant 0 : index
    %c0_20 = arith.constant 0 : index
    %28 = vector.load %arg3[%c5, %c0_19, %c0_20] : memref<27x2x4xbf16, #tpu.memory_space<vmem>>, vector<1x2x4xbf16>
    %29 = vector.shape_cast %28 : vector<1x2x4xbf16> to vector<2x4xbf16>
    %30 = vector.extract_strided_slice %1 {offsets = [0, 8], sizes = [4, 256], strides = [1, 1]} : vector<4x360xbf16> to vector<4x256xbf16>
    %cst_21 = arith.constant dense<0.000000e+00> : vector<2x256xf32>
    %31 = tpu.matmul %29, %30, %cst_21 {dimension_numbers = #tpu.dot_dimension_numbers<[1], [0], [0], [1], [0, 0, 1, 1], [], []>} : vector<2x4xbf16>, vector<4x256xbf16>, vector<2x256xf32> -> vector<2x256xf32>
    %32 = arith.addf %27, %31 : vector<2x256xf32>
    %c6 = arith.constant 6 : index
    %c0_22 = arith.constant 0 : index
    %c0_23 = arith.constant 0 : index
    %33 = vector.load %arg3[%c6, %c0_22, %c0_23] : memref<27x2x4xbf16, #tpu.memory_space<vmem>>, vector<1x2x4xbf16>
    %34 = vector.shape_cast %33 : vector<1x2x4xbf16> to vector<2x4xbf16>
    %35 = vector.extract_strided_slice %1 {offsets = [0, 12], sizes = [4, 256], strides = [1, 1]} : vector<4x360xbf16> to vector<4x256xbf16>
    %cst_24 = arith.constant dense<0.000000e+00> : vector<2x256xf32>
    %36 = tpu.matmul %34, %35, %cst_24 {dimension_numbers = #tpu.dot_dimension_numbers<[1], [0], [0], [1], [0, 0, 1, 1], [], []>} : vector<2x4xbf16>, vector<4x256xbf16>, vector<2x256xf32> -> vector<2x256xf32>
    %37 = arith.addf %32, %36 : vector<2x256xf32>
    %c7 = arith.constant 7 : index
    %c0_25 = arith.constant 0 : index
    %c0_26 = arith.constant 0 : index
    %38 = vector.load %arg3[%c7, %c0_25, %c0_26] : memref<27x2x4xbf16, #tpu.memory_space<vmem>>, vector<1x2x4xbf16>
    %39 = vector.shape_cast %38 : vector<1x2x4xbf16> to vector<2x4xbf16>
    %40 = vector.extract_strided_slice %1 {offsets = [0, 13], sizes = [4, 256], strides = [1, 1]} : vector<4x360xbf16> to vector<4x256xbf16>
    %cst_27 = arith.constant dense<0.000000e+00> : vector<2x256xf32>
    %41 = tpu.matmul %39, %40, %cst_27 {dimension_numbers = #tpu.dot_dimension_numbers<[1], [0], [0], [1], [0, 0, 1, 1], [], []>} : vector<2x4xbf16>, vector<4x256xbf16>, vector<2x256xf32> -> vector<2x256xf32>
    %42 = arith.addf %37, %41 : vector<2x256xf32>
    %c8 = arith.constant 8 : index
    %c0_28 = arith.constant 0 : index
    %c0_29 = arith.constant 0 : index
    %43 = vector.load %arg3[%c8, %c0_28, %c0_29] : memref<27x2x4xbf16, #tpu.memory_space<vmem>>, vector<1x2x4xbf16>
    %44 = vector.shape_cast %43 : vector<1x2x4xbf16> to vector<2x4xbf16>
    %45 = vector.extract_strided_slice %1 {offsets = [0, 14], sizes = [4, 256], strides = [1, 1]} : vector<4x360xbf16> to vector<4x256xbf16>
    %cst_30 = arith.constant dense<0.000000e+00> : vector<2x256xf32>
    %46 = tpu.matmul %44, %45, %cst_30 {dimension_numbers = #tpu.dot_dimension_numbers<[1], [0], [0], [1], [0, 0, 1, 1], [], []>} : vector<2x4xbf16>, vector<4x256xbf16>, vector<2x256xf32> -> vector<2x256xf32>
    %47 = arith.addf %42, %46 : vector<2x256xf32>
    %c9 = arith.constant 9 : index
    %c0_31 = arith.constant 0 : index
    %c0_32 = arith.constant 0 : index
    %48 = vector.load %arg3[%c9, %c0_31, %c0_32] : memref<27x2x4xbf16, #tpu.memory_space<vmem>>, vector<1x2x4xbf16>
    %49 = vector.shape_cast %48 : vector<1x2x4xbf16> to vector<2x4xbf16>
    %50 = vector.extract_strided_slice %1 {offsets = [0, 36], sizes = [4, 256], strides = [1, 1]} : vector<4x360xbf16> to vector<4x256xbf16>
    %cst_33 = arith.constant dense<0.000000e+00> : vector<2x256xf32>
    %51 = tpu.matmul %49, %50, %cst_33 {dimension_numbers = #tpu.dot_dimension_numbers<[1], [0], [0], [1], [0, 0, 1, 1], [], []>} : vector<2x4xbf16>, vector<4x256xbf16>, vector<2x256xf32> -> vector<2x256xf32>
    %52 = arith.addf %47, %51 : vector<2x256xf32>
    %c10 = arith.constant 10 : index
    %c0_34 = arith.constant 0 : index
    %c0_35 = arith.constant 0 : index
    %53 = vector.load %arg3[%c10, %c0_34, %c0_35] : memref<27x2x4xbf16, #tpu.memory_space<vmem>>, vector<1x2x4xbf16>
    %54 = vector.shape_cast %53 : vector<1x2x4xbf16> to vector<2x4xbf16>
    %55 = vector.extract_strided_slice %1 {offsets = [0, 37], sizes = [4, 256], strides = [1, 1]} : vector<4x360xbf16> to vector<4x256xbf16>
    %cst_36 = arith.constant dense<0.000000e+00> : vector<2x256xf32>
    %56 = tpu.matmul %54, %55, %cst_36 {dimension_numbers = #tpu.dot_dimension_numbers<[1], [0], [0], [1], [0, 0, 1, 1], [], []>} : vector<2x4xbf16>, vector<4x256xbf16>, vector<2x256xf32> -> vector<2x256xf32>
    %57 = arith.addf %52, %56 : vector<2x256xf32>
    %c11 = arith.constant 11 : index
    %c0_37 = arith.constant 0 : index
    %c0_38 = arith.constant 0 : index
    %58 = vector.load %arg3[%c11, %c0_37, %c0_38] : memref<27x2x4xbf16, #tpu.memory_space<vmem>>, vector<1x2x4xbf16>
    %59 = vector.shape_cast %58 : vector<1x2x4xbf16> to vector<2x4xbf16>
    %60 = vector.extract_strided_slice %1 {offsets = [0, 38], sizes = [4, 256], strides = [1, 1]} : vector<4x360xbf16> to vector<4x256xbf16>
    %cst_39 = arith.constant dense<0.000000e+00> : vector<2x256xf32>
    %61 = tpu.matmul %59, %60, %cst_39 {dimension_numbers = #tpu.dot_dimension_numbers<[1], [0], [0], [1], [0, 0, 1, 1], [], []>} : vector<2x4xbf16>, vector<4x256xbf16>, vector<2x256xf32> -> vector<2x256xf32>
    %62 = arith.addf %57, %61 : vector<2x256xf32>
    %c12 = arith.constant 12 : index
    %c0_40 = arith.constant 0 : index
    %c0_41 = arith.constant 0 : index
    %63 = vector.load %arg3[%c12, %c0_40, %c0_41] : memref<27x2x4xbf16, #tpu.memory_space<vmem>>, vector<1x2x4xbf16>
    %64 = vector.shape_cast %63 : vector<1x2x4xbf16> to vector<2x4xbf16>
    %65 = vector.extract_strided_slice %1 {offsets = [0, 42], sizes = [4, 256], strides = [1, 1]} : vector<4x360xbf16> to vector<4x256xbf16>
    %cst_42 = arith.constant dense<0.000000e+00> : vector<2x256xf32>
    %66 = tpu.matmul %64, %65, %cst_42 {dimension_numbers = #tpu.dot_dimension_numbers<[1], [0], [0], [1], [0, 0, 1, 1], [], []>} : vector<2x4xbf16>, vector<4x256xbf16>, vector<2x256xf32> -> vector<2x256xf32>
    %67 = arith.addf %62, %66 : vector<2x256xf32>
    %c13 = arith.constant 13 : index
    %c0_43 = arith.constant 0 : index
    %c0_44 = arith.constant 0 : index
    %68 = vector.load %arg3[%c13, %c0_43, %c0_44] : memref<27x2x4xbf16, #tpu.memory_space<vmem>>, vector<1x2x4xbf16>
    %69 = vector.shape_cast %68 : vector<1x2x4xbf16> to vector<2x4xbf16>
    %70 = vector.extract_strided_slice %1 {offsets = [0, 43], sizes = [4, 256], strides = [1, 1]} : vector<4x360xbf16> to vector<4x256xbf16>
    %cst_45 = arith.constant dense<0.000000e+00> : vector<2x256xf32>
    %71 = tpu.matmul %69, %70, %cst_45 {dimension_numbers = #tpu.dot_dimension_numbers<[1], [0], [0], [1], [0, 0, 1, 1], [], []>} : vector<2x4xbf16>, vector<4x256xbf16>, vector<2x256xf32> -> vector<2x256xf32>
    %72 = arith.addf %67, %71 : vector<2x256xf32>
    %c14 = arith.constant 14 : index
    %c0_46 = arith.constant 0 : index
    %c0_47 = arith.constant 0 : index
    %73 = vector.load %arg3[%c14, %c0_46, %c0_47] : memref<27x2x4xbf16, #tpu.memory_space<vmem>>, vector<1x2x4xbf16>
    %74 = vector.shape_cast %73 : vector<1x2x4xbf16> to vector<2x4xbf16>
    %75 = vector.extract_strided_slice %1 {offsets = [0, 44], sizes = [4, 256], strides = [1, 1]} : vector<4x360xbf16> to vector<4x256xbf16>
    %cst_48 = arith.constant dense<0.000000e+00> : vector<2x256xf32>
    %76 = tpu.matmul %74, %75, %cst_48 {dimension_numbers = #tpu.dot_dimension_numbers<[1], [0], [0], [1], [0, 0, 1, 1], [], []>} : vector<2x4xbf16>, vector<4x256xbf16>, vector<2x256xf32> -> vector<2x256xf32>
    %77 = arith.addf %72, %76 : vector<2x256xf32>
    %c15 = arith.constant 15 : index
    %c0_49 = arith.constant 0 : index
    %c0_50 = arith.constant 0 : index
    %78 = vector.load %arg3[%c15, %c0_49, %c0_50] : memref<27x2x4xbf16, #tpu.memory_space<vmem>>, vector<1x2x4xbf16>
    %79 = vector.shape_cast %78 : vector<1x2x4xbf16> to vector<2x4xbf16>
    %80 = vector.extract_strided_slice %1 {offsets = [0, 48], sizes = [4, 256], strides = [1, 1]} : vector<4x360xbf16> to vector<4x256xbf16>
    %cst_51 = arith.constant dense<0.000000e+00> : vector<2x256xf32>
    %81 = tpu.matmul %79, %80, %cst_51 {dimension_numbers = #tpu.dot_dimension_numbers<[1], [0], [0], [1], [0, 0, 1, 1], [], []>} : vector<2x4xbf16>, vector<4x256xbf16>, vector<2x256xf32> -> vector<2x256xf32>
    %82 = arith.addf %77, %81 : vector<2x256xf32>
    %c16 = arith.constant 16 : index
    %c0_52 = arith.constant 0 : index
    %c0_53 = arith.constant 0 : index
    %83 = vector.load %arg3[%c16, %c0_52, %c0_53] : memref<27x2x4xbf16, #tpu.memory_space<vmem>>, vector<1x2x4xbf16>
    %84 = vector.shape_cast %83 : vector<1x2x4xbf16> to vector<2x4xbf16>
    %85 = vector.extract_strided_slice %1 {offsets = [0, 49], sizes = [4, 256], strides = [1, 1]} : vector<4x360xbf16> to vector<4x256xbf16>
    %cst_54 = arith.constant dense<0.000000e+00> : vector<2x256xf32>
    %86 = tpu.matmul %84, %85, %cst_54 {dimension_numbers = #tpu.dot_dimension_numbers<[1], [0], [0], [1], [0, 0, 1, 1], [], []>} : vector<2x4xbf16>, vector<4x256xbf16>, vector<2x256xf32> -> vector<2x256xf32>
    %87 = arith.addf %82, %86 : vector<2x256xf32>
    %c17 = arith.constant 17 : index
    %c0_55 = arith.constant 0 : index
    %c0_56 = arith.constant 0 : index
    %88 = vector.load %arg3[%c17, %c0_55, %c0_56] : memref<27x2x4xbf16, #tpu.memory_space<vmem>>, vector<1x2x4xbf16>
    %89 = vector.shape_cast %88 : vector<1x2x4xbf16> to vector<2x4xbf16>
    %90 = vector.extract_strided_slice %1 {offsets = [0, 50], sizes = [4, 256], strides = [1, 1]} : vector<4x360xbf16> to vector<4x256xbf16>
    %cst_57 = arith.constant dense<0.000000e+00> : vector<2x256xf32>
    %91 = tpu.matmul %89, %90, %cst_57 {dimension_numbers = #tpu.dot_dimension_numbers<[1], [0], [0], [1], [0, 0, 1, 1], [], []>} : vector<2x4xbf16>, vector<4x256xbf16>, vector<2x256xf32> -> vector<2x256xf32>
    %92 = arith.addf %87, %91 : vector<2x256xf32>
    %c18 = arith.constant 18 : index
    %c0_58 = arith.constant 0 : index
    %c0_59 = arith.constant 0 : index
    %93 = vector.load %arg3[%c18, %c0_58, %c0_59] : memref<27x2x4xbf16, #tpu.memory_space<vmem>>, vector<1x2x4xbf16>
    %94 = vector.shape_cast %93 : vector<1x2x4xbf16> to vector<2x4xbf16>
    %95 = vector.extract_strided_slice %1 {offsets = [0, 72], sizes = [4, 256], strides = [1, 1]} : vector<4x360xbf16> to vector<4x256xbf16>
    %cst_60 = arith.constant dense<0.000000e+00> : vector<2x256xf32>
    %96 = tpu.matmul %94, %95, %cst_60 {dimension_numbers = #tpu.dot_dimension_numbers<[1], [0], [0], [1], [0, 0, 1, 1], [], []>} : vector<2x4xbf16>, vector<4x256xbf16>, vector<2x256xf32> -> vector<2x256xf32>
    %97 = arith.addf %92, %96 : vector<2x256xf32>
    %c19 = arith.constant 19 : index
    %c0_61 = arith.constant 0 : index
    %c0_62 = arith.constant 0 : index
    %98 = vector.load %arg3[%c19, %c0_61, %c0_62] : memref<27x2x4xbf16, #tpu.memory_space<vmem>>, vector<1x2x4xbf16>
    %99 = vector.shape_cast %98 : vector<1x2x4xbf16> to vector<2x4xbf16>
    %100 = vector.extract_strided_slice %1 {offsets = [0, 73], sizes = [4, 256], strides = [1, 1]} : vector<4x360xbf16> to vector<4x256xbf16>
    %cst_63 = arith.constant dense<0.000000e+00> : vector<2x256xf32>
    %101 = tpu.matmul %99, %100, %cst_63 {dimension_numbers = #tpu.dot_dimension_numbers<[1], [0], [0], [1], [0, 0, 1, 1], [], []>} : vector<2x4xbf16>, vector<4x256xbf16>, vector<2x256xf32> -> vector<2x256xf32>
    %102 = arith.addf %97, %101 : vector<2x256xf32>
    %c20 = arith.constant 20 : index
    %c0_64 = arith.constant 0 : index
    %c0_65 = arith.constant 0 : index
    %103 = vector.load %arg3[%c20, %c0_64, %c0_65] : memref<27x2x4xbf16, #tpu.memory_space<vmem>>, vector<1x2x4xbf16>
    %104 = vector.shape_cast %103 : vector<1x2x4xbf16> to vector<2x4xbf16>
    %105 = vector.extract_strided_slice %1 {offsets = [0, 74], sizes = [4, 256], strides = [1, 1]} : vector<4x360xbf16> to vector<4x256xbf16>
    %cst_66 = arith.constant dense<0.000000e+00> : vector<2x256xf32>
    %106 = tpu.matmul %104, %105, %cst_66 {dimension_numbers = #tpu.dot_dimension_numbers<[1], [0], [0], [1], [0, 0, 1, 1], [], []>} : vector<2x4xbf16>, vector<4x256xbf16>, vector<2x256xf32> -> vector<2x256xf32>
    %107 = arith.addf %102, %106 : vector<2x256xf32>
    %c21 = arith.constant 21 : index
    %c0_67 = arith.constant 0 : index
    %c0_68 = arith.constant 0 : index
    %108 = vector.load %arg3[%c21, %c0_67, %c0_68] : memref<27x2x4xbf16, #tpu.memory_space<vmem>>, vector<1x2x4xbf16>
    %109 = vector.shape_cast %108 : vector<1x2x4xbf16> to vector<2x4xbf16>
    %110 = vector.extract_strided_slice %1 {offsets = [0, 78], sizes = [4, 256], strides = [1, 1]} : vector<4x360xbf16> to vector<4x256xbf16>
    %cst_69 = arith.constant dense<0.000000e+00> : vector<2x256xf32>
    %111 = tpu.matmul %109, %110, %cst_69 {dimension_numbers = #tpu.dot_dimension_numbers<[1], [0], [0], [1], [0, 0, 1, 1], [], []>} : vector<2x4xbf16>, vector<4x256xbf16>, vector<2x256xf32> -> vector<2x256xf32>
    %112 = arith.addf %107, %111 : vector<2x256xf32>
    %c22 = arith.constant 22 : index
    %c0_70 = arith.constant 0 : index
    %c0_71 = arith.constant 0 : index
    %113 = vector.load %arg3[%c22, %c0_70, %c0_71] : memref<27x2x4xbf16, #tpu.memory_space<vmem>>, vector<1x2x4xbf16>
    %114 = vector.shape_cast %113 : vector<1x2x4xbf16> to vector<2x4xbf16>
    %115 = vector.extract_strided_slice %1 {offsets = [0, 79], sizes = [4, 256], strides = [1, 1]} : vector<4x360xbf16> to vector<4x256xbf16>
    %cst_72 = arith.constant dense<0.000000e+00> : vector<2x256xf32>
    %116 = tpu.matmul %114, %115, %cst_72 {dimension_numbers = #tpu.dot_dimension_numbers<[1], [0], [0], [1], [0, 0, 1, 1], [], []>} : vector<2x4xbf16>, vector<4x256xbf16>, vector<2x256xf32> -> vector<2x256xf32>
    %117 = arith.addf %112, %116 : vector<2x256xf32>
    %c23 = arith.constant 23 : index
    %c0_73 = arith.constant 0 : index
    %c0_74 = arith.constant 0 : index
    %118 = vector.load %arg3[%c23, %c0_73, %c0_74] : memref<27x2x4xbf16, #tpu.memory_space<vmem>>, vector<1x2x4xbf16>
    %119 = vector.shape_cast %118 : vector<1x2x4xbf16> to vector<2x4xbf16>
    %120 = vector.extract_strided_slice %1 {offsets = [0, 80], sizes = [4, 256], strides = [1, 1]} : vector<4x360xbf16> to vector<4x256xbf16>
    %cst_75 = arith.constant dense<0.000000e+00> : vector<2x256xf32>
    %121 = tpu.matmul %119, %120, %cst_75 {dimension_numbers = #tpu.dot_dimension_numbers<[1], [0], [0], [1], [0, 0, 1, 1], [], []>} : vector<2x4xbf16>, vector<4x256xbf16>, vector<2x256xf32> -> vector<2x256xf32>
    %122 = arith.addf %117, %121 : vector<2x256xf32>
    %c24 = arith.constant 24 : index
    %c0_76 = arith.constant 0 : index
    %c0_77 = arith.constant 0 : index
    %123 = vector.load %arg3[%c24, %c0_76, %c0_77] : memref<27x2x4xbf16, #tpu.memory_space<vmem>>, vector<1x2x4xbf16>
    %124 = vector.shape_cast %123 : vector<1x2x4xbf16> to vector<2x4xbf16>
    %125 = vector.extract_strided_slice %1 {offsets = [0, 84], sizes = [4, 256], strides = [1, 1]} : vector<4x360xbf16> to vector<4x256xbf16>
    %cst_78 = arith.constant dense<0.000000e+00> : vector<2x256xf32>
    %126 = tpu.matmul %124, %125, %cst_78 {dimension_numbers = #tpu.dot_dimension_numbers<[1], [0], [0], [1], [0, 0, 1, 1], [], []>} : vector<2x4xbf16>, vector<4x256xbf16>, vector<2x256xf32> -> vector<2x256xf32>
    %127 = arith.addf %122, %126 : vector<2x256xf32>
    %c25 = arith.constant 25 : index
    %c0_79 = arith.constant 0 : index
    %c0_80 = arith.constant 0 : index
    %128 = vector.load %arg3[%c25, %c0_79, %c0_80] : memref<27x2x4xbf16, #tpu.memory_space<vmem>>, vector<1x2x4xbf16>
    %129 = vector.shape_cast %128 : vector<1x2x4xbf16> to vector<2x4xbf16>
    %130 = vector.extract_strided_slice %1 {offsets = [0, 85], sizes = [4, 256], strides = [1, 1]} : vector<4x360xbf16> to vector<4x256xbf16>
    %cst_81 = arith.constant dense<0.000000e+00> : vector<2x256xf32>
    %131 = tpu.matmul %129, %130, %cst_81 {dimension_numbers = #tpu.dot_dimension_numbers<[1], [0], [0], [1], [0, 0, 1, 1], [], []>} : vector<2x4xbf16>, vector<4x256xbf16>, vector<2x256xf32> -> vector<2x256xf32>
    %132 = arith.addf %127, %131 : vector<2x256xf32>
    %c26 = arith.constant 26 : index
    %c0_82 = arith.constant 0 : index
    %c0_83 = arith.constant 0 : index
    %133 = vector.load %arg3[%c26, %c0_82, %c0_83] : memref<27x2x4xbf16, #tpu.memory_space<vmem>>, vector<1x2x4xbf16>
    %134 = vector.shape_cast %133 : vector<1x2x4xbf16> to vector<2x4xbf16>
    %135 = vector.extract_strided_slice %1 {offsets = [0, 86], sizes = [4, 256], strides = [1, 1]} : vector<4x360xbf16> to vector<4x256xbf16>
    %cst_84 = arith.constant dense<0.000000e+00> : vector<2x256xf32>
    %136 = tpu.matmul %134, %135, %cst_84 {dimension_numbers = #tpu.dot_dimension_numbers<[1], [0], [0], [1], [0, 0, 1, 1], [], []>} : vector<2x4xbf16>, vector<4x256xbf16>, vector<2x256xf32> -> vector<2x256xf32>
    %137 = arith.addf %132, %136 : vector<2x256xf32>
    %c0_85 = arith.constant 0 : index
    %c0_86 = arith.constant 0 : index
    %138 = vector.load %arg4[%c0_85, %c0_86] : memref<2x1xf32, #tpu.memory_space<vmem>>, vector<2x1xf32>
    %139 = vector.broadcast %138 : vector<2x1xf32> to vector<2x256xf32>
    %140 = arith.addf %137, %139 : vector<2x256xf32>
    %cst_87 = arith.constant 0.000000e+00 : f32
    %141 = vector.broadcast %cst_87 : f32 to vector<2x256xf32>
    %142 = arith.maximumf %140, %141 : vector<2x256xf32>
    %c0_88 = arith.constant 0 : index
    %c0_89 = arith.constant 0 : index
    %c0_90 = arith.constant 0 : index
    %c0_91 = arith.constant 0 : index
    %143 = vector.load %arg5[%c0_88, %c0_89, %c0_90, %c0_91] : memref<1x1x2x256xf32, #tpu.memory_space<vmem>>, vector<1x1x2x256xf32>
    %144 = vector.shape_cast %143 : vector<1x1x2x256xf32> to vector<2x256xf32>
    %145 = vector.shape_cast %142 : vector<2x256xf32> to vector<1x1x2x256xf32>
    tpu.vector_store %arg5[%c0_88, %c0_89, %c0_90, %c0_91], %145 {strides = array<i32>} : memref<1x1x2x256xf32, #tpu.memory_space<vmem>>, vector<1x1x2x256xf32>,
    return
  }
  func.func @transform_0(%arg0: i32, %arg1: i32) -> (i32, i32, i32, i32) {
    %c0_i32 = arith.constant 0 : i32
    %c0_i32_0 = arith.constant 0 : i32
    %c0_i32_1 = arith.constant 0 : i32
    return %arg0, %arg1, %c0_i32, %c0_i32_0 : i32, i32, i32, i32
  }
  func.func @transform_1(%arg0: i32, %arg1: i32) -> (i32, i32, i32) {
    %c0_i32 = arith.constant 0 : i32
    %c0_i32_0 = arith.constant 0 : i32
    %c0_i32_1 = arith.constant 0 : i32
    %c0_i32_2 = arith.constant 0 : i32
    return %c0_i32, %c0_i32_0, %c0_i32_1 : i32, i32, i32
  }
  func.func @transform_2(%arg0: i32, %arg1: i32) -> (i32, i32) {
    %c0_i32 = arith.constant 0 : i32
    %c0_i32_0 = arith.constant 0 : i32
    %c0_i32_1 = arith.constant 0 : i32
    return %c0_i32, %c0_i32_0 : i32, i32
  }
  func.func @transform_3(%arg0: i32, %arg1: i32) -> (i32, i32, i32, i32) {
    %c0_i32 = arith.constant 0 : i32
    %c0_i32_0 = arith.constant 0 : i32
    %c0_i32_1 = arith.constant 0 : i32
    return %arg0, %arg1, %c0_i32, %c0_i32_0 : i32, i32, i32, i32
  }
}

module attributes {stable_mosaic.version = 11 : i64} {
  func.func @_conv3d_taps_kernel(%arg0: i32, %arg1: i32, %arg2: memref<1x1x4x176xbf16, #tpu.memory_space<vmem>>, %arg3: memref<27x4x4xbf16, #tpu.memory_space<vmem>>, %arg4: memref<4x1xf32, #tpu.memory_space<vmem>>, %arg5: memref<1x1x4x128xf32, #tpu.memory_space<vmem>>) attributes {dimension_semantics = [#tpu.dimension_semantics<parallel>, #tpu.dimension_semantics<parallel>], iteration_bounds = array<i64: 2, 1>, scalar_prefetch = 0 : i64, scratch_operands = 0 : i64, tpu.core_type = #tpu.core_type<tc>, window_params = [{transform_indices = @transform_0, window_bounds = array<i64: 1, 1, 4, 176>}, {pipeline_mode = #tpu.pipeline_mode<synchronous>, transform_indices = @transform_1, window_bounds = array<i64: 27, 4, 4>}, {pipeline_mode = #tpu.pipeline_mode<synchronous>, transform_indices = @transform_2, window_bounds = array<i64: 4, 1>}, {transform_indices = @transform_3, window_bounds = array<i64: 1, 1, 4, 128>}]} {
    %c0 = arith.constant 0 : index
    %c0_0 = arith.constant 0 : index
    %c0_1 = arith.constant 0 : index
    %c0_2 = arith.constant 0 : index
    %0 = vector.load %arg2[%c0, %c0_0, %c0_1, %c0_2] : memref<1x1x4x176xbf16, #tpu.memory_space<vmem>>, vector<1x1x4x176xbf16>
    %1 = vector.shape_cast %0 : vector<1x1x4x176xbf16> to vector<4x176xbf16>
    %cst = arith.constant 0.000000e+00 : f32
    %2 = vector.broadcast %cst : f32 to vector<4x128xf32>
    %c0_3 = arith.constant 0 : index
    %c0_4 = arith.constant 0 : index
    %c0_5 = arith.constant 0 : index
    %3 = vector.load %arg3[%c0_3, %c0_4, %c0_5] : memref<27x4x4xbf16, #tpu.memory_space<vmem>>, vector<1x4x4xbf16>
    %4 = vector.shape_cast %3 : vector<1x4x4xbf16> to vector<4x4xbf16>
    %5 = vector.extract_strided_slice %1 {offsets = [0, 0], sizes = [4, 128], strides = [1, 1]} : vector<4x176xbf16> to vector<4x128xbf16>
    %cst_6 = arith.constant dense<0.000000e+00> : vector<4x128xf32>
    %6 = tpu.matmul %4, %5, %cst_6 {dimension_numbers = #tpu.dot_dimension_numbers<[1], [0], [0], [1], [0, 0, 1, 1], [], []>} : vector<4x4xbf16>, vector<4x128xbf16>, vector<4x128xf32> -> vector<4x128xf32>
    %7 = arith.addf %2, %6 : vector<4x128xf32>
    %c1 = arith.constant 1 : index
    %c0_7 = arith.constant 0 : index
    %c0_8 = arith.constant 0 : index
    %8 = vector.load %arg3[%c1, %c0_7, %c0_8] : memref<27x4x4xbf16, #tpu.memory_space<vmem>>, vector<1x4x4xbf16>
    %9 = vector.shape_cast %8 : vector<1x4x4xbf16> to vector<4x4xbf16>
    %10 = vector.extract_strided_slice %1 {offsets = [0, 1], sizes = [4, 128], strides = [1, 1]} : vector<4x176xbf16> to vector<4x128xbf16>
    %cst_9 = arith.constant dense<0.000000e+00> : vector<4x128xf32>
    %11 = tpu.matmul %9, %10, %cst_9 {dimension_numbers = #tpu.dot_dimension_numbers<[1], [0], [0], [1], [0, 0, 1, 1], [], []>} : vector<4x4xbf16>, vector<4x128xbf16>, vector<4x128xf32> -> vector<4x128xf32>
    %12 = arith.addf %7, %11 : vector<4x128xf32>
    %c2 = arith.constant 2 : index
    %c0_10 = arith.constant 0 : index
    %c0_11 = arith.constant 0 : index
    %13 = vector.load %arg3[%c2, %c0_10, %c0_11] : memref<27x4x4xbf16, #tpu.memory_space<vmem>>, vector<1x4x4xbf16>
    %14 = vector.shape_cast %13 : vector<1x4x4xbf16> to vector<4x4xbf16>
    %15 = vector.extract_strided_slice %1 {offsets = [0, 2], sizes = [4, 128], strides = [1, 1]} : vector<4x176xbf16> to vector<4x128xbf16>
    %cst_12 = arith.constant dense<0.000000e+00> : vector<4x128xf32>
    %16 = tpu.matmul %14, %15, %cst_12 {dimension_numbers = #tpu.dot_dimension_numbers<[1], [0], [0], [1], [0, 0, 1, 1], [], []>} : vector<4x4xbf16>, vector<4x128xbf16>, vector<4x128xf32> -> vector<4x128xf32>
    %17 = arith.addf %12, %16 : vector<4x128xf32>
    %c3 = arith.constant 3 : index
    %c0_13 = arith.constant 0 : index
    %c0_14 = arith.constant 0 : index
    %18 = vector.load %arg3[%c3, %c0_13, %c0_14] : memref<27x4x4xbf16, #tpu.memory_space<vmem>>, vector<1x4x4xbf16>
    %19 = vector.shape_cast %18 : vector<1x4x4xbf16> to vector<4x4xbf16>
    %20 = vector.extract_strided_slice %1 {offsets = [0, 4], sizes = [4, 128], strides = [1, 1]} : vector<4x176xbf16> to vector<4x128xbf16>
    %cst_15 = arith.constant dense<0.000000e+00> : vector<4x128xf32>
    %21 = tpu.matmul %19, %20, %cst_15 {dimension_numbers = #tpu.dot_dimension_numbers<[1], [0], [0], [1], [0, 0, 1, 1], [], []>} : vector<4x4xbf16>, vector<4x128xbf16>, vector<4x128xf32> -> vector<4x128xf32>
    %22 = arith.addf %17, %21 : vector<4x128xf32>
    %c4 = arith.constant 4 : index
    %c0_16 = arith.constant 0 : index
    %c0_17 = arith.constant 0 : index
    %23 = vector.load %arg3[%c4, %c0_16, %c0_17] : memref<27x4x4xbf16, #tpu.memory_space<vmem>>, vector<1x4x4xbf16>
    %24 = vector.shape_cast %23 : vector<1x4x4xbf16> to vector<4x4xbf16>
    %25 = vector.extract_strided_slice %1 {offsets = [0, 5], sizes = [4, 128], strides = [1, 1]} : vector<4x176xbf16> to vector<4x128xbf16>
    %cst_18 = arith.constant dense<0.000000e+00> : vector<4x128xf32>
    %26 = tpu.matmul %24, %25, %cst_18 {dimension_numbers = #tpu.dot_dimension_numbers<[1], [0], [0], [1], [0, 0, 1, 1], [], []>} : vector<4x4xbf16>, vector<4x128xbf16>, vector<4x128xf32> -> vector<4x128xf32>
    %27 = arith.addf %22, %26 : vector<4x128xf32>
    %c5 = arith.constant 5 : index
    %c0_19 = arith.constant 0 : index
    %c0_20 = arith.constant 0 : index
    %28 = vector.load %arg3[%c5, %c0_19, %c0_20] : memref<27x4x4xbf16, #tpu.memory_space<vmem>>, vector<1x4x4xbf16>
    %29 = vector.shape_cast %28 : vector<1x4x4xbf16> to vector<4x4xbf16>
    %30 = vector.extract_strided_slice %1 {offsets = [0, 6], sizes = [4, 128], strides = [1, 1]} : vector<4x176xbf16> to vector<4x128xbf16>
    %cst_21 = arith.constant dense<0.000000e+00> : vector<4x128xf32>
    %31 = tpu.matmul %29, %30, %cst_21 {dimension_numbers = #tpu.dot_dimension_numbers<[1], [0], [0], [1], [0, 0, 1, 1], [], []>} : vector<4x4xbf16>, vector<4x128xbf16>, vector<4x128xf32> -> vector<4x128xf32>
    %32 = arith.addf %27, %31 : vector<4x128xf32>
    %c6 = arith.constant 6 : index
    %c0_22 = arith.constant 0 : index
    %c0_23 = arith.constant 0 : index
    %33 = vector.load %arg3[%c6, %c0_22, %c0_23] : memref<27x4x4xbf16, #tpu.memory_space<vmem>>, vector<1x4x4xbf16>
    %34 = vector.shape_cast %33 : vector<1x4x4xbf16> to vector<4x4xbf16>
    %35 = vector.extract_strided_slice %1 {offsets = [0, 8], sizes = [4, 128], strides = [1, 1]} : vector<4x176xbf16> to vector<4x128xbf16>
    %cst_24 = arith.constant dense<0.000000e+00> : vector<4x128xf32>
    %36 = tpu.matmul %34, %35, %cst_24 {dimension_numbers = #tpu.dot_dimension_numbers<[1], [0], [0], [1], [0, 0, 1, 1], [], []>} : vector<4x4xbf16>, vector<4x128xbf16>, vector<4x128xf32> -> vector<4x128xf32>
    %37 = arith.addf %32, %36 : vector<4x128xf32>
    %c7 = arith.constant 7 : index
    %c0_25 = arith.constant 0 : index
    %c0_26 = arith.constant 0 : index
    %38 = vector.load %arg3[%c7, %c0_25, %c0_26] : memref<27x4x4xbf16, #tpu.memory_space<vmem>>, vector<1x4x4xbf16>
    %39 = vector.shape_cast %38 : vector<1x4x4xbf16> to vector<4x4xbf16>
    %40 = vector.extract_strided_slice %1 {offsets = [0, 9], sizes = [4, 128], strides = [1, 1]} : vector<4x176xbf16> to vector<4x128xbf16>
    %cst_27 = arith.constant dense<0.000000e+00> : vector<4x128xf32>
    %41 = tpu.matmul %39, %40, %cst_27 {dimension_numbers = #tpu.dot_dimension_numbers<[1], [0], [0], [1], [0, 0, 1, 1], [], []>} : vector<4x4xbf16>, vector<4x128xbf16>, vector<4x128xf32> -> vector<4x128xf32>
    %42 = arith.addf %37, %41 : vector<4x128xf32>
    %c8 = arith.constant 8 : index
    %c0_28 = arith.constant 0 : index
    %c0_29 = arith.constant 0 : index
    %43 = vector.load %arg3[%c8, %c0_28, %c0_29] : memref<27x4x4xbf16, #tpu.memory_space<vmem>>, vector<1x4x4xbf16>
    %44 = vector.shape_cast %43 : vector<1x4x4xbf16> to vector<4x4xbf16>
    %45 = vector.extract_strided_slice %1 {offsets = [0, 10], sizes = [4, 128], strides = [1, 1]} : vector<4x176xbf16> to vector<4x128xbf16>
    %cst_30 = arith.constant dense<0.000000e+00> : vector<4x128xf32>
    %46 = tpu.matmul %44, %45, %cst_30 {dimension_numbers = #tpu.dot_dimension_numbers<[1], [0], [0], [1], [0, 0, 1, 1], [], []>} : vector<4x4xbf16>, vector<4x128xbf16>, vector<4x128xf32> -> vector<4x128xf32>
    %47 = arith.addf %42, %46 : vector<4x128xf32>
    %c9 = arith.constant 9 : index
    %c0_31 = arith.constant 0 : index
    %c0_32 = arith.constant 0 : index
    %48 = vector.load %arg3[%c9, %c0_31, %c0_32] : memref<27x4x4xbf16, #tpu.memory_space<vmem>>, vector<1x4x4xbf16>
    %49 = vector.shape_cast %48 : vector<1x4x4xbf16> to vector<4x4xbf16>
    %50 = vector.extract_strided_slice %1 {offsets = [0, 16], sizes = [4, 128], strides = [1, 1]} : vector<4x176xbf16> to vector<4x128xbf16>
    %cst_33 = arith.constant dense<0.000000e+00> : vector<4x128xf32>
    %51 = tpu.matmul %49, %50, %cst_33 {dimension_numbers = #tpu.dot_dimension_numbers<[1], [0], [0], [1], [0, 0, 1, 1], [], []>} : vector<4x4xbf16>, vector<4x128xbf16>, vector<4x128xf32> -> vector<4x128xf32>
    %52 = arith.addf %47, %51 : vector<4x128xf32>
    %c10 = arith.constant 10 : index
    %c0_34 = arith.constant 0 : index
    %c0_35 = arith.constant 0 : index
    %53 = vector.load %arg3[%c10, %c0_34, %c0_35] : memref<27x4x4xbf16, #tpu.memory_space<vmem>>, vector<1x4x4xbf16>
    %54 = vector.shape_cast %53 : vector<1x4x4xbf16> to vector<4x4xbf16>
    %55 = vector.extract_strided_slice %1 {offsets = [0, 17], sizes = [4, 128], strides = [1, 1]} : vector<4x176xbf16> to vector<4x128xbf16>
    %cst_36 = arith.constant dense<0.000000e+00> : vector<4x128xf32>
    %56 = tpu.matmul %54, %55, %cst_36 {dimension_numbers = #tpu.dot_dimension_numbers<[1], [0], [0], [1], [0, 0, 1, 1], [], []>} : vector<4x4xbf16>, vector<4x128xbf16>, vector<4x128xf32> -> vector<4x128xf32>
    %57 = arith.addf %52, %56 : vector<4x128xf32>
    %c11 = arith.constant 11 : index
    %c0_37 = arith.constant 0 : index
    %c0_38 = arith.constant 0 : index
    %58 = vector.load %arg3[%c11, %c0_37, %c0_38] : memref<27x4x4xbf16, #tpu.memory_space<vmem>>, vector<1x4x4xbf16>
    %59 = vector.shape_cast %58 : vector<1x4x4xbf16> to vector<4x4xbf16>
    %60 = vector.extract_strided_slice %1 {offsets = [0, 18], sizes = [4, 128], strides = [1, 1]} : vector<4x176xbf16> to vector<4x128xbf16>
    %cst_39 = arith.constant dense<0.000000e+00> : vector<4x128xf32>
    %61 = tpu.matmul %59, %60, %cst_39 {dimension_numbers = #tpu.dot_dimension_numbers<[1], [0], [0], [1], [0, 0, 1, 1], [], []>} : vector<4x4xbf16>, vector<4x128xbf16>, vector<4x128xf32> -> vector<4x128xf32>
    %62 = arith.addf %57, %61 : vector<4x128xf32>
    %c12 = arith.constant 12 : index
    %c0_40 = arith.constant 0 : index
    %c0_41 = arith.constant 0 : index
    %63 = vector.load %arg3[%c12, %c0_40, %c0_41] : memref<27x4x4xbf16, #tpu.memory_space<vmem>>, vector<1x4x4xbf16>
    %64 = vector.shape_cast %63 : vector<1x4x4xbf16> to vector<4x4xbf16>
    %65 = vector.extract_strided_slice %1 {offsets = [0, 20], sizes = [4, 128], strides = [1, 1]} : vector<4x176xbf16> to vector<4x128xbf16>
    %cst_42 = arith.constant dense<0.000000e+00> : vector<4x128xf32>
    %66 = tpu.matmul %64, %65, %cst_42 {dimension_numbers = #tpu.dot_dimension_numbers<[1], [0], [0], [1], [0, 0, 1, 1], [], []>} : vector<4x4xbf16>, vector<4x128xbf16>, vector<4x128xf32> -> vector<4x128xf32>
    %67 = arith.addf %62, %66 : vector<4x128xf32>
    %c13 = arith.constant 13 : index
    %c0_43 = arith.constant 0 : index
    %c0_44 = arith.constant 0 : index
    %68 = vector.load %arg3[%c13, %c0_43, %c0_44] : memref<27x4x4xbf16, #tpu.memory_space<vmem>>, vector<1x4x4xbf16>
    %69 = vector.shape_cast %68 : vector<1x4x4xbf16> to vector<4x4xbf16>
    %70 = vector.extract_strided_slice %1 {offsets = [0, 21], sizes = [4, 128], strides = [1, 1]} : vector<4x176xbf16> to vector<4x128xbf16>
    %cst_45 = arith.constant dense<0.000000e+00> : vector<4x128xf32>
    %71 = tpu.matmul %69, %70, %cst_45 {dimension_numbers = #tpu.dot_dimension_numbers<[1], [0], [0], [1], [0, 0, 1, 1], [], []>} : vector<4x4xbf16>, vector<4x128xbf16>, vector<4x128xf32> -> vector<4x128xf32>
    %72 = arith.addf %67, %71 : vector<4x128xf32>
    %c14 = arith.constant 14 : index
    %c0_46 = arith.constant 0 : index
    %c0_47 = arith.constant 0 : index
    %73 = vector.load %arg3[%c14, %c0_46, %c0_47] : memref<27x4x4xbf16, #tpu.memory_space<vmem>>, vector<1x4x4xbf16>
    %74 = vector.shape_cast %73 : vector<1x4x4xbf16> to vector<4x4xbf16>
    %75 = vector.extract_strided_slice %1 {offsets = [0, 22], sizes = [4, 128], strides = [1, 1]} : vector<4x176xbf16> to vector<4x128xbf16>
    %cst_48 = arith.constant dense<0.000000e+00> : vector<4x128xf32>
    %76 = tpu.matmul %74, %75, %cst_48 {dimension_numbers = #tpu.dot_dimension_numbers<[1], [0], [0], [1], [0, 0, 1, 1], [], []>} : vector<4x4xbf16>, vector<4x128xbf16>, vector<4x128xf32> -> vector<4x128xf32>
    %77 = arith.addf %72, %76 : vector<4x128xf32>
    %c15 = arith.constant 15 : index
    %c0_49 = arith.constant 0 : index
    %c0_50 = arith.constant 0 : index
    %78 = vector.load %arg3[%c15, %c0_49, %c0_50] : memref<27x4x4xbf16, #tpu.memory_space<vmem>>, vector<1x4x4xbf16>
    %79 = vector.shape_cast %78 : vector<1x4x4xbf16> to vector<4x4xbf16>
    %80 = vector.extract_strided_slice %1 {offsets = [0, 24], sizes = [4, 128], strides = [1, 1]} : vector<4x176xbf16> to vector<4x128xbf16>
    %cst_51 = arith.constant dense<0.000000e+00> : vector<4x128xf32>
    %81 = tpu.matmul %79, %80, %cst_51 {dimension_numbers = #tpu.dot_dimension_numbers<[1], [0], [0], [1], [0, 0, 1, 1], [], []>} : vector<4x4xbf16>, vector<4x128xbf16>, vector<4x128xf32> -> vector<4x128xf32>
    %82 = arith.addf %77, %81 : vector<4x128xf32>
    %c16 = arith.constant 16 : index
    %c0_52 = arith.constant 0 : index
    %c0_53 = arith.constant 0 : index
    %83 = vector.load %arg3[%c16, %c0_52, %c0_53] : memref<27x4x4xbf16, #tpu.memory_space<vmem>>, vector<1x4x4xbf16>
    %84 = vector.shape_cast %83 : vector<1x4x4xbf16> to vector<4x4xbf16>
    %85 = vector.extract_strided_slice %1 {offsets = [0, 25], sizes = [4, 128], strides = [1, 1]} : vector<4x176xbf16> to vector<4x128xbf16>
    %cst_54 = arith.constant dense<0.000000e+00> : vector<4x128xf32>
    %86 = tpu.matmul %84, %85, %cst_54 {dimension_numbers = #tpu.dot_dimension_numbers<[1], [0], [0], [1], [0, 0, 1, 1], [], []>} : vector<4x4xbf16>, vector<4x128xbf16>, vector<4x128xf32> -> vector<4x128xf32>
    %87 = arith.addf %82, %86 : vector<4x128xf32>
    %c17 = arith.constant 17 : index
    %c0_55 = arith.constant 0 : index
    %c0_56 = arith.constant 0 : index
    %88 = vector.load %arg3[%c17, %c0_55, %c0_56] : memref<27x4x4xbf16, #tpu.memory_space<vmem>>, vector<1x4x4xbf16>
    %89 = vector.shape_cast %88 : vector<1x4x4xbf16> to vector<4x4xbf16>
    %90 = vector.extract_strided_slice %1 {offsets = [0, 26], sizes = [4, 128], strides = [1, 1]} : vector<4x176xbf16> to vector<4x128xbf16>
    %cst_57 = arith.constant dense<0.000000e+00> : vector<4x128xf32>
    %91 = tpu.matmul %89, %90, %cst_57 {dimension_numbers = #tpu.dot_dimension_numbers<[1], [0], [0], [1], [0, 0, 1, 1], [], []>} : vector<4x4xbf16>, vector<4x128xbf16>, vector<4x128xf32> -> vector<4x128xf32>
    %92 = arith.addf %87, %91 : vector<4x128xf32>
    %c18 = arith.constant 18 : index
    %c0_58 = arith.constant 0 : index
    %c0_59 = arith.constant 0 : index
    %93 = vector.load %arg3[%c18, %c0_58, %c0_59] : memref<27x4x4xbf16, #tpu.memory_space<vmem>>, vector<1x4x4xbf16>
    %94 = vector.shape_cast %93 : vector<1x4x4xbf16> to vector<4x4xbf16>
    %95 = vector.extract_strided_slice %1 {offsets = [0, 32], sizes = [4, 128], strides = [1, 1]} : vector<4x176xbf16> to vector<4x128xbf16>
    %cst_60 = arith.constant dense<0.000000e+00> : vector<4x128xf32>
    %96 = tpu.matmul %94, %95, %cst_60 {dimension_numbers = #tpu.dot_dimension_numbers<[1], [0], [0], [1], [0, 0, 1, 1], [], []>} : vector<4x4xbf16>, vector<4x128xbf16>, vector<4x128xf32> -> vector<4x128xf32>
    %97 = arith.addf %92, %96 : vector<4x128xf32>
    %c19 = arith.constant 19 : index
    %c0_61 = arith.constant 0 : index
    %c0_62 = arith.constant 0 : index
    %98 = vector.load %arg3[%c19, %c0_61, %c0_62] : memref<27x4x4xbf16, #tpu.memory_space<vmem>>, vector<1x4x4xbf16>
    %99 = vector.shape_cast %98 : vector<1x4x4xbf16> to vector<4x4xbf16>
    %100 = vector.extract_strided_slice %1 {offsets = [0, 33], sizes = [4, 128], strides = [1, 1]} : vector<4x176xbf16> to vector<4x128xbf16>
    %cst_63 = arith.constant dense<0.000000e+00> : vector<4x128xf32>
    %101 = tpu.matmul %99, %100, %cst_63 {dimension_numbers = #tpu.dot_dimension_numbers<[1], [0], [0], [1], [0, 0, 1, 1], [], []>} : vector<4x4xbf16>, vector<4x128xbf16>, vector<4x128xf32> -> vector<4x128xf32>
    %102 = arith.addf %97, %101 : vector<4x128xf32>
    %c20 = arith.constant 20 : index
    %c0_64 = arith.constant 0 : index
    %c0_65 = arith.constant 0 : index
    %103 = vector.load %arg3[%c20, %c0_64, %c0_65] : memref<27x4x4xbf16, #tpu.memory_space<vmem>>, vector<1x4x4xbf16>
    %104 = vector.shape_cast %103 : vector<1x4x4xbf16> to vector<4x4xbf16>
    %105 = vector.extract_strided_slice %1 {offsets = [0, 34], sizes = [4, 128], strides = [1, 1]} : vector<4x176xbf16> to vector<4x128xbf16>
    %cst_66 = arith.constant dense<0.000000e+00> : vector<4x128xf32>
    %106 = tpu.matmul %104, %105, %cst_66 {dimension_numbers = #tpu.dot_dimension_numbers<[1], [0], [0], [1], [0, 0, 1, 1], [], []>} : vector<4x4xbf16>, vector<4x128xbf16>, vector<4x128xf32> -> vector<4x128xf32>
    %107 = arith.addf %102, %106 : vector<4x128xf32>
    %c21 = arith.constant 21 : index
    %c0_67 = arith.constant 0 : index
    %c0_68 = arith.constant 0 : index
    %108 = vector.load %arg3[%c21, %c0_67, %c0_68] : memref<27x4x4xbf16, #tpu.memory_space<vmem>>, vector<1x4x4xbf16>
    %109 = vector.shape_cast %108 : vector<1x4x4xbf16> to vector<4x4xbf16>
    %110 = vector.extract_strided_slice %1 {offsets = [0, 36], sizes = [4, 128], strides = [1, 1]} : vector<4x176xbf16> to vector<4x128xbf16>
    %cst_69 = arith.constant dense<0.000000e+00> : vector<4x128xf32>
    %111 = tpu.matmul %109, %110, %cst_69 {dimension_numbers = #tpu.dot_dimension_numbers<[1], [0], [0], [1], [0, 0, 1, 1], [], []>} : vector<4x4xbf16>, vector<4x128xbf16>, vector<4x128xf32> -> vector<4x128xf32>
    %112 = arith.addf %107, %111 : vector<4x128xf32>
    %c22 = arith.constant 22 : index
    %c0_70 = arith.constant 0 : index
    %c0_71 = arith.constant 0 : index
    %113 = vector.load %arg3[%c22, %c0_70, %c0_71] : memref<27x4x4xbf16, #tpu.memory_space<vmem>>, vector<1x4x4xbf16>
    %114 = vector.shape_cast %113 : vector<1x4x4xbf16> to vector<4x4xbf16>
    %115 = vector.extract_strided_slice %1 {offsets = [0, 37], sizes = [4, 128], strides = [1, 1]} : vector<4x176xbf16> to vector<4x128xbf16>
    %cst_72 = arith.constant dense<0.000000e+00> : vector<4x128xf32>
    %116 = tpu.matmul %114, %115, %cst_72 {dimension_numbers = #tpu.dot_dimension_numbers<[1], [0], [0], [1], [0, 0, 1, 1], [], []>} : vector<4x4xbf16>, vector<4x128xbf16>, vector<4x128xf32> -> vector<4x128xf32>
    %117 = arith.addf %112, %116 : vector<4x128xf32>
    %c23 = arith.constant 23 : index
    %c0_73 = arith.constant 0 : index
    %c0_74 = arith.constant 0 : index
    %118 = vector.load %arg3[%c23, %c0_73, %c0_74] : memref<27x4x4xbf16, #tpu.memory_space<vmem>>, vector<1x4x4xbf16>
    %119 = vector.shape_cast %118 : vector<1x4x4xbf16> to vector<4x4xbf16>
    %120 = vector.extract_strided_slice %1 {offsets = [0, 38], sizes = [4, 128], strides = [1, 1]} : vector<4x176xbf16> to vector<4x128xbf16>
    %cst_75 = arith.constant dense<0.000000e+00> : vector<4x128xf32>
    %121 = tpu.matmul %119, %120, %cst_75 {dimension_numbers = #tpu.dot_dimension_numbers<[1], [0], [0], [1], [0, 0, 1, 1], [], []>} : vector<4x4xbf16>, vector<4x128xbf16>, vector<4x128xf32> -> vector<4x128xf32>
    %122 = arith.addf %117, %121 : vector<4x128xf32>
    %c24 = arith.constant 24 : index
    %c0_76 = arith.constant 0 : index
    %c0_77 = arith.constant 0 : index
    %123 = vector.load %arg3[%c24, %c0_76, %c0_77] : memref<27x4x4xbf16, #tpu.memory_space<vmem>>, vector<1x4x4xbf16>
    %124 = vector.shape_cast %123 : vector<1x4x4xbf16> to vector<4x4xbf16>
    %125 = vector.extract_strided_slice %1 {offsets = [0, 40], sizes = [4, 128], strides = [1, 1]} : vector<4x176xbf16> to vector<4x128xbf16>
    %cst_78 = arith.constant dense<0.000000e+00> : vector<4x128xf32>
    %126 = tpu.matmul %124, %125, %cst_78 {dimension_numbers = #tpu.dot_dimension_numbers<[1], [0], [0], [1], [0, 0, 1, 1], [], []>} : vector<4x4xbf16>, vector<4x128xbf16>, vector<4x128xf32> -> vector<4x128xf32>
    %127 = arith.addf %122, %126 : vector<4x128xf32>
    %c25 = arith.constant 25 : index
    %c0_79 = arith.constant 0 : index
    %c0_80 = arith.constant 0 : index
    %128 = vector.load %arg3[%c25, %c0_79, %c0_80] : memref<27x4x4xbf16, #tpu.memory_space<vmem>>, vector<1x4x4xbf16>
    %129 = vector.shape_cast %128 : vector<1x4x4xbf16> to vector<4x4xbf16>
    %130 = vector.extract_strided_slice %1 {offsets = [0, 41], sizes = [4, 128], strides = [1, 1]} : vector<4x176xbf16> to vector<4x128xbf16>
    %cst_81 = arith.constant dense<0.000000e+00> : vector<4x128xf32>
    %131 = tpu.matmul %129, %130, %cst_81 {dimension_numbers = #tpu.dot_dimension_numbers<[1], [0], [0], [1], [0, 0, 1, 1], [], []>} : vector<4x4xbf16>, vector<4x128xbf16>, vector<4x128xf32> -> vector<4x128xf32>
    %132 = arith.addf %127, %131 : vector<4x128xf32>
    %c26 = arith.constant 26 : index
    %c0_82 = arith.constant 0 : index
    %c0_83 = arith.constant 0 : index
    %133 = vector.load %arg3[%c26, %c0_82, %c0_83] : memref<27x4x4xbf16, #tpu.memory_space<vmem>>, vector<1x4x4xbf16>
    %134 = vector.shape_cast %133 : vector<1x4x4xbf16> to vector<4x4xbf16>
    %135 = vector.extract_strided_slice %1 {offsets = [0, 42], sizes = [4, 128], strides = [1, 1]} : vector<4x176xbf16> to vector<4x128xbf16>
    %cst_84 = arith.constant dense<0.000000e+00> : vector<4x128xf32>
    %136 = tpu.matmul %134, %135, %cst_84 {dimension_numbers = #tpu.dot_dimension_numbers<[1], [0], [0], [1], [0, 0, 1, 1], [], []>} : vector<4x4xbf16>, vector<4x128xbf16>, vector<4x128xf32> -> vector<4x128xf32>
    %137 = arith.addf %132, %136 : vector<4x128xf32>
    %c0_85 = arith.constant 0 : index
    %c0_86 = arith.constant 0 : index
    %138 = vector.load %arg4[%c0_85, %c0_86] : memref<4x1xf32, #tpu.memory_space<vmem>>, vector<4x1xf32>
    %139 = vector.broadcast %138 : vector<4x1xf32> to vector<4x128xf32>
    %140 = arith.addf %137, %139 : vector<4x128xf32>
    %cst_87 = arith.constant 0.000000e+00 : f32
    %141 = vector.broadcast %cst_87 : f32 to vector<4x128xf32>
    %142 = arith.maximumf %140, %141 : vector<4x128xf32>
    %c0_88 = arith.constant 0 : index
    %c0_89 = arith.constant 0 : index
    %c0_90 = arith.constant 0 : index
    %c0_91 = arith.constant 0 : index
    %143 = vector.load %arg5[%c0_88, %c0_89, %c0_90, %c0_91] : memref<1x1x4x128xf32, #tpu.memory_space<vmem>>, vector<1x1x4x128xf32>
    %144 = vector.shape_cast %143 : vector<1x1x4x128xf32> to vector<4x128xf32>
    %145 = vector.shape_cast %142 : vector<4x128xf32> to vector<1x1x4x128xf32>
    tpu.vector_store %arg5[%c0_88, %c0_89, %c0_90, %c0_91], %145 {strides = array<i32>} : memref<1x1x4x128xf32, #tpu.memory_space<vmem>>, vector<1x1x4x128xf32>,
    return
  }
  func.func @transform_0(%arg0: i32, %arg1: i32) -> (i32, i32, i32, i32) {
    %c0_i32 = arith.constant 0 : i32
    %c0_i32_0 = arith.constant 0 : i32
    %c0_i32_1 = arith.constant 0 : i32
    return %arg0, %arg1, %c0_i32, %c0_i32_0 : i32, i32, i32, i32
  }
  func.func @transform_1(%arg0: i32, %arg1: i32) -> (i32, i32, i32) {
    %c0_i32 = arith.constant 0 : i32
    %c0_i32_0 = arith.constant 0 : i32
    %c0_i32_1 = arith.constant 0 : i32
    %c0_i32_2 = arith.constant 0 : i32
    return %c0_i32, %c0_i32_0, %c0_i32_1 : i32, i32, i32
  }
  func.func @transform_2(%arg0: i32, %arg1: i32) -> (i32, i32) {
    %c0_i32 = arith.constant 0 : i32
    %c0_i32_0 = arith.constant 0 : i32
    %c0_i32_1 = arith.constant 0 : i32
    return %c0_i32, %c0_i32_0 : i32, i32
  }
  func.func @transform_3(%arg0: i32, %arg1: i32) -> (i32, i32, i32, i32) {
    %c0_i32 = arith.constant 0 : i32
    %c0_i32_0 = arith.constant 0 : i32
    %c0_i32_1 = arith.constant 0 : i32
    return %arg0, %arg1, %c0_i32, %c0_i32_0 : i32, i32, i32, i32
  }
}

module attributes {stable_mosaic.version = 11 : i64} {
  func.func @_conv3d_taps_kernel(%arg0: i32, %arg1: i32, %arg2: memref<1x1x8x1200xbf16, #tpu.memory_space<vmem>>, %arg3: memref<27x8x8xbf16, #tpu.memory_space<vmem>>, %arg4: memref<8x1xf32, #tpu.memory_space<vmem>>, %arg5: memref<1x1x8x896xf32, #tpu.memory_space<vmem>>) attributes {dimension_semantics = [#tpu.dimension_semantics<parallel>, #tpu.dimension_semantics<parallel>], iteration_bounds = array<i64: 2, 1>, scalar_prefetch = 0 : i64, scratch_operands = 0 : i64, tpu.core_type = #tpu.core_type<tc>, window_params = [{transform_indices = @transform_0, window_bounds = array<i64: 1, 1, 8, 1200>}, {pipeline_mode = #tpu.pipeline_mode<synchronous>, transform_indices = @transform_1, window_bounds = array<i64: 27, 8, 8>}, {pipeline_mode = #tpu.pipeline_mode<synchronous>, transform_indices = @transform_2, window_bounds = array<i64: 8, 1>}, {transform_indices = @transform_3, window_bounds = array<i64: 1, 1, 8, 896>}]} {
    %c0 = arith.constant 0 : index
    %c0_0 = arith.constant 0 : index
    %c0_1 = arith.constant 0 : index
    %c0_2 = arith.constant 0 : index
    %0 = vector.load %arg2[%c0, %c0_0, %c0_1, %c0_2] : memref<1x1x8x1200xbf16, #tpu.memory_space<vmem>>, vector<1x1x8x1200xbf16>
    %1 = vector.shape_cast %0 : vector<1x1x8x1200xbf16> to vector<8x1200xbf16>
    %cst = arith.constant 0.000000e+00 : f32
    %2 = vector.broadcast %cst : f32 to vector<8x896xf32>
    %c0_3 = arith.constant 0 : index
    %c0_4 = arith.constant 0 : index
    %c0_5 = arith.constant 0 : index
    %3 = vector.load %arg3[%c0_3, %c0_4, %c0_5] : memref<27x8x8xbf16, #tpu.memory_space<vmem>>, vector<1x8x8xbf16>
    %4 = vector.shape_cast %3 : vector<1x8x8xbf16> to vector<8x8xbf16>
    %5 = vector.extract_strided_slice %1 {offsets = [0, 0], sizes = [8, 896], strides = [1, 1]} : vector<8x1200xbf16> to vector<8x896xbf16>
    %cst_6 = arith.constant dense<0.000000e+00> : vector<8x896xf32>
    %6 = tpu.matmul %4, %5, %cst_6 {dimension_numbers = #tpu.dot_dimension_numbers<[1], [0], [0], [1], [0, 0, 1, 1], [], []>} : vector<8x8xbf16>, vector<8x896xbf16>, vector<8x896xf32> -> vector<8x896xf32>
    %7 = arith.addf %2, %6 : vector<8x896xf32>
    %c1 = arith.constant 1 : index
    %c0_7 = arith.constant 0 : index
    %c0_8 = arith.constant 0 : index
    %8 = vector.load %arg3[%c1, %c0_7, %c0_8] : memref<27x8x8xbf16, #tpu.memory_space<vmem>>, vector<1x8x8xbf16>
    %9 = vector.shape_cast %8 : vector<1x8x8xbf16> to vector<8x8xbf16>
    %10 = vector.extract_strided_slice %1 {offsets = [0, 1], sizes = [8, 896], strides = [1, 1]} : vector<8x1200xbf16> to vector<8x896xbf16>
    %cst_9 = arith.constant dense<0.000000e+00> : vector<8x896xf32>
    %11 = tpu.matmul %9, %10, %cst_9 {dimension_numbers = #tpu.dot_dimension_numbers<[1], [0], [0], [1], [0, 0, 1, 1], [], []>} : vector<8x8xbf16>, vector<8x896xbf16>, vector<8x896xf32> -> vector<8x896xf32>
    %12 = arith.addf %7, %11 : vector<8x896xf32>
    %c2 = arith.constant 2 : index
    %c0_10 = arith.constant 0 : index
    %c0_11 = arith.constant 0 : index
    %13 = vector.load %arg3[%c2, %c0_10, %c0_11] : memref<27x8x8xbf16, #tpu.memory_space<vmem>>, vector<1x8x8xbf16>
    %14 = vector.shape_cast %13 : vector<1x8x8xbf16> to vector<8x8xbf16>
    %15 = vector.extract_strided_slice %1 {offsets = [0, 2], sizes = [8, 896], strides = [1, 1]} : vector<8x1200xbf16> to vector<8x896xbf16>
    %cst_12 = arith.constant dense<0.000000e+00> : vector<8x896xf32>
    %16 = tpu.matmul %14, %15, %cst_12 {dimension_numbers = #tpu.dot_dimension_numbers<[1], [0], [0], [1], [0, 0, 1, 1], [], []>} : vector<8x8xbf16>, vector<8x896xbf16>, vector<8x896xf32> -> vector<8x896xf32>
    %17 = arith.addf %12, %16 : vector<8x896xf32>
    %c3 = arith.constant 3 : index
    %c0_13 = arith.constant 0 : index
    %c0_14 = arith.constant 0 : index
    %18 = vector.load %arg3[%c3, %c0_13, %c0_14] : memref<27x8x8xbf16, #tpu.memory_space<vmem>>, vector<1x8x8xbf16>
    %19 = vector.shape_cast %18 : vector<1x8x8xbf16> to vector<8x8xbf16>
    %20 = vector.extract_strided_slice %1 {offsets = [0, 10], sizes = [8, 896], strides = [1, 1]} : vector<8x1200xbf16> to vector<8x896xbf16>
    %cst_15 = arith.constant dense<0.000000e+00> : vector<8x896xf32>
    %21 = tpu.matmul %19, %20, %cst_15 {dimension_numbers = #tpu.dot_dimension_numbers<[1], [0], [0], [1], [0, 0, 1, 1], [], []>} : vector<8x8xbf16>, vector<8x896xbf16>, vector<8x896xf32> -> vector<8x896xf32>
    %22 = arith.addf %17, %21 : vector<8x896xf32>
    %c4 = arith.constant 4 : index
    %c0_16 = arith.constant 0 : index
    %c0_17 = arith.constant 0 : index
    %23 = vector.load %arg3[%c4, %c0_16, %c0_17] : memref<27x8x8xbf16, #tpu.memory_space<vmem>>, vector<1x8x8xbf16>
    %24 = vector.shape_cast %23 : vector<1x8x8xbf16> to vector<8x8xbf16>
    %25 = vector.extract_strided_slice %1 {offsets = [0, 11], sizes = [8, 896], strides = [1, 1]} : vector<8x1200xbf16> to vector<8x896xbf16>
    %cst_18 = arith.constant dense<0.000000e+00> : vector<8x896xf32>
    %26 = tpu.matmul %24, %25, %cst_18 {dimension_numbers = #tpu.dot_dimension_numbers<[1], [0], [0], [1], [0, 0, 1, 1], [], []>} : vector<8x8xbf16>, vector<8x896xbf16>, vector<8x896xf32> -> vector<8x896xf32>
    %27 = arith.addf %22, %26 : vector<8x896xf32>
    %c5 = arith.constant 5 : index
    %c0_19 = arith.constant 0 : index
    %c0_20 = arith.constant 0 : index
    %28 = vector.load %arg3[%c5, %c0_19, %c0_20] : memref<27x8x8xbf16, #tpu.memory_space<vmem>>, vector<1x8x8xbf16>
    %29 = vector.shape_cast %28 : vector<1x8x8xbf16> to vector<8x8xbf16>
    %30 = vector.extract_strided_slice %1 {offsets = [0, 12], sizes = [8, 896], strides = [1, 1]} : vector<8x1200xbf16> to vector<8x896xbf16>
    %cst_21 = arith.constant dense<0.000000e+00> : vector<8x896xf32>
    %31 = tpu.matmul %29, %30, %cst_21 {dimension_numbers = #tpu.dot_dimension_numbers<[1], [0], [0], [1], [0, 0, 1, 1], [], []>} : vector<8x8xbf16>, vector<8x896xbf16>, vector<8x896xf32> -> vector<8x896xf32>
    %32 = arith.addf %27, %31 : vector<8x896xf32>
    %c6 = arith.constant 6 : index
    %c0_22 = arith.constant 0 : index
    %c0_23 = arith.constant 0 : index
    %33 = vector.load %arg3[%c6, %c0_22, %c0_23] : memref<27x8x8xbf16, #tpu.memory_space<vmem>>, vector<1x8x8xbf16>
    %34 = vector.shape_cast %33 : vector<1x8x8xbf16> to vector<8x8xbf16>
    %35 = vector.extract_strided_slice %1 {offsets = [0, 20], sizes = [8, 896], strides = [1, 1]} : vector<8x1200xbf16> to vector<8x896xbf16>
    %cst_24 = arith.constant dense<0.000000e+00> : vector<8x896xf32>
    %36 = tpu.matmul %34, %35, %cst_24 {dimension_numbers = #tpu.dot_dimension_numbers<[1], [0], [0], [1], [0, 0, 1, 1], [], []>} : vector<8x8xbf16>, vector<8x896xbf16>, vector<8x896xf32> -> vector<8x896xf32>
    %37 = arith.addf %32, %36 : vector<8x896xf32>
    %c7 = arith.constant 7 : index
    %c0_25 = arith.constant 0 : index
    %c0_26 = arith.constant 0 : index
    %38 = vector.load %arg3[%c7, %c0_25, %c0_26] : memref<27x8x8xbf16, #tpu.memory_space<vmem>>, vector<1x8x8xbf16>
    %39 = vector.shape_cast %38 : vector<1x8x8xbf16> to vector<8x8xbf16>
    %40 = vector.extract_strided_slice %1 {offsets = [0, 21], sizes = [8, 896], strides = [1, 1]} : vector<8x1200xbf16> to vector<8x896xbf16>
    %cst_27 = arith.constant dense<0.000000e+00> : vector<8x896xf32>
    %41 = tpu.matmul %39, %40, %cst_27 {dimension_numbers = #tpu.dot_dimension_numbers<[1], [0], [0], [1], [0, 0, 1, 1], [], []>} : vector<8x8xbf16>, vector<8x896xbf16>, vector<8x896xf32> -> vector<8x896xf32>
    %42 = arith.addf %37, %41 : vector<8x896xf32>
    %c8 = arith.constant 8 : index
    %c0_28 = arith.constant 0 : index
    %c0_29 = arith.constant 0 : index
    %43 = vector.load %arg3[%c8, %c0_28, %c0_29] : memref<27x8x8xbf16, #tpu.memory_space<vmem>>, vector<1x8x8xbf16>
    %44 = vector.shape_cast %43 : vector<1x8x8xbf16> to vector<8x8xbf16>
    %45 = vector.extract_strided_slice %1 {offsets = [0, 22], sizes = [8, 896], strides = [1, 1]} : vector<8x1200xbf16> to vector<8x896xbf16>
    %cst_30 = arith.constant dense<0.000000e+00> : vector<8x896xf32>
    %46 = tpu.matmul %44, %45, %cst_30 {dimension_numbers = #tpu.dot_dimension_numbers<[1], [0], [0], [1], [0, 0, 1, 1], [], []>} : vector<8x8xbf16>, vector<8x896xbf16>, vector<8x896xf32> -> vector<8x896xf32>
    %47 = arith.addf %42, %46 : vector<8x896xf32>
    %c9 = arith.constant 9 : index
    %c0_31 = arith.constant 0 : index
    %c0_32 = arith.constant 0 : index
    %48 = vector.load %arg3[%c9, %c0_31, %c0_32] : memref<27x8x8xbf16, #tpu.memory_space<vmem>>, vector<1x8x8xbf16>
    %49 = vector.shape_cast %48 : vector<1x8x8xbf16> to vector<8x8xbf16>
    %50 = vector.extract_strided_slice %1 {offsets = [0, 100], sizes = [8, 896], strides = [1, 1]} : vector<8x1200xbf16> to vector<8x896xbf16>
    %cst_33 = arith.constant dense<0.000000e+00> : vector<8x896xf32>
    %51 = tpu.matmul %49, %50, %cst_33 {dimension_numbers = #tpu.dot_dimension_numbers<[1], [0], [0], [1], [0, 0, 1, 1], [], []>} : vector<8x8xbf16>, vector<8x896xbf16>, vector<8x896xf32> -> vector<8x896xf32>
    %52 = arith.addf %47, %51 : vector<8x896xf32>
    %c10 = arith.constant 10 : index
    %c0_34 = arith.constant 0 : index
    %c0_35 = arith.constant 0 : index
    %53 = vector.load %arg3[%c10, %c0_34, %c0_35] : memref<27x8x8xbf16, #tpu.memory_space<vmem>>, vector<1x8x8xbf16>
    %54 = vector.shape_cast %53 : vector<1x8x8xbf16> to vector<8x8xbf16>
    %55 = vector.extract_strided_slice %1 {offsets = [0, 101], sizes = [8, 896], strides = [1, 1]} : vector<8x1200xbf16> to vector<8x896xbf16>
    %cst_36 = arith.constant dense<0.000000e+00> : vector<8x896xf32>
    %56 = tpu.matmul %54, %55, %cst_36 {dimension_numbers = #tpu.dot_dimension_numbers<[1], [0], [0], [1], [0, 0, 1, 1], [], []>} : vector<8x8xbf16>, vector<8x896xbf16>, vector<8x896xf32> -> vector<8x896xf32>
    %57 = arith.addf %52, %56 : vector<8x896xf32>
    %c11 = arith.constant 11 : index
    %c0_37 = arith.constant 0 : index
    %c0_38 = arith.constant 0 : index
    %58 = vector.load %arg3[%c11, %c0_37, %c0_38] : memref<27x8x8xbf16, #tpu.memory_space<vmem>>, vector<1x8x8xbf16>
    %59 = vector.shape_cast %58 : vector<1x8x8xbf16> to vector<8x8xbf16>
    %60 = vector.extract_strided_slice %1 {offsets = [0, 102], sizes = [8, 896], strides = [1, 1]} : vector<8x1200xbf16> to vector<8x896xbf16>
    %cst_39 = arith.constant dense<0.000000e+00> : vector<8x896xf32>
    %61 = tpu.matmul %59, %60, %cst_39 {dimension_numbers = #tpu.dot_dimension_numbers<[1], [0], [0], [1], [0, 0, 1, 1], [], []>} : vector<8x8xbf16>, vector<8x896xbf16>, vector<8x896xf32> -> vector<8x896xf32>
    %62 = arith.addf %57, %61 : vector<8x896xf32>
    %c12 = arith.constant 12 : index
    %c0_40 = arith.constant 0 : index
    %c0_41 = arith.constant 0 : index
    %63 = vector.load %arg3[%c12, %c0_40, %c0_41] : memref<27x8x8xbf16, #tpu.memory_space<vmem>>, vector<1x8x8xbf16>
    %64 = vector.shape_cast %63 : vector<1x8x8xbf16> to vector<8x8xbf16>
    %65 = vector.extract_strided_slice %1 {offsets = [0, 110], sizes = [8, 896], strides = [1, 1]} : vector<8x1200xbf16> to vector<8x896xbf16>
    %cst_42 = arith.constant dense<0.000000e+00> : vector<8x896xf32>
    %66 = tpu.matmul %64, %65, %cst_42 {dimension_numbers = #tpu.dot_dimension_numbers<[1], [0], [0], [1], [0, 0, 1, 1], [], []>} : vector<8x8xbf16>, vector<8x896xbf16>, vector<8x896xf32> -> vector<8x896xf32>
    %67 = arith.addf %62, %66 : vector<8x896xf32>
    %c13 = arith.constant 13 : index
    %c0_43 = arith.constant 0 : index
    %c0_44 = arith.constant 0 : index
    %68 = vector.load %arg3[%c13, %c0_43, %c0_44] : memref<27x8x8xbf16, #tpu.memory_space<vmem>>, vector<1x8x8xbf16>
    %69 = vector.shape_cast %68 : vector<1x8x8xbf16> to vector<8x8xbf16>
    %70 = vector.extract_strided_slice %1 {offsets = [0, 111], sizes = [8, 896], strides = [1, 1]} : vector<8x1200xbf16> to vector<8x896xbf16>
    %cst_45 = arith.constant dense<0.000000e+00> : vector<8x896xf32>
    %71 = tpu.matmul %69, %70, %cst_45 {dimension_numbers = #tpu.dot_dimension_numbers<[1], [0], [0], [1], [0, 0, 1, 1], [], []>} : vector<8x8xbf16>, vector<8x896xbf16>, vector<8x896xf32> -> vector<8x896xf32>
    %72 = arith.addf %67, %71 : vector<8x896xf32>
    %c14 = arith.constant 14 : index
    %c0_46 = arith.constant 0 : index
    %c0_47 = arith.constant 0 : index
    %73 = vector.load %arg3[%c14, %c0_46, %c0_47] : memref<27x8x8xbf16, #tpu.memory_space<vmem>>, vector<1x8x8xbf16>
    %74 = vector.shape_cast %73 : vector<1x8x8xbf16> to vector<8x8xbf16>
    %75 = vector.extract_strided_slice %1 {offsets = [0, 112], sizes = [8, 896], strides = [1, 1]} : vector<8x1200xbf16> to vector<8x896xbf16>
    %cst_48 = arith.constant dense<0.000000e+00> : vector<8x896xf32>
    %76 = tpu.matmul %74, %75, %cst_48 {dimension_numbers = #tpu.dot_dimension_numbers<[1], [0], [0], [1], [0, 0, 1, 1], [], []>} : vector<8x8xbf16>, vector<8x896xbf16>, vector<8x896xf32> -> vector<8x896xf32>
    %77 = arith.addf %72, %76 : vector<8x896xf32>
    %c15 = arith.constant 15 : index
    %c0_49 = arith.constant 0 : index
    %c0_50 = arith.constant 0 : index
    %78 = vector.load %arg3[%c15, %c0_49, %c0_50] : memref<27x8x8xbf16, #tpu.memory_space<vmem>>, vector<1x8x8xbf16>
    %79 = vector.shape_cast %78 : vector<1x8x8xbf16> to vector<8x8xbf16>
    %80 = vector.extract_strided_slice %1 {offsets = [0, 120], sizes = [8, 896], strides = [1, 1]} : vector<8x1200xbf16> to vector<8x896xbf16>
    %cst_51 = arith.constant dense<0.000000e+00> : vector<8x896xf32>
    %81 = tpu.matmul %79, %80, %cst_51 {dimension_numbers = #tpu.dot_dimension_numbers<[1], [0], [0], [1], [0, 0, 1, 1], [], []>} : vector<8x8xbf16>, vector<8x896xbf16>, vector<8x896xf32> -> vector<8x896xf32>
    %82 = arith.addf %77, %81 : vector<8x896xf32>
    %c16 = arith.constant 16 : index
    %c0_52 = arith.constant 0 : index
    %c0_53 = arith.constant 0 : index
    %83 = vector.load %arg3[%c16, %c0_52, %c0_53] : memref<27x8x8xbf16, #tpu.memory_space<vmem>>, vector<1x8x8xbf16>
    %84 = vector.shape_cast %83 : vector<1x8x8xbf16> to vector<8x8xbf16>
    %85 = vector.extract_strided_slice %1 {offsets = [0, 121], sizes = [8, 896], strides = [1, 1]} : vector<8x1200xbf16> to vector<8x896xbf16>
    %cst_54 = arith.constant dense<0.000000e+00> : vector<8x896xf32>
    %86 = tpu.matmul %84, %85, %cst_54 {dimension_numbers = #tpu.dot_dimension_numbers<[1], [0], [0], [1], [0, 0, 1, 1], [], []>} : vector<8x8xbf16>, vector<8x896xbf16>, vector<8x896xf32> -> vector<8x896xf32>
    %87 = arith.addf %82, %86 : vector<8x896xf32>
    %c17 = arith.constant 17 : index
    %c0_55 = arith.constant 0 : index
    %c0_56 = arith.constant 0 : index
    %88 = vector.load %arg3[%c17, %c0_55, %c0_56] : memref<27x8x8xbf16, #tpu.memory_space<vmem>>, vector<1x8x8xbf16>
    %89 = vector.shape_cast %88 : vector<1x8x8xbf16> to vector<8x8xbf16>
    %90 = vector.extract_strided_slice %1 {offsets = [0, 122], sizes = [8, 896], strides = [1, 1]} : vector<8x1200xbf16> to vector<8x896xbf16>
    %cst_57 = arith.constant dense<0.000000e+00> : vector<8x896xf32>
    %91 = tpu.matmul %89, %90, %cst_57 {dimension_numbers = #tpu.dot_dimension_numbers<[1], [0], [0], [1], [0, 0, 1, 1], [], []>} : vector<8x8xbf16>, vector<8x896xbf16>, vector<8x896xf32> -> vector<8x896xf32>
    %92 = arith.addf %87, %91 : vector<8x896xf32>
    %c18 = arith.constant 18 : index
    %c0_58 = arith.constant 0 : index
    %c0_59 = arith.constant 0 : index
    %93 = vector.load %arg3[%c18, %c0_58, %c0_59] : memref<27x8x8xbf16, #tpu.memory_space<vmem>>, vector<1x8x8xbf16>
    %94 = vector.shape_cast %93 : vector<1x8x8xbf16> to vector<8x8xbf16>
    %95 = vector.extract_strided_slice %1 {offsets = [0, 200], sizes = [8, 896], strides = [1, 1]} : vector<8x1200xbf16> to vector<8x896xbf16>
    %cst_60 = arith.constant dense<0.000000e+00> : vector<8x896xf32>
    %96 = tpu.matmul %94, %95, %cst_60 {dimension_numbers = #tpu.dot_dimension_numbers<[1], [0], [0], [1], [0, 0, 1, 1], [], []>} : vector<8x8xbf16>, vector<8x896xbf16>, vector<8x896xf32> -> vector<8x896xf32>
    %97 = arith.addf %92, %96 : vector<8x896xf32>
    %c19 = arith.constant 19 : index
    %c0_61 = arith.constant 0 : index
    %c0_62 = arith.constant 0 : index
    %98 = vector.load %arg3[%c19, %c0_61, %c0_62] : memref<27x8x8xbf16, #tpu.memory_space<vmem>>, vector<1x8x8xbf16>
    %99 = vector.shape_cast %98 : vector<1x8x8xbf16> to vector<8x8xbf16>
    %100 = vector.extract_strided_slice %1 {offsets = [0, 201], sizes = [8, 896], strides = [1, 1]} : vector<8x1200xbf16> to vector<8x896xbf16>
    %cst_63 = arith.constant dense<0.000000e+00> : vector<8x896xf32>
    %101 = tpu.matmul %99, %100, %cst_63 {dimension_numbers = #tpu.dot_dimension_numbers<[1], [0], [0], [1], [0, 0, 1, 1], [], []>} : vector<8x8xbf16>, vector<8x896xbf16>, vector<8x896xf32> -> vector<8x896xf32>
    %102 = arith.addf %97, %101 : vector<8x896xf32>
    %c20 = arith.constant 20 : index
    %c0_64 = arith.constant 0 : index
    %c0_65 = arith.constant 0 : index
    %103 = vector.load %arg3[%c20, %c0_64, %c0_65] : memref<27x8x8xbf16, #tpu.memory_space<vmem>>, vector<1x8x8xbf16>
    %104 = vector.shape_cast %103 : vector<1x8x8xbf16> to vector<8x8xbf16>
    %105 = vector.extract_strided_slice %1 {offsets = [0, 202], sizes = [8, 896], strides = [1, 1]} : vector<8x1200xbf16> to vector<8x896xbf16>
    %cst_66 = arith.constant dense<0.000000e+00> : vector<8x896xf32>
    %106 = tpu.matmul %104, %105, %cst_66 {dimension_numbers = #tpu.dot_dimension_numbers<[1], [0], [0], [1], [0, 0, 1, 1], [], []>} : vector<8x8xbf16>, vector<8x896xbf16>, vector<8x896xf32> -> vector<8x896xf32>
    %107 = arith.addf %102, %106 : vector<8x896xf32>
    %c21 = arith.constant 21 : index
    %c0_67 = arith.constant 0 : index
    %c0_68 = arith.constant 0 : index
    %108 = vector.load %arg3[%c21, %c0_67, %c0_68] : memref<27x8x8xbf16, #tpu.memory_space<vmem>>, vector<1x8x8xbf16>
    %109 = vector.shape_cast %108 : vector<1x8x8xbf16> to vector<8x8xbf16>
    %110 = vector.extract_strided_slice %1 {offsets = [0, 210], sizes = [8, 896], strides = [1, 1]} : vector<8x1200xbf16> to vector<8x896xbf16>
    %cst_69 = arith.constant dense<0.000000e+00> : vector<8x896xf32>
    %111 = tpu.matmul %109, %110, %cst_69 {dimension_numbers = #tpu.dot_dimension_numbers<[1], [0], [0], [1], [0, 0, 1, 1], [], []>} : vector<8x8xbf16>, vector<8x896xbf16>, vector<8x896xf32> -> vector<8x896xf32>
    %112 = arith.addf %107, %111 : vector<8x896xf32>
    %c22 = arith.constant 22 : index
    %c0_70 = arith.constant 0 : index
    %c0_71 = arith.constant 0 : index
    %113 = vector.load %arg3[%c22, %c0_70, %c0_71] : memref<27x8x8xbf16, #tpu.memory_space<vmem>>, vector<1x8x8xbf16>
    %114 = vector.shape_cast %113 : vector<1x8x8xbf16> to vector<8x8xbf16>
    %115 = vector.extract_strided_slice %1 {offsets = [0, 211], sizes = [8, 896], strides = [1, 1]} : vector<8x1200xbf16> to vector<8x896xbf16>
    %cst_72 = arith.constant dense<0.000000e+00> : vector<8x896xf32>
    %116 = tpu.matmul %114, %115, %cst_72 {dimension_numbers = #tpu.dot_dimension_numbers<[1], [0], [0], [1], [0, 0, 1, 1], [], []>} : vector<8x8xbf16>, vector<8x896xbf16>, vector<8x896xf32> -> vector<8x896xf32>
    %117 = arith.addf %112, %116 : vector<8x896xf32>
    %c23 = arith.constant 23 : index
    %c0_73 = arith.constant 0 : index
    %c0_74 = arith.constant 0 : index
    %118 = vector.load %arg3[%c23, %c0_73, %c0_74] : memref<27x8x8xbf16, #tpu.memory_space<vmem>>, vector<1x8x8xbf16>
    %119 = vector.shape_cast %118 : vector<1x8x8xbf16> to vector<8x8xbf16>
    %120 = vector.extract_strided_slice %1 {offsets = [0, 212], sizes = [8, 896], strides = [1, 1]} : vector<8x1200xbf16> to vector<8x896xbf16>
    %cst_75 = arith.constant dense<0.000000e+00> : vector<8x896xf32>
    %121 = tpu.matmul %119, %120, %cst_75 {dimension_numbers = #tpu.dot_dimension_numbers<[1], [0], [0], [1], [0, 0, 1, 1], [], []>} : vector<8x8xbf16>, vector<8x896xbf16>, vector<8x896xf32> -> vector<8x896xf32>
    %122 = arith.addf %117, %121 : vector<8x896xf32>
    %c24 = arith.constant 24 : index
    %c0_76 = arith.constant 0 : index
    %c0_77 = arith.constant 0 : index
    %123 = vector.load %arg3[%c24, %c0_76, %c0_77] : memref<27x8x8xbf16, #tpu.memory_space<vmem>>, vector<1x8x8xbf16>
    %124 = vector.shape_cast %123 : vector<1x8x8xbf16> to vector<8x8xbf16>
    %125 = vector.extract_strided_slice %1 {offsets = [0, 220], sizes = [8, 896], strides = [1, 1]} : vector<8x1200xbf16> to vector<8x896xbf16>
    %cst_78 = arith.constant dense<0.000000e+00> : vector<8x896xf32>
    %126 = tpu.matmul %124, %125, %cst_78 {dimension_numbers = #tpu.dot_dimension_numbers<[1], [0], [0], [1], [0, 0, 1, 1], [], []>} : vector<8x8xbf16>, vector<8x896xbf16>, vector<8x896xf32> -> vector<8x896xf32>
    %127 = arith.addf %122, %126 : vector<8x896xf32>
    %c25 = arith.constant 25 : index
    %c0_79 = arith.constant 0 : index
    %c0_80 = arith.constant 0 : index
    %128 = vector.load %arg3[%c25, %c0_79, %c0_80] : memref<27x8x8xbf16, #tpu.memory_space<vmem>>, vector<1x8x8xbf16>
    %129 = vector.shape_cast %128 : vector<1x8x8xbf16> to vector<8x8xbf16>
    %130 = vector.extract_strided_slice %1 {offsets = [0, 221], sizes = [8, 896], strides = [1, 1]} : vector<8x1200xbf16> to vector<8x896xbf16>
    %cst_81 = arith.constant dense<0.000000e+00> : vector<8x896xf32>
    %131 = tpu.matmul %129, %130, %cst_81 {dimension_numbers = #tpu.dot_dimension_numbers<[1], [0], [0], [1], [0, 0, 1, 1], [], []>} : vector<8x8xbf16>, vector<8x896xbf16>, vector<8x896xf32> -> vector<8x896xf32>
    %132 = arith.addf %127, %131 : vector<8x896xf32>
    %c26 = arith.constant 26 : index
    %c0_82 = arith.constant 0 : index
    %c0_83 = arith.constant 0 : index
    %133 = vector.load %arg3[%c26, %c0_82, %c0_83] : memref<27x8x8xbf16, #tpu.memory_space<vmem>>, vector<1x8x8xbf16>
    %134 = vector.shape_cast %133 : vector<1x8x8xbf16> to vector<8x8xbf16>
    %135 = vector.extract_strided_slice %1 {offsets = [0, 222], sizes = [8, 896], strides = [1, 1]} : vector<8x1200xbf16> to vector<8x896xbf16>
    %cst_84 = arith.constant dense<0.000000e+00> : vector<8x896xf32>
    %136 = tpu.matmul %134, %135, %cst_84 {dimension_numbers = #tpu.dot_dimension_numbers<[1], [0], [0], [1], [0, 0, 1, 1], [], []>} : vector<8x8xbf16>, vector<8x896xbf16>, vector<8x896xf32> -> vector<8x896xf32>
    %137 = arith.addf %132, %136 : vector<8x896xf32>
    %c0_85 = arith.constant 0 : index
    %c0_86 = arith.constant 0 : index
    %138 = vector.load %arg4[%c0_85, %c0_86] : memref<8x1xf32, #tpu.memory_space<vmem>>, vector<8x1xf32>
    %139 = vector.broadcast %138 : vector<8x1xf32> to vector<8x896xf32>
    %140 = arith.addf %137, %139 : vector<8x896xf32>
    %c0_87 = arith.constant 0 : index
    %c0_88 = arith.constant 0 : index
    %c0_89 = arith.constant 0 : index
    %c0_90 = arith.constant 0 : index
    %141 = vector.load %arg5[%c0_87, %c0_88, %c0_89, %c0_90] : memref<1x1x8x896xf32, #tpu.memory_space<vmem>>, vector<1x1x8x896xf32>
    %142 = vector.shape_cast %141 : vector<1x1x8x896xf32> to vector<8x896xf32>
    %143 = vector.shape_cast %140 : vector<8x896xf32> to vector<1x1x8x896xf32>
    tpu.vector_store %arg5[%c0_87, %c0_88, %c0_89, %c0_90], %143 {strides = array<i32>} : memref<1x1x8x896xf32, #tpu.memory_space<vmem>>, vector<1x1x8x896xf32>,
    return
  }
  func.func @transform_0(%arg0: i32, %arg1: i32) -> (i32, i32, i32, i32) {
    %c0_i32 = arith.constant 0 : i32
    %c0_i32_0 = arith.constant 0 : i32
    %c0_i32_1 = arith.constant 0 : i32
    return %arg0, %arg1, %c0_i32, %c0_i32_0 : i32, i32, i32, i32
  }
  func.func @transform_1(%arg0: i32, %arg1: i32) -> (i32, i32, i32) {
    %c0_i32 = arith.constant 0 : i32
    %c0_i32_0 = arith.constant 0 : i32
    %c0_i32_1 = arith.constant 0 : i32
    %c0_i32_2 = arith.constant 0 : i32
    return %c0_i32, %c0_i32_0, %c0_i32_1 : i32, i32, i32
  }
  func.func @transform_2(%arg0: i32, %arg1: i32) -> (i32, i32) {
    %c0_i32 = arith.constant 0 : i32
    %c0_i32_0 = arith.constant 0 : i32
    %c0_i32_1 = arith.constant 0 : i32
    return %c0_i32, %c0_i32_0 : i32, i32
  }
  func.func @transform_3(%arg0: i32, %arg1: i32) -> (i32, i32, i32, i32) {
    %c0_i32 = arith.constant 0 : i32
    %c0_i32_0 = arith.constant 0 : i32
    %c0_i32_1 = arith.constant 0 : i32
    return %arg0, %arg1, %c0_i32, %c0_i32_0 : i32, i32, i32, i32
  }
}

</mosaic_0001>

<bundles_post_ra>
// kernel: ppm_forward.6
= control target key start
LH: loop header
LB: loop body
LE: loop exit
PB: predicated region body
PF: predicated region fallthrough
CT: control target
= control target key end

     0   :  { %s6888_s12 = smov 0   ;;  %s6890_s13 = smov 0   ;;  %s8194_s0 = inlined_call_operand.vmem [shape: bf16[2,1,4,1200], index: 0, kind: input, shape index: {}]   ;;  %s8195_s1 = inlined_call_operand.vmem [shape: bf16[27,2,4], index: 1, kind: input, shape index: {}]   ;;  %s8196_s2 = inlined_call_operand.vmem [shape: f32[2,1], index: 2, kind: input, shape index: {}]   ;;  %s8197_s3 = inlined_call_operand.vmem [shape: f32[2,1,2,896], index: 3, kind: output, shape index: {}]  }
   0x1   :  { %s6892_s14 = smov 0  }
   0x2 LB: > { %s25_s15 = sadd.s32 1, %s6832_s13  ;;  %p6318_p0 = scmp.ge.s32.totalorder %s6836_s14, 1  ;;  %s6836_s14 = sphi %s6892_s14, %s13_s14   ;;  %s6832_s13 = sphi %s6890_s13, %s8199_s13   ;;  %s6828_s12 = sphi %s6888_s12, %s8198_s12  }
   0x3   : > { %p27_p1 = scmp.ge.s32.totalorder %s25_s15, 2  ;;  %p157_p2 = scmp.lt.s32.totalorder %s6836_s14, 3 }
   0x5   : > { %s8201_s15 = smov (%p27_p1, %s25_s15), 0  ;;  %p158_p3 = pnand %p6318_p0, %p157_p2 }
   0x6   : > { %p189_p4 = scmp.lt.s32.totalorder (!%p158_p3), %s6828_s12, 1  ;;  %v220_v0 = vlaneseq (!%p158_p3)  ;;  %v6838_v1 = vmov (!%p158_p3), 1983009808   ;;  %v6839_v6 = vmov (!%p158_p3), 0   ;;  %s6840_s20 = smov (!%p158_p3), 127   ;;  %vm266_vm0 = vcmask (!%p158_p3), 1039360  }
   0x7   : > { %161 = sbr.rel (%p158_p3) target bundleno = 796 (0x31c), region = 32  ;;  %v218_v2 = vunpack.c.l.s4 (!%p158_p3), %v6838_v1  ;;  %332 = vmatprep.mubr.bf16.mxu0 (!%p158_p3), %v6839_v6  ;;  %373 = vmatprep.mubr.bf16.mxu1 (!%p158_p3), %v6839_v6  ;;  %s6841_s21 = smov (!%p158_p3), 126   ;;  %vm278_vm1 = vcmask (!%p158_p3), 1041408   ;;  %v6321_v26 = vld [vmem:[%s8195_s1 + $0x1] sm:$0x1] (!%p158_p3)  ;;  %vm274_vm2 = vcmask (!%p158_p3), 31744  }
   0x8   : > { %v221_v3 = vshrl.u32 (!%p158_p3), %v220_v0, 7  ;;  %6811 = vset.pattern.permute.xlu0 (!%p158_p3), %v6839_v6  ;;  %s6842_s22 = smov (!%p158_p3), 118   ;;  %s6843_s23 = smov (!%p158_p3), 117   ;;  %v6848_v34 = vmov (!%p158_p3), 0.0   ;;  %vm6849_vm3 = vmmov (!%p158_p3), 0   ;;  %vm668_vm4 = vcmask (!%p158_p3), 1031168  }
   0x9   : > { %v219_v4 = vunpack.c.0.s8 (!%p158_p3), %v218_v2  ;;  %s6844_s24 = smov (!%p158_p3), 116   ;;  %s6845_s25 = smov (!%p158_p3), 108   ;;  %v211_v46 = vld [vmem:[%s8195_s1] sm:$0x1] (!%p158_p3)  ;;  %vm888_vm5 = vcmask (!%p158_p3), 965632   ;;  %vm1108_vm6 = vcmask (!%p158_p3), 957440  }
   0xa   : > { %s6846_s26 = smov (!%p158_p3), 107   ;;  %s6847_s27 = smov (!%p158_p3), 106   ;;  %v6336_v1 = vld [vmem:[%s8195_s1 + $0x2] sm:$0x1] (!%p158_p3)  ;;  %vm1328_vm7 = vcmask (!%p158_p3), 949248   ;;  %vm1548_vm8 = vcmask (!%p158_p3), 883712  }
   0xb   : > { %v6909_v5 = vsub.s32 (!%p158_p3), %v219_v4, %v221_v3  ;;  %s6850_s30 = smov (!%p158_p3), 28   ;;  %s6851_s6 = smov (!%p158_p3), 27   ;;  %vm1768_vm9 = vcmask (!%p158_p3), 875520   ;;  %vm1988_vm10 = vcmask (!%p158_p3), 867328   ;;  %vm2208_vm11 = vcmask (!%p158_p3), 228352  }
   0xc   : > { %s6852_s9 = smov (!%p158_p3), 26   ;;  %s6857_s29 = smov (!%p158_p3), 7   ;;  %vm2428_vm12 = vcmask (!%p158_p3), 220160   ;;  %vm2648_vm13 = vcmask (!%p158_p3), 211968   ;;  %vm2868_vm14 = vcmask (!%p158_p3), 146432   ;;  %vm3088_vm15 = vcmask (!%p158_p3), 138240  }
   0xd   : > { %s6858_s5 = smov (!%p158_p3), 6   ;;  %s6859_s8 = smov (!%p158_p3), 56  }
   0xe   : > { %s8203_s12 = smov (!%p189_p4, %s6828_s12), 1  ;;  %s6861_s17 = smov 54  }
   0xf   : > { %s6755_s16 = smul.u32 20, %s8203_s12 }
  0x10   : > { %s6756_s7 = smul.u32 14, %s8203_s12 }
  0x11   : > { %s6916_s19 = scalar_lea.vmem %s8194_s0, %s6755_s16  ;;  %s6853_s16 = smov 18  }
  0x12   : > { %v208_v7 = vld [vmem:[%s6916_s19] sm:$0xff]  ;;  %v209_v10 = vld [vmem:[%s6916_s19 + $0x8] sm:$0xff]  ;;  %s206_s10 = scalar_lea.vmem %s8197_s3, %s6756_s7 }
  0x13   : > { %v6921_v8 = vrot.slane %v208_v7, %v6909_v5  ;;  %v216_v9 = vcombine.high %v208_v7, %v208_v7  ;;  %v233_v13 = vcombine.high %v209_v10, %v209_v10  ;;  %v6933_v14 = vrot.slane %v209_v10, %v6909_v5 }
  0x15   : > { %250 = vrot.lane.b32.xlu0 %v6921_v8, %s6840_s20  ;;  %v6926_v11 = vrot.slane %v216_v9, %v6909_v5  ;;  %v6930_v12 = vcombine.high %v6921_v8, %v6921_v8  ;;  %v6942_v16 = vrot.slane %v233_v13, %v6909_v5  ;;  %v6947_v17 = vcombine.high %v6933_v14, %v6933_v14 }
  0x16   : > { %v467_v40 = vsel %vm278_vm1, %v6921_v8, 0  ;;  %v479_v47 = vsel %vm278_vm1, %v6933_v14, 0 }
  0x17   : > { %254 = vrot.lane.b32.xlu1 %v6926_v11, %s6840_s20  ;;  %v6938_v15 = vcombine.high %v6926_v11, %v6926_v11  ;;  %v6953_v18 = vcombine.high %v6942_v16, %v6942_v16  ;;  %v473_v43 = vsel %vm278_vm1, %v6926_v11, 0  ;;  %v485_v51 = vsel %vm278_vm1, %v6942_v16, 0 }
  0x19   : > { %252 = vrot.lane.b32.xlu0 %v6930_v12, %s6840_s20 }
  0x1b   : > { %256 = vrot.lane.b32.xlu1 %v6938_v15, %s6840_s20 }
  0x1d   : > { %258 = vrot.lane.b32.xlu0 %v6933_v14, %s6840_s20 }
  0x1f   : > { %260 = vrot.lane.b32.xlu1 %v6947_v17, %s6840_s20 }
  0x21   : > { %262 = vrot.lane.b32.xlu0 %v6942_v16, %s6840_s20 }
  0x23   : > { %264 = vrot.lane.b32.xlu1 %v6953_v18, %s6840_s20  ;;  %s6854_s20 = smov 17  }
  0x25   : > { %652 = vrot.lane.b32.xlu0 %v6921_v8, %s6841_s21 }
  0x27   : > { %654 = vrot.lane.b32.xlu1 %v6930_v12, %s6841_s21 }
  0x29   : > { %656 = vrot.lane.b32.xlu0 %v6926_v11, %s6841_s21 }
  0x2b   : > { %658 = vrot.lane.b32.xlu1 %v6938_v15, %s6841_s21 }
  0x2d   : > { %660 = vrot.lane.b32.xlu0 %v6933_v14, %s6841_s21 }
  0x2f   : > { %662 = vrot.lane.b32.xlu1 %v6947_v17, %s6841_s21 }
  0x31   : > { %664 = vrot.lane.b32.xlu0 %v6942_v16, %s6841_s21 }
  0x33   : > { %666 = vrot.lane.b32.xlu1 %v6953_v18, %s6841_s21  ;;  %s6862_s21 = smov 46  }
  0x35   : > { %872 = vrot.lane.b32.xlu0 %v6921_v8, %s6842_s22 }
  0x37   : > { %874 = vrot.lane.b32.xlu1 %v6930_v12, %s6842_s22 }
  0x39   : > { %876 = vrot.lane.b32.xlu0 %v6926_v11, %s6842_s22 }
  0x3b   : > { %878 = vrot.lane.b32.xlu1 %v6938_v15, %s6842_s22 }
  0x3d   : > { %880 = vrot.lane.b32.xlu0 %v6933_v14, %s6842_s22 }
  0x3f   : > { %882 = vrot.lane.b32.xlu1 %v6947_v17, %s6842_s22 }
  0x41   : > { %884 = vrot.lane.b32.xlu0 %v6942_v16, %s6842_s22 }
  0x43   : > { %886 = vrot.lane.b32.xlu1 %v6953_v18, %s6842_s22 }
  0x45   : > { %1092 = vrot.lane.b32.xlu0 %v6921_v8, %s6843_s23 }
  0x47   : > { %1094 = vrot.lane.b32.xlu1 %v6930_v12, %s6843_s23 }
  0x49   : > { %1096 = vrot.lane.b32.xlu0 %v6926_v11, %s6843_s23 }
  0x4b   : > { %1098 = vrot.lane.b32.xlu1 %v6938_v15, %s6843_s23 }
  0x4d   : > { %1100 = vrot.lane.b32.xlu0 %v6933_v14, %s6843_s23 }
  0x4f   : > { %1102 = vrot.lane.b32.xlu1 %v6947_v17, %s6843_s23 }
  0x51   : > { %1104 = vrot.lane.b32.xlu0 %v6942_v16, %s6843_s23 }
  0x53   : > { %1106 = vrot.lane.b32.xlu1 %v6953_v18, %s6843_s23  ;;  %s6855_s23 = smov 16  }
  0x55   : > { %1312 = vrot.lane.b32.xlu0 %v6921_v8, %s6844_s24 }
  0x57   : > { %1314 = vrot.lane.b32.xlu1 %v6930_v12, %s6844_s24 }
  0x59   : > { %1316 = vrot.lane.b32.xlu0 %v6926_v11, %s6844_s24 }
  0x5b   : > { %1318 = vrot.lane.b32.xlu1 %v6938_v15, %s6844_s24 }
  0x5d   : > { %1320 = vrot.lane.b32.xlu0 %v6933_v14, %s6844_s24 }
  0x5f   : > { %1322 = vrot.lane.b32.xlu1 %v6947_v17, %s6844_s24 }
  0x61   : > { %1324 = vrot.lane.b32.xlu0 %v6942_v16, %s6844_s24 }
  0x63   : > { %1326 = vrot.lane.b32.xlu1 %v6953_v18, %s6844_s24  ;;  %s6863_s24 = smov 45  }
  0x65   : > { %1532 = vrot.lane.b32.xlu0 %v6921_v8, %s6845_s25 }
  0x67   : > { %1534 = vrot.lane.b32.xlu1 %v6930_v12, %s6845_s25 }
  0x69   : > { %1536 = vrot.lane.b32.xlu0 %v6926_v11, %s6845_s25 }
  0x6b   : > { %1538 = vrot.lane.b32.xlu1 %v6938_v15, %s6845_s25 }
  0x6d   : > { %1540 = vrot.lane.b32.xlu0 %v6933_v14, %s6845_s25 }
  0x6f   : > { %1542 = vrot.lane.b32.xlu1 %v6947_v17, %s6845_s25 }
  0x71   : > { %1544 = vrot.lane.b32.xlu0 %v6942_v16, %s6845_s25 }
  0x73   : > { %1546 = vrot.lane.b32.xlu1 %v6953_v18, %s6845_s25 }
  0x75   : > { %1752 = vrot.lane.b32.xlu0 %v6921_v8, %s6846_s26 }
  0x77   : > { %1754 = vrot.lane.b32.xlu1 %v6930_v12, %s6846_s26 }
  0x79   : > { %1756 = vrot.lane.b32.xlu0 %v6926_v11, %s6846_s26 }
  0x7b   : > { %1758 = vrot.lane.b32.xlu1 %v6938_v15, %s6846_s26 }
  0x7d   : > { %1760 = vrot.lane.b32.xlu0 %v6933_v14, %s6846_s26 }
  0x7f   : > { %1762 = vrot.lane.b32.xlu1 %v6947_v17, %s6846_s26 }
  0x81   : > { %1764 = vrot.lane.b32.xlu0 %v6942_v16, %s6846_s26 }
  0x83   : > { %1766 = vrot.lane.b32.xlu1 %v6953_v18, %s6846_s26  ;;  %s6856_s26 = smov 8  }
  0x85   : > { %1972 = vrot.lane.b32.xlu0 %v6921_v8, %s6847_s27 }
  0x87   : > { %v251_v19 = vpop.permute.xlu0 %250  ;;  %1974 = vrot.lane.b32.xlu1 %v6930_v12, %s6847_s27 }
  0x89   : > { %v255_v20 = vpop.permute.xlu1 %254  ;;  %1976 = vrot.lane.b32.xlu0 %v6926_v11, %s6847_s27 }
  0x8b   : > { %v253_v21 = vpop.permute.xlu0 %252  ;;  %1978 = vrot.lane.b32.xlu1 %v6938_v15, %s6847_s27 }
  0x8c   : > { %v268_v22 = vsel %vm266_vm0, %v253_v21, %v255_v20  ;;  %v267_v23 = vsel %vm266_vm0, %v251_v19, %v253_v21 }
  0x8d   : > { %6322 = vmatprep.subr.msk.bf16.mxu0 %vm278_vm1, %v268_v22  ;;  %v257_v24 = vpop.permute.xlu1 %256  ;;  %v280_v25 = vsel %vm278_vm1, %v267_v23, 0  ;;  %1980 = vrot.lane.b32.xlu0 %v6933_v14, %s6847_s27 }
  0x8e   : > { %301 = vmatpush1.bf16.msra.mxu0 %v280_v25  ;;  %v269_v27 = vsel %vm266_vm0, %v255_v20, %v257_v24 }
  0x8f   : > { %v259_v28 = vpop.permute.xlu0 %258  ;;  %1982 = vrot.lane.b32.xlu1 %v6947_v17, %s6847_s27  ;;  %v286_v31 = vsel %vm278_vm1, %v269_v27, 0 }
  0x90   : > { %v270_v29 = vsel %vm266_vm0, %v257_v24, %v259_v28 }
  0x91   : > { %6323 = vmatmul.mubr.msk.bf16.vlgmr.msra.gmra.mrb[0].mxu0 %vm274_vm2, %v6321_v26  ;;  %6324 = vmatprep.subr.msk.bf16.mxu1 %vm278_vm1, %v270_v29  ;;  %v261_v30 = vpop.permute.xlu1 %260 }
  0x92   : > { %v271_v32 = vsel %vm266_vm0, %v259_v28, %v261_v30  ;;  %342 = vmatpush1.bf16.msra.mxu1 %v286_v31  ;;  %414 = vmatprep.mubr.bf16.mxu0 %v6839_v6  ;;  %v6344_v31 = vld [vmem:[%s8195_s1 + $0x3] sm:$0x1] }
  0x93   : > { %v263_v33 = vpop.permute.xlu0 %262  ;;  %6593 = vmatprep.subr.bf16.mxu1 %v6848_v34  ;;  %1984 = vrot.lane.b32.xlu0 %v6942_v16, %s6847_s27  ;;  %v292_v37 = vsel %vm278_vm1, %v271_v32, 0 }
  0x94   : > { %v272_v35 = vsel %vm266_vm0, %v261_v30, %v263_v33  ;;  %1986 = vrot.lane.b32.xlu1 %v6953_v18, %s6847_s27  ;;  %s6864_s27 = smov 44  }
  0x95   : > { %6325 = vmatmul.mubr.msk.bf16.vlgmr.msra.gmra.mrb[0].mxu1 %vm274_vm2, %v6321_v26  ;;  %6326 = vmatprep.subr.msk.bf16.mxu0 %vm278_vm1, %v272_v35  ;;  %v265_v36 = vpop.permute.xlu1 %264 }
  0x96   : > { %v273_v38 = vsel %vm266_vm0, %v263_v33, %v265_v36  ;;  %383 = vmatpush1.bf16.msra.mxu0 %v292_v37  ;;  %6595 = vmatprep.mubr.msk.bf16.mxu1 %vm6849_vm3, %v6848_v34  ;;  %vm3308_vm0 = vcmask 130048  }
  0x97   : > { %v298_v39 = vsel %vm278_vm1, %v273_v38, 0  ;;  %6329 = vmatprep.subr.msk.bf16.mxu0 %vm278_vm1, %v6930_v12  ;;  %2192 = vrot.lane.b32.xlu0 %v6921_v8, %s6850_s30  ;;  %v653_v41 = vpop.permute.xlu0 %652 }
  0x98   : > { %6594 = vmatpush3.bf16.msra.mxu1 %v298_v39  ;;  %2194 = vrot.lane.b32.xlu1 %v6930_v12, %s6850_s30 }
  0x99   : > { %6327 = vmatmul.mubr.msk.bf16.vlgmr.msra.gmra.mrb[4].mxu0 %vm274_vm2, %v6321_v26  ;;  %6331 = vmatprep.subr.msk.bf16.mxu1 %vm278_vm1, %v6938_v15  ;;  %v655_v42 = vpop.permute.xlu1 %654 }
  0x9a   : > { %488 = vmatpush1.bf16.msra.mxu0 %v467_v40  ;;  %519 = vmatprep.mubr.bf16.mxu0 %v6839_v6  ;;  %v669_v53 = vsel %vm668_vm4, %v653_v41, %v655_v42 }
  0x9b   : > { %2196 = vrot.lane.b32.xlu0 %v6926_v11, %s6850_s30  ;;  %6333 = vmatprep.subr.msk.bf16.mxu0 %vm278_vm1, %v6947_v17  ;;  %v657_v44 = vpop.permute.xlu0 %656  ;;  %v680_v56 = vsel %vm278_vm1, %v669_v53, 0 }
  0x9c   : > { %2198 = vrot.lane.b32.xlu1 %v6938_v15, %s6850_s30  ;;  %v670_v49 = vsel %vm668_vm4, %v655_v42, %v657_v44 }
  0x9d   : > { %6596 = vmatmul.mubr.msk.bf16.vlgmr.msra.gmra.mrb[4].mxu1 %vm274_vm2, %v6321_v26  ;;  %v659_v45 = vpop.permute.xlu1 %658 }
  0x9e   : > { %529 = vmatpush1.bf16.msra.mxu1 %v473_v43  ;;  %560 = vmatprep.mubr.bf16.mxu1 %v6839_v6  ;;  %v671_v58 = vsel %vm668_vm4, %v657_v44, %v659_v45 }
  0x9f   : > { %2200 = vrot.lane.b32.xlu0 %v6933_v14, %s6850_s30  ;;  %6599 = vmatprep.subr.bf16.mxu1 %v6848_v34  ;;  %v661_v48 = vpop.permute.xlu0 %660  ;;  %v686_v61 = vsel %vm278_vm1, %v671_v58, 0 }
  0xa0   : > { %2202 = vrot.lane.b32.xlu1 %v6947_v17, %s6850_s30  ;;  %v672_v54 = vsel %vm668_vm4, %v659_v45, %v661_v48 }
  0xa1   : > { %6330 = vmatmul.mubr.msk.bf16.vlgmr.msra.gmra.mrb[8].mxu0 %vm274_vm2, %v211_v46  ;;  %v663_v50 = vpop.permute.xlu1 %662 }
  0xa2   : > { %570 = vmatpush1.bf16.msra.mxu0 %v479_v47  ;;  %601 = vmatprep.mubr.bf16.mxu0 %v6839_v6  ;;  %v673_v63 = vsel %vm668_vm4, %v661_v48, %v663_v50 }
  0xa3   : > { %6337 = vmatprep.subr.msk.bf16.mxu0 %vm278_vm1, %v670_v49  ;;  %2204 = vrot.lane.b32.xlu0 %v6942_v16, %s6850_s30  ;;  %v665_v52 = vpop.permute.xlu0 %664  ;;  %v692_v2 = vsel %vm278_vm1, %v673_v63, 0 }
  0xa4   : > { %2206 = vrot.lane.b32.xlu1 %v6953_v18, %s6850_s30  ;;  %v674_v59 = vsel %vm668_vm4, %v663_v50, %v665_v52  ;;  %s6865_s30 = smov 36  }
  0xa5   : > { %6332 = vmatmul.mubr.msk.bf16.vlgmr.msra.gmra.mrb[8].mxu1 %vm274_vm2, %v211_v46  ;;  %v667_v55 = vpop.permute.xlu1 %666 }
  0xa6   : > { %6600 = vmatpush3.bf16.msra.mxu1 %v485_v51  ;;  %6601 = vmatprep.mubr.msk.bf16.mxu1 %vm6849_vm3, %v6848_v34  ;;  %v675_v4 = vsel %vm668_vm4, %v665_v52, %v667_v55  ;;  %v6352_v52 = vld [vmem:[%s8195_s1 + $0x4] sm:$0x1]  ;;  %vm3528_vm4 = vcmask 64512  }
  0xa7   : > { %6339 = vmatprep.subr.msk.bf16.mxu1 %vm278_vm1, %v672_v54  ;;  %2412 = vrot.lane.b32.xlu0 %v6921_v8, %s6851_s6  ;;  %v873_v57 = vpop.permute.xlu0 %872  ;;  %v698_v10 = vsel %vm278_vm1, %v675_v4, 0 }
  0xa8   : > { %2414 = vrot.lane.b32.xlu1 %v6930_v12, %s6851_s6 }
  0xa9   : > { %6334 = vmatmul.mubr.msk.bf16.vlgmr.msra.gmra.mrb[12].mxu0 %vm274_vm2, %v211_v46  ;;  %v875_v60 = vpop.permute.xlu1 %874 }
  0xaa   : > { %701 = vmatpush1.bf16.msra.mxu0 %v680_v56  ;;  %732 = vmatprep.mubr.bf16.mxu0 %v6839_v6  ;;  %v889_v19 = vsel %vm888_vm5, %v873_v57, %v875_v60 }
  0xab   : > { %6341 = vmatprep.subr.msk.bf16.mxu0 %vm278_vm1, %v674_v59  ;;  %2416 = vrot.lane.b32.xlu0 %v6926_v11, %s6851_s6  ;;  %v877_v62 = vpop.permute.xlu0 %876  ;;  %v900_v22 = vsel %vm278_vm1, %v889_v19, 0 }
  0xac   : > { %2418 = vrot.lane.b32.xlu1 %v6938_v15, %s6851_s6  ;;  %v890_v7 = vsel %vm888_vm5, %v875_v60, %v877_v62 }
  0xad   : > { %6602 = vmatmul.mubr.msk.bf16.vlgmr.msra.gmra.mrb[12].mxu1 %vm274_vm2, %v211_v46  ;;  %v879_v0 = vpop.permute.xlu1 %878 }
  0xae   : > { %742 = vmatpush1.bf16.msra.mxu1 %v686_v61  ;;  %773 = vmatprep.mubr.bf16.mxu1 %v6839_v6  ;;  %v891_v24 = vsel %vm888_vm5, %v877_v62, %v879_v0 }
  0xaf   : > { %6605 = vmatprep.subr.bf16.mxu1 %v6848_v34  ;;  %2420 = vrot.lane.b32.xlu0 %v6933_v14, %s6851_s6  ;;  %v881_v3 = vpop.permute.xlu0 %880  ;;  %v906_v27 = vsel %vm278_vm1, %v891_v24, 0 }
  0xb0   : > { %2422 = vrot.lane.b32.xlu1 %v6947_v17, %s6851_s6  ;;  %v892_v20 = vsel %vm888_vm5, %v879_v0, %v881_v3 }
  0xb1   : > { %6338 = vmatmul.mubr.msk.bf16.vlgmr.msra.gmra.mrb[16].mxu0 %vm274_vm2, %v6336_v1  ;;  %v883_v9 = vpop.permute.xlu1 %882 }
  0xb2   : > { %783 = vmatpush1.bf16.msra.mxu0 %v692_v2  ;;  %814 = vmatprep.mubr.bf16.mxu0 %v6839_v6  ;;  %v893_v29 = vsel %vm888_vm5, %v881_v3, %v883_v9 }
  0xb3   : > { %6345 = vmatprep.subr.msk.bf16.mxu0 %vm278_vm1, %v890_v7  ;;  %2424 = vrot.lane.b32.xlu0 %v6942_v16, %s6851_s6  ;;  %v885_v13 = vpop.permute.xlu0 %884  ;;  %v912_v32 = vsel %vm278_vm1, %v893_v29, 0 }
  0xb4   : > { %2426 = vrot.lane.b32.xlu1 %v6953_v18, %s6851_s6  ;;  %v894_v25 = vsel %vm888_vm5, %v883_v9, %v885_v13  ;;  %s6866_s6 = smov 35  }
  0xb5   : > { %6340 = vmatmul.mubr.msk.bf16.vlgmr.msra.gmra.mrb[16].mxu1 %vm274_vm2, %v6336_v1  ;;  %v887_v21 = vpop.permute.xlu1 %886 }
  0xb6   : > { %6606 = vmatpush3.bf16.msra.mxu1 %v698_v10  ;;  %6607 = vmatprep.mubr.msk.bf16.mxu1 %vm6849_vm3, %v6848_v34  ;;  %v895_v35 = vsel %vm888_vm5, %v885_v13, %v887_v21  ;;  %v6360_v13 = vld [vmem:[%s8195_s1 + $0x5] sm:$0x1]  ;;  %vm3748_vm5 = vcmask 56320  }
  0xb7   : > { %6347 = vmatprep.subr.msk.bf16.mxu1 %vm278_vm1, %v892_v20  ;;  %2632 = vrot.lane.b32.xlu0 %v6921_v8, %s6852_s9  ;;  %v1093_v23 = vpop.permute.xlu0 %1092  ;;  %v918_v38 = vsel %vm278_vm1, %v895_v35, 0 }
  0xb8   : > { %2634 = vrot.lane.b32.xlu1 %v6930_v12, %s6852_s9 }
  0xb9   : > { %6342 = vmatmul.mubr.msk.bf16.vlgmr.msra.gmra.mrb[20].mxu0 %vm274_vm2, %v6336_v1  ;;  %v1095_v26 = vpop.permute.xlu1 %1094 }
  0xba   : > { %921 = vmatpush1.bf16.msra.mxu0 %v900_v22  ;;  %952 = vmatprep.mubr.bf16.mxu0 %v6839_v6  ;;  %v1109_v40 = vsel %vm1108_vm6, %v1093_v23, %v1095_v26 }
  0xbb   : > { %6349 = vmatprep.subr.msk.bf16.mxu0 %vm278_vm1, %v894_v25  ;;  %2636 = vrot.lane.b32.xlu0 %v6926_v11, %s6852_s9  ;;  %v1097_v28 = vpop.permute.xlu0 %1096  ;;  %v1120_v43 = vsel %vm278_vm1, %v1109_v40, 0 }
  0xbc   : > { %2638 = vrot.lane.b32.xlu1 %v6938_v15, %s6852_s9  ;;  %v1110_v36 = vsel %vm1108_vm6, %v1095_v26, %v1097_v28 }
  0xbd   : > { %6608 = vmatmul.mubr.msk.bf16.vlgmr.msra.gmra.mrb[20].mxu1 %vm274_vm2, %v6336_v1  ;;  %v1099_v30 = vpop.permute.xlu1 %1098 }
  0xbe   : > { %962 = vmatpush1.bf16.msra.mxu1 %v906_v27  ;;  %993 = vmatprep.mubr.bf16.mxu1 %v6839_v6  ;;  %v1111_v45 = vsel %vm1108_vm6, %v1097_v28, %v1099_v30 }
  0xbf   : > { %6611 = vmatprep.subr.bf16.mxu1 %v6848_v34  ;;  %2640 = vrot.lane.b32.xlu0 %v6933_v14, %s6852_s9  ;;  %v1101_v33 = vpop.permute.xlu0 %1100  ;;  %v1126_v48 = vsel %vm278_vm1, %v1111_v45, 0 }
  0xc0   : > { %2642 = vrot.lane.b32.xlu1 %v6947_v17, %s6852_s9  ;;  %v1112_v41 = vsel %vm1108_vm6, %v1099_v30, %v1101_v33 }
  0xc1   : > { %6346 = vmatmul.mubr.msk.bf16.vlgmr.msra.gmra.mrb[24].mxu0 %vm274_vm2, %v6344_v31  ;;  %v1103_v37 = vpop.permute.xlu1 %1102 }
  0xc2   : > { %1003 = vmatpush1.bf16.msra.mxu0 %v912_v32  ;;  %1034 = vmatprep.mubr.bf16.mxu0 %v6839_v6  ;;  %v1113_v50 = vsel %vm1108_vm6, %v1101_v33, %v1103_v37 }
  0xc3   : > { %6353 = vmatprep.subr.msk.bf16.mxu0 %vm278_vm1, %v1110_v36  ;;  %2644 = vrot.lane.b32.xlu0 %v6942_v16, %s6852_s9  ;;  %v1105_v39 = vpop.permute.xlu0 %1104  ;;  %v1132_v53 = vsel %vm278_vm1, %v1113_v50, 0 }
  0xc4   : > { %2646 = vrot.lane.b32.xlu1 %v6953_v18, %s6852_s9  ;;  %v1114_v46 = vsel %vm1108_vm6, %v1103_v37, %v1105_v39  ;;  %s6867_s9 = smov 34  }
  0xc5   : > { %6348 = vmatmul.mubr.msk.bf16.vlgmr.msra.gmra.mrb[24].mxu1 %vm274_vm2, %v6344_v31  ;;  %v1107_v42 = vpop.permute.xlu1 %1106 }
  0xc6   : > { %6612 = vmatpush3.bf16.msra.mxu1 %v918_v38  ;;  %6613 = vmatprep.mubr.msk.bf16.mxu1 %vm6849_vm3, %v6848_v34  ;;  %v1115_v55 = vsel %vm1108_vm6, %v1105_v39, %v1107_v42  ;;  %v6368_v39 = vld [vmem:[%s8195_s1 + $0x6] sm:$0x1]  ;;  %vm3968_vm6 = vcmask 48128  }
  0xc7   : > { %6355 = vmatprep.subr.msk.bf16.mxu1 %vm278_vm1, %v1112_v41  ;;  %2852 = vrot.lane.b32.xlu0 %v6921_v8, %s6853_s16  ;;  %v1313_v44 = vpop.permute.xlu0 %1312  ;;  %v1138_v58 = vsel %vm278_vm1, %v1115_v55, 0 }
  0xc8   : > { %2854 = vrot.lane.b32.xlu1 %v6930_v12, %s6853_s16 }
  0xc9   : > { %6350 = vmatmul.mubr.msk.bf16.vlgmr.msra.gmra.mrb[28].mxu0 %vm274_vm2, %v6344_v31  ;;  %v1315_v47 = vpop.permute.xlu1 %1314 }
  0xca   : > { %1141 = vmatpush1.bf16.msra.mxu0 %v1120_v43  ;;  %1172 = vmatprep.mubr.bf16.mxu0 %v6839_v6  ;;  %v1329_v60 = vsel %vm1328_vm7, %v1313_v44, %v1315_v47 }
  0xcb   : > { %6357 = vmatprep.subr.msk.bf16.mxu0 %vm278_vm1, %v1114_v46  ;;  %2856 = vrot.lane.b32.xlu0 %v6926_v11, %s6853_s16  ;;  %v1317_v49 = vpop.permute.xlu0 %1316  ;;  %v1340_v63 = vsel %vm278_vm1, %v1329_v60, 0 }
  0xcc   : > { %2858 = vrot.lane.b32.xlu1 %v6938_v15, %s6853_s16  ;;  %v1330_v56 = vsel %vm1328_vm7, %v1315_v47, %v1317_v49 }
  0xcd   : > { %6614 = vmatmul.mubr.msk.bf16.vlgmr.msra.gmra.mrb[28].mxu1 %vm274_vm2, %v6344_v31  ;;  %v1319_v51 = vpop.permute.xlu1 %1318 }
  0xce   : > { %1182 = vmatpush1.bf16.msra.mxu1 %v1126_v48  ;;  %1213 = vmatprep.mubr.bf16.mxu1 %v6839_v6  ;;  %v1331_v1 = vsel %vm1328_vm7, %v1317_v49, %v1319_v51 }
  0xcf   : > { %6617 = vmatprep.subr.bf16.mxu1 %v6848_v34  ;;  %2860 = vrot.lane.b32.xlu0 %v6933_v14, %s6853_s16  ;;  %v1321_v54 = vpop.permute.xlu0 %1320  ;;  %v1346_v4 = vsel %vm278_vm1, %v1331_v1, 0 }
  0xd0   : > { %2862 = vrot.lane.b32.xlu1 %v6947_v17, %s6853_s16  ;;  %v1332_v61 = vsel %vm1328_vm7, %v1319_v51, %v1321_v54 }
  0xd1   : > { %6354 = vmatmul.mubr.msk.bf16.vlgmr.msra.gmra.mrb[32].mxu0 %vm274_vm2, %v6352_v52  ;;  %v1323_v57 = vpop.permute.xlu1 %1322 }
  0xd2   : > { %1223 = vmatpush1.bf16.msra.mxu0 %v1132_v53  ;;  %1254 = vmatprep.mubr.bf16.mxu0 %v6839_v6  ;;  %v1333_v9 = vsel %vm1328_vm7, %v1321_v54, %v1323_v57 }
  0xd3   : > { %6361 = vmatprep.subr.msk.bf16.mxu0 %vm278_vm1, %v1330_v56  ;;  %2864 = vrot.lane.b32.xlu0 %v6942_v16, %s6853_s16  ;;  %v1325_v59 = vpop.permute.xlu0 %1324  ;;  %v1352_v19 = vsel %vm278_vm1, %v1333_v9, 0 }
  0xd4   : > { %2866 = vrot.lane.b32.xlu1 %v6953_v18, %s6853_s16  ;;  %v1334_v2 = vsel %vm1328_vm7, %v1323_v57, %v1325_v59 }
  0xd5   : > { %6356 = vmatmul.mubr.msk.bf16.vlgmr.msra.gmra.mrb[32].mxu1 %vm274_vm2, %v6352_v52  ;;  %v1327_v62 = vpop.permute.xlu1 %1326 }
  0xd6   : > { %6618 = vmatpush3.bf16.msra.mxu1 %v1138_v58  ;;  %6619 = vmatprep.mubr.msk.bf16.mxu1 %vm6849_vm3, %v6848_v34  ;;  %v1335_v21 = vsel %vm1328_vm7, %v1325_v59, %v1327_v62  ;;  %v6376_v59 = vld [vmem:[%s8195_s1 + $0x7] sm:$0x1]  ;;  %vm4196_vm7 = vcmask 457728  }
  0xd7   : > { %6363 = vmatprep.subr.msk.bf16.mxu1 %vm278_vm1, %v1332_v61  ;;  %3072 = vrot.lane.b32.xlu0 %v6921_v8, %s6854_s20  ;;  %v1533_v0 = vpop.permute.xlu0 %1532  ;;  %v1358_v24 = vsel %vm278_vm1, %v1335_v21, 0 }
  0xd8   : > { %3074 = vrot.lane.b32.xlu1 %v6930_v12, %s6854_s20 }
  0xd9   : > { %6358 = vmatmul.mubr.msk.bf16.vlgmr.msra.gmra.mrb[36].mxu0 %vm274_vm2, %v6352_v52  ;;  %v1535_v3 = vpop.permute.xlu1 %1534 }
  0xda   : > { %1361 = vmatpush1.bf16.msra.mxu0 %v1340_v63  ;;  %1392 = vmatprep.mubr.bf16.mxu0 %v6839_v6  ;;  %v1549_v26 = vsel %vm1548_vm8, %v1533_v0, %v1535_v3 }
  0xdb   : > { %6365 = vmatprep.subr.msk.bf16.mxu0 %vm278_vm1, %v1334_v2  ;;  %3076 = vrot.lane.b32.xlu0 %v6926_v11, %s6854_s20  ;;  %v1537_v7 = vpop.permute.xlu0 %1536  ;;  %v1560_v29 = vsel %vm278_vm1, %v1549_v26, 0 }
  0xdc   : > { %3078 = vrot.lane.b32.xlu1 %v6938_v15, %s6854_s20  ;;  %v1550_v22 = vsel %vm1548_vm8, %v1535_v3, %v1537_v7 }
  0xdd   : > { %6620 = vmatmul.mubr.msk.bf16.vlgmr.msra.gmra.mrb[36].mxu1 %vm274_vm2, %v6352_v52  ;;  %v1539_v10 = vpop.permute.xlu1 %1538 }
  0xde   : > { %1402 = vmatpush1.bf16.msra.mxu1 %v1346_v4  ;;  %1433 = vmatprep.mubr.bf16.mxu1 %v6839_v6  ;;  %v1551_v31 = vsel %vm1548_vm8, %v1537_v7, %v1539_v10 }
  0xdf   : > { %6623 = vmatprep.subr.bf16.mxu1 %v6848_v34  ;;  %3080 = vrot.lane.b32.xlu0 %v6933_v14, %s6854_s20  ;;  %v1541_v20 = vpop.permute.xlu0 %1540  ;;  %v1566_v35 = vsel %vm278_vm1, %v1551_v31, 0 }
  0xe0   : > { %3082 = vrot.lane.b32.xlu1 %v6947_v17, %s6854_s20  ;;  %v1552_v27 = vsel %vm1548_vm8, %v1539_v10, %v1541_v20 }
  0xe1   : > { %6362 = vmatmul.mubr.msk.bf16.vlgmr.msra.gmra.mrb[40].mxu0 %vm274_vm2, %v6360_v13  ;;  %v1543_v23 = vpop.permute.xlu1 %1542 }
  0xe2   : > { %1443 = vmatpush1.bf16.msra.mxu0 %v1352_v19  ;;  %1474 = vmatprep.mubr.bf16.mxu0 %v6839_v6  ;;  %v1553_v37 = vsel %vm1548_vm8, %v1541_v20, %v1543_v23 }
  0xe3   : > { %6369 = vmatprep.subr.msk.bf16.mxu0 %vm278_vm1, %v1550_v22  ;;  %3084 = vrot.lane.b32.xlu0 %v6942_v16, %s6854_s20  ;;  %v1545_v25 = vpop.permute.xlu0 %1544  ;;  %v1572_v40 = vsel %vm278_vm1, %v1553_v37, 0 }
  0xe4   : > { %3086 = vrot.lane.b32.xlu1 %v6953_v18, %s6854_s20  ;;  %v1554_v32 = vsel %vm1548_vm8, %v1543_v23, %v1545_v25 }
  0xe5   : > { %6364 = vmatmul.mubr.msk.bf16.vlgmr.msra.gmra.mrb[40].mxu1 %vm274_vm2, %v6360_v13  ;;  %v1547_v28 = vpop.permute.xlu1 %1546 }
  0xe6   : > { %6624 = vmatpush3.bf16.msra.mxu1 %v1358_v24  ;;  %6625 = vmatprep.mubr.msk.bf16.mxu1 %vm6849_vm3, %v6848_v34  ;;  %v1555_v42 = vsel %vm1548_vm8, %v1545_v25, %v1547_v28  ;;  %v6384_v24 = vld [vmem:[%s8195_s1 + $0x8] sm:$0x1]  ;;  %vm4416_vm8 = vcmask 449536  }
  0xe7   : > { %6371 = vmatprep.subr.msk.bf16.mxu1 %vm278_vm1, %v1552_v27  ;;  %3292 = vrot.lane.b32.xlu0 %v6921_v8, %s6855_s23  ;;  %v1753_v30 = vpop.permute.xlu0 %1752  ;;  %v1578_v45 = vsel %vm278_vm1, %v1555_v42, 0 }
  0xe8   : > { %3294 = vrot.lane.b32.xlu1 %v6930_v12, %s6855_s23 }
  0xe9   : > { %6366 = vmatmul.mubr.msk.bf16.vlgmr.msra.gmra.mrb[44].mxu0 %vm274_vm2, %v6360_v13  ;;  %v1755_v33 = vpop.permute.xlu1 %1754 }
  0xea   : > { %1581 = vmatpush1.bf16.msra.mxu0 %v1560_v29  ;;  %1612 = vmatprep.mubr.bf16.mxu0 %v6839_v6  ;;  %v1769_v47 = vsel %vm1768_vm9, %v1753_v30, %v1755_v33 }
  0xeb   : > { %6373 = vmatprep.subr.msk.bf16.mxu0 %vm278_vm1, %v1554_v32  ;;  %3296 = vrot.lane.b32.xlu0 %v6926_v11, %s6855_s23  ;;  %v1757_v36 = vpop.permute.xlu0 %1756  ;;  %v1780_v50 = vsel %vm278_vm1, %v1769_v47, 0 }
  0xec   : > { %3298 = vrot.lane.b32.xlu1 %v6938_v15, %s6855_s23  ;;  %v1770_v43 = vsel %vm1768_vm9, %v1755_v33, %v1757_v36 }
  0xed   : > { %6626 = vmatmul.mubr.msk.bf16.vlgmr.msra.gmra.mrb[44].mxu1 %vm274_vm2, %v6360_v13  ;;  %v1759_v38 = vpop.permute.xlu1 %1758 }
  0xee   : > { %1622 = vmatpush1.bf16.msra.mxu1 %v1566_v35  ;;  %1653 = vmatprep.mubr.bf16.mxu1 %v6839_v6  ;;  %v1771_v52 = vsel %vm1768_vm9, %v1757_v36, %v1759_v38 }
  0xef   : > { %6629 = vmatprep.subr.bf16.mxu1 %v6848_v34  ;;  %3300 = vrot.lane.b32.xlu0 %v6933_v14, %s6855_s23  ;;  %v1761_v41 = vpop.permute.xlu0 %1760  ;;  %v1786_v55 = vsel %vm278_vm1, %v1771_v52, 0 }
  0xf0   : > { %3302 = vrot.lane.b32.xlu1 %v6947_v17, %s6855_s23  ;;  %v1772_v48 = vsel %vm1768_vm9, %v1759_v38, %v1761_v41 }
  0xf1   : > { %6370 = vmatmul.mubr.msk.bf16.vlgmr.msra.gmra.mrb[48].mxu0 %vm274_vm2, %v6368_v39  ;;  %v1763_v44 = vpop.permute.xlu1 %1762 }
  0xf2   : > { %1663 = vmatpush1.bf16.msra.mxu0 %v1572_v40  ;;  %1694 = vmatprep.mubr.bf16.mxu0 %v6839_v6  ;;  %v1773_v57 = vsel %vm1768_vm9, %v1761_v41, %v1763_v44 }
  0xf3   : > { %6377 = vmatprep.subr.msk.bf16.mxu0 %vm278_vm1, %v1770_v43  ;;  %3304 = vrot.lane.b32.xlu0 %v6942_v16, %s6855_s23  ;;  %v1765_v46 = vpop.permute.xlu0 %1764  ;;  %v1792_v60 = vsel %vm278_vm1, %v1773_v57, 0 }
  0xf4   : > { %3306 = vrot.lane.b32.xlu1 %v6953_v18, %s6855_s23  ;;  %v1774_v53 = vsel %vm1768_vm9, %v1763_v44, %v1765_v46  ;;  %v6392_v44 = vld [vmem:[%s8195_s1 + $0x9] sm:$0x1] }
  0xf5   : > { %6372 = vmatmul.mubr.msk.bf16.vlgmr.msra.gmra.mrb[48].mxu1 %vm274_vm2, %v6368_v39  ;;  %v1767_v49 = vpop.permute.xlu1 %1766 }
  0xf6   : > { %6630 = vmatpush3.bf16.msra.mxu1 %v1578_v45  ;;  %6631 = vmatprep.mubr.msk.bf16.mxu1 %vm6849_vm3, %v6848_v34  ;;  %v1775_v62 = vsel %vm1768_vm9, %v1765_v46, %v1767_v49  ;;  %vm4636_vm9 = vcmask 441344  }
  0xf7   : > { %6379 = vmatprep.subr.msk.bf16.mxu1 %vm278_vm1, %v1772_v48  ;;  %3512 = vrot.lane.b32.xlu0 %v6921_v8, %s6856_s26  ;;  %v1973_v51 = vpop.permute.xlu0 %1972  ;;  %v1798_v1 = vsel %vm278_vm1, %v1775_v62, 0 }
  0xf8   : > { %3514 = vrot.lane.b32.xlu1 %v6930_v12, %s6856_s26 }
  0xf9   : > { %6374 = vmatmul.mubr.msk.bf16.vlgmr.msra.gmra.mrb[52].mxu0 %vm274_vm2, %v6368_v39  ;;  %v1975_v54 = vpop.permute.xlu1 %1974 }
  0xfa   : > { %1801 = vmatpush1.bf16.msra.mxu0 %v1780_v50  ;;  %1832 = vmatprep.mubr.bf16.mxu0 %v6839_v6  ;;  %v1989_v2 = vsel %vm1988_vm10, %v1973_v51, %v1975_v54 }
  0xfb   : > { %6381 = vmatprep.subr.msk.bf16.mxu0 %vm278_vm1, %v1774_v53  ;;  %3516 = vrot.lane.b32.xlu0 %v6926_v11, %s6856_s26  ;;  %v1977_v56 = vpop.permute.xlu0 %1976  ;;  %v2000_v9 = vsel %vm278_vm1, %v1989_v2, 0 }
  0xfc   : > { %3518 = vrot.lane.b32.xlu1 %v6938_v15, %s6856_s26  ;;  %v1990_v63 = vsel %vm1988_vm10, %v1975_v54, %v1977_v56 }
  0xfd   : > { %6632 = vmatmul.mubr.msk.bf16.vlgmr.msra.gmra.mrb[52].mxu1 %vm274_vm2, %v6368_v39  ;;  %v1979_v58 = vpop.permute.xlu1 %1978 }
  0xfe   : > { %1842 = vmatpush1.bf16.msra.mxu1 %v1786_v55  ;;  %1873 = vmatprep.mubr.bf16.mxu1 %v6839_v6  ;;  %v1991_v10 = vsel %vm1988_vm10, %v1977_v56, %v1979_v58 }
  0xff   : > { %6635 = vmatprep.subr.bf16.mxu1 %v6848_v34  ;;  %3520 = vrot.lane.b32.xlu0 %v6933_v14, %s6856_s26  ;;  %v1981_v61 = vpop.permute.xlu0 %1980  ;;  %v2006_v21 = vsel %vm278_vm1, %v1991_v10, 0 }
 0x100   : > { %3522 = vrot.lane.b32.xlu1 %v6947_v17, %s6856_s26  ;;  %v1992_v3 = vsel %vm1988_vm10, %v1979_v58, %v1981_v61 }
 0x101   : > { %6378 = vmatmul.mubr.msk.bf16.vlgmr.msra.gmra.mrb[56].mxu0 %vm274_vm2, %v6376_v59  ;;  %v1983_v0 = vpop.permute.xlu1 %1982 }
 0x102   : > { %1883 = vmatpush1.bf16.msra.mxu0 %v1792_v60  ;;  %1914 = vmatprep.mubr.bf16.mxu0 %v6839_v6  ;;  %v1993_v22 = vsel %vm1988_vm10, %v1981_v61, %v1983_v0 }
 0x103   : > { %6385 = vmatprep.subr.msk.bf16.mxu0 %vm278_vm1, %v1990_v63  ;;  %3524 = vrot.lane.b32.xlu0 %v6942_v16, %s6856_s26  ;;  %v2012_v26 = vsel %vm278_vm1, %v1993_v22, 0 }
 0x104   : > { %3526 = vrot.lane.b32.xlu1 %v6953_v18, %s6856_s26 }
 0x105   : > { %6380 = vmatmul.mubr.msk.bf16.vlgmr.msra.gmra.mrb[56].mxu1 %vm274_vm2, %v6376_v59  ;;  %v1985_v4 = vpop.permute.xlu0 %1984 }
 0x106   : > { %6636 = vmatpush3.bf16.msra.mxu1 %v1798_v1  ;;  %6637 = vmatprep.mubr.msk.bf16.mxu1 %vm6849_vm3, %v6848_v34  ;;  %v1987_v7 = vpop.permute.xlu1 %1986  ;;  %v1994_v13 = vsel %vm1988_vm10, %v1983_v0, %v1985_v4  ;;  %v6400_v0 = vld [vmem:[%s8195_s1 + $0xa] sm:$0x1] }
 0x107   : > { %6387 = vmatprep.subr.msk.bf16.mxu1 %vm278_vm1, %v1992_v3  ;;  %3732 = vrot.lane.b32.xlu0 %v6921_v8, %s6857_s29  ;;  %v1995_v27 = vsel %vm1988_vm10, %v1985_v4, %v1987_v7  ;;  %vm4856_vm10 = vcmask 375808  }
 0x108   : > { %3734 = vrot.lane.b32.xlu1 %v6930_v12, %s6857_s29  ;;  %v2018_v31 = vsel %vm278_vm1, %v1995_v27, 0 }
 0x109   : > { %6382 = vmatmul.mubr.msk.bf16.vlgmr.msra.gmra.mrb[60].mxu0 %vm274_vm2, %v6376_v59  ;;  %v2193_v19 = vpop.permute.xlu0 %2192 }
 0x10a   : > { %2021 = vmatpush1.bf16.msra.mxu0 %v2000_v9  ;;  %2052 = vmatprep.mubr.bf16.mxu0 %v6839_v6  ;;  %v2195_v20 = vpop.permute.xlu1 %2194  ;;  %v7467_v9 = vld.sshfl [vmem:[%s6916_s19 + $0x10] sm:$0x33 pattern:$0x76325410]  ;;  %s6860_s19 = smov 55  }
 0x10b   : > { %6389 = vmatprep.subr.msk.bf16.mxu0 %vm278_vm1, %v1994_v13  ;;  %3736 = vrot.lane.b32.xlu0 %v6926_v11, %s6857_s29  ;;  %v2209_v32 = vsel %vm2208_vm11, %v2193_v19, %v2195_v20 }
 0x10c   : > { %3738 = vrot.lane.b32.xlu1 %v6938_v15, %s6857_s29  ;;  %v2220_v37 = vsel %vm278_vm1, %v2209_v32, 0 }
 0x10d   : > { %6638 = vmatmul.mubr.msk.bf16.vlgmr.msra.gmra.mrb[60].mxu1 %vm274_vm2, %v6376_v59  ;;  %v2197_v23 = vpop.permute.xlu0 %2196 }
 0x10e   : > { %2062 = vmatpush1.bf16.msra.mxu1 %v2006_v21  ;;  %2093 = vmatprep.mubr.bf16.mxu1 %v6839_v6  ;;  %v2199_v25 = vpop.permute.xlu1 %2198  ;;  %v2210_v28 = vsel %vm2208_vm11, %v2195_v20, %v2197_v23 }
 0x10f   : > { %6641 = vmatprep.subr.bf16.mxu1 %v6848_v34  ;;  %3740 = vrot.lane.b32.xlu0 %v6933_v14, %s6857_s29  ;;  %v2211_v38 = vsel %vm2208_vm11, %v2197_v23, %v2199_v25 }
 0x110   : > { %3742 = vrot.lane.b32.xlu1 %v6947_v17, %s6857_s29  ;;  %v2226_v42 = vsel %vm278_vm1, %v2211_v38, 0 }
 0x111   : > { %6386 = vmatmul.mubr.msk.bf16.vlgmr.msra.gmra.mrb[64].mxu0 %vm274_vm2, %v6384_v24  ;;  %v2201_v29 = vpop.permute.xlu0 %2200 }
 0x112   : > { %2103 = vmatpush1.bf16.msra.mxu0 %v2012_v26  ;;  %2134 = vmatprep.mubr.bf16.mxu0 %v6839_v6  ;;  %v2203_v30 = vpop.permute.xlu1 %2202  ;;  %v2212_v33 = vsel %vm2208_vm11, %v2199_v25, %v2201_v29 }
 0x113   : > { %6393 = vmatprep.subr.msk.bf16.mxu0 %vm278_vm1, %v2210_v28  ;;  %3744 = vrot.lane.b32.xlu0 %v6942_v16, %s6857_s29 }
 0x114   : > { %3746 = vrot.lane.b32.xlu1 %v6953_v18, %s6857_s29 }
 0x115   : > { %6388 = vmatmul.mubr.msk.bf16.vlgmr.msra.gmra.mrb[64].mxu1 %vm274_vm2, %v6384_v24  ;;  %v2205_v35 = vpop.permute.xlu0 %2204 }
 0x116   : > { %6642 = vmatpush3.bf16.msra.mxu1 %v2018_v31  ;;  %6643 = vmatprep.mubr.msk.bf16.mxu1 %vm6849_vm3, %v6848_v34  ;;  %v2207_v36 = vpop.permute.xlu1 %2206  ;;  %v2214_v39 = vsel %vm2208_vm11, %v2203_v30, %v2205_v35  ;;  %v6408_v31 = vld [vmem:[%s8195_s1 + $0xb] sm:$0x1] }
 0x117   : > { %6395 = vmatprep.subr.msk.bf16.mxu1 %vm278_vm1, %v2212_v33  ;;  %3952 = vrot.lane.b32.xlu0 %v6921_v8, %s6858_s5  ;;  %v2213_v8 = vsel %vm2208_vm11, %v2201_v29, %v2203_v30  ;;  %v2215_v47 = vsel %vm2208_vm11, %v2205_v35, %v2207_v36  ;;  %vm5076_vm11 = vcmask 367616  }
 0x118   : > { %3954 = vrot.lane.b32.xlu1 %v6930_v12, %s6858_s5  ;;  %v2232_v46 = vsel %vm278_vm1, %v2213_v8, 0  ;;  %v2238_v51 = vsel %vm278_vm1, %v2215_v47, 0 }
 0x119   : > { %6390 = vmatmul.mubr.msk.bf16.vlgmr.msra.gmra.mrb[68].mxu0 %vm274_vm2, %v6384_v24  ;;  %v2413_v40 = vpop.permute.xlu0 %2412 }
 0x11a   : > { %2241 = vmatpush1.bf16.msra.mxu0 %v2220_v37  ;;  %2272 = vmatprep.mubr.bf16.mxu0 %v6839_v6  ;;  %v2415_v41 = vpop.permute.xlu1 %2414 }
 0x11b   : > { %6397 = vmatprep.subr.msk.bf16.mxu0 %vm278_vm1, %v2214_v39  ;;  %3956 = vrot.lane.b32.xlu0 %v6926_v11, %s6858_s5  ;;  %v2429_v52 = vsel %vm2428_vm12, %v2413_v40, %v2415_v41 }
 0x11c   : > { %3958 = vrot.lane.b32.xlu1 %v6938_v15, %s6858_s5  ;;  %v2440_v56 = vsel %vm278_vm1, %v2429_v52, 0 }
 0x11d   : > { %6644 = vmatmul.mubr.msk.bf16.vlgmr.msra.gmra.mrb[68].mxu1 %vm274_vm2, %v6384_v24  ;;  %v2417_v43 = vpop.permute.xlu0 %2416 }
 0x11e   : > { %2282 = vmatpush1.bf16.msra.mxu1 %v2226_v42  ;;  %2313 = vmatprep.mubr.bf16.mxu1 %v6839_v6  ;;  %v2419_v45 = vpop.permute.xlu1 %2418  ;;  %v2430_v48 = vsel %vm2428_vm12, %v2415_v41, %v2417_v43 }
 0x11f   : > { %6647 = vmatprep.subr.bf16.mxu1 %v6848_v34  ;;  %3960 = vrot.lane.b32.xlu0 %v6933_v14, %s6858_s5  ;;  %v2431_v57 = vsel %vm2428_vm12, %v2417_v43, %v2419_v45 }
 0x120   : > { %3962 = vrot.lane.b32.xlu1 %v6947_v17, %s6858_s5  ;;  %v2446_v61 = vsel %vm278_vm1, %v2431_v57, 0 }
 0x121   : > { %6394 = vmatmul.mubr.msk.bf16.vlgmr.msra.gmra.mrb[72].mxu0 %vm274_vm2, %v6392_v44  ;;  %v2421_v49 = vpop.permute.xlu0 %2420 }
 0x122   : > { %2323 = vmatpush1.bf16.msra.mxu0 %v2232_v46  ;;  %2354 = vmatprep.mubr.bf16.mxu0 %v6839_v6  ;;  %v2423_v50 = vpop.permute.xlu1 %2422  ;;  %v2432_v53 = vsel %vm2428_vm12, %v2419_v45, %v2421_v49 }
 0x123   : > { %6401 = vmatprep.subr.msk.bf16.mxu0 %vm278_vm1, %v2430_v48  ;;  %3964 = vrot.lane.b32.xlu0 %v6942_v16, %s6858_s5  ;;  %v2433_v62 = vsel %vm2428_vm12, %v2421_v49, %v2423_v50 }
 0x124   : > { %3966 = vrot.lane.b32.xlu1 %v6953_v18, %s6858_s5  ;;  %v2452_v2 = vsel %vm278_vm1, %v2433_v62, 0 }
 0x125   : > { %6396 = vmatmul.mubr.msk.bf16.vlgmr.msra.gmra.mrb[72].mxu1 %vm274_vm2, %v6392_v44  ;;  %v2425_v54 = vpop.permute.xlu0 %2424 }
 0x126   : > { %6648 = vmatpush3.bf16.msra.mxu1 %v2238_v51  ;;  %6649 = vmatprep.mubr.msk.bf16.mxu1 %vm6849_vm3, %v6848_v34  ;;  %v2427_v55 = vpop.permute.xlu1 %2426  ;;  %v2434_v58 = vsel %vm2428_vm12, %v2423_v50, %v2425_v54  ;;  %v6416_v51 = vld [vmem:[%s8195_s1 + $0xc] sm:$0x1] }
 0x127   : > { %6403 = vmatprep.subr.msk.bf16.mxu1 %vm278_vm1, %v2432_v53  ;;  %4180 = vrot.lane.b32.xlu0 %v6930_v12, %s6859_s8  ;;  %v2435_v3 = vsel %vm2428_vm12, %v2425_v54, %v2427_v55  ;;  %vm5296_vm12 = vcmask 359424  }
 0x128   : > { %4182 = vrot.lane.b32.xlu1 %v6926_v11, %s6859_s8  ;;  %v2458_v13 = vsel %vm278_vm1, %v2435_v3, 0 }
 0x129   : > { %6398 = vmatmul.mubr.msk.bf16.vlgmr.msra.gmra.mrb[76].mxu0 %vm274_vm2, %v6392_v44  ;;  %v2633_v59 = vpop.permute.xlu0 %2632 }
 0x12a   : > { %2461 = vmatpush1.bf16.msra.mxu0 %v2440_v56  ;;  %2492 = vmatprep.mubr.bf16.mxu0 %v6839_v6  ;;  %v2635_v60 = vpop.permute.xlu1 %2634 }
 0x12b   : > { %6405 = vmatprep.subr.msk.bf16.mxu0 %vm278_vm1, %v2434_v58  ;;  %4184 = vrot.lane.b32.xlu0 %v6938_v15, %s6859_s8  ;;  %v2649_v19 = vsel %vm2648_vm13, %v2633_v59, %v2635_v60 }
 0x12c   : > { %4186 = vrot.lane.b32.xlu1 %v6933_v14, %s6859_s8  ;;  %v2660_v23 = vsel %vm278_vm1, %v2649_v19, 0 }
 0x12d   : > { %6650 = vmatmul.mubr.msk.bf16.vlgmr.msra.gmra.mrb[76].mxu1 %vm274_vm2, %v6392_v44  ;;  %v2637_v63 = vpop.permute.xlu0 %2636 }
 0x12e   : > { %2502 = vmatpush1.bf16.msra.mxu1 %v2446_v61  ;;  %2533 = vmatprep.mubr.bf16.mxu1 %v6839_v6  ;;  %v2639_v1 = vpop.permute.xlu1 %2638  ;;  %v2650_v4 = vsel %vm2648_vm13, %v2635_v60, %v2637_v63 }
 0x12f   : > { %6653 = vmatprep.subr.bf16.mxu1 %v6848_v34  ;;  %4188 = vrot.lane.b32.xlu0 %v6947_v17, %s6859_s8  ;;  %v2651_v24 = vsel %vm2648_vm13, %v2637_v63, %v2639_v1 }
 0x130   : > { %4190 = vrot.lane.b32.xlu1 %v6942_v16, %s6859_s8  ;;  %v2666_v28 = vsel %vm278_vm1, %v2651_v24, 0 }
 0x131   : > { %6402 = vmatmul.mubr.msk.bf16.vlgmr.msra.gmra.mrb[80].mxu0 %vm274_vm2, %v6400_v0  ;;  %v2641_v7 = vpop.permute.xlu0 %2640 }
 0x132   : > { %2543 = vmatpush1.bf16.msra.mxu0 %v2452_v2  ;;  %2574 = vmatprep.mubr.bf16.mxu0 %v6839_v6  ;;  %v2643_v10 = vpop.permute.xlu1 %2642  ;;  %v2652_v20 = vsel %vm2648_vm13, %v2639_v1, %v2641_v7 }
 0x133   : > { %6409 = vmatprep.subr.msk.bf16.mxu0 %vm278_vm1, %v2650_v4  ;;  %4192 = vrot.lane.b32.xlu0 %v6953_v18, %s6859_s8  ;;  %v2653_v29 = vsel %vm2648_vm13, %v2641_v7, %v2643_v10 }
 0x134   : > { %4194 = vrot.lane.b32.xlu1 %v7467_v9, %s6859_s8  ;;  %v2672_v33 = vsel %vm278_vm1, %v2653_v29, 0 }
 0x135   : > { %6404 = vmatmul.mubr.msk.bf16.vlgmr.msra.gmra.mrb[80].mxu1 %vm274_vm2, %v6400_v0  ;;  %v2645_v21 = vpop.permute.xlu0 %2644 }
 0x136   : > { %6654 = vmatpush3.bf16.msra.mxu1 %v2458_v13  ;;  %6655 = vmatprep.mubr.msk.bf16.mxu1 %vm6849_vm3, %v6848_v34  ;;  %v2647_v22 = vpop.permute.xlu1 %2646  ;;  %v2654_v25 = vsel %vm2648_vm13, %v2643_v10, %v2645_v21  ;;  %v6424_v13 = vld [vmem:[%s8195_s1 + $0xd] sm:$0x1] }
 0x137   : > { %6411 = vmatprep.subr.msk.bf16.mxu1 %vm278_vm1, %v2652_v20  ;;  %4400 = vrot.lane.b32.xlu0 %v6930_v12, %s6860_s19  ;;  %v2655_v35 = vsel %vm2648_vm13, %v2645_v21, %v2647_v22  ;;  %vm5516_vm13 = vcmask 293888  }
 0x138   : > { %4402 = vrot.lane.b32.xlu1 %v6926_v11, %s6860_s19  ;;  %v2678_v39 = vsel %vm278_vm1, %v2655_v35, 0 }
 0x139   : > { %6406 = vmatmul.mubr.msk.bf16.vlgmr.msra.gmra.mrb[84].mxu0 %vm274_vm2, %v6400_v0  ;;  %v2853_v26 = vpop.permute.xlu0 %2852 }
 0x13a   : > { %2681 = vmatpush1.bf16.msra.mxu0 %v2660_v23  ;;  %2712 = vmatprep.mubr.bf16.mxu0 %v6839_v6  ;;  %v2855_v27 = vpop.permute.xlu1 %2854 }
 0x13b   : > { %6413 = vmatprep.subr.msk.bf16.mxu0 %vm278_vm1, %v2654_v25  ;;  %4404 = vrot.lane.b32.xlu0 %v6938_v15, %s6860_s19  ;;  %v2869_v40 = vsel %vm2868_vm14, %v2853_v26, %v2855_v27 }
 0x13c   : > { %4406 = vrot.lane.b32.xlu1 %v6933_v14, %s6860_s19  ;;  %v2880_v43 = vsel %vm278_vm1, %v2869_v40, 0 }
 0x13d   : > { %6656 = vmatmul.mubr.msk.bf16.vlgmr.msra.gmra.mrb[84].mxu1 %vm274_vm2, %v6400_v0  ;;  %v2857_v30 = vpop.permute.xlu0 %2856 }
 0x13e   : > { %2722 = vmatpush1.bf16.msra.mxu1 %v2666_v28  ;;  %2753 = vmatprep.mubr.bf16.mxu1 %v6839_v6  ;;  %v2859_v32 = vpop.permute.xlu1 %2858  ;;  %v2870_v36 = vsel %vm2868_vm14, %v2855_v27, %v2857_v30 }
 0x13f   : > { %6659 = vmatprep.subr.bf16.mxu1 %v6848_v34  ;;  %4408 = vrot.lane.b32.xlu0 %v6947_v17, %s6860_s19  ;;  %v2871_v44 = vsel %vm2868_vm14, %v2857_v30, %v2859_v32 }
 0x140   : > { %4410 = vrot.lane.b32.xlu1 %v6942_v16, %s6860_s19  ;;  %v2886_v48 = vsel %vm278_vm1, %v2871_v44, 0 }
 0x141   : > { %6410 = vmatmul.mubr.msk.bf16.vlgmr.msra.gmra.mrb[88].mxu0 %vm274_vm2, %v6408_v31  ;;  %v2861_v37 = vpop.permute.xlu0 %2860 }
 0x142   : > { %2763 = vmatpush1.bf16.msra.mxu0 %v2672_v33  ;;  %2794 = vmatprep.mubr.bf16.mxu0 %v6839_v6  ;;  %v2863_v38 = vpop.permute.xlu1 %2862  ;;  %v2872_v41 = vsel %vm2868_vm14, %v2859_v32, %v2861_v37 }
 0x143   : > { %6417 = vmatprep.subr.msk.bf16.mxu0 %vm278_vm1, %v2870_v36  ;;  %4412 = vrot.lane.b32.xlu0 %v6953_v18, %s6860_s19  ;;  %v2873_v49 = vsel %vm2868_vm14, %v2861_v37, %v2863_v38 }
 0x144   : > { %4414 = vrot.lane.b32.xlu1 %v7467_v9, %s6860_s19  ;;  %v2892_v53 = vsel %vm278_vm1, %v2873_v49, 0  ;;  %v6432_v49 = vld [vmem:[%s8195_s1 + $0xe] sm:$0x1] }
 0x145   : > { %6412 = vmatmul.mubr.msk.bf16.vlgmr.msra.gmra.mrb[88].mxu1 %vm274_vm2, %v6408_v31  ;;  %v2865_v42 = vpop.permute.xlu0 %2864 }
 0x146   : > { %6660 = vmatpush3.bf16.msra.mxu1 %v2678_v39  ;;  %6661 = vmatprep.mubr.msk.bf16.mxu1 %vm6849_vm3, %v6848_v34  ;;  %v2867_v8 = vpop.permute.xlu1 %2866  ;;  %v2874_v45 = vsel %vm2868_vm14, %v2863_v38, %v2865_v42 }
 0x147   : > { %6419 = vmatprep.subr.msk.bf16.mxu1 %vm278_vm1, %v2872_v41  ;;  %4620 = vrot.lane.b32.xlu0 %v6930_v12, %s6861_s17  ;;  %v2875_v54 = vsel %vm2868_vm14, %v2865_v42, %v2867_v8  ;;  %vm5736_vm14 = vcmask 285696  }
 0x148   : > { %4622 = vrot.lane.b32.xlu1 %v6926_v11, %s6861_s17  ;;  %v2898_v58 = vsel %vm278_vm1, %v2875_v54, 0 }
 0x149   : > { %6414 = vmatmul.mubr.msk.bf16.vlgmr.msra.gmra.mrb[92].mxu0 %vm274_vm2, %v6408_v31  ;;  %v3073_v46 = vpop.permute.xlu0 %3072 }
 0x14a   : > { %2901 = vmatpush1.bf16.msra.mxu0 %v2880_v43  ;;  %2932 = vmatprep.mubr.bf16.mxu0 %v6839_v6  ;;  %v3075_v47 = vpop.permute.xlu1 %3074 }
 0x14b   : > { %6421 = vmatprep.subr.msk.bf16.mxu0 %vm278_vm1, %v2874_v45  ;;  %4624 = vrot.lane.b32.xlu0 %v6938_v15, %s6861_s17  ;;  %v3089_v59 = vsel %vm3088_vm15, %v3073_v46, %v3075_v47 }
 0x14c   : > { %4626 = vrot.lane.b32.xlu1 %v6933_v14, %s6861_s17  ;;  %v3100_v63 = vsel %vm278_vm1, %v3089_v59, 0 }
 0x14d   : > { %6662 = vmatmul.mubr.msk.bf16.vlgmr.msra.gmra.mrb[92].mxu1 %vm274_vm2, %v6408_v31  ;;  %v3077_v50 = vpop.permute.xlu0 %3076 }
 0x14e   : > { %2942 = vmatpush1.bf16.msra.mxu1 %v2886_v48  ;;  %2973 = vmatprep.mubr.bf16.mxu1 %v6839_v6  ;;  %v3079_v52 = vpop.permute.xlu1 %3078  ;;  %v3090_v55 = vsel %vm3088_vm15, %v3075_v47, %v3077_v50 }
 0x14f   : > { %6665 = vmatprep.subr.bf16.mxu1 %v6848_v34  ;;  %4628 = vrot.lane.b32.xlu0 %v6947_v17, %s6861_s17  ;;  %v3091_v0 = vsel %vm3088_vm15, %v3077_v50, %v3079_v52 }
 0x150   : > { %4630 = vrot.lane.b32.xlu1 %v6942_v16, %s6861_s17  ;;  %v3106_v4 = vsel %vm278_vm1, %v3091_v0, 0 }
 0x151   : > { %6418 = vmatmul.mubr.msk.bf16.vlgmr.msra.gmra.mrb[96].mxu0 %vm274_vm2, %v6416_v51  ;;  %v3081_v56 = vpop.permute.xlu0 %3080 }
 0x152   : > { %2983 = vmatpush1.bf16.msra.mxu0 %v2892_v53  ;;  %3014 = vmatprep.mubr.bf16.mxu0 %v6839_v6  ;;  %v3083_v57 = vpop.permute.xlu1 %3082  ;;  %v3092_v60 = vsel %vm3088_vm15, %v3079_v52, %v3081_v56 }
 0x153   : > { %6425 = vmatprep.subr.msk.bf16.mxu0 %vm278_vm1, %v3090_v55  ;;  %4632 = vrot.lane.b32.xlu0 %v6953_v18, %s6861_s17  ;;  %v3093_v7 = vsel %vm3088_vm15, %v3081_v56, %v3083_v57 }
 0x154   : > { %4634 = vrot.lane.b32.xlu1 %v7467_v9, %s6861_s17  ;;  %v3112_v20 = vsel %vm278_vm1, %v3093_v7, 0 }
 0x155   : > { %6420 = vmatmul.mubr.msk.bf16.vlgmr.msra.gmra.mrb[96].mxu1 %vm274_vm2, %v6416_v51  ;;  %v3085_v61 = vpop.permute.xlu0 %3084 }
 0x156   : > { %6666 = vmatpush3.bf16.msra.mxu1 %v2898_v58  ;;  %6667 = vmatprep.mubr.msk.bf16.mxu1 %vm6849_vm3, %v6848_v34  ;;  %v3087_v62 = vpop.permute.xlu1 %3086  ;;  %v3094_v1 = vsel %vm3088_vm15, %v3083_v57, %v3085_v61 }
 0x157   : > { %6427 = vmatprep.subr.msk.bf16.mxu1 %vm278_vm1, %v3092_v60  ;;  %4840 = vrot.lane.b32.xlu0 %v6930_v12, %s6862_s21  ;;  %v3095_v21 = vsel %vm3088_vm15, %v3085_v61, %v3087_v62  ;;  %vm5956_vm15 = vcmask 277504  }
 0x158   : > { %4842 = vrot.lane.b32.xlu1 %v6926_v11, %s6862_s21  ;;  %v3118_v25 = vsel %vm278_vm1, %v3095_v21, 0 }
 0x159   : > { %6422 = vmatmul.mubr.msk.bf16.vlgmr.msra.gmra.mrb[100].mxu0 %vm274_vm2, %v6416_v51  ;;  %v3293_v2 = vpop.permute.xlu0 %3292 }
 0x15a   : > { %3121 = vmatpush1.bf16.msra.mxu0 %v3100_v63  ;;  %3152 = vmatprep.mubr.bf16.mxu0 %v6839_v6  ;;  %v3295_v3 = vpop.permute.xlu1 %3294 }
 0x15b   : > { %6429 = vmatprep.subr.msk.bf16.mxu0 %vm278_vm1, %v3094_v1  ;;  %4844 = vrot.lane.b32.xlu0 %v6938_v15, %s6862_s21  ;;  %v3309_v27 = vsel %vm3308_vm0, %v3293_v2, %v3295_v3 }
 0x15c   : > { %4846 = vrot.lane.b32.xlu1 %v6933_v14, %s6862_s21  ;;  %v3320_v35 = vsel %vm278_vm1, %v3309_v27, 0 }
 0x15d   : > { %6668 = vmatmul.mubr.msk.bf16.vlgmr.msra.gmra.mrb[100].mxu1 %vm274_vm2, %v6416_v51  ;;  %v3297_v10 = vpop.permute.xlu0 %3296 }
 0x15e   : > { %3162 = vmatpush1.bf16.msra.mxu1 %v3106_v4  ;;  %3193 = vmatprep.mubr.bf16.mxu1 %v6839_v6  ;;  %v3299_v19 = vpop.permute.xlu1 %3298  ;;  %v3310_v22 = vsel %vm3308_vm0, %v3295_v3, %v3297_v10 }
 0x15f   : > { %6671 = vmatprep.subr.bf16.mxu1 %v6848_v34  ;;  %4848 = vrot.lane.b32.xlu0 %v6947_v17, %s6862_s21  ;;  %v3311_v37 = vsel %vm3308_vm0, %v3297_v10, %v3299_v19 }
 0x160   : > { %4850 = vrot.lane.b32.xlu1 %v6942_v16, %s6862_s21  ;;  %v3326_v43 = vsel %vm278_vm1, %v3311_v37, 0 }
 0x161   : > { %6426 = vmatmul.mubr.msk.bf16.vlgmr.msra.gmra.mrb[104].mxu0 %vm274_vm2, %v6424_v13  ;;  %v3301_v23 = vpop.permute.xlu0 %3300 }
 0x162   : > { %3203 = vmatpush1.bf16.msra.mxu0 %v3112_v20  ;;  %3234 = vmatprep.mubr.bf16.mxu0 %v6839_v6  ;;  %v3303_v24 = vpop.permute.xlu1 %3302  ;;  %v3312_v28 = vsel %vm3308_vm0, %v3299_v19, %v3301_v23 }
 0x163   : > { %6433 = vmatprep.subr.msk.bf16.mxu0 %vm278_vm1, %v3310_v22  ;;  %4852 = vrot.lane.b32.xlu0 %v6953_v18, %s6862_s21  ;;  %v3313_v45 = vsel %vm3308_vm0, %v3301_v23, %v3303_v24 }
 0x164   : > { %v7603_v26 = vpop.f32.mrb[0].mxu0  ;;  %4854 = vrot.lane.b32.xlu1 %v7467_v9, %s6862_s21  ;;  %v3332_v52 = vsel %vm278_vm1, %v3313_v45, 0 }
 0x165   : > { %6428 = vmatmul.mubr.msk.bf16.vlgmr.msra.gmra.mrb[104].mxu1 %vm274_vm2, %v6424_v13  ;;  %v7610_v29 = vpop.f32.mrb[1].mxu0  ;;  %v3305_v30 = vpop.permute.xlu0 %3304 }
 0x166   : > { %6672 = vmatpush3.bf16.msra.mxu1 %v3118_v25  ;;  %v338_v31 = vpop.f32.mrb[2].mxu0  ;;  %6673 = vmatprep.mubr.msk.bf16.mxu1 %vm6849_vm3, %v6848_v34  ;;  %v3307_v32 = vpop.permute.xlu1 %3306  ;;  %v3314_v38 = vsel %vm3308_vm0, %v3303_v24, %v3305_v30 }
 0x167   : > { %v339_v33 = vpop.f32.mrb[3].mxu0  ;;  %6435 = vmatprep.subr.msk.bf16.mxu1 %vm278_vm1, %v3312_v28  ;;  %5060 = vrot.lane.b32.xlu0 %v6930_v12, %s6863_s24  ;;  %v3315_v54 = vsel %vm3308_vm0, %v3305_v30, %v3307_v32 }
 0x168   : > { %v7618_v36 = vpop.f32.mrb[0].mxu1  ;;  %5062 = vrot.lane.b32.xlu1 %v6926_v11, %s6863_s24  ;;  %v3338_v60 = vsel %vm278_vm1, %v3315_v54, 0 }
 0x169   : > { %6430 = vmatmul.mubr.msk.bf16.vlgmr.msra.gmra.mrb[108].mxu0 %vm274_vm2, %v6424_v13  ;;  %v7625_v39 = vpop.f32.mrb[1].mxu1  ;;  %v3513_v40 = vpop.permute.xlu0 %3512 }
 0x16a   : > { %3341 = vmatpush1.bf16.msra.mxu0 %v3320_v35  ;;  %v379_v41 = vpop.f32.mrb[2].mxu1  ;;  %3372 = vmatprep.mubr.bf16.mxu0 %v6839_v6  ;;  %v3515_v42 = vpop.permute.xlu1 %3514 }
 0x16b   : > { %v380_v8 = vpop.f32.mrb[3].mxu1  ;;  %6437 = vmatprep.subr.msk.bf16.mxu0 %vm278_vm1, %v3314_v38  ;;  %5064 = vrot.lane.b32.xlu0 %v6938_v15, %s6863_s24  ;;  %v3529_v63 = vsel %vm3528_vm4, %v3513_v40, %v3515_v42 }
 0x16c   : > { %v7632_v44 = vpop.f32.mrb[4].mxu0  ;;  %5066 = vrot.lane.b32.xlu1 %v6933_v14, %s6863_s24 }
 0x16d   : > { %6674 = vmatmul.mubr.msk.bf16.vlgmr.msra.gmra.mrb[108].mxu1 %vm274_vm2, %v6424_v13  ;;  %v7638_v46 = vpop.f32.mrb[5].mxu0  ;;  %v3517_v47 = vpop.permute.xlu0 %3516  ;;  %v3540_v13 = vsel %vm278_vm1, %v3529_v63, 0 }
 0x16e   : > { %3382 = vmatpush1.bf16.msra.mxu1 %v3326_v43  ;;  %v420_v48 = vpop.f32.mrb[6].mxu0  ;;  %3413 = vmatprep.mubr.bf16.mxu1 %v6839_v6  ;;  %v3519_v50 = vpop.permute.xlu1 %3518  ;;  %v3530_v55 = vsel %vm3528_vm4, %v3515_v42, %v3517_v47 }
 0x16f   : > { %v421_v51 = vpop.f32.mrb[7].mxu0  ;;  %6677 = vmatprep.subr.bf16.mxu1 %v6848_v34  ;;  %5068 = vrot.lane.b32.xlu0 %v6947_v17, %s6863_s24  ;;  %v3531_v21 = vsel %vm3528_vm4, %v3517_v47, %v3519_v50 }
 0x170   : > { %v7648_v53 = vpop.f32.mrb[4].mxu1  ;;  %5070 = vrot.lane.b32.xlu1 %v6942_v16, %s6863_s24 }
 0x171   : > { %6434 = vmatmul.mubr.msk.bf16.vlgmr.msra.gmra.mrb[112].mxu0 %vm274_vm2, %v6432_v49  ;;  %v6597_v56 = vpop.f32.mrb[5].mxu1  ;;  %v3521_v57 = vpop.permute.xlu0 %3520 }
 0x172   : > { %3423 = vmatpush1.bf16.msra.mxu0 %v3332_v52  ;;  %v460_v58 = vpop.f32.mrb[6].mxu1  ;;  %3454 = vmatprep.mubr.bf16.mxu0 %v6839_v6  ;;  %v3523_v59 = vpop.permute.xlu1 %3522  ;;  %v3532_v0 = vsel %vm3528_vm4, %v3519_v50, %v3521_v57 }
 0x173   : > { %v6598_v61 = vpop.f32.mrb[7].mxu1  ;;  %6441 = vmatprep.subr.msk.bf16.mxu0 %vm278_vm1, %v3530_v55  ;;  %5072 = vrot.lane.b32.xlu0 %v6953_v18, %s6863_s24  ;;  %v3533_v32 = vsel %vm3528_vm4, %v3521_v57, %v3523_v59 }
 0x174   : > { %v521_v62 = vpop.f32.mrb[8].mxu0  ;;  %5074 = vrot.lane.b32.xlu1 %v7467_v9, %s6863_s24  ;;  %v3552_v41 = vsel %vm278_vm1, %v3533_v32, 0 }
 0x175   : > { %v7665_v1 = vadd.f32 %v521_v62, %v7603_v26  ;;  %v523_v2 = vpop.f32.mrb[9].mxu0  ;;  %6436 = vmatmul.mubr.msk.bf16.vlgmr.msra.gmra.mrb[112].mxu1 %vm274_vm2, %v6432_v49  ;;  %v3525_v3 = vpop.permute.xlu0 %3524 }
 0x176   : > { %v7669_v4 = vadd.f32 %v523_v2, %v7610_v29  ;;  %6678 = vmatpush3.bf16.msra.mxu1 %v3338_v60  ;;  %v525_v7 = vpop.f32.mrb[10].mxu0  ;;  %6679 = vmatprep.mubr.msk.bf16.mxu1 %vm6849_vm3, %v6848_v34  ;;  %v3527_v10 = vpop.permute.xlu1 %3526  ;;  %v3534_v22 = vsel %vm3528_vm4, %v3523_v59, %v3525_v3  ;;  %v3546_v29 = vsel %vm278_vm1, %v3531_v21, 0 }
 0x177   : > { %v526_v19 = vpop.f32.mrb[11].mxu0  ;;  %6443 = vmatprep.subr.msk.bf16.mxu1 %vm278_vm1, %v3532_v0  ;;  %5280 = vrot.lane.b32.xlu0 %v6930_v12, %s6864_s27  ;;  %v3535_v43 = vsel %vm3528_vm4, %v3525_v3, %v3527_v10 }
 0x178   : > { %v562_v20 = vpop.f32.mrb[8].mxu1  ;;  %5282 = vrot.lane.b32.xlu1 %v6926_v11, %s6864_s27  ;;  %v3558_v50 = vsel %vm278_vm1, %v3535_v43, 0 }
 0x179   : > { %v7682_v23 = vadd.f32 %v562_v20, %v7618_v36  ;;  %v564_v24 = vpop.f32.mrb[9].mxu1  ;;  %6438 = vmatmul.mubr.msk.bf16.vlgmr.msra.gmra.mrb[116].mxu0 %vm274_vm2, %v6432_v49  ;;  %v3733_v25 = vpop.permute.xlu0 %3732 }
 0x17a   : > { %v7686_v26 = vadd.f32 %v564_v24, %v7625_v39  ;;  %3561 = vmatpush1.bf16.msra.mxu0 %v3540_v13  ;;  %v566_v27 = vpop.f32.mrb[10].mxu1  ;;  %3592 = vmatprep.mubr.bf16.mxu0 %v6839_v6  ;;  %v3735_v28 = vpop.permute.xlu1 %3734  ;;  %v7706_v39 = vld [vmem:[%s8195_s1 + $0xf] sm:$0x1] }
 0x17b   : > { %v567_v30 = vpop.f32.mrb[11].mxu1  ;;  %6445 = vmatprep.subr.msk.bf16.mxu0 %vm278_vm1, %v3534_v22  ;;  %5284 = vrot.lane.b32.xlu0 %v6938_v15, %s6864_s27 }
 0x17c   : > { %v603_v31 = vpop.f32.mrb[12].mxu0  ;;  %5286 = vrot.lane.b32.xlu1 %v6933_v14, %s6864_s27 }
 0x17d   : > { %v7697_v33 = vadd.f32 %v603_v31, %v7632_v44  ;;  %v605_v35 = vpop.f32.mrb[13].mxu0  ;;  %6680 = vmatmul.mubr.msk.bf16.vlgmr.msra.gmra.mrb[116].mxu1 %vm274_vm2, %v6432_v49  ;;  %v3737_v36 = vpop.permute.xlu0 %3736 }
 0x17e   : > { %v7701_v37 = vadd.f32 %v605_v35, %v7638_v46  ;;  %3602 = vmatpush1.bf16.msra.mxu1 %v3546_v29  ;;  %v607_v38 = vpop.f32.mrb[14].mxu0  ;;  %3633 = vmatprep.mubr.bf16.mxu1 %v6839_v6  ;;  %v3739_v40 = vpop.permute.xlu1 %3738  ;;  %v3750_v44 = vsel %vm3748_vm5, %v3735_v28, %v3737_v36 }
 0x17f   : > { %v608_v42 = vpop.f32.mrb[15].mxu0  ;;  %6683 = vmatprep.subr.bf16.mxu1 %v6848_v34  ;;  %5288 = vrot.lane.b32.xlu0 %v6947_v17, %s6864_s27  ;;  %v3751_v0 = vsel %vm3748_vm5, %v3737_v36, %v3739_v40 }
 0x180   : > { %v644_v8 = vpop.f32.mrb[12].mxu1  ;;  %5290 = vrot.lane.b32.xlu1 %v6942_v16, %s6864_s27  ;;  %v3766_v19 = vsel %vm278_vm1, %v3751_v0, 0 }
 0x181   : > { %v7718_v45 = vadd.f32 %v644_v8, %v7648_v53  ;;  %6442 = vmatmul.mubr.msk.bf16.vlgmr.msra.gmra.mrb[120].mxu0 %vm274_vm2, %v7706_v39  ;;  %v6603_v46 = vpop.f32.mrb[13].mxu1  ;;  %v3741_v47 = vpop.permute.xlu0 %3740  ;;  %v3749_v53 = vsel %vm3748_vm5, %v3733_v25, %v3735_v28  ;;  %v7776_v28 = vld [vmem:[%s8195_s1 + $0x10] sm:$0x1] }
 0x182   : > { %3643 = vmatpush1.bf16.msra.mxu0 %v3552_v41  ;;  %v647_v48 = vpop.f32.mrb[14].mxu1  ;;  %3674 = vmatprep.mubr.bf16.mxu0 %v6839_v6  ;;  %v3743_v49 = vpop.permute.xlu1 %3742  ;;  %v3752_v54 = vsel %vm3748_vm5, %v3739_v40, %v3741_v47  ;;  %v3760_v61 = vsel %vm278_vm1, %v3749_v53, 0 }
 0x183   : > { %v6604_v51 = vpop.f32.mrb[15].mxu1  ;;  %6449 = vmatprep.subr.msk.bf16.mxu0 %vm278_vm1, %v3750_v44  ;;  %5292 = vrot.lane.b32.xlu0 %v6953_v18, %s6864_s27  ;;  %v3753_v22 = vsel %vm3748_vm5, %v3741_v47, %v3743_v49 }
 0x184   : > { %v734_v52 = vpop.f32.mrb[16].mxu0  ;;  %5294 = vrot.lane.b32.xlu1 %v7467_v9, %s6864_s27  ;;  %v3772_v30 = vsel %vm278_vm1, %v3753_v22, 0 }
 0x185   : > { %v7732_v55 = vadd.f32 %v734_v52, %v7665_v1  ;;  %v736_v56 = vpop.f32.mrb[17].mxu0  ;;  %6444 = vmatmul.mubr.msk.bf16.vlgmr.msra.gmra.mrb[120].mxu1 %vm274_vm2, %v7706_v39  ;;  %v3745_v57 = vpop.permute.xlu0 %3744 }
 0x186   : > { %v7737_v58 = vadd.f32 %v736_v56, %v7669_v4  ;;  %6684 = vmatpush3.bf16.msra.mxu1 %v3558_v50  ;;  %v738_v59 = vpop.f32.mrb[18].mxu0  ;;  %6685 = vmatprep.mubr.msk.bf16.mxu1 %vm6849_vm3, %v6848_v34  ;;  %v3747_v60 = vpop.permute.xlu1 %3746  ;;  %v3754_v1 = vsel %vm3748_vm5, %v3743_v49, %v3745_v57 }
 0x187   : > { %v739_v62 = vpop.f32.mrb[19].mxu0  ;;  %6451 = vmatprep.subr.msk.bf16.mxu1 %vm278_vm1, %v3752_v54  ;;  %5500 = vrot.lane.b32.xlu0 %v6930_v12, %s6865_s30 }
 0x188   : > { %v775_v63 = vpop.f32.mrb[16].mxu1  ;;  %5502 = vrot.lane.b32.xlu1 %v6926_v11, %s6865_s30 }
 0x189   : > { %v7750_v2 = vadd.f32 %v775_v63, %v7682_v23  ;;  %v777_v3 = vpop.f32.mrb[17].mxu1  ;;  %6446 = vmatmul.mubr.msk.bf16.vlgmr.msra.gmra.mrb[124].mxu0 %vm274_vm2, %v7706_v39  ;;  %v3953_v4 = vpop.permute.xlu0 %3952 }
 0x18a   : > { %v7755_v7 = vadd.f32 %v777_v3, %v7686_v26  ;;  %3781 = vmatpush1.bf16.msra.mxu0 %v3760_v61  ;;  %v779_v10 = vpop.f32.mrb[18].mxu1  ;;  %3812 = vmatprep.mubr.bf16.mxu0 %v6839_v6  ;;  %v3955_v13 = vpop.permute.xlu1 %3954 }
 0x18b   : > { %v780_v20 = vpop.f32.mrb[19].mxu1  ;;  %6453 = vmatprep.subr.msk.bf16.mxu0 %vm278_vm1, %v3754_v1  ;;  %5504 = vrot.lane.b32.xlu0 %v6938_v15, %s6865_s30  ;;  %v3969_v43 = vsel %vm3968_vm6, %v3953_v4, %v3955_v13 }
 0x18c   : > { %v816_v21 = vpop.f32.mrb[20].mxu0  ;;  %5506 = vrot.lane.b32.xlu1 %v6933_v14, %s6865_s30  ;;  %v3980_v51 = vsel %vm278_vm1, %v3969_v43, 0 }
 0x18d   : > { %v7766_v23 = vadd.f32 %v816_v21, %v7697_v33  ;;  %v818_v24 = vpop.f32.mrb[21].mxu0  ;;  %6686 = vmatmul.mubr.msk.bf16.vlgmr.msra.gmra.mrb[124].mxu1 %vm274_vm2, %v7706_v39  ;;  %v3957_v25 = vpop.permute.xlu0 %3956  ;;  %v3755_v33 = vsel %vm3748_vm5, %v3745_v57, %v3747_v60 }
 0x18e   : > { %v7771_v26 = vadd.f32 %v818_v24, %v7701_v37  ;;  %3822 = vmatpush1.bf16.msra.mxu1 %v3766_v19  ;;  %v820_v27 = vpop.f32.mrb[22].mxu0  ;;  %3853 = vmatprep.mubr.bf16.mxu1 %v6839_v6  ;;  %v3959_v29 = vpop.permute.xlu1 %3958  ;;  %v3970_v35 = vsel %vm3968_vm6, %v3955_v13, %v3957_v25  ;;  %v3778_v41 = vsel %vm278_vm1, %v3755_v33, 0  ;;  %v7846_v13 = vld [vmem:[%s8195_s1 + $0x11] sm:$0x1] }
 0x18f   : > { %v821_v31 = vpop.f32.mrb[23].mxu0  ;;  %6689 = vmatprep.subr.bf16.mxu1 %v6848_v34  ;;  %5508 = vrot.lane.b32.xlu0 %v6947_v17, %s6865_s30  ;;  %v3971_v54 = vsel %vm3968_vm6, %v3957_v25, %v3959_v29 }
 0x190   : > { %v857_v32 = vpop.f32.mrb[20].mxu1  ;;  %5510 = vrot.lane.b32.xlu1 %v6942_v16, %s6865_s30  ;;  %v3986_v62 = vsel %vm278_vm1, %v3971_v54, 0 }
 0x191   : > { %v7788_v36 = vadd.f32 %v857_v32, %v7718_v45  ;;  %6450 = vmatmul.mubr.msk.bf16.vlgmr.msra.gmra.mrb[128].mxu0 %vm274_vm2, %v7776_v28  ;;  %v6609_v37 = vpop.f32.mrb[21].mxu1  ;;  %v3961_v38 = vpop.permute.xlu0 %3960 }
 0x192   : > { %3863 = vmatpush1.bf16.msra.mxu0 %v3772_v30  ;;  %v860_v39 = vpop.f32.mrb[22].mxu1  ;;  %3894 = vmatprep.mubr.bf16.mxu0 %v6839_v6  ;;  %v3963_v40 = vpop.permute.xlu1 %3962  ;;  %v3972_v44 = vsel %vm3968_vm6, %v3959_v29, %v3961_v38 }
 0x193   : > { %v6610_v42 = vpop.f32.mrb[23].mxu1  ;;  %6457 = vmatprep.subr.msk.bf16.mxu0 %vm278_vm1, %v3970_v35  ;;  %5512 = vrot.lane.b32.xlu0 %v6953_v18, %s6865_s30  ;;  %v3973_v1 = vsel %vm3968_vm6, %v3961_v38, %v3963_v40 }
 0x194   : > { %v954_v8 = vpop.f32.mrb[24].mxu0  ;;  %5514 = vrot.lane.b32.xlu1 %v7467_v9, %s6865_s30  ;;  %v3992_v20 = vsel %vm278_vm1, %v3973_v1, 0 }
 0x195   : > { %v7802_v45 = vadd.f32 %v954_v8, %v7732_v55  ;;  %v956_v46 = vpop.f32.mrb[25].mxu0  ;;  %6452 = vmatmul.mubr.msk.bf16.vlgmr.msra.gmra.mrb[128].mxu1 %vm274_vm2, %v7776_v28  ;;  %v3965_v47 = vpop.permute.xlu0 %3964 }
 0x196   : > { %v7807_v48 = vadd.f32 %v956_v46, %v7737_v58  ;;  %6690 = vmatpush3.bf16.msra.mxu1 %v3778_v41  ;;  %v958_v49 = vpop.f32.mrb[26].mxu0  ;;  %6691 = vmatprep.mubr.msk.bf16.mxu1 %vm6849_vm3, %v6848_v34  ;;  %v3967_v50 = vpop.permute.xlu1 %3966  ;;  %v3974_v55 = vsel %vm3968_vm6, %v3963_v40, %v3965_v47 }
 0x197   : > { %v959_v52 = vpop.f32.mrb[27].mxu0  ;;  %6459 = vmatprep.subr.msk.bf16.mxu1 %vm278_vm1, %v3972_v44  ;;  %5720 = vrot.lane.b32.xlu0 %v6930_v12, %s6866_s6 }
 0x198   : > { %v995_v53 = vpop.f32.mrb[24].mxu1  ;;  %5722 = vrot.lane.b32.xlu1 %v6926_v11, %s6866_s6 }
 0x199   : > { %v7820_v56 = vadd.f32 %v995_v53, %v7750_v2  ;;  %v997_v57 = vpop.f32.mrb[25].mxu1  ;;  %6454 = vmatmul.mubr.msk.bf16.vlgmr.msra.gmra.mrb[132].mxu0 %vm274_vm2, %v7776_v28  ;;  %v4181_v58 = vpop.permute.xlu0 %4180 }
 0x19a   : > { %v7825_v59 = vadd.f32 %v997_v57, %v7755_v7  ;;  %4001 = vmatpush1.bf16.msra.mxu0 %v3980_v51  ;;  %v999_v60 = vpop.f32.mrb[26].mxu1  ;;  %4032 = vmatprep.mubr.bf16.mxu0 %v6839_v6  ;;  %v4183_v61 = vpop.permute.xlu1 %4182 }
 0x19b   : > { %v1000_v63 = vpop.f32.mrb[27].mxu1  ;;  %6461 = vmatprep.subr.msk.bf16.mxu0 %vm278_vm1, %v3974_v55  ;;  %5724 = vrot.lane.b32.xlu0 %v6938_v15, %s6866_s6  ;;  %v4197_v33 = vsel %vm4196_vm7, %v4181_v58, %v4183_v61  ;;  %v6464_v58 = vld [vmem:[%s8195_s1 + $0x12] sm:$0x1] }
 0x19c   : > { %v1036_v0 = vpop.f32.mrb[28].mxu0  ;;  %5726 = vrot.lane.b32.xlu1 %v6933_v14, %s6866_s6  ;;  %v4208_v42 = vsel %vm278_vm1, %v4197_v33, 0 }
 0x19d   : > { %v7836_v2 = vadd.f32 %v1036_v0, %v7766_v23  ;;  %v1038_v3 = vpop.f32.mrb[29].mxu0  ;;  %6692 = vmatmul.mubr.msk.bf16.vlgmr.msra.gmra.mrb[132].mxu1 %vm274_vm2, %v7776_v28  ;;  %v4185_v4 = vpop.permute.xlu0 %4184  ;;  %v3975_v23 = vsel %vm3968_vm6, %v3965_v47, %v3967_v50 }
 0x19e   : > { %v7841_v7 = vadd.f32 %v1038_v3, %v7771_v26  ;;  %4042 = vmatpush1.bf16.msra.mxu1 %v3986_v62  ;;  %v1040_v10 = vpop.f32.mrb[30].mxu0  ;;  %4073 = vmatprep.mubr.bf16.mxu1 %v6839_v6  ;;  %v4187_v19 = vpop.permute.xlu1 %4186  ;;  %v4198_v24 = vsel %vm4196_vm7, %v4183_v61, %v4185_v4  ;;  %v3998_v30 = vsel %vm278_vm1, %v3975_v23, 0 }
 0x19f   : > { %v1041_v21 = vpop.f32.mrb[31].mxu0  ;;  %6695 = vmatprep.subr.bf16.mxu1 %v6848_v34  ;;  %5728 = vrot.lane.b32.xlu0 %v6947_v17, %s6866_s6  ;;  %v4199_v44 = vsel %vm4196_vm7, %v4185_v4, %v4187_v19 }
 0x1a0   : > { %v1077_v22 = vpop.f32.mrb[28].mxu1  ;;  %5730 = vrot.lane.b32.xlu1 %v6942_v16, %s6866_s6  ;;  %v4214_v51 = vsel %vm278_vm1, %v4199_v44, 0 }
 0x1a1   : > { %v7858_v25 = vadd.f32 %v1077_v22, %v7788_v36  ;;  %6458 = vmatmul.mubr.msk.bf16.vlgmr.msra.gmra.mrb[136].mxu0 %vm274_vm2, %v7846_v13  ;;  %v6615_v26 = vpop.f32.mrb[29].mxu1  ;;  %v4189_v27 = vpop.permute.xlu0 %4188 }
 0x1a2   : > { %4083 = vmatpush1.bf16.msra.mxu0 %v3992_v20  ;;  %v1080_v28 = vpop.f32.mrb[30].mxu1  ;;  %4114 = vmatprep.mubr.bf16.mxu0 %v6839_v6  ;;  %v4191_v29 = vpop.permute.xlu1 %4190  ;;  %v4200_v35 = vsel %vm4196_vm7, %v4187_v19, %v4189_v27 }
 0x1a3   : > { %v6616_v31 = vpop.f32.mrb[31].mxu1  ;;  %6466 = vmatprep.subr.msk.bf16.mxu0 %vm278_vm1, %v4198_v24  ;;  %5732 = vrot.lane.b32.xlu0 %v6953_v18, %s6866_s6  ;;  %v4201_v53 = vsel %vm4196_vm7, %v4189_v27, %v4191_v29 }
 0x1a4   : > { %v1174_v32 = vpop.f32.mrb[32].mxu0  ;;  %5734 = vrot.lane.b32.xlu1 %v7467_v9, %s6866_s6 }
 0x1a5   : > { %v7872_v36 = vadd.f32 %v1174_v32, %v7802_v45  ;;  %v1176_v37 = vpop.f32.mrb[33].mxu0  ;;  %6460 = vmatmul.mubr.msk.bf16.vlgmr.msra.gmra.mrb[136].mxu1 %vm274_vm2, %v7846_v13  ;;  %v4193_v38 = vpop.permute.xlu0 %4192 }
 0x1a6   : > { %v7877_v39 = vadd.f32 %v1176_v37, %v7807_v48  ;;  %6696 = vmatpush3.bf16.msra.mxu1 %v3998_v30  ;;  %v1178_v40 = vpop.f32.mrb[34].mxu0  ;;  %6697 = vmatprep.mubr.msk.bf16.mxu1 %vm6849_vm3, %v6848_v34  ;;  %v4195_v41 = vpop.permute.xlu1 %4194  ;;  %v4202_v45 = vsel %vm4196_vm7, %v4191_v29, %v4193_v38 }
 0x1a7   : > { %v1179_v8 = vpop.f32.mrb[35].mxu0  ;;  %6468 = vmatprep.subr.msk.bf16.mxu1 %vm278_vm1, %v4200_v35  ;;  %5940 = vrot.lane.b32.xlu0 %v6930_v12, %s6867_s9  ;;  %v4203_v62 = vsel %vm4196_vm7, %v4193_v38, %v4195_v41 }
 0x1a8   : > { %v1215_v43 = vpop.f32.mrb[32].mxu1  ;;  %5942 = vrot.lane.b32.xlu1 %v6926_v11, %s6867_s9  ;;  %v4226_v4 = vsel %vm278_vm1, %v4203_v62, 0 }
 0x1a9   : > { %v7890_v46 = vadd.f32 %v1215_v43, %v7820_v56  ;;  %v1217_v47 = vpop.f32.mrb[33].mxu1  ;;  %6462 = vmatmul.mubr.msk.bf16.vlgmr.msra.gmra.mrb[140].mxu0 %vm274_vm2, %v7846_v13  ;;  %v4401_v48 = vpop.permute.xlu0 %4400  ;;  %v6473_v43 = vld [vmem:[%s8195_s1 + $0x13] sm:$0x1] }
 0x1aa   : > { %v7895_v49 = vadd.f32 %v1217_v47, %v7825_v59  ;;  %4229 = vmatpush1.bf16.msra.mxu0 %v4208_v42  ;;  %v1219_v12 = vpop.f32.mrb[34].mxu1  ;;  %4260 = vmatprep.mubr.bf16.mxu0 %v6839_v6  ;;  %v4403_v50 = vpop.permute.xlu1 %4402  ;;  %v4220_v59 = vsel %vm278_vm1, %v4201_v53, 0 }
 0x1ab   : > { %v1220_v52 = vpop.f32.mrb[35].mxu1  ;;  %6470 = vmatprep.subr.msk.bf16.mxu0 %vm278_vm1, %v4202_v45  ;;  %5944 = vrot.lane.b32.xlu0 %v6938_v15, %s6867_s9  ;;  %v4417_v10 = vsel %vm4416_vm8, %v4401_v48, %v4403_v50 }
 0x1ac   : > { %v1256_v11 = vpop.f32.mrb[36].mxu0  ;;  %5946 = vrot.lane.b32.xlu1 %v6933_v14, %s6867_s9  ;;  %v4428_v24 = vsel %vm278_vm1, %v4417_v10, 0 }
 0x1ad   : > { %v7906_v54 = vadd.f32 %v1256_v11, %v7836_v2  ;;  %v1258_v55 = vpop.f32.mrb[37].mxu0  ;;  %6698 = vmatmul.mubr.msk.bf16.vlgmr.msra.gmra.mrb[140].mxu1 %vm274_vm2, %v7846_v13  ;;  %v4405_v56 = vpop.permute.xlu0 %4404 }
 0x1ae   : > { %v7911_v57 = vadd.f32 %v1258_v55, %v7841_v7  ;;  %4270 = vmatpush1.bf16.msra.mxu1 %v4214_v51  ;;  %v1260_v15 = vpop.f32.mrb[38].mxu0  ;;  %4301 = vmatprep.mubr.bf16.mxu1 %v6839_v6  ;;  %v4407_v14 = vpop.permute.xlu1 %4406  ;;  %v4418_v63 = vsel %vm4416_vm8, %v4403_v50, %v4405_v56 }
 0x1af   : > { %v1261_v60 = vpop.f32.mrb[39].mxu0  ;;  %6701 = vmatprep.subr.bf16.mxu1 %v6848_v34  ;;  %5948 = vrot.lane.b32.xlu0 %v6947_v17, %s6867_s9  ;;  %v4419_v26 = vsel %vm4416_vm8, %v4405_v56, %v4407_v14 }
 0x1b0   : > { %v1297_v61 = vpop.f32.mrb[36].mxu1  ;;  %5950 = vrot.lane.b32.xlu1 %v6942_v16, %s6867_s9  ;;  %v4434_v35 = vsel %vm278_vm1, %v4419_v26, 0 }
 0x1b1   : > { %v7926_v0 = vadd.f32 %v1297_v61, %v7858_v25  ;;  %6467 = vmatmul.mubr.msk.bf16.vlgmr.msra.gmra.mrb[144].mxu0 %vm274_vm2, %v6464_v58  ;;  %v6621_v1 = vpop.f32.mrb[37].mxu1  ;;  %v4409_v2 = vpop.permute.xlu0 %4408 }
 0x1b2   : > { %4311 = vmatpush1.bf16.msra.mxu0 %v4220_v59  ;;  %v1300_v3 = vpop.f32.mrb[38].mxu1  ;;  %4342 = vmatprep.mubr.bf16.mxu0 %v6839_v6  ;;  %v4411_v17 = vpop.permute.xlu1 %4410  ;;  %v4420_v13 = vsel %vm4416_vm8, %v4407_v14, %v4409_v2 }
 0x1b3   : > { %v6622_v7 = vpop.f32.mrb[39].mxu1  ;;  %6474 = vmatprep.subr.msk.bf16.mxu0 %vm278_vm1, %v4418_v63  ;;  %5952 = vrot.lane.b32.xlu0 %v6953_v18, %s6867_s9  ;;  %v4421_v38 = vsel %vm4416_vm8, %v4409_v2, %v4411_v17 }
 0x1b4   : > { %v1394_v16 = vpop.f32.mrb[40].mxu0  ;;  %5954 = vrot.lane.b32.xlu1 %v7467_v9, %s6867_s9  ;;  %v4440_v45 = vsel %vm278_vm1, %v4421_v38, 0 }
 0x1b5   : > { %v1523_v19 = vadd.f32 %v1394_v16, %v7872_v36  ;;  %v1396_v20 = vpop.f32.mrb[41].mxu0  ;;  %6469 = vmatmul.mubr.msk.bf16.vlgmr.msra.gmra.mrb[144].mxu1 %vm274_vm2, %v6464_v58  ;;  %v4413_v21 = vpop.permute.xlu0 %4412 }
 0x1b6   : > { %v1524_v22 = vadd.f32 %v1396_v20, %v7877_v39  ;;  %6702 = vmatpush3.bf16.msra.mxu1 %v4226_v4  ;;  %v1398_v23 = vpop.f32.mrb[42].mxu0  ;;  %6703 = vmatprep.mubr.msk.bf16.mxu1 %vm6849_vm3, %v6848_v34  ;;  %v4415_v18 = vpop.permute.xlu1 %4414  ;;  %v4422_v27 = vsel %vm4416_vm8, %v4411_v17, %v4413_v21 }
 0x1b7   : > { %v1399_v25 = vpop.f32.mrb[43].mxu0  ;;  %6476 = vmatprep.subr.msk.bf16.mxu1 %vm278_vm1, %v4420_v13  ;;  %v4423_v48 = vsel %vm4416_vm8, %v4413_v21, %v4415_v18 }
 0x1b8   : > { %v1435_v9 = vpop.f32.mrb[40].mxu1  ;;  %v4446_v53 = vsel %vm278_vm1, %v4423_v48, 0 }
 0x1b9   : > { %v1525_v28 = vadd.f32 %v1435_v9, %v7890_v46  ;;  %v1437_v29 = vpop.f32.mrb[41].mxu1  ;;  %6471 = vmatmul.mubr.msk.bf16.vlgmr.msra.gmra.mrb[148].mxu0 %vm274_vm2, %v6464_v58  ;;  %v4621_v30 = vpop.permute.xlu0 %4620  ;;  %v6481_v9 = vld [vmem:[%s8195_s1 + $0x14] sm:$0x1] }
 0x1ba   : > { %v1526_v31 = vadd.f32 %v1437_v29, %v7895_v49  ;;  %4449 = vmatpush1.bf16.msra.mxu0 %v4428_v24  ;;  %v1439_v32 = vpop.f32.mrb[42].mxu1  ;;  %4480 = vmatprep.mubr.bf16.mxu0 %v6839_v6  ;;  %v4623_v33 = vpop.permute.xlu1 %4622 }
 0x1bb   : > { %v1440_v36 = vpop.f32.mrb[43].mxu1  ;;  %6478 = vmatprep.subr.msk.bf16.mxu0 %vm278_vm1, %v4422_v27  ;;  %v4637_v56 = vsel %vm4636_vm9, %v4621_v30, %v4623_v33 }
 0x1bc   : > { %v1476_v37 = vpop.f32.mrb[44].mxu0  ;;  %v4648_v62 = vsel %vm278_vm1, %v4637_v56, 0 }
 0x1bd   : > { %v1527_v39 = vadd.f32 %v1476_v37, %v7906_v54  ;;  %v1478_v40 = vpop.f32.mrb[45].mxu0  ;;  %6704 = vmatmul.mubr.msk.bf16.vlgmr.msra.gmra.mrb[148].mxu1 %vm274_vm2, %v6464_v58  ;;  %v4625_v41 = vpop.permute.xlu0 %4624 }
 0x1be   : > { %v1528_v42 = vadd.f32 %v1478_v40, %v7911_v57  ;;  %4490 = vmatpush1.bf16.msra.mxu1 %v4434_v35  ;;  %v1480_v8 = vpop.f32.mrb[46].mxu0  ;;  %4521 = vmatprep.mubr.bf16.mxu1 %v6839_v6  ;;  %v4627_v44 = vpop.permute.xlu1 %4626  ;;  %v4638_v49 = vsel %vm4636_vm9, %v4623_v33, %v4625_v41 }
 0x1bf   : > { %v1481_v46 = vpop.f32.mrb[47].mxu0  ;;  %6707 = vmatprep.subr.bf16.mxu1 %v6848_v34  ;;  %v4639_v1 = vsel %vm4636_vm9, %v4625_v41, %v4627_v44 }
 0x1c0   : > { %v1517_v47 = vpop.f32.mrb[44].mxu1  ;;  %v4654_v13 = vsel %vm278_vm1, %v4639_v1, 0 }
 0x1c1   : > { %v1529_v12 = vadd.f32 %v1517_v47, %v7926_v0  ;;  %6475 = vmatmul.mubr.msk.bf16.vlgmr.msra.gmra.mrb[152].mxu0 %vm274_vm2, %v6473_v43  ;;  %v6627_v50 = vpop.f32.mrb[45].mxu1  ;;  %v4629_v51 = vpop.permute.xlu0 %4628 }
 0x1c2   : > { %4531 = vmatpush1.bf16.msra.mxu0 %v4440_v45  ;;  %v1520_v52 = vpop.f32.mrb[46].mxu1  ;;  %4562 = vmatprep.mubr.bf16.mxu0 %v6839_v6  ;;  %v4631_v11 = vpop.permute.xlu1 %4630  ;;  %v4640_v57 = vsel %vm4636_vm9, %v4627_v44, %v4629_v51 }
 0x1c3   : > { %v6628_v54 = vpop.f32.mrb[47].mxu1  ;;  %6482 = vmatprep.subr.msk.bf16.mxu0 %vm278_vm1, %v4638_v49  ;;  %v4641_v21 = vsel %vm4636_vm9, %v4629_v51, %v4631_v11 }
 0x1c4   : > { %v1614_v55 = vpop.f32.mrb[48].mxu0  ;;  %v4660_v27 = vsel %vm278_vm1, %v4641_v21, 0 }
 0x1c5   : > { %v1743_v15 = vadd.f32 %v1614_v55, %v1523_v19  ;;  %v1616_v58 = vpop.f32.mrb[49].mxu0  ;;  %6477 = vmatmul.mubr.msk.bf16.vlgmr.msra.gmra.mrb[152].mxu1 %vm274_vm2, %v6473_v43  ;;  %v4633_v14 = vpop.permute.xlu0 %4632 }
 0x1c6   : > { %v1744_v59 = vadd.f32 %v1616_v58, %v1524_v22  ;;  %6708 = vmatpush3.bf16.msra.mxu1 %v4446_v53  ;;  %v1618_v60 = vpop.f32.mrb[50].mxu0  ;;  %6709 = vmatprep.mubr.msk.bf16.mxu1 %vm6849_vm3, %v6848_v34  ;;  %v4635_v61 = vpop.permute.xlu1 %4634  ;;  %v4642_v2 = vsel %vm4636_vm9, %v4631_v11, %v4633_v14 }
 0x1c7   : > { %v1619_v63 = vpop.f32.mrb[51].mxu0  ;;  %6484 = vmatprep.subr.msk.bf16.mxu1 %vm278_vm1, %v4640_v57  ;;  %v4643_v30 = vsel %vm4636_vm9, %v4633_v14, %v4635_v61 }
 0x1c8   : > { %v1655_v0 = vpop.f32.mrb[48].mxu1  ;;  %v4666_v38 = vsel %vm278_vm1, %v4643_v30, 0 }
 0x1c9   : > { %v1745_v3 = vadd.f32 %v1655_v0, %v1525_v28  ;;  %v1657_v17 = vpop.f32.mrb[49].mxu1  ;;  %6479 = vmatmul.mubr.msk.bf16.vlgmr.msra.gmra.mrb[156].mxu0 %vm274_vm2, %v6473_v43  ;;  %v4841_v4 = vpop.permute.xlu0 %4840  ;;  %v6489_v0 = vld [vmem:[%s8195_s1 + $0x15] sm:$0x1] }
 0x1ca   : > { %v1746_v7 = vadd.f32 %v1657_v17, %v1526_v31  ;;  %4669 = vmatpush1.bf16.msra.mxu0 %v4648_v62  ;;  %v1659_v16 = vpop.f32.mrb[50].mxu1  ;;  %4700 = vmatprep.mubr.bf16.mxu0 %v6839_v6  ;;  %v4843_v10 = vpop.permute.xlu1 %4842 }
 0x1cb   : > { %v1660_v19 = vpop.f32.mrb[51].mxu1  ;;  %6486 = vmatprep.subr.msk.bf16.mxu0 %vm278_vm1, %v4642_v2  ;;  %v4857_v41 = vsel %vm4856_vm10, %v4841_v4, %v4843_v10 }
 0x1cc   : > { %v1696_v20 = vpop.f32.mrb[52].mxu0  ;;  %v4868_v48 = vsel %vm278_vm1, %v4857_v41, 0 }
 0x1cd   : > { %v1747_v22 = vadd.f32 %v1696_v20, %v1527_v39  ;;  %v1698_v23 = vpop.f32.mrb[53].mxu0  ;;  %6710 = vmatmul.mubr.msk.bf16.vlgmr.msra.gmra.mrb[156].mxu1 %vm274_vm2, %v6473_v43  ;;  %v4845_v18 = vpop.permute.xlu0 %4844 }
 0x1ce   : > { %v1748_v24 = vadd.f32 %v1698_v23, %v1528_v42  ;;  %4710 = vmatpush1.bf16.msra.mxu1 %v4654_v13  ;;  %v1700_v25 = vpop.f32.mrb[54].mxu0  ;;  %4741 = vmatprep.mubr.bf16.mxu1 %v6839_v6  ;;  %v4847_v26 = vpop.permute.xlu1 %4846  ;;  %v4858_v31 = vsel %vm4856_vm10, %v4843_v10, %v4845_v18 }
 0x1cf   : > { %v1701_v28 = vpop.f32.mrb[55].mxu0  ;;  %6713 = vmatprep.subr.bf16.mxu1 %v6848_v34  ;;  %v4859_v50 = vsel %vm4856_vm10, %v4845_v18, %v4847_v26 }
 0x1d0   : > { %v1737_v29 = vpop.f32.mrb[52].mxu1  ;;  %v4874_v57 = vsel %vm278_vm1, %v4859_v50, 0 }
 0x1d1   : > { %v1749_v32 = vadd.f32 %v1737_v29, %v1529_v12  ;;  %6483 = vmatmul.mubr.msk.bf16.vlgmr.msra.gmra.mrb[160].mxu0 %vm274_vm2, %v6481_v9  ;;  %v6633_v33 = vpop.f32.mrb[53].mxu1  ;;  %v4849_v35 = vpop.permute.xlu0 %4848 }
 0x1d2   : > { %4751 = vmatpush1.bf16.msra.mxu0 %v4660_v27  ;;  %v1740_v36 = vpop.f32.mrb[54].mxu1  ;;  %4782 = vmatprep.mubr.bf16.mxu0 %v6839_v6  ;;  %v4851_v37 = vpop.permute.xlu1 %4850  ;;  %v4860_v42 = vsel %vm4856_vm10, %v4847_v26, %v4849_v35 }
 0x1d3   : > { %v6634_v39 = vpop.f32.mrb[55].mxu1  ;;  %6490 = vmatprep.subr.msk.bf16.mxu0 %vm278_vm1, %v4858_v31  ;;  %v4861_v14 = vsel %vm4856_vm10, %v4849_v35, %v4851_v37 }
 0x1d4   : > { %v1834_v40 = vpop.f32.mrb[56].mxu0  ;;  %v4880_v2 = vsel %vm278_vm1, %v4861_v14, 0 }
 0x1d5   : > { %v1963_v8 = vadd.f32 %v1834_v40, %v1743_v15  ;;  %v1836_v43 = vpop.f32.mrb[57].mxu0  ;;  %6485 = vmatmul.mubr.msk.bf16.vlgmr.msra.gmra.mrb[160].mxu1 %vm274_vm2, %v6481_v9  ;;  %v4853_v44 = vpop.permute.xlu0 %4852 }
 0x1d6   : > { %v1964_v45 = vadd.f32 %v1836_v43, %v1744_v59  ;;  %6714 = vmatpush3.bf16.msra.mxu1 %v4666_v38  ;;  %v1838_v46 = vpop.f32.mrb[58].mxu0  ;;  %6715 = vmatprep.mubr.msk.bf16.mxu1 %vm6849_vm3, %v6848_v34  ;;  %v4855_v47 = vpop.permute.xlu1 %4854  ;;  %v4862_v51 = vsel %vm4856_vm10, %v4851_v37, %v4853_v44 }
 0x1d7   : > { %v1839_v49 = vpop.f32.mrb[59].mxu0  ;;  %6492 = vmatprep.subr.msk.bf16.mxu1 %vm278_vm1, %v4860_v42  ;;  %v4863_v4 = vsel %vm4856_vm10, %v4853_v44, %v4855_v47 }
 0x1d8   : > { %v1875_v12 = vpop.f32.mrb[56].mxu1  ;;  %v4886_v21 = vsel %vm278_vm1, %v4863_v4, 0 }
 0x1d9   : > { %v1965_v52 = vadd.f32 %v1875_v12, %v1745_v3  ;;  %v1877_v11 = vpop.f32.mrb[57].mxu1  ;;  %6487 = vmatmul.mubr.msk.bf16.vlgmr.msra.gmra.mrb[164].mxu0 %vm274_vm2, %v6481_v9  ;;  %v5061_v53 = vpop.permute.xlu0 %5060  ;;  %v6497_v12 = vld [vmem:[%s8195_s1 + $0x16] sm:$0x1] }
 0x1da   : > { %v1966_v54 = vadd.f32 %v1877_v11, %v1746_v7  ;;  %4889 = vmatpush1.bf16.msra.mxu0 %v4868_v48  ;;  %v1879_v55 = vpop.f32.mrb[58].mxu1  ;;  %4920 = vmatprep.mubr.bf16.mxu0 %v6839_v6  ;;  %v5063_v56 = vpop.permute.xlu1 %5062 }
 0x1db   : > { %v1880_v15 = vpop.f32.mrb[59].mxu1  ;;  %6494 = vmatprep.subr.msk.bf16.mxu0 %vm278_vm1, %v4862_v51  ;;  %v5077_v18 = vsel %vm5076_vm11, %v5061_v53, %v5063_v56 }
 0x1dc   : > { %v1916_v58 = vpop.f32.mrb[60].mxu0  ;;  %v5088_v30 = vsel %vm278_vm1, %v5077_v18, 0 }
 0x1dd   : > { %v1967_v59 = vadd.f32 %v1916_v58, %v1747_v22  ;;  %v1918_v60 = vpop.f32.mrb[61].mxu0  ;;  %6716 = vmatmul.mubr.msk.bf16.vlgmr.msra.gmra.mrb[164].mxu1 %vm274_vm2, %v6481_v9  ;;  %v5065_v61 = vpop.permute.xlu0 %5064 }
 0x1de   : > { %v1968_v62 = vadd.f32 %v1918_v60, %v1748_v24  ;;  %4930 = vmatpush1.bf16.msra.mxu1 %v4874_v57  ;;  %v1920_v63 = vpop.f32.mrb[62].mxu0  ;;  %4961 = vmatprep.mubr.bf16.mxu1 %v6839_v6  ;;  %v5067_v1 = vpop.permute.xlu1 %5066  ;;  %v5078_v7 = vsel %vm5076_vm11, %v5063_v56, %v5065_v61 }
 0x1df   : > { %v1921_v3 = vpop.f32.mrb[63].mxu0  ;;  %6719 = vmatprep.subr.bf16.mxu1 %v6848_v34  ;;  %v5079_v33 = vsel %vm5076_vm11, %v5065_v61, %v5067_v1 }
 0x1e0   : > { %v1957_v17 = vpop.f32.mrb[60].mxu1  ;;  %v5094_v42 = vsel %vm278_vm1, %v5079_v33, 0 }
 0x1e1   : > { %v1969_v16 = vadd.f32 %v1957_v17, %v1749_v32  ;;  %6491 = vmatmul.mubr.msk.bf16.vlgmr.msra.gmra.mrb[168].mxu0 %vm274_vm2, %v6489_v0  ;;  %v6639_v10 = vpop.f32.mrb[61].mxu1  ;;  %v5069_v13 = vpop.permute.xlu0 %5068 }
 0x1e2   : > { %4971 = vmatpush1.bf16.msra.mxu0 %v4880_v2  ;;  %v1960_v19 = vpop.f32.mrb[62].mxu1  ;;  %5002 = vmatprep.mubr.bf16.mxu0 %v6839_v6  ;;  %v5071_v20 = vpop.permute.xlu1 %5070  ;;  %v5080_v24 = vsel %vm5076_vm11, %v5067_v1, %v5069_v13 }
 0x1e3   : > { %v6640_v22 = vpop.f32.mrb[63].mxu1  ;;  %6498 = vmatprep.subr.msk.bf16.mxu0 %vm278_vm1, %v5078_v7  ;;  %v5081_v44 = vsel %vm5076_vm11, %v5069_v13, %v5071_v20 }
 0x1e4   : > { %v2054_v23 = vpop.f32.mrb[64].mxu0  ;;  %v5100_v51 = vsel %vm278_vm1, %v5081_v44, 0 }
 0x1e5   : > { %v2183_v25 = vadd.f32 %v2054_v23, %v1963_v8  ;;  %v2056_v9 = vpop.f32.mrb[65].mxu0  ;;  %6493 = vmatmul.mubr.msk.bf16.vlgmr.msra.gmra.mrb[168].mxu1 %vm274_vm2, %v6489_v0  ;;  %v5073_v26 = vpop.permute.xlu0 %5072 }
 0x1e6   : > { %v2184_v27 = vadd.f32 %v2056_v9, %v1964_v45  ;;  %6720 = vmatpush3.bf16.msra.mxu1 %v4886_v21  ;;  %v2058_v28 = vpop.f32.mrb[66].mxu0  ;;  %6721 = vmatprep.mubr.msk.bf16.mxu1 %vm6849_vm3, %v6848_v34  ;;  %v5075_v29 = vpop.permute.xlu1 %5074  ;;  %v5082_v35 = vsel %vm5076_vm11, %v5071_v20, %v5073_v26 }
 0x1e7   : > { %v2059_v31 = vpop.f32.mrb[67].mxu0  ;;  %6500 = vmatprep.subr.msk.bf16.mxu1 %vm278_vm1, %v5080_v24  ;;  %v5083_v53 = vsel %vm5076_vm11, %v5073_v26, %v5075_v29 }
 0x1e8   : > { %v2095_v32 = vpop.f32.mrb[64].mxu1  ;;  %v5106_v14 = vsel %vm278_vm1, %v5083_v53, 0  ;;  %v6158_v53 = vld [vmem:[%s8196_s2] sm:$0x3] }
 0x1e9   : > { %v2185_v36 = vadd.f32 %v2095_v32, %v1965_v52  ;;  %v2097_v37 = vpop.f32.mrb[65].mxu1  ;;  %6495 = vmatmul.mubr.msk.bf16.vlgmr.msra.gmra.mrb[172].mxu0 %vm274_vm2, %v6489_v0  ;;  %v5281_v38 = vpop.permute.xlu0 %5280  ;;  %v6505_v32 = vld [vmem:[%s8195_s1 + $0x17] sm:$0x1]  ;;  %6161 = vperm.xlu0 %6811, %v6158_v53  }
 0x1ea   : > { %v2186_v39 = vadd.f32 %v2097_v37, %v1966_v54  ;;  %5109 = vmatpush1.bf16.msra.mxu0 %v5088_v30  ;;  %v2099_v40 = vpop.f32.mrb[66].mxu1  ;;  %5140 = vmatprep.mubr.bf16.mxu0 %v6839_v6  ;;  %v5283_v41 = vpop.permute.xlu1 %5282 }
 0x1eb   : > { %v2100_v8 = vpop.f32.mrb[67].mxu1  ;;  %6502 = vmatprep.subr.msk.bf16.mxu0 %vm278_vm1, %v5082_v35  ;;  %v5297_v61 = vsel %vm5296_vm12, %v5281_v38, %v5283_v41 }
 0x1ec   : > { %v2136_v43 = vpop.f32.mrb[68].mxu0  ;;  %v5308_v4 = vsel %vm278_vm1, %v5297_v61, 0 }
 0x1ed   : > { %v2187_v45 = vadd.f32 %v2136_v43, %v1967_v59  ;;  %v2138_v46 = vpop.f32.mrb[69].mxu0  ;;  %6722 = vmatmul.mubr.msk.bf16.vlgmr.msra.gmra.mrb[172].mxu1 %vm274_vm2, %v6489_v0  ;;  %v5285_v47 = vpop.permute.xlu0 %5284 }
 0x1ee   : > { %v2188_v48 = vadd.f32 %v2138_v46, %v1968_v62  ;;  %5150 = vmatpush1.bf16.msra.mxu1 %v5094_v42  ;;  %v2140_v49 = vpop.f32.mrb[70].mxu0  ;;  %5181 = vmatprep.mubr.bf16.mxu1 %v6839_v6  ;;  %v5287_v50 = vpop.permute.xlu1 %5286  ;;  %v5298_v54 = vsel %vm5296_vm12, %v5283_v41, %v5285_v47 }
 0x1ef   : > { %v2141_v52 = vpop.f32.mrb[71].mxu0  ;;  %6725 = vmatprep.subr.bf16.mxu1 %v6848_v34  ;;  %v5299_v10 = vsel %vm5296_vm12, %v5285_v47, %v5287_v50 }
 0x1f0   : > { %v2177_v11 = vpop.f32.mrb[68].mxu1  ;;  %v5314_v24 = vsel %vm278_vm1, %v5299_v10, 0  ;;  %v6513_v10 = vld [vmem:[%s8195_s1 + $0x18] sm:$0x1] }
 0x1f1   : > { %v2189_v55 = vadd.f32 %v2177_v11, %v1969_v16  ;;  %6499 = vmatmul.mubr.msk.bf16.vlgmr.msra.gmra.mrb[176].mxu0 %vm274_vm2, %v6497_v12  ;;  %v6645_v56 = vpop.f32.mrb[69].mxu1  ;;  %v5289_v57 = vpop.permute.xlu0 %5288 }
 0x1f2   : > { %5191 = vmatpush1.bf16.msra.mxu0 %v5100_v51  ;;  %v2180_v15 = vpop.f32.mrb[70].mxu1  ;;  %5222 = vmatprep.mubr.bf16.mxu0 %v6839_v6  ;;  %v5291_v58 = vpop.permute.xlu1 %5290  ;;  %v5300_v62 = vsel %vm5296_vm12, %v5287_v50, %v5289_v57 }
 0x1f3   : > { %v6646_v59 = vpop.f32.mrb[71].mxu1  ;;  %6506 = vmatprep.subr.msk.bf16.mxu0 %vm278_vm1, %v5298_v54  ;;  %v5301_v26 = vsel %vm5296_vm12, %v5289_v57, %v5291_v58 }
 0x1f4   : > { %v2274_v60 = vpop.f32.mrb[72].mxu0  ;;  %v5320_v35 = vsel %vm278_vm1, %v5301_v26, 0 }
 0x1f5   : > { %v2403_v63 = vadd.f32 %v2274_v60, %v2183_v25  ;;  %v2276_v0 = vpop.f32.mrb[73].mxu0  ;;  %6501 = vmatmul.mubr.msk.bf16.vlgmr.msra.gmra.mrb[176].mxu1 %vm274_vm2, %v6497_v12  ;;  %v5293_v1 = vpop.permute.xlu0 %5292 }
 0x1f6   : > { %v2404_v2 = vadd.f32 %v2276_v0, %v2184_v27  ;;  %6726 = vmatpush3.bf16.msra.mxu1 %v5106_v14  ;;  %v2278_v3 = vpop.f32.mrb[74].mxu0  ;;  %6727 = vmatprep.mubr.msk.bf16.mxu1 %vm6849_vm3, %v6848_v34  ;;  %v5295_v17 = vpop.permute.xlu1 %5294  ;;  %v5302_v13 = vsel %vm5296_vm12, %v5291_v58, %v5293_v1 }
 0x1f7   : > { %v2279_v7 = vpop.f32.mrb[75].mxu0  ;;  %6508 = vmatprep.subr.msk.bf16.mxu1 %vm278_vm1, %v5300_v62  ;;  %v5303_v38 = vsel %vm5296_vm12, %v5293_v1, %v5295_v17 }
 0x1f8   : > { %v2315_v16 = vpop.f32.mrb[72].mxu1  ;;  %v5326_v44 = vsel %vm278_vm1, %v5303_v38, 0 }
 0x1f9   : > { %v8060_v19 = vadd.f32 %v2315_v16, %v2185_v36  ;;  %v2317_v20 = vpop.f32.mrb[73].mxu1  ;;  %6503 = vmatmul.mubr.msk.bf16.vlgmr.msra.gmra.mrb[180].mxu0 %vm274_vm2, %v6497_v12  ;;  %v5501_v21 = vpop.permute.xlu0 %5500 }
 0x1fa   : > { %v2406_v22 = vadd.f32 %v2317_v20, %v2186_v39  ;;  %5329 = vmatpush1.bf16.msra.mxu0 %v5308_v4  ;;  %v2319_v23 = vpop.f32.mrb[74].mxu1  ;;  %5360 = vmatprep.mubr.bf16.mxu0 %v6839_v6  ;;  %v5503_v18 = vpop.permute.xlu1 %5502 }
 0x1fb   : > { %v2320_v25 = vpop.f32.mrb[75].mxu1  ;;  %6510 = vmatprep.subr.msk.bf16.mxu0 %vm278_vm1, %v5302_v13  ;;  %v5517_v47 = vsel %vm5516_vm13, %v5501_v21, %v5503_v18 }
 0x1fc   : > { %v2356_v9 = vpop.f32.mrb[76].mxu0  ;;  %v5528_v54 = vsel %vm278_vm1, %v5517_v47, 0 }
 0x1fd   : > { %v8067_v27 = vadd.f32 %v2356_v9, %v2187_v45  ;;  %v2358_v28 = vpop.f32.mrb[77].mxu0  ;;  %6728 = vmatmul.mubr.msk.bf16.vlgmr.msra.gmra.mrb[180].mxu1 %vm274_vm2, %v6497_v12  ;;  %v5505_v29 = vpop.permute.xlu0 %5504 }
 0x1fe   : > { %v2408_v30 = vadd.f32 %v2358_v28, %v2188_v48  ;;  %5370 = vmatpush1.bf16.msra.mxu1 %v5314_v24  ;;  %v2360_v31 = vpop.f32.mrb[78].mxu0  ;;  %5401 = vmatprep.mubr.bf16.mxu1 %v6839_v6  ;;  %v5507_v33 = vpop.permute.xlu1 %5506  ;;  %v5518_v39 = vsel %vm5516_vm13, %v5503_v18, %v5505_v29 }
 0x1ff   : > { %v2361_v36 = vpop.f32.mrb[79].mxu0  ;;  %6731 = vmatprep.subr.bf16.mxu1 %v6848_v34  ;;  %v5519_v57 = vsel %vm5516_vm13, %v5505_v29, %v5507_v33 }
 0x200   : > { %v2397_v37 = vpop.f32.mrb[76].mxu1 }
 0x201   : > { %v8078_v40 = vadd.f32 %v2397_v37, %v2189_v55  ;;  %6507 = vmatmul.mubr.msk.bf16.vlgmr.msra.gmra.mrb[184].mxu0 %vm274_vm2, %v6505_v32  ;;  %v6651_v41 = vpop.f32.mrb[77].mxu1  ;;  %v5509_v42 = vpop.permute.xlu0 %5508 }
 0x202   : > { %5411 = vmatpush1.bf16.msra.mxu0 %v5320_v35  ;;  %v2400_v8 = vpop.f32.mrb[78].mxu1  ;;  %5442 = vmatprep.mubr.bf16.mxu0 %v6839_v6  ;;  %v5511_v43 = vpop.permute.xlu1 %5510  ;;  %v5520_v48 = vsel %vm5516_vm13, %v5507_v33, %v5509_v42 }
 0x203   : > { %v6652_v45 = vpop.f32.mrb[79].mxu1  ;;  %6514 = vmatprep.subr.msk.bf16.mxu0 %vm278_vm1, %v5518_v39 }
 0x204   : > { %v2494_v46 = vpop.f32.mrb[80].mxu0 }
 0x205   : > { %v8086_v49 = vadd.f32 %v2494_v46, %v2403_v63  ;;  %v2496_v12 = vpop.f32.mrb[81].mxu0  ;;  %6509 = vmatmul.mubr.msk.bf16.vlgmr.msra.gmra.mrb[184].mxu1 %vm274_vm2, %v6505_v32  ;;  %v5513_v50 = vpop.permute.xlu0 %5512  ;;  %v5534_v63 = vsel %vm278_vm1, %v5519_v57, 0 }
 0x206   : > { %v2624_v51 = vadd.f32 %v2496_v12, %v2404_v2  ;;  %6732 = vmatpush3.bf16.msra.mxu1 %v5326_v44  ;;  %v2498_v52 = vpop.f32.mrb[82].mxu0  ;;  %6733 = vmatprep.mubr.msk.bf16.mxu1 %vm6849_vm3, %v6848_v34  ;;  %v5515_v11 = vpop.permute.xlu1 %5514  ;;  %v5522_v15 = vsel %vm5516_vm13, %v5511_v43, %v5513_v50  ;;  %v5521_v2 = vsel %vm5516_vm13, %v5509_v42, %v5511_v43 }
 0x207   : > { %v2499_v55 = vpop.f32.mrb[83].mxu0  ;;  %6516 = vmatprep.subr.msk.bf16.mxu1 %vm278_vm1, %v5520_v48 }
 0x208   : > { %v2535_v56 = vpop.f32.mrb[80].mxu1 }
 0x209   : > { %v2625_v58 = vadd.f32 %v2535_v56, %v8060_v19  ;;  %v2537_v14 = vpop.f32.mrb[81].mxu1  ;;  %6511 = vmatmul.mubr.msk.bf16.vlgmr.msra.gmra.mrb[188].mxu0 %vm274_vm2, %v6505_v32  ;;  %v5721_v59 = vpop.permute.xlu0 %5720  ;;  %v5540_v19 = vsel %vm278_vm1, %v5521_v2, 0  ;;  %v6521_v56 = vld [vmem:[%s8195_s1 + $0x19] sm:$0x1] }
 0x20a   : > { %v2626_v60 = vadd.f32 %v2537_v14, %v2406_v22  ;;  %5549 = vmatpush1.bf16.msra.mxu0 %v5528_v54  ;;  %v2539_v61 = vpop.f32.mrb[82].mxu1  ;;  %5580 = vmatprep.mubr.bf16.mxu0 %v6839_v6  ;;  %v5723_v62 = vpop.permute.xlu1 %5722  ;;  %v5523_v22 = vsel %vm5516_vm13, %v5513_v50, %v5515_v11 }
 0x20b   : > { %v2540_v0 = vpop.f32.mrb[83].mxu1  ;;  %6518 = vmatprep.subr.msk.bf16.mxu0 %vm278_vm1, %v5522_v15 }
 0x20c   : > { %v2576_v1 = vpop.f32.mrb[84].mxu0 }
 0x20d   : > { %v2627_v3 = vadd.f32 %v2576_v1, %v8067_v27  ;;  %v2578_v17 = vpop.f32.mrb[85].mxu0  ;;  %6734 = vmatmul.mubr.msk.bf16.vlgmr.msra.gmra.mrb[188].mxu1 %vm274_vm2, %v6505_v32  ;;  %v5725_v4 = vpop.permute.xlu0 %5724  ;;  %v5546_v27 = vsel %vm278_vm1, %v5523_v22, 0 }
 0x20e   : > { %v2628_v7 = vadd.f32 %v2578_v17, %v2408_v30  ;;  %5590 = vmatpush1.bf16.msra.mxu1 %v5534_v63  ;;  %v2580_v16 = vpop.f32.mrb[86].mxu0  ;;  %5621 = vmatprep.mubr.bf16.mxu1 %v6839_v6  ;;  %v5727_v13 = vpop.permute.xlu1 %5726  ;;  %v5738_v23 = vsel %vm5736_vm14, %v5723_v62, %v5725_v4  ;;  %v5737_v30 = vsel %vm5736_vm14, %v5721_v59, %v5723_v62 }
 0x20f   : > { %v2581_v20 = vpop.f32.mrb[87].mxu0  ;;  %6737 = vmatprep.subr.bf16.mxu1 %v6848_v34  ;;  %v5748_v39 = vsel %vm278_vm1, %v5737_v30, 0  ;;  %v5739_v42 = vsel %vm5736_vm14, %v5725_v4, %v5727_v13 }
 0x210   : > { %v2617_v21 = vpop.f32.mrb[84].mxu1 }
 0x211   : > { %v2629_v18 = vadd.f32 %v2617_v21, %v8078_v40  ;;  %6515 = vmatmul.mubr.msk.bf16.vlgmr.msra.gmra.mrb[192].mxu0 %vm274_vm2, %v6513_v10  ;;  %v6657_v24 = vpop.f32.mrb[85].mxu1  ;;  %v5729_v25 = vpop.permute.xlu0 %5728 }
 0x212   : > { %5631 = vmatpush1.bf16.msra.mxu0 %v5540_v19  ;;  %v2620_v9 = vpop.f32.mrb[86].mxu1  ;;  %5662 = vmatprep.mubr.bf16.mxu0 %v6839_v6  ;;  %v5731_v26 = vpop.permute.xlu1 %5730  ;;  %v5740_v31 = vsel %vm5736_vm14, %v5727_v13, %v5729_v25 }
 0x213   : > { %v6658_v28 = vpop.f32.mrb[87].mxu1  ;;  %6522 = vmatprep.subr.msk.bf16.mxu0 %vm278_vm1, %v5738_v23 }
 0x214   : > { %v2714_v29 = vpop.f32.mrb[88].mxu0 }
 0x215   : > { %v2843_v32 = vadd.f32 %v2714_v29, %v8086_v49  ;;  %v2716_v33 = vpop.f32.mrb[89].mxu0  ;;  %6517 = vmatmul.mubr.msk.bf16.vlgmr.msra.gmra.mrb[192].mxu1 %vm274_vm2, %v6513_v10  ;;  %v5733_v35 = vpop.permute.xlu0 %5732  ;;  %v5754_v49 = vsel %vm278_vm1, %v5739_v42, 0 }
 0x216   : > { %v2844_v36 = vadd.f32 %v2716_v33, %v2624_v51  ;;  %6738 = vmatpush3.bf16.msra.mxu1 %v5546_v27  ;;  %v2718_v37 = vpop.f32.mrb[90].mxu0  ;;  %6739 = vmatprep.mubr.msk.bf16.mxu1 %vm6849_vm3, %v6848_v34  ;;  %v5735_v38 = vpop.permute.xlu1 %5734  ;;  %v5742_v8 = vsel %vm5736_vm14, %v5731_v26, %v5733_v35  ;;  %v5741_v51 = vsel %vm5736_vm14, %v5729_v25, %v5731_v26 }
 0x217   : > { %v2719_v40 = vpop.f32.mrb[91].mxu0  ;;  %6524 = vmatprep.subr.msk.bf16.mxu1 %vm278_vm1, %v5740_v31  ;;  %v5760_v15 = vsel %vm278_vm1, %v5741_v51, 0  ;;  %v5743_v59 = vsel %vm5736_vm14, %v5733_v35, %v5735_v38  ;;  %v6529_v38 = vld [vmem:[%s8195_s1 + $0x1a] sm:$0x1] }
 0x218   : > { %v2755_v41 = vpop.f32.mrb[88].mxu1  ;;  %v5766_v1 = vsel %vm278_vm1, %v5743_v59, 0 }
 0x219   : > { %v2845_v43 = vadd.f32 %v2755_v41, %v2625_v58  ;;  %v2757_v44 = vpop.f32.mrb[89].mxu1  ;;  %6519 = vmatmul.mubr.msk.bf16.vlgmr.msra.gmra.mrb[196].mxu0 %vm274_vm2, %v6513_v10  ;;  %v5941_v45 = vpop.permute.xlu0 %5940 }
 0x21a   : > { %v2846_v46 = vadd.f32 %v2757_v44, %v2626_v60  ;;  %5769 = vmatpush1.bf16.msra.mxu0 %v5748_v39  ;;  %v2759_v47 = vpop.f32.mrb[90].mxu1  ;;  %5800 = vmatprep.mubr.bf16.mxu0 %v6839_v6  ;;  %v5943_v48 = vpop.permute.xlu1 %5942 }
 0x21b   : > { %v2760_v12 = vpop.f32.mrb[91].mxu1  ;;  %6526 = vmatprep.subr.msk.bf16.mxu0 %vm278_vm1, %v5742_v8  ;;  %v5957_v17 = vsel %vm5956_vm15, %v5941_v45, %v5943_v48 }
 0x21c   : > { %v2796_v50 = vpop.f32.mrb[92].mxu0  ;;  %v5968_v21 = vsel %vm278_vm1, %v5957_v17, 0 }
 0x21d   : > { %v2847_v52 = vadd.f32 %v2796_v50, %v2627_v3  ;;  %v2798_v11 = vpop.f32.mrb[93].mxu0  ;;  %6740 = vmatmul.mubr.msk.bf16.vlgmr.msra.gmra.mrb[196].mxu1 %vm274_vm2, %v6513_v10  ;;  %v5945_v53 = vpop.permute.xlu0 %5944 }
 0x21e   : > { %v2848_v54 = vadd.f32 %v2798_v11, %v2628_v7  ;;  %5810 = vmatpush1.bf16.msra.mxu1 %v5754_v49  ;;  %v2800_v55 = vpop.f32.mrb[94].mxu0  ;;  %5841 = vmatprep.mubr.bf16.mxu1 %v6839_v6  ;;  %v5947_v57 = vpop.permute.xlu1 %5946  ;;  %v5958_v60 = vsel %vm5956_vm15, %v5943_v48, %v5945_v53 }
 0x21f   : > { %v2801_v58 = vpop.f32.mrb[95].mxu0  ;;  %6743 = vmatprep.subr.bf16.mxu1 %v6848_v34 }
 0x220   : > { %v2837_v14 = vpop.f32.mrb[92].mxu1 }
 0x221   : > { %v2849_v61 = vadd.f32 %v2837_v14, %v2629_v18  ;;  %6523 = vmatmul.mubr.msk.bf16.vlgmr.msra.gmra.mrb[200].mxu0 %vm274_vm2, %v6521_v56  ;;  %v6663_v62 = vpop.f32.mrb[93].mxu1  ;;  %v5949_v63 = vpop.permute.xlu0 %5948  ;;  %v5959_v18 = vsel %vm5956_vm15, %v5945_v53, %v5947_v57 }
 0x222   : > { %5851 = vmatpush1.bf16.msra.mxu0 %v5760_v15  ;;  %v2840_v0 = vpop.f32.mrb[94].mxu1  ;;  %5882 = vmatprep.mubr.bf16.mxu0 %v6839_v6  ;;  %v5960_v4 = vsel %vm5956_vm15, %v5947_v57, %v5949_v63  ;;  %v5951_v7 = vpop.permute.xlu1 %5950  ;;  %v5974_v28 = vsel %vm278_vm1, %v5959_v18, 0 }
 0x223   : > { %v6664_v2 = vpop.f32.mrb[95].mxu1  ;;  %6530 = vmatprep.subr.msk.bf16.mxu0 %vm278_vm1, %v5958_v60  ;;  %v5961_v31 = vsel %vm5956_vm15, %v5949_v63, %v5951_v7 }
 0x224   : > { %v2934_v3 = vpop.f32.mrb[96].mxu0  ;;  %v5980_v39 = vsel %vm278_vm1, %v5961_v31, 0 }
 0x225   : > { %v3063_v16 = vadd.f32 %v2934_v3, %v2843_v32  ;;  %v2936_v10 = vpop.f32.mrb[97].mxu0  ;;  %6525 = vmatmul.mubr.msk.bf16.vlgmr.msra.gmra.mrb[200].mxu1 %vm274_vm2, %v6521_v56  ;;  %v5953_v13 = vpop.permute.xlu0 %5952 }
 0x226   : > { %v3064_v19 = vadd.f32 %v2936_v10, %v2844_v36  ;;  %6744 = vmatpush3.bf16.msra.mxu1 %v5766_v1  ;;  %v2938_v20 = vpop.f32.mrb[98].mxu0  ;;  %6745 = vmatprep.mubr.msk.bf16.mxu1 %vm6849_vm3, %v6848_v34  ;;  %v5962_v24 = vsel %vm5956_vm15, %v5951_v7, %v5953_v13  ;;  %v5955_v35 = vpop.permute.xlu1 %5954 }
 0x227   : > { %v2939_v22 = vpop.f32.mrb[99].mxu0  ;;  %6532 = vmatprep.subr.msk.bf16.mxu1 %vm278_vm1, %v5960_v4  ;;  %v5963_v42 = vsel %vm5956_vm15, %v5953_v13, %v5955_v35 }
 0x228   : > { %v2975_v23 = vpop.f32.mrb[96].mxu1  ;;  %v5986_v45 = vsel %vm278_vm1, %v5963_v42, 0 }
 0x229   : > { %v3065_v25 = vadd.f32 %v2975_v23, %v2845_v43  ;;  %v2977_v9 = vpop.f32.mrb[97].mxu1  ;;  %6527 = vmatmul.mubr.msk.bf16.vlgmr.msra.gmra.mrb[204].mxu0 %vm274_vm2, %v6521_v56 }
 0x22a   : > { %v3066_v26 = vadd.f32 %v2977_v9, %v2846_v46  ;;  %5989 = vmatpush1.bf16.msra.mxu0 %v5968_v21  ;;  %v2979_v27 = vpop.f32.mrb[98].mxu1  ;;  %6020 = vmatprep.mubr.bf16.mxu0 %v6839_v6 }
 0x22b   : > { %v2980_v29 = vpop.f32.mrb[99].mxu1  ;;  %6534 = vmatprep.subr.msk.bf16.mxu0 %vm278_vm1, %v5962_v24 }
 0x22c   : > { %v3016_v30 = vpop.f32.mrb[100].mxu0 }
 0x22d   : > { %v3067_v32 = vadd.f32 %v3016_v30, %v2847_v52  ;;  %v3018_v33 = vpop.f32.mrb[101].mxu0  ;;  %6746 = vmatmul.mubr.msk.bf16.vlgmr.msra.gmra.mrb[204].mxu1 %vm274_vm2, %v6521_v56 }
 0x22e   : > { %v3068_v36 = vadd.f32 %v3018_v33, %v2848_v54  ;;  %6030 = vmatpush1.bf16.msra.mxu1 %v5974_v28  ;;  %v3020_v37 = vpop.f32.mrb[102].mxu0  ;;  %6061 = vmatprep.mubr.bf16.mxu1 %v6839_v6 }
 0x22f   : > { %v3021_v40 = vpop.f32.mrb[103].mxu0  ;;  %6749 = vmatprep.subr.bf16.mxu1 %v6848_v34 }
 0x230   : > { %v3057_v41 = vpop.f32.mrb[100].mxu1 }
 0x231   : > { %v3069_v8 = vadd.f32 %v3057_v41, %v2849_v61  ;;  %6531 = vmatmul.mubr.msk.bf16.vlgmr.msra.gmra.mrb[208].mxu0 %vm274_vm2, %v6529_v38  ;;  %v6669_v43 = vpop.f32.mrb[101].mxu1 }
 0x232   : > { %6071 = vmatpush1.bf16.msra.mxu0 %v5980_v39  ;;  %v3060_v44 = vpop.f32.mrb[102].mxu1  ;;  %6102 = vmatprep.mubr.bf16.mxu0 %v6839_v6 }
 0x233   : > { %v6670_v46 = vpop.f32.mrb[103].mxu1 }
 0x234   : > { %v3154_v47 = vpop.f32.mrb[104].mxu0 }
 0x235   : > { %v3283_v48 = vadd.f32 %v3154_v47, %v3063_v16  ;;  %v3156_v49 = vpop.f32.mrb[105].mxu0  ;;  %6533 = vmatmul.mubr.msk.bf16.vlgmr.msra.gmra.mrb[208].mxu1 %vm274_vm2, %v6529_v38 }
 0x236   : > { %v3284_v12 = vadd.f32 %v3156_v49, %v3064_v19  ;;  %6750 = vmatpush3.bf16.msra.mxu1 %v5986_v45  ;;  %v3158_v50 = vpop.f32.mrb[106].mxu0  ;;  %6751 = vmatprep.mubr.msk.bf16.mxu1 %vm6849_vm3, %v6848_v34 }
 0x237   : > { %v3159_v51 = vpop.f32.mrb[107].mxu0 }
 0x238   : > { %v3195_v52 = vpop.f32.mrb[104].mxu1 }
 0x239   : > { %v3285_v11 = vadd.f32 %v3195_v52, %v3065_v25  ;;  %v3197_v53 = vpop.f32.mrb[105].mxu1  ;;  %6535 = vmatmul.mubr.msk.bf16.vlgmr.msra.gmra.mrb[212].mxu0 %vm274_vm2, %v6529_v38 }
 0x23a   : > { %v3286_v6 = vadd.f32 %v3197_v53, %v3066_v26  ;;  %v3199_v54 = vpop.f32.mrb[106].mxu1 }
 0x23b   : > { %v3200_v55 = vpop.f32.mrb[107].mxu1 }
 0x23c   : > { %v3236_v56 = vpop.f32.mrb[108].mxu0 }
 0x23d   : > { %v3287_v57 = vadd.f32 %v3236_v56, %v3067_v32  ;;  %v3238_v15 = vpop.f32.mrb[109].mxu0  ;;  %6752 = vmatmul.mubr.msk.bf16.vlgmr.msra.gmra.mrb[212].mxu1 %vm274_vm2, %v6529_v38 }
 0x23e   : > { %v3288_v58 = vadd.f32 %v3238_v15, %v3068_v36  ;;  %v3240_v14 = vpop.f32.mrb[110].mxu0 }
 0x23f   : > { %v3241_v59 = vpop.f32.mrb[111].mxu0 }
 0x240   : > { %v3277_v60 = vpop.f32.mrb[108].mxu1 }
 0x241   : > { %v3289_v61 = vadd.f32 %v3277_v60, %v3069_v8  ;;  %v6675_v34 = vpop.f32.mrb[109].mxu1 }
 0x242   : > { %v3280_v62 = vpop.f32.mrb[110].mxu1 }
 0x243   : > { %v6676_v63 = vpop.f32.mrb[111].mxu1 }
 0x244   : > { %v3374_v0 = vpop.f32.mrb[112].mxu0 }
 0x245   : > { %v3503_v1 = vadd.f32 %v3374_v0, %v3283_v48  ;;  %v3376_v2 = vpop.f32.mrb[113].mxu0 }
 0x246   : > { %v3504_v3 = vadd.f32 %v3376_v2, %v3284_v12  ;;  %v3378_v17 = vpop.f32.mrb[114].mxu0 }
 0x247   : > { %v3379_v4 = vpop.f32.mrb[115].mxu0 }
 0x248   : > { %v3415_v7 = vpop.f32.mrb[112].mxu1 }
 0x249   : > { %v3505_v16 = vadd.f32 %v3415_v7, %v3285_v11  ;;  %v3417_v10 = vpop.f32.mrb[113].mxu1 }
 0x24a   : > { %v3506_v13 = vadd.f32 %v3417_v10, %v3286_v6  ;;  %v3419_v19 = vpop.f32.mrb[114].mxu1 }
 0x24b   : > { %v3420_v20 = vpop.f32.mrb[115].mxu1 }
 0x24c   : > { %v3456_v21 = vpop.f32.mrb[116].mxu0 }
 0x24d   : > { %v3507_v22 = vadd.f32 %v3456_v21, %v3287_v57  ;;  %v3458_v23 = vpop.f32.mrb[117].mxu0 }
 0x24e   : > { %v3508_v18 = vadd.f32 %v3458_v23, %v3288_v58  ;;  %v3460_v24 = vpop.f32.mrb[118].mxu0 }
 0x24f   : > { %v3461_v25 = vpop.f32.mrb[119].mxu0 }
 0x250   : > { %v3497_v9 = vpop.f32.mrb[116].mxu1 }
 0x251   : > { %v3509_v26 = vadd.f32 %v3497_v9, %v3289_v61  ;;  %v6681_v27 = vpop.f32.mrb[117].mxu1 }
 0x252   : > { %v3500_v28 = vpop.f32.mrb[118].mxu1 }
 0x253   : > { %v6682_v29 = vpop.f32.mrb[119].mxu1 }
 0x254   : > { %v3594_v30 = vpop.f32.mrb[120].mxu0 }
 0x255   : > { %v3723_v31 = vadd.f32 %v3594_v30, %v3503_v1  ;;  %v3596_v32 = vpop.f32.mrb[121].mxu0 }
 0x256   : > { %v3724_v33 = vadd.f32 %v3596_v32, %v3504_v3  ;;  %v3598_v35 = vpop.f32.mrb[122].mxu0 }
 0x257   : > { %v3599_v36 = vpop.f32.mrb[123].mxu0 }
 0x258   : > { %v3635_v37 = vpop.f32.mrb[120].mxu1 }
 0x259   : > { %v3725_v38 = vadd.f32 %v3635_v37, %v3505_v16  ;;  %v3637_v39 = vpop.f32.mrb[121].mxu1 }
 0x25a   : > { %v3726_v40 = vadd.f32 %v3637_v39, %v3506_v13  ;;  %v3639_v41 = vpop.f32.mrb[122].mxu1 }
 0x25b   : > { %v3640_v42 = vpop.f32.mrb[123].mxu1 }
 0x25c   : > { %v3676_v8 = vpop.f32.mrb[124].mxu0 }
 0x25d   : > { %v3727_v43 = vadd.f32 %v3676_v8, %v3507_v22  ;;  %v3678_v44 = vpop.f32.mrb[125].mxu0 }
 0x25e   : > { %v3728_v45 = vadd.f32 %v3678_v44, %v3508_v18  ;;  %v3680_v46 = vpop.f32.mrb[126].mxu0 }
 0x25f   : > { %v3681_v47 = vpop.f32.mrb[127].mxu0 }
 0x260   : > { %v3717_v48 = vpop.f32.mrb[124].mxu1 }
 0x261   : > { %v3729_v49 = vadd.f32 %v3717_v48, %v3509_v26  ;;  %v6687_v12 = vpop.f32.mrb[125].mxu1 }
 0x262   : > { %v3720_v50 = vpop.f32.mrb[126].mxu1 }
 0x263   : > { %v6688_v51 = vpop.f32.mrb[127].mxu1 }
 0x264   : > { %v3814_v52 = vpop.f32.mrb[128].mxu0 }
 0x265   : > { %v3943_v11 = vadd.f32 %v3814_v52, %v3723_v31  ;;  %v3816_v53 = vpop.f32.mrb[129].mxu0 }
 0x266   : > { %v3944_v6 = vadd.f32 %v3816_v53, %v3724_v33  ;;  %v3818_v54 = vpop.f32.mrb[130].mxu0 }
 0x267   : > { %v3819_v55 = vpop.f32.mrb[131].mxu0 }
 0x268   : > { %v3855_v56 = vpop.f32.mrb[128].mxu1 }
 0x269   : > { %v3945_v57 = vadd.f32 %v3855_v56, %v3725_v38  ;;  %v3857_v15 = vpop.f32.mrb[129].mxu1 }
 0x26a   : > { %v3946_v58 = vadd.f32 %v3857_v15, %v3726_v40  ;;  %v3859_v14 = vpop.f32.mrb[130].mxu1 }
 0x26b   : > { %v3860_v59 = vpop.f32.mrb[131].mxu1 }
 0x26c   : > { %v3896_v60 = vpop.f32.mrb[132].mxu0 }
 0x26d   : > { %v3947_v61 = vadd.f32 %v3896_v60, %v3727_v43  ;;  %v3898_v34 = vpop.f32.mrb[133].mxu0 }
 0x26e   : > { %v3948_v62 = vadd.f32 %v3898_v34, %v3728_v45  ;;  %v3900_v63 = vpop.f32.mrb[134].mxu0 }
 0x26f   : > { %v3901_v0 = vpop.f32.mrb[135].mxu0 }
 0x270   : > { %v3937_v1 = vpop.f32.mrb[132].mxu1 }
 0x271   : > { %v3949_v2 = vadd.f32 %v3937_v1, %v3729_v49  ;;  %v6693_v3 = vpop.f32.mrb[133].mxu1 }
 0x272   : > { %v3940_v17 = vpop.f32.mrb[134].mxu1 }
 0x273   : > { %v6694_v4 = vpop.f32.mrb[135].mxu1 }
 0x274   : > { %v4034_v7 = vpop.f32.mrb[136].mxu0 }
 0x275   : > { %v4163_v16 = vadd.f32 %v4034_v7, %v3943_v11  ;;  %v4036_v10 = vpop.f32.mrb[137].mxu0 }
 0x276   : > { %v4164_v13 = vadd.f32 %v4036_v10, %v3944_v6  ;;  %v4038_v19 = vpop.f32.mrb[138].mxu0 }
 0x277   : > { %v4039_v20 = vpop.f32.mrb[139].mxu0 }
 0x278   : > { %v4075_v21 = vpop.f32.mrb[136].mxu1 }
 0x279   : > { %v4165_v22 = vadd.f32 %v4075_v21, %v3945_v57  ;;  %v4077_v23 = vpop.f32.mrb[137].mxu1 }
 0x27a   : > { %v4166_v18 = vadd.f32 %v4077_v23, %v3946_v58  ;;  %v4079_v24 = vpop.f32.mrb[138].mxu1 }
 0x27b   : > { %v4080_v25 = vpop.f32.mrb[139].mxu1 }
 0x27c   : > { %v4116_v9 = vpop.f32.mrb[140].mxu0 }
 0x27d   : > { %v4167_v26 = vadd.f32 %v4116_v9, %v3947_v61  ;;  %v4118_v27 = vpop.f32.mrb[141].mxu0 }
 0x27e   : > { %v4168_v28 = vadd.f32 %v4118_v27, %v3948_v62  ;;  %v4120_v29 = vpop.f32.mrb[142].mxu0 }
 0x27f   : > { %v4121_v30 = vpop.f32.mrb[143].mxu0 }
 0x280   : > { %v4157_v31 = vpop.f32.mrb[140].mxu1 }
 0x281   : > { %v4169_v32 = vadd.f32 %v4157_v31, %v3949_v2  ;;  %v6699_v33 = vpop.f32.mrb[141].mxu1 }
 0x282   : > { %v4160_v35 = vpop.f32.mrb[142].mxu1 }
 0x283   : > { %v6700_v36 = vpop.f32.mrb[143].mxu1 }
 0x284   : > { %v4262_v37 = vpop.f32.mrb[144].mxu0 }
 0x285   : > { %v4391_v38 = vadd.f32 %v4262_v37, %v4163_v16  ;;  %v4264_v39 = vpop.f32.mrb[145].mxu0 }
 0x286   : > { %v4392_v40 = vadd.f32 %v4264_v39, %v4164_v13  ;;  %v4266_v41 = vpop.f32.mrb[146].mxu0 }
 0x287   : > { %v4267_v42 = vpop.f32.mrb[147].mxu0 }
 0x288   : > { %v4303_v8 = vpop.f32.mrb[144].mxu1 }
 0x289   : > { %v4393_v43 = vadd.f32 %v4303_v8, %v4165_v22  ;;  %v4305_v44 = vpop.f32.mrb[145].mxu1 }
 0x28a   : > { %v4394_v45 = vadd.f32 %v4305_v44, %v4166_v18  ;;  %v4307_v46 = vpop.f32.mrb[146].mxu1 }
 0x28b   : > { %v4308_v47 = vpop.f32.mrb[147].mxu1 }
 0x28c   : > { %v4344_v48 = vpop.f32.mrb[148].mxu0 }
 0x28d   : > { %v4395_v49 = vadd.f32 %v4344_v48, %v4167_v26  ;;  %v4346_v12 = vpop.f32.mrb[149].mxu0 }
 0x28e   : > { %v4396_v50 = vadd.f32 %v4346_v12, %v4168_v28  ;;  %v4348_v51 = vpop.f32.mrb[150].mxu0 }
 0x28f   : > { %v4349_v52 = vpop.f32.mrb[151].mxu0 }
 0x290   : > { %v4385_v11 = vpop.f32.mrb[148].mxu1 }
 0x291   : > { %v4397_v53 = vadd.f32 %v4385_v11, %v4169_v32  ;;  %v6705_v6 = vpop.f32.mrb[149].mxu1 }
 0x292   : > { %v4388_v54 = vpop.f32.mrb[150].mxu1 }
 0x293   : > { %v6706_v55 = vpop.f32.mrb[151].mxu1 }
 0x294   : > { %v4482_v56 = vpop.f32.mrb[152].mxu0 }
 0x295   : > { %v4611_v57 = vadd.f32 %v4482_v56, %v4391_v38  ;;  %v4484_v15 = vpop.f32.mrb[153].mxu0 }
 0x296   : > { %v4612_v58 = vadd.f32 %v4484_v15, %v4392_v40  ;;  %v4486_v14 = vpop.f32.mrb[154].mxu0 }
 0x297   : > { %v4487_v59 = vpop.f32.mrb[155].mxu0 }
 0x298   : > { %v4523_v60 = vpop.f32.mrb[152].mxu1 }
 0x299   : > { %v4613_v61 = vadd.f32 %v4523_v60, %v4393_v43  ;;  %v4525_v34 = vpop.f32.mrb[153].mxu1 }
 0x29a   : > { %v4614_v62 = vadd.f32 %v4525_v34, %v4394_v45  ;;  %v4527_v63 = vpop.f32.mrb[154].mxu1 }
 0x29b   : > { %v4528_v0 = vpop.f32.mrb[155].mxu1 }
 0x29c   : > { %v4564_v1 = vpop.f32.mrb[156].mxu0 }
 0x29d   : > { %v4615_v2 = vadd.f32 %v4564_v1, %v4395_v49  ;;  %v4566_v3 = vpop.f32.mrb[157].mxu0 }
 0x29e   : > { %v4616_v17 = vadd.f32 %v4566_v3, %v4396_v50  ;;  %v4568_v4 = vpop.f32.mrb[158].mxu0 }
 0x29f   : > { %v4569_v7 = vpop.f32.mrb[159].mxu0 }
 0x2a0   : > { %v4605_v16 = vpop.f32.mrb[156].mxu1 }
 0x2a1   : > { %v4617_v10 = vadd.f32 %v4605_v16, %v4397_v53  ;;  %v6711_v13 = vpop.f32.mrb[157].mxu1 }
 0x2a2   : > { %v4608_v19 = vpop.f32.mrb[158].mxu1 }
 0x2a3   : > { %v6712_v20 = vpop.f32.mrb[159].mxu1 }
 0x2a4   : > { %v4702_v21 = vpop.f32.mrb[160].mxu0 }
 0x2a5   : > { %v4831_v22 = vadd.f32 %v4702_v21, %v4611_v57  ;;  %v4704_v23 = vpop.f32.mrb[161].mxu0 }
 0x2a6   : > { %v4832_v18 = vadd.f32 %v4704_v23, %v4612_v58  ;;  %v4706_v24 = vpop.f32.mrb[162].mxu0 }
 0x2a7   : > { %v4707_v25 = vpop.f32.mrb[163].mxu0 }
 0x2a8   : > { %v4743_v9 = vpop.f32.mrb[160].mxu1 }
 0x2a9   : > { %v4833_v26 = vadd.f32 %v4743_v9, %v4613_v61  ;;  %v4745_v27 = vpop.f32.mrb[161].mxu1 }
 0x2aa   : > { %v4834_v28 = vadd.f32 %v4745_v27, %v4614_v62  ;;  %v4747_v29 = vpop.f32.mrb[162].mxu1 }
 0x2ab   : > { %v4748_v30 = vpop.f32.mrb[163].mxu1 }
 0x2ac   : > { %v4784_v31 = vpop.f32.mrb[164].mxu0 }
 0x2ad   : > { %v4835_v32 = vadd.f32 %v4784_v31, %v4615_v2  ;;  %v4786_v33 = vpop.f32.mrb[165].mxu0 }
 0x2ae   : > { %v4836_v35 = vadd.f32 %v4786_v33, %v4616_v17  ;;  %v4788_v36 = vpop.f32.mrb[166].mxu0 }
 0x2af   : > { %v4789_v37 = vpop.f32.mrb[167].mxu0 }
 0x2b0   : > { %v4825_v38 = vpop.f32.mrb[164].mxu1 }
 0x2b1   : > { %v4837_v39 = vadd.f32 %v4825_v38, %v4617_v10  ;;  %v6717_v40 = vpop.f32.mrb[165].mxu1 }
 0x2b2   : > { %v4828_v41 = vpop.f32.mrb[166].mxu1 }
 0x2b3   : > { %v6718_v42 = vpop.f32.mrb[167].mxu1 }
 0x2b4   : > { %v4922_v8 = vpop.f32.mrb[168].mxu0 }
 0x2b5   : > { %v5051_v43 = vadd.f32 %v4922_v8, %v4831_v22  ;;  %v4924_v44 = vpop.f32.mrb[169].mxu0 }
 0x2b6   : > { %v5052_v45 = vadd.f32 %v4924_v44, %v4832_v18  ;;  %v4926_v46 = vpop.f32.mrb[170].mxu0 }
 0x2b7   : > { %v4927_v47 = vpop.f32.mrb[171].mxu0 }
 0x2b8   : > { %v4963_v48 = vpop.f32.mrb[168].mxu1 }
 0x2b9   : > { %v5053_v49 = vadd.f32 %v4963_v48, %v4833_v26  ;;  %v4965_v12 = vpop.f32.mrb[169].mxu1 }
 0x2ba   : > { %v5054_v50 = vadd.f32 %v4965_v12, %v4834_v28  ;;  %v4967_v51 = vpop.f32.mrb[170].mxu1 }
 0x2bb   : > { %v4968_v52 = vpop.f32.mrb[171].mxu1 }
 0x2bc   : > { %v5004_v11 = vpop.f32.mrb[172].mxu0 }
 0x2bd   : > { %v5055_v53 = vadd.f32 %v5004_v11, %v4835_v32  ;;  %v5006_v6 = vpop.f32.mrb[173].mxu0 }
 0x2be   : > { %v5056_v54 = vadd.f32 %v5006_v6, %v4836_v35  ;;  %v5008_v55 = vpop.f32.mrb[174].mxu0 }
 0x2bf   : > { %v5009_v56 = vpop.f32.mrb[175].mxu0 }
 0x2c0   : > { %v5045_v57 = vpop.f32.mrb[172].mxu1 }
 0x2c1   : > { %v5057_v15 = vadd.f32 %v5045_v57, %v4837_v39  ;;  %v6723_v58 = vpop.f32.mrb[173].mxu1 }
 0x2c2   : > { %v5048_v14 = vpop.f32.mrb[174].mxu1 }
 0x2c3   : > { %v6724_v59 = vpop.f32.mrb[175].mxu1 }
 0x2c4   : > { %v5142_v60 = vpop.f32.mrb[176].mxu0 }
 0x2c5   : > { %v5271_v61 = vadd.f32 %v5142_v60, %v5051_v43  ;;  %v5144_v34 = vpop.f32.mrb[177].mxu0 }
 0x2c6   : > { %v5272_v62 = vadd.f32 %v5144_v34, %v5052_v45  ;;  %v5146_v63 = vpop.f32.mrb[178].mxu0 }
 0x2c7   : > { %v5147_v0 = vpop.f32.mrb[179].mxu0 }
 0x2c8   : > { %v5183_v1 = vpop.f32.mrb[176].mxu1 }
 0x2c9   : > { %v5273_v2 = vadd.f32 %v5183_v1, %v5053_v49  ;;  %v5185_v3 = vpop.f32.mrb[177].mxu1 }
 0x2ca   : > { %v5274_v17 = vadd.f32 %v5185_v3, %v5054_v50  ;;  %v5187_v4 = vpop.f32.mrb[178].mxu1 }
 0x2cb   : > { %v5188_v7 = vpop.f32.mrb[179].mxu1 }
 0x2cc   : > { %v5224_v16 = vpop.f32.mrb[180].mxu0 }
 0x2cd   : > { %v5275_v10 = vadd.f32 %v5224_v16, %v5055_v53  ;;  %v5226_v13 = vpop.f32.mrb[181].mxu0 }
 0x2ce   : > { %v5276_v19 = vadd.f32 %v5226_v13, %v5056_v54  ;;  %v5228_v20 = vpop.f32.mrb[182].mxu0 }
 0x2cf   : > { %v5229_v21 = vpop.f32.mrb[183].mxu0 }
 0x2d0   : > { %v5265_v22 = vpop.f32.mrb[180].mxu1 }
 0x2d1   : > { %v5277_v23 = vadd.f32 %v5265_v22, %v5057_v15  ;;  %v6729_v18 = vpop.f32.mrb[181].mxu1 }
 0x2d2   : > { %v5268_v24 = vpop.f32.mrb[182].mxu1 }
 0x2d3   : > { %v6730_v25 = vpop.f32.mrb[183].mxu1 }
 0x2d4   : > { %v5362_v9 = vpop.f32.mrb[184].mxu0 }
 0x2d5   : > { %v5491_v26 = vadd.f32 %v5362_v9, %v5271_v61  ;;  %v5364_v27 = vpop.f32.mrb[185].mxu0 }
 0x2d6   : > { %v5492_v28 = vadd.f32 %v5364_v27, %v5272_v62  ;;  %v5366_v29 = vpop.f32.mrb[186].mxu0 }
 0x2d7   : > { %v5367_v30 = vpop.f32.mrb[187].mxu0 }
 0x2d8   : > { %v5403_v31 = vpop.f32.mrb[184].mxu1 }
 0x2d9   : > { %v5493_v32 = vadd.f32 %v5403_v31, %v5273_v2  ;;  %v5405_v33 = vpop.f32.mrb[185].mxu1 }
 0x2da   : > { %v5494_v35 = vadd.f32 %v5405_v33, %v5274_v17  ;;  %v5407_v36 = vpop.f32.mrb[186].mxu1 }
 0x2db   : > { %v5408_v37 = vpop.f32.mrb[187].mxu1 }
 0x2dc   : > { %v5444_v38 = vpop.f32.mrb[188].mxu0 }
 0x2dd   : > { %v5495_v39 = vadd.f32 %v5444_v38, %v5275_v10  ;;  %v5446_v40 = vpop.f32.mrb[189].mxu0 }
 0x2de   : > { %v5496_v41 = vadd.f32 %v5446_v40, %v5276_v19  ;;  %v5448_v42 = vpop.f32.mrb[190].mxu0 }
 0x2df   : > { %v5449_v8 = vpop.f32.mrb[191].mxu0 }
 0x2e0   : > { %v5485_v43 = vpop.f32.mrb[188].mxu1 }
 0x2e1   : > { %v5497_v44 = vadd.f32 %v5485_v43, %v5277_v23  ;;  %v6735_v45 = vpop.f32.mrb[189].mxu1 }
 0x2e2   : > { %v5488_v46 = vpop.f32.mrb[190].mxu1 }
 0x2e3   : > { %v6736_v47 = vpop.f32.mrb[191].mxu1 }
 0x2e4   : > { %v5582_v48 = vpop.f32.mrb[192].mxu0 }
 0x2e5   : > { %v5711_v49 = vadd.f32 %v5582_v48, %v5491_v26  ;;  %v5584_v12 = vpop.f32.mrb[193].mxu0 }
 0x2e6   : > { %v5712_v50 = vadd.f32 %v5584_v12, %v5492_v28  ;;  %v5586_v51 = vpop.f32.mrb[194].mxu0 }
 0x2e7   : > { %v5587_v52 = vpop.f32.mrb[195].mxu0 }
 0x2e8   : > { %v5623_v11 = vpop.f32.mrb[192].mxu1 }
 0x2e9   : > { %v5713_v53 = vadd.f32 %v5623_v11, %v5493_v32  ;;  %v5625_v6 = vpop.f32.mrb[193].mxu1  ;;  %v6162_v32 = vpop.permute.xlu0 %6161 }
 0x2ea   : > { %v5714_v54 = vadd.f32 %v5625_v6, %v5494_v35  ;;  %v5627_v55 = vpop.f32.mrb[194].mxu1 }
 0x2eb   : > { %v5628_v56 = vpop.f32.mrb[195].mxu1 }
 0x2ec   : > { %v5664_v57 = vpop.f32.mrb[196].mxu0 }
 0x2ed   : > { %v5715_v15 = vadd.f32 %v5664_v57, %v5495_v39  ;;  %v5666_v58 = vpop.f32.mrb[197].mxu0 }
 0x2ee   : > { %v5716_v14 = vadd.f32 %v5666_v58, %v5496_v41  ;;  %v5668_v59 = vpop.f32.mrb[198].mxu0 }
 0x2ef   : > { %v5669_v60 = vpop.f32.mrb[199].mxu0 }
 0x2f0   : > { %v5705_v61 = vpop.f32.mrb[196].mxu1 }
 0x2f1   : > { %v5717_v34 = vadd.f32 %v5705_v61, %v5497_v44  ;;  %v6741_v62 = vpop.f32.mrb[197].mxu1 }
 0x2f2   : > { %v5708_v63 = vpop.f32.mrb[198].mxu1 }
 0x2f3   : > { %v6742_v0 = vpop.f32.mrb[199].mxu1 }
 0x2f4   : > { %v5802_v1 = vpop.f32.mrb[200].mxu0 }
 0x2f5   : > { %v5931_v2 = vadd.f32 %v5802_v1, %v5711_v49  ;;  %v5804_v3 = vpop.f32.mrb[201].mxu0 }
 0x2f6   : > { %v5932_v17 = vadd.f32 %v5804_v3, %v5712_v50  ;;  %v5806_v4 = vpop.f32.mrb[202].mxu0 }
 0x2f7   : > { %v5807_v7 = vpop.f32.mrb[203].mxu0 }
 0x2f8   : > { %v5843_v16 = vpop.f32.mrb[200].mxu1 }
 0x2f9   : > { %v5933_v10 = vadd.f32 %v5843_v16, %v5713_v53  ;;  %v5845_v13 = vpop.f32.mrb[201].mxu1 }
 0x2fa   : > { %v5934_v19 = vadd.f32 %v5845_v13, %v5714_v54  ;;  %v5847_v20 = vpop.f32.mrb[202].mxu1 }
 0x2fb   : > { %v5848_v21 = vpop.f32.mrb[203].mxu1 }
 0x2fc   : > { %v5884_v22 = vpop.f32.mrb[204].mxu0 }
 0x2fd   : > { %v5935_v23 = vadd.f32 %v5884_v22, %v5715_v15  ;;  %v5886_v18 = vpop.f32.mrb[205].mxu0 }
 0x2fe   : > { %v5936_v24 = vadd.f32 %v5886_v18, %v5716_v14  ;;  %v5888_v25 = vpop.f32.mrb[206].mxu0 }
 0x2ff   : > { %v5889_v9 = vpop.f32.mrb[207].mxu0 }
 0x300   : > { %v5925_v26 = vpop.f32.mrb[204].mxu1 }
 0x301   : > { %v5937_v27 = vadd.f32 %v5925_v26, %v5717_v34  ;;  %v6747_v28 = vpop.f32.mrb[205].mxu1 }
 0x302   : > { %v5928_v29 = vpop.f32.mrb[206].mxu1 }
 0x303   : > { %v6748_v30 = vpop.f32.mrb[207].mxu1 }
 0x304   : > { %v6022_v31 = vpop.f32.mrb[208].mxu0 }
 0x305   : > { %v6151_v33 = vadd.f32 %v6022_v31, %v5931_v2  ;;  %v6024_v35 = vpop.f32.mrb[209].mxu0 }
 0x306   : > { %v6152_v36 = vadd.f32 %v6024_v35, %v5932_v17  ;;  %v6026_v37 = vpop.f32.mrb[210].mxu0 }
 0x307   : > { %v6164_v38 = vadd.f32 %v6162_v32, %v6151_v33  ;;  %v6027_v39 = vpop.f32.mrb[211].mxu0 }
 0x308   : > { %v6165_v40 = vadd.f32 %v6162_v32, %v6152_v36  ;;  %v6063_v41 = vpop.f32.mrb[208].mxu1 }
 0x309   : > { %v6171_v42 = vmax.f32 %v6164_v38, 0.0  ;;  %v6153_v8 = vadd.f32 %v6063_v41, %v5933_v10  ;;  %v6065_v43 = vpop.f32.mrb[209].mxu1 }
 0x30a   : > { %v6172_v44 = vmax.f32 %v6165_v40, 0.0  ;;  %v6154_v45 = vadd.f32 %v6065_v43, %v5934_v19  ;;  %v6067_v46 = vpop.f32.mrb[210].mxu1 }
 0x30b   : > { %v6166_v47 = vadd.f32 %v6162_v32, %v6153_v8  ;;  %v6068_v48 = vpop.f32.mrb[211].mxu1 }
 0x30c   : > { %v6167_v49 = vadd.f32 %v6162_v32, %v6154_v45  ;;  %v6185_v12 = vcombine.low %v6171_v42, %v6172_v44  ;;  %v6104_v50 = vpop.f32.mrb[212].mxu0 }
 0x30d   : > { %v6173_v51 = vmax.f32 %v6166_v47, 0.0  ;;  %v6155_v52 = vadd.f32 %v6104_v50, %v5935_v23  ;;  %v6106_v11 = vpop.f32.mrb[213].mxu0 }
 0x30e   : > { %v6174_v53 = vmax.f32 %v6167_v49, 0.0  ;;  %v6156_v6 = vadd.f32 %v6106_v11, %v5936_v24  ;;  %v6108_v54 = vpop.f32.mrb[214].mxu0  ;;  %v6193_v61 = vrot.slane %v6185_v12, %v6909_v5 }
 0x30f   : > { %v6168_v55 = vadd.f32 %v6162_v32, %v6155_v52  ;;  %v6109_v56 = vpop.f32.mrb[215].mxu0 }
 0x310   : > { %v6186_v57 = vcombine.low %v6173_v51, %v6174_v53  ;;  %v6169_v15 = vadd.f32 %v6162_v32, %v6156_v6  ;;  %v6145_v58 = vpop.f32.mrb[212].mxu1 }
 0x311   : > { %v6175_v14 = vmax.f32 %v6168_v55, 0.0  ;;  %v6157_v59 = vadd.f32 %v6145_v58, %v5937_v27  ;;  %v6753_v60 = vpop.f32.mrb[213].mxu1 }
 0x312   : > { %v6200_v34 = vrot.slane %v6186_v57, %v6909_v5  ;;  %v6176_v62 = vmax.f32 %v6169_v15, 0.0  ;;  %v6148_v63 = vpop.f32.mrb[214].mxu1 }
 0x313   : > { %v6170_v0 = vadd.f32 %v6162_v32, %v6157_v59  ;;  %v6754_v1 = vpop.f32.mrb[215].mxu1 }
 0x314   : > { %v6201_v2 = vcombine.low %v6193_v61, %v6200_v34  ;;  %v6202_v3 = vcombine.low %v6175_v14, %v6176_v62 }
 0x315   : > { %v6177_v17 = vmax.f32 %v6170_v0, 0.0 }
 0x316   : > { %v6209_v4 = vrot.slane %v6202_v3, %v6909_v5  ;;  %6220 = vst [vmem:[%s206_s10] sm:$0xff] %v6201_v2 }
 0x317   : > { %v6216_v7 = vrot.slane %v6177_v17, %v6909_v5 }
 0x319   : > { %v6217_v16 = vcombine.low %v6209_v4, %v6216_v7 }
 0x31b   : > { %6221 = vst [vmem:[%s206_s10 + $0x8] sm:$0x3f] %v6217_v16 }
 0x31c PF: > { %s13_s14 = sadd.s32 1, %s6836_s14   ;;  %s8198_s12 = smov %s6832_s13 }
 0x31d   : > { %p10_p5 = scmp.ge.s32.totalorder %s13_s14, 4   ;;  %s8199_s13 = smov %s8201_s15 }
 0x31f   :  { %12 = sbr.rel (!%p10_p5) target bundleno = 2 (0x2), region = 88 }

// kernel: ppm_forward.5
= control target key start
LH: loop header
LB: loop body
LE: loop exit
PB: predicated region body
PF: predicated region fallthrough
CT: control target
= control target key end

     0   :  { %s2248_s12 = smov 0   ;;  %s2250_s13 = smov 0   ;;  %s2572_s0 = inlined_call_operand.vmem [shape: bf16[2,1,4,360], index: 0, kind: input, shape index: {}]   ;;  %s2573_s1 = inlined_call_operand.vmem [shape: bf16[27,2,4], index: 1, kind: input, shape index: {}]   ;;  %s2574_s2 = inlined_call_operand.vmem [shape: f32[2,1], index: 2, kind: input, shape index: {}]   ;;  %s2575_s3 = inlined_call_operand.vmem [shape: f32[2,1,2,256], index: 3, kind: output, shape index: {}]  }
   0x1   :  { %s2252_s14 = smov 0  }
   0x2 LB: > { %s25_s15 = sadd.s32 1, %s2194_s13  ;;  %p2033_p0 = scmp.ge.s32.totalorder %s2198_s14, 1  ;;  %s2198_s14 = sphi %s2252_s14, %s13_s14   ;;  %s2194_s13 = sphi %s2250_s13, %s2577_s13   ;;  %s2190_s12 = sphi %s2248_s12, %s2576_s12  }
   0x3   : > { %p27_p1 = scmp.ge.s32.totalorder %s25_s15, 2  ;;  %p157_p2 = scmp.lt.s32.totalorder %s2198_s14, 3 }
   0x5   : > { %s2579_s15 = smov (%p27_p1, %s25_s15), 0  ;;  %p158_p3 = pnand %p2033_p0, %p157_p2 }
   0x6   : > { %p189_p4 = scmp.lt.s32.totalorder (!%p158_p3), %s2190_s12, 1  ;;  %v217_v0 = vlaneseq (!%p158_p3)  ;;  %v2200_v1 = vmov (!%p158_p3), 1983009808   ;;  %s2201_s20 = smov (!%p158_p3), 126   ;;  %vm242_vm0 = vcmask (!%p158_p3), 1041408   ;;  %v2203_v11 = vmov (!%p158_p3), 0  }
   0x7   : > { %161 = sbr.rel (%p158_p3) target bundleno = 515 (0x203), region = 32  ;;  %v215_v2 = vunpack.c.l.s4 (!%p158_p3), %v2200_v1  ;;  %s2202_s21 = smov (!%p158_p3), 127   ;;  %281 = vmatprep.mubr.bf16.mxu0 (!%p158_p3), %v2203_v11  ;;  %331 = vmatprep.mubr.bf16.mxu1 (!%p158_p3), %v2203_v11  ;;  %vm238_vm1 = vcmask (!%p158_p3), 31744   ;;  %v209_v13 = vld [vmem:[%s2573_s1] sm:$0x1] (!%p158_p3)  ;;  %vm235_vm2 = vcmask (!%p158_p3), 1039360  }
   0x8   : > { %v218_v3 = vshrl.u32 (!%p158_p3), %v217_v0, 7  ;;  %2174 = vset.pattern.permute.xlu0 (!%p158_p3), %v2203_v11  ;;  %s2204_s22 = smov (!%p158_p3), 122   ;;  %s2205_s25 = smov (!%p158_p3), 121   ;;  %vm348_vm3 = vcmask (!%p158_p3), 1031168   ;;  %v2037_v25 = vld [vmem:[%s2573_s1 + $0x1] sm:$0x1] (!%p158_p3) }
   0x9   : > { %v216_v4 = vunpack.c.0.s8 (!%p158_p3), %v215_v2  ;;  %s2206_s26 = smov (!%p158_p3), 120   ;;  %s2207_s27 = smov (!%p158_p3), 116   ;;  %vm411_vm4 = vcmask (!%p158_p3), 998400   ;;  %vm474_vm5 = vcmask (!%p158_p3), 990208   ;;  %v2042_v36 = vld [vmem:[%s2573_s1 + $0x2] sm:$0x1] (!%p158_p3) }
   0xa   : > { %s2208_s28 = smov (!%p158_p3), 115   ;;  %s2209_s29 = smov (!%p158_p3), 114   ;;  %v2045_v39 = vld [vmem:[%s2573_s1 + $0x3] sm:$0x1] (!%p158_p3)  ;;  %vm537_vm6 = vcmask (!%p158_p3), 982016   ;;  %vm600_vm7 = vcmask (!%p158_p3), 949248  }
   0xb   : > { %v219_v5 = vsub.s32 (!%p158_p3), %v216_v4, %v218_v3  ;;  %s2210_s30 = smov (!%p158_p3), 92   ;;  %s2211_s4 = smov (!%p158_p3), 91   ;;  %v2048_v46 = vld [vmem:[%s2573_s1 + $0x4] sm:$0x1] (!%p158_p3)  ;;  %v2051_v51 = vld [vmem:[%s2573_s1 + $0x5] sm:$0x1] (!%p158_p3) }
   0xc   : > { %s2212_s5 = smov (!%p158_p3), 90   ;;  %s2213_s6 = smov (!%p158_p3), 86   ;;  %vm663_vm8 = vcmask (!%p158_p3), 941056   ;;  %v2054_v57 = vld [vmem:[%s2573_s1 + $0x6] sm:$0x1] (!%p158_p3)  ;;  %vm726_vm9 = vcmask (!%p158_p3), 932864  }
   0xd   : > { %s2214_s7 = smov (!%p158_p3), 85   ;;  %s2215_s8 = smov (!%p158_p3), 84   ;;  %v1915_v59 = vld [vmem:[%s2574_s2] sm:$0x3] (!%p158_p3)  ;;  %v2057_v0 = vld [vmem:[%s2573_s1 + $0x7] sm:$0x1] (!%p158_p3) }
   0xe   : > { %s2581_s12 = smov (!%p189_p4, %s2190_s12), 1  ;;  %s2216_s9 = smov 80   ;;  %vm789_vm10 = vcmask 752640   ;;  %vm852_vm11 = vcmask 744448   ;;  %vm915_vm12 = vcmask 736256   ;;  %vm978_vm13 = vcmask 703488  }
   0xf   : > { %s2121_s16 = smul.u32 6, %s2581_s12  ;;  %s2217_s10 = smov 79   ;;  %vm1041_vm14 = vcmask 695296   ;;  %vm1104_vm15 = vcmask 687104  }
  0x10   : > { %s2218_s11 = smov 78   ;;  %s2220_s17 = smov 55  }
  0x11   : > { %s197_s19 = scalar_lea.vmem %s2572_s0, %s2121_s16  ;;  %s2219_s16 = smov 56  }
  0x12   : > { %v208_v6 = vld [vmem:[%s197_s19] sm:$0x3f]  ;;  %s2221_s18 = smov 54   ;;  %s2222_s19 = smov 50  }
  0x13   : > { %v2272_v7 = vrot.slane %v208_v6, %v219_v5  ;;  %v213_v8 = vcombine.high %v208_v6, %v208_v6  ;;  %s2224_s23 = smov 48   ;;  %v2060_v6 = vld [vmem:[%s2573_s1 + $0x8] sm:$0x1] }
  0x15   : > { %342 = vrot.lane.b32.xlu1 %v2272_v7, %s2201_s20  ;;  %229 = vrot.lane.b32.xlu0 %v2272_v7, %s2202_s21  ;;  %v2276_v9 = vrot.slane %v213_v8, %v219_v5  ;;  %v2280_v10 = vcombine.high %v2272_v7, %v2272_v7  ;;  %v294_v12 = vsel %vm242_vm0, %v2272_v7, 0 }
  0x17   : > { %2040 = vmatprep.subr.msk.bf16.mxu1 %vm242_vm0, %v2280_v10 }
  0x18   : > { %300 = vmatpush1.bf16.msra.mxu1 %v294_v12 }
  0x19   : > { %405 = vrot.lane.b32.xlu0 %v2272_v7, %s2204_s22  ;;  %233 = vrot.lane.b32.xlu1 %v2276_v9, %s2202_s21 }
  0x1b   : > { %2041 = vmatmul.mubr.msk.bf16.vlgmr.msra.gmra.mrb[0].mxu1 %vm238_vm1, %v209_v13 }
  0x1c   : > { %455 = vmatprep.mubr.bf16.mxu1 %v2203_v11 }
  0x1d   : > { %231 = vrot.lane.b32.xlu0 %v2280_v10, %s2202_s21  ;;  %346 = vrot.lane.b32.xlu1 %v2276_v9, %s2201_s20 }
  0x21   : > { %344 = vrot.lane.b32.xlu0 %v2280_v10, %s2201_s20  ;;  %407 = vrot.lane.b32.xlu1 %v2280_v10, %s2204_s22  ;;  %s2223_s20 = smov 49  }
  0x25   : > { %409 = vrot.lane.b32.xlu0 %v2276_v9, %s2204_s22  ;;  %468 = vrot.lane.b32.xlu1 %v2272_v7, %s2205_s25 }
  0x29   : > { %470 = vrot.lane.b32.xlu0 %v2280_v10, %s2205_s25  ;;  %472 = vrot.lane.b32.xlu1 %v2276_v9, %s2205_s25 }
  0x2d   : > { %531 = vrot.lane.b32.xlu0 %v2272_v7, %s2206_s26  ;;  %533 = vrot.lane.b32.xlu1 %v2280_v10, %s2206_s26 }
  0x31   : > { %535 = vrot.lane.b32.xlu0 %v2276_v9, %s2206_s26  ;;  %594 = vrot.lane.b32.xlu1 %v2272_v7, %s2207_s27 }
  0x35   : > { %596 = vrot.lane.b32.xlu0 %v2280_v10, %s2207_s27  ;;  %598 = vrot.lane.b32.xlu1 %v2276_v9, %s2207_s27 }
  0x39   : > { %657 = vrot.lane.b32.xlu0 %v2272_v7, %s2208_s28  ;;  %659 = vrot.lane.b32.xlu1 %v2280_v10, %s2208_s28 }
  0x3d   : > { %661 = vrot.lane.b32.xlu0 %v2276_v9, %s2208_s28  ;;  %720 = vrot.lane.b32.xlu1 %v2272_v7, %s2209_s29  ;;  %s2225_s28 = smov 44  }
  0x41   : > { %722 = vrot.lane.b32.xlu0 %v2280_v10, %s2209_s29  ;;  %724 = vrot.lane.b32.xlu1 %v2276_v9, %s2209_s29 }
  0x45   : > { %783 = vrot.lane.b32.xlu0 %v2272_v7, %s2210_s30  ;;  %785 = vrot.lane.b32.xlu1 %v2280_v10, %s2210_s30 }
  0x49   : > { %787 = vrot.lane.b32.xlu0 %v2276_v9, %s2210_s30  ;;  %846 = vrot.lane.b32.xlu1 %v2272_v7, %s2211_s4 }
  0x4d   : > { %848 = vrot.lane.b32.xlu0 %v2280_v10, %s2211_s4  ;;  %850 = vrot.lane.b32.xlu1 %v2276_v9, %s2211_s4  ;;  %s2226_s4 = smov 43  }
  0x51   : > { %909 = vrot.lane.b32.xlu0 %v2272_v7, %s2212_s5  ;;  %911 = vrot.lane.b32.xlu1 %v2280_v10, %s2212_s5 }
  0x55   : > { %913 = vrot.lane.b32.xlu0 %v2276_v9, %s2212_s5  ;;  %972 = vrot.lane.b32.xlu1 %v2272_v7, %s2213_s6 }
  0x59   : > { %974 = vrot.lane.b32.xlu0 %v2280_v10, %s2213_s6  ;;  %976 = vrot.lane.b32.xlu1 %v2276_v9, %s2213_s6  ;;  %s2120_s6 = sshll.u32 %s2581_s12, 2 }
  0x5d   : > { %1035 = vrot.lane.b32.xlu0 %v2272_v7, %s2214_s7  ;;  %1037 = vrot.lane.b32.xlu1 %v2280_v10, %s2214_s7 }
  0x61   : > { %1039 = vrot.lane.b32.xlu0 %v2276_v9, %s2214_s7  ;;  %1098 = vrot.lane.b32.xlu1 %v2272_v7, %s2215_s8  ;;  %s2227_s7 = smov 42  }
  0x65   : > { %1100 = vrot.lane.b32.xlu0 %v2280_v10, %s2215_s8  ;;  %1102 = vrot.lane.b32.xlu1 %v2276_v9, %s2215_s8 }
  0x69   : > { %1161 = vrot.lane.b32.xlu0 %v2272_v7, %s2216_s9  ;;  %1163 = vrot.lane.b32.xlu1 %v2280_v10, %s2216_s9 }
  0x6d   : > { %1165 = vrot.lane.b32.xlu0 %v2276_v9, %s2216_s9  ;;  %1224 = vrot.lane.b32.xlu1 %v2272_v7, %s2217_s10  ;;  %s206_s9 = scalar_lea.vmem %s2575_s3, %s2120_s6 }
  0x71   : > { %1226 = vrot.lane.b32.xlu0 %v2280_v10, %s2217_s10  ;;  %1228 = vrot.lane.b32.xlu1 %v2276_v9, %s2217_s10 }
  0x75   : > { %1287 = vrot.lane.b32.xlu0 %v2272_v7, %s2218_s11  ;;  %1289 = vrot.lane.b32.xlu1 %v2280_v10, %s2218_s11 }
  0x79   : > { %1291 = vrot.lane.b32.xlu0 %v2276_v9, %s2218_s11  ;;  %1350 = vrot.lane.b32.xlu1 %v2272_v7, %s2219_s16 }
  0x7d   : > { %1352 = vrot.lane.b32.xlu0 %v2280_v10, %s2219_s16  ;;  %1354 = vrot.lane.b32.xlu1 %v2276_v9, %s2219_s16 }
  0x81   : > { %1413 = vrot.lane.b32.xlu0 %v2272_v7, %s2220_s17  ;;  %1415 = vrot.lane.b32.xlu1 %v2280_v10, %s2220_s17 }
  0x85   : > { %1417 = vrot.lane.b32.xlu0 %v2276_v9, %s2220_s17  ;;  %1476 = vrot.lane.b32.xlu1 %v2272_v7, %s2221_s18 }
  0x87   : > { %v343_v14 = vpop.permute.xlu1 %342  ;;  %v230_v15 = vpop.permute.xlu0 %229 }
  0x89   : > { %1478 = vrot.lane.b32.xlu0 %v2280_v10, %s2221_s18  ;;  %1480 = vrot.lane.b32.xlu1 %v2276_v9, %s2221_s18 }
  0x8b   : > { %v406_v16 = vpop.permute.xlu0 %405  ;;  %v234_v17 = vpop.permute.xlu1 %233 }
  0x8d   : > { %1539 = vrot.lane.b32.xlu0 %v2272_v7, %s2222_s19  ;;  %1541 = vrot.lane.b32.xlu1 %v2280_v10, %s2222_s19 }
  0x8f   : > { %v232_v18 = vpop.permute.xlu0 %231  ;;  %v347_v19 = vpop.permute.xlu1 %346 }
  0x90   : > { %v237_v20 = vsel %vm235_vm2, %v232_v18, %v234_v17  ;;  %v236_v21 = vsel %vm235_vm2, %v230_v15, %v232_v18  ;;  %v2063_v15 = vld [vmem:[%s2573_s1 + $0x9] sm:$0x1]  ;;  %vm1167_vm2 = vcmask 654336  }
  0x91   : > { %1543 = vrot.lane.b32.xlu0 %v2276_v9, %s2222_s19  ;;  %1602 = vrot.lane.b32.xlu1 %v2272_v7, %s2223_s20  ;;  %v244_v22 = vsel %vm242_vm0, %v236_v21, 0  ;;  %v2066_v21 = vld [vmem:[%s2573_s1 + $0xa] sm:$0x1] }
  0x92   : > { %2038 = vmatprep.subr.msk.bf16.mxu0 %vm242_vm0, %v237_v20 }
  0x93   : > { %250 = vmatpush1.bf16.msra.mxu0 %v244_v22  ;;  %v345_v23 = vpop.permute.xlu0 %344  ;;  %v408_v24 = vpop.permute.xlu1 %407 }
  0x94   : > { %v349_v26 = vsel %vm348_vm3, %v343_v14, %v345_v23  ;;  %v350_v27 = vsel %vm348_vm3, %v345_v23, %v347_v19  ;;  %v412_v29 = vsel %vm411_vm4, %v406_v16, %v408_v24  ;;  %vm1230_vm3 = vcmask 646144  }
  0x95   : > { %v355_v28 = vsel %vm242_vm0, %v349_v26, 0  ;;  %1604 = vrot.lane.b32.xlu0 %v2280_v10, %s2223_s20  ;;  %1606 = vrot.lane.b32.xlu1 %v2276_v9, %s2223_s20  ;;  %v418_v33 = vsel %vm242_vm0, %v412_v29, 0  ;;  %v2069_v29 = vld [vmem:[%s2573_s1 + $0xb] sm:$0x1] }
  0x96   : > { %2043 = vmatprep.subr.msk.bf16.mxu0 %vm242_vm0, %v350_v27  ;;  %2039 = vmatmul.mubr.msk.bf16.vlgmr.msra.gmra.mrb[0].mxu0 %vm238_vm1, %v2037_v25 }
  0x97   : > { %361 = vmatpush1.bf16.msra.mxu0 %v355_v28  ;;  %v410_v30 = vpop.permute.xlu0 %409  ;;  %v469_v31 = vpop.permute.xlu1 %468  ;;  %392 = vmatprep.mubr.bf16.mxu0 %v2203_v11 }
  0x98   : > { %v413_v32 = vsel %vm411_vm4, %v408_v24, %v410_v30  ;;  %vm1293_vm4 = vcmask 637952  }
  0x99   : > { %1665 = vrot.lane.b32.xlu0 %v2272_v7, %s2224_s23  ;;  %1667 = vrot.lane.b32.xlu1 %v2280_v10, %s2224_s23 }
  0x9a   : > { %2046 = vmatprep.subr.msk.bf16.mxu1 %vm242_vm0, %v413_v32 }
  0x9b   : > { %424 = vmatpush1.bf16.msra.mxu1 %v418_v33  ;;  %v471_v34 = vpop.permute.xlu0 %470  ;;  %v473_v35 = vpop.permute.xlu1 %472 }
  0x9c   : > { %v475_v37 = vsel %vm474_vm5, %v469_v31, %v471_v34  ;;  %v476_v38 = vsel %vm474_vm5, %v471_v34, %v473_v35  ;;  %v2072_v35 = vld [vmem:[%s2573_s1 + $0xc] sm:$0x1]  ;;  %vm1356_vm5 = vcmask 457728  }
  0x9d   : > { %v481_v40 = vsel %vm242_vm0, %v475_v37, 0  ;;  %1669 = vrot.lane.b32.xlu0 %v2276_v9, %s2224_s23  ;;  %1728 = vrot.lane.b32.xlu1 %v2272_v7, %s2225_s28 }
  0x9e   : > { %2049 = vmatprep.subr.msk.bf16.mxu0 %vm242_vm0, %v476_v38  ;;  %2044 = vmatmul.mubr.msk.bf16.vlgmr.msra.gmra.mrb[4].mxu0 %vm238_vm1, %v2042_v36 }
  0x9f   : > { %487 = vmatpush1.bf16.msra.mxu0 %v481_v40  ;;  %v532_v41 = vpop.permute.xlu0 %531  ;;  %v534_v42 = vpop.permute.xlu1 %533  ;;  %2047 = vmatmul.mubr.msk.bf16.vlgmr.msra.gmra.mrb[4].mxu1 %vm238_vm1, %v2045_v39 }
  0xa0   : > { %518 = vmatprep.mubr.bf16.mxu0 %v2203_v11  ;;  %581 = vmatprep.mubr.bf16.mxu1 %v2203_v11  ;;  %v538_v43 = vsel %vm537_vm6, %v532_v41, %v534_v42 }
  0xa1   : > { %1730 = vrot.lane.b32.xlu0 %v2280_v10, %s2225_s28  ;;  %1732 = vrot.lane.b32.xlu1 %v2276_v9, %s2225_s28  ;;  %v544_v48 = vsel %vm242_vm0, %v538_v43, 0  ;;  %v2075_v43 = vld [vmem:[%s2573_s1 + $0xd] sm:$0x1] }
  0xa3   : > { %v536_v44 = vpop.permute.xlu0 %535  ;;  %v595_v45 = vpop.permute.xlu1 %594 }
  0xa4   : > { %v539_v47 = vsel %vm537_vm6, %v534_v42, %v536_v44  ;;  %vm1419_vm6 = vcmask 449536  }
  0xa5   : > { %1791 = vrot.lane.b32.xlu0 %v2272_v7, %s2226_s4  ;;  %1793 = vrot.lane.b32.xlu1 %v2280_v10, %s2226_s4 }
  0xa6   : > { %2052 = vmatprep.subr.msk.bf16.mxu1 %vm242_vm0, %v539_v47  ;;  %2050 = vmatmul.mubr.msk.bf16.vlgmr.msra.gmra.mrb[8].mxu0 %vm238_vm1, %v2048_v46 }
  0xa7   : > { %550 = vmatpush1.bf16.msra.mxu1 %v544_v48  ;;  %v597_v49 = vpop.permute.xlu0 %596  ;;  %v599_v50 = vpop.permute.xlu1 %598  ;;  %644 = vmatprep.mubr.bf16.mxu0 %v2203_v11 }
  0xa8   : > { %v601_v52 = vsel %vm600_vm7, %v595_v45, %v597_v49  ;;  %v602_v53 = vsel %vm600_vm7, %v597_v49, %v599_v50  ;;  %v2078_v49 = vld [vmem:[%s2573_s1 + $0xe] sm:$0x1]  ;;  %vm1482_vm7 = vcmask 441344  }
  0xa9   : > { %v607_v54 = vsel %vm242_vm0, %v601_v52, 0  ;;  %1795 = vrot.lane.b32.xlu0 %v2276_v9, %s2226_s4  ;;  %1854 = vrot.lane.b32.xlu1 %v2272_v7, %s2227_s7 }
  0xaa   : > { %2055 = vmatprep.subr.msk.bf16.mxu0 %vm242_vm0, %v602_v53  ;;  %2053 = vmatmul.mubr.msk.bf16.vlgmr.msra.gmra.mrb[8].mxu1 %vm238_vm1, %v2051_v51 }
  0xab   : > { %613 = vmatpush1.bf16.msra.mxu0 %v607_v54  ;;  %v658_v55 = vpop.permute.xlu0 %657  ;;  %v660_v56 = vpop.permute.xlu1 %659  ;;  %707 = vmatprep.mubr.bf16.mxu1 %v2203_v11 }
  0xac   : > { %v664_v58 = vsel %vm663_vm8, %v658_v55, %v660_v56 }
  0xad   : > { %1856 = vrot.lane.b32.xlu0 %v2280_v10, %s2227_s7  ;;  %1858 = vrot.lane.b32.xlu1 %v2276_v9, %s2227_s7  ;;  %v670_v63 = vsel %vm242_vm0, %v664_v58, 0 }
  0xae   : > { %2056 = vmatmul.mubr.msk.bf16.vlgmr.msra.gmra.mrb[12].mxu0 %vm238_vm1, %v2054_v57  ;;  %v2081_v57 = vld [vmem:[%s2573_s1 + $0xf] sm:$0x1] }
  0xaf   : > { %v662_v60 = vpop.permute.xlu0 %661  ;;  %v721_v61 = vpop.permute.xlu1 %720  ;;  %770 = vmatprep.mubr.bf16.mxu0 %v2203_v11 }
  0xb0   : > { %v665_v62 = vsel %vm663_vm8, %v660_v56, %v662_v60  ;;  %vm1545_vm8 = vcmask 408576  }
  0xb1   : > { %2058 = vmatprep.subr.msk.bf16.mxu1 %vm242_vm0, %v665_v62  ;;  %1918 = vperm.xlu0 %2174, %v1915_v59  }
  0xb2   : > { %676 = vmatpush1.bf16.msra.mxu1 %v670_v63  ;;  %v2084_v63 = vld [vmem:[%s2573_s1 + $0x10] sm:$0x1] }
  0xb3   : > { %v723_v1 = vpop.permute.xlu0 %722  ;;  %v725_v2 = vpop.permute.xlu1 %724 }
  0xb4   : > { %v727_v3 = vsel %vm726_vm9, %v721_v61, %v723_v1  ;;  %v728_v4 = vsel %vm726_vm9, %v723_v1, %v725_v2  ;;  %vm1608_vm9 = vcmask 400384  }
  0xb5   : > { %v733_v5 = vsel %vm242_vm0, %v727_v3, 0  ;;  %2061 = vmatprep.subr.msk.bf16.mxu0 %vm242_vm0, %v728_v4  ;;  %2059 = vmatmul.mubr.msk.bf16.vlgmr.msra.gmra.mrb[12].mxu1 %vm238_vm1, %v2057_v0 }
  0xb6   : > { %739 = vmatpush1.bf16.msra.mxu0 %v733_v5  ;;  %833 = vmatprep.mubr.bf16.mxu1 %v2203_v11 }
  0xb7   : > { %v784_v7 = vpop.permute.xlu0 %783  ;;  %v786_v8 = vpop.permute.xlu1 %785 }
  0xb8   : > { %v790_v9 = vsel %vm789_vm10, %v784_v7, %v786_v8  ;;  %v2087_v7 = vld [vmem:[%s2573_s1 + $0x11] sm:$0x1] }
  0xb9   : > { %2062 = vmatmul.mubr.msk.bf16.vlgmr.msra.gmra.mrb[16].mxu0 %vm238_vm1, %v2060_v6  ;;  %v796_v14 = vsel %vm242_vm0, %v790_v9, 0 }
  0xba   : > { %896 = vmatprep.mubr.bf16.mxu0 %v2203_v11 }
  0xbb   : > { %v788_v10 = vpop.permute.xlu0 %787  ;;  %v847_v12 = vpop.permute.xlu1 %846 }
  0xbc   : > { %v791_v13 = vsel %vm789_vm10, %v786_v8, %v788_v10  ;;  %vm1671_vm10 = vcmask 392192  }
  0xbd   : > { %2064 = vmatprep.subr.msk.bf16.mxu1 %vm242_vm0, %v791_v13 }
  0xbe   : > { %802 = vmatpush1.bf16.msra.mxu1 %v796_v14 }
  0xbf   : > { %v849_v16 = vpop.permute.xlu0 %848  ;;  %v851_v17 = vpop.permute.xlu1 %850 }
  0xc0   : > { %v853_v18 = vsel %vm852_vm11, %v847_v12, %v849_v16  ;;  %v854_v19 = vsel %vm852_vm11, %v849_v16, %v851_v17  ;;  %v2090_v17 = vld [vmem:[%s2573_s1 + $0x12] sm:$0x1]  ;;  %vm1734_vm11 = vcmask 359424  }
  0xc1   : > { %v859_v20 = vsel %vm242_vm0, %v853_v18, 0  ;;  %2067 = vmatprep.subr.msk.bf16.mxu0 %vm242_vm0, %v854_v19  ;;  %2065 = vmatmul.mubr.msk.bf16.vlgmr.msra.gmra.mrb[16].mxu1 %vm238_vm1, %v2063_v15 }
  0xc2   : > { %865 = vmatpush1.bf16.msra.mxu0 %v859_v20  ;;  %959 = vmatprep.mubr.bf16.mxu1 %v2203_v11 }
  0xc3   : > { %v910_v22 = vpop.permute.xlu0 %909  ;;  %v912_v23 = vpop.permute.xlu1 %911 }
  0xc4   : > { %v916_v24 = vsel %vm915_vm12, %v910_v22, %v912_v23 }
  0xc5   : > { %2068 = vmatmul.mubr.msk.bf16.vlgmr.msra.gmra.mrb[20].mxu0 %vm238_vm1, %v2066_v21  ;;  %v922_v28 = vsel %vm242_vm0, %v916_v24, 0 }
  0xc6   : > { %1022 = vmatprep.mubr.bf16.mxu0 %v2203_v11 }
  0xc7   : > { %v914_v25 = vpop.permute.xlu0 %913  ;;  %v973_v26 = vpop.permute.xlu1 %972 }
  0xc8   : > { %v917_v27 = vsel %vm915_vm12, %v912_v23, %v914_v25  ;;  %vm1797_vm12 = vcmask 351232  }
  0xc9   : > { %2070 = vmatprep.subr.msk.bf16.mxu1 %vm242_vm0, %v917_v27 }
  0xca   : > { %928 = vmatpush1.bf16.msra.mxu1 %v922_v28 }
  0xcb   : > { %v975_v30 = vpop.permute.xlu0 %974  ;;  %v977_v31 = vpop.permute.xlu1 %976 }
  0xcc   : > { %v979_v32 = vsel %vm978_vm13, %v973_v26, %v975_v30  ;;  %v980_v33 = vsel %vm978_vm13, %v975_v30, %v977_v31  ;;  %v2093_v26 = vld [vmem:[%s2573_s1 + $0x13] sm:$0x1]  ;;  %vm1860_vm13 = vcmask 343040  }
  0xcd   : > { %v985_v34 = vsel %vm242_vm0, %v979_v32, 0  ;;  %2073 = vmatprep.subr.msk.bf16.mxu0 %vm242_vm0, %v980_v33  ;;  %2071 = vmatmul.mubr.msk.bf16.vlgmr.msra.gmra.mrb[20].mxu1 %vm238_vm1, %v2069_v29  ;;  %v2096_v32 = vld [vmem:[%s2573_s1 + $0x14] sm:$0x1] }
  0xce   : > { %991 = vmatpush1.bf16.msra.mxu0 %v985_v34  ;;  %1085 = vmatprep.mubr.bf16.mxu1 %v2203_v11 }
  0xcf   : > { %v1036_v36 = vpop.permute.xlu0 %1035  ;;  %v1038_v37 = vpop.permute.xlu1 %1037 }
  0xd0   : > { %v1042_v38 = vsel %vm1041_vm14, %v1036_v36, %v1038_v37 }
  0xd1   : > { %2074 = vmatmul.mubr.msk.bf16.vlgmr.msra.gmra.mrb[24].mxu0 %vm238_vm1, %v2072_v35  ;;  %v1048_v42 = vsel %vm242_vm0, %v1042_v38, 0 }
  0xd2   : > { %1148 = vmatprep.mubr.bf16.mxu0 %v2203_v11 }
  0xd3   : > { %v1040_v39 = vpop.permute.xlu0 %1039  ;;  %v1099_v40 = vpop.permute.xlu1 %1098 }
  0xd4   : > { %v1043_v41 = vsel %vm1041_vm14, %v1038_v37, %v1040_v39 }
  0xd5   : > { %2076 = vmatprep.subr.msk.bf16.mxu1 %vm242_vm0, %v1043_v41 }
  0xd6   : > { %1054 = vmatpush1.bf16.msra.mxu1 %v1048_v42 }
  0xd7   : > { %v1101_v44 = vpop.permute.xlu0 %1100  ;;  %v1103_v45 = vpop.permute.xlu1 %1102 }
  0xd8   : > { %v1105_v46 = vsel %vm1104_vm15, %v1099_v40, %v1101_v44  ;;  %v1106_v47 = vsel %vm1104_vm15, %v1101_v44, %v1103_v45  ;;  %v2099_v40 = vld [vmem:[%s2573_s1 + $0x15] sm:$0x1] }
  0xd9   : > { %v1111_v48 = vsel %vm242_vm0, %v1105_v46, 0  ;;  %2077 = vmatmul.mubr.msk.bf16.vlgmr.msra.gmra.mrb[24].mxu1 %vm238_vm1, %v2075_v43  ;;  %2079 = vmatprep.subr.msk.bf16.mxu0 %vm242_vm0, %v1106_v47  ;;  %v2102_v46 = vld [vmem:[%s2573_s1 + $0x16] sm:$0x1] }
  0xda   : > { %1117 = vmatpush1.bf16.msra.mxu0 %v1111_v48  ;;  %1211 = vmatprep.mubr.bf16.mxu1 %v2203_v11 }
  0xdb   : > { %v1162_v50 = vpop.permute.xlu0 %1161  ;;  %v1164_v51 = vpop.permute.xlu1 %1163 }
  0xdc   : > { %v1168_v52 = vsel %vm1167_vm2, %v1162_v50, %v1164_v51 }
  0xdd   : > { %2080 = vmatmul.mubr.msk.bf16.vlgmr.msra.gmra.mrb[28].mxu0 %vm238_vm1, %v2078_v49  ;;  %v1174_v56 = vsel %vm242_vm0, %v1168_v52, 0 }
  0xde   : > { %1274 = vmatprep.mubr.bf16.mxu0 %v2203_v11 }
  0xdf   : > { %v1166_v53 = vpop.permute.xlu0 %1165  ;;  %v1225_v54 = vpop.permute.xlu1 %1224 }
  0xe0   : > { %v1169_v55 = vsel %vm1167_vm2, %v1164_v51, %v1166_v53 }
  0xe1   : > { %2082 = vmatprep.subr.msk.bf16.mxu1 %vm242_vm0, %v1169_v55 }
  0xe2   : > { %1180 = vmatpush1.bf16.msra.mxu1 %v1174_v56 }
  0xe3   : > { %v1227_v58 = vpop.permute.xlu0 %1226  ;;  %v1229_v59 = vpop.permute.xlu1 %1228 }
  0xe4   : > { %v1231_v60 = vsel %vm1230_vm3, %v1225_v54, %v1227_v58  ;;  %v1232_v61 = vsel %vm1230_vm3, %v1227_v58, %v1229_v59  ;;  %v2105_v54 = vld [vmem:[%s2573_s1 + $0x17] sm:$0x1] }
  0xe5   : > { %v1237_v62 = vsel %vm242_vm0, %v1231_v60, 0  ;;  %2083 = vmatmul.mubr.msk.bf16.vlgmr.msra.gmra.mrb[28].mxu1 %vm238_vm1, %v2081_v57  ;;  %2085 = vmatprep.subr.msk.bf16.mxu0 %vm242_vm0, %v1232_v61  ;;  %v2108_v60 = vld [vmem:[%s2573_s1 + $0x18] sm:$0x1] }
  0xe6   : > { %1243 = vmatpush1.bf16.msra.mxu0 %v1237_v62  ;;  %1337 = vmatprep.mubr.bf16.mxu1 %v2203_v11 }
  0xe7   : > { %v1288_v0 = vpop.permute.xlu0 %1287  ;;  %v1290_v1 = vpop.permute.xlu1 %1289 }
  0xe8   : > { %v1294_v2 = vsel %vm1293_vm4, %v1288_v0, %v1290_v1 }
  0xe9   : > { %2086 = vmatmul.mubr.msk.bf16.vlgmr.msra.gmra.mrb[32].mxu0 %vm238_vm1, %v2084_v63  ;;  %v1300_v6 = vsel %vm242_vm0, %v1294_v2, 0 }
  0xea   : > { %1400 = vmatprep.mubr.bf16.mxu0 %v2203_v11 }
  0xeb   : > { %v1292_v3 = vpop.permute.xlu0 %1291  ;;  %v1351_v4 = vpop.permute.xlu1 %1350 }
  0xec   : > { %v1295_v5 = vsel %vm1293_vm4, %v1290_v1, %v1292_v3 }
  0xed   : > { %2088 = vmatprep.subr.msk.bf16.mxu1 %vm242_vm0, %v1295_v5 }
  0xee   : > { %1306 = vmatpush1.bf16.msra.mxu1 %v1300_v6  ;;  %v2490_v8 = vpop.f32.mrb[0].mxu1 }
  0xef   : > { %v1353_v9 = vpop.permute.xlu0 %1352  ;;  %v1355_v10 = vpop.permute.xlu1 %1354 }
  0xf0   : > { %v1357_v12 = vsel %vm1356_vm5, %v1351_v4, %v1353_v9  ;;  %v1358_v13 = vsel %vm1356_vm5, %v1353_v9, %v1355_v10  ;;  %v2492_v14 = vpop.f32.mrb[1].mxu1  ;;  %v2111_v4 = vld [vmem:[%s2573_s1 + $0x19] sm:$0x1] }
  0xf1   : > { %v1363_v15 = vsel %vm242_vm0, %v1357_v12, 0  ;;  %2089 = vmatmul.mubr.msk.bf16.vlgmr.msra.gmra.mrb[32].mxu1 %vm238_vm1, %v2087_v7  ;;  %2091 = vmatprep.subr.msk.bf16.mxu0 %vm242_vm0, %v1358_v13  ;;  %v337_v16 = vpop.f32.mrb[2].mxu1 }
  0xf2   : > { %1369 = vmatpush1.bf16.msra.mxu0 %v1363_v15  ;;  %1463 = vmatprep.mubr.bf16.mxu1 %v2203_v11  ;;  %v338_v18 = vpop.f32.mrb[3].mxu1 }
  0xf3   : > { %v1414_v19 = vpop.permute.xlu0 %1413  ;;  %v1416_v20 = vpop.permute.xlu1 %1415 }
  0xf4   : > { %v1420_v21 = vsel %vm1419_vm6, %v1414_v19, %v1416_v20 }
  0xf5   : > { %2092 = vmatmul.mubr.msk.bf16.vlgmr.msra.gmra.mrb[36].mxu0 %vm238_vm1, %v2090_v17  ;;  %v1426_v25 = vsel %vm242_vm0, %v1420_v21, 0 }
  0xf6   : > { %1526 = vmatprep.mubr.bf16.mxu0 %v2203_v11 }
  0xf7   : > { %v1418_v22 = vpop.permute.xlu0 %1417  ;;  %v1477_v23 = vpop.permute.xlu1 %1476 }
  0xf8   : > { %v1421_v24 = vsel %vm1419_vm6, %v1416_v20, %v1418_v22 }
  0xf9   : > { %2094 = vmatprep.subr.msk.bf16.mxu1 %vm242_vm0, %v1421_v24 }
  0xfa   : > { %1432 = vmatpush1.bf16.msra.mxu1 %v1426_v25 }
  0xfb   : > { %v1479_v27 = vpop.permute.xlu0 %1478  ;;  %v1481_v28 = vpop.permute.xlu1 %1480 }
  0xfc   : > { %v1483_v29 = vsel %vm1482_vm7, %v1477_v23, %v1479_v27  ;;  %v1484_v30 = vsel %vm1482_vm7, %v1479_v27, %v1481_v28 }
  0xfd   : > { %v1489_v31 = vsel %vm242_vm0, %v1483_v29, 0  ;;  %2095 = vmatmul.mubr.msk.bf16.vlgmr.msra.gmra.mrb[36].mxu1 %vm238_vm1, %v2093_v26  ;;  %2097 = vmatprep.subr.msk.bf16.mxu0 %vm242_vm0, %v1484_v30 }
  0xfe   : > { %1495 = vmatpush1.bf16.msra.mxu0 %v1489_v31  ;;  %1589 = vmatprep.mubr.bf16.mxu1 %v2203_v11 }
  0xff   : > { %v1540_v33 = vpop.permute.xlu0 %1539  ;;  %v1542_v34 = vpop.permute.xlu1 %1541 }
 0x100   : > { %v1546_v35 = vsel %vm1545_vm8, %v1540_v33, %v1542_v34 }
 0x101   : > { %2098 = vmatmul.mubr.msk.bf16.vlgmr.msra.gmra.mrb[40].mxu0 %vm238_vm1, %v2096_v32  ;;  %v1552_v39 = vsel %vm242_vm0, %v1546_v35, 0 }
 0x102   : > { %1652 = vmatprep.mubr.bf16.mxu0 %v2203_v11 }
 0x103   : > { %v1544_v36 = vpop.permute.xlu0 %1543  ;;  %v1603_v37 = vpop.permute.xlu1 %1602 }
 0x104   : > { %v1547_v38 = vsel %vm1545_vm8, %v1542_v34, %v1544_v36 }
 0x105   : > { %2100 = vmatprep.subr.msk.bf16.mxu1 %vm242_vm0, %v1547_v38 }
 0x106   : > { %1558 = vmatpush1.bf16.msra.mxu1 %v1552_v39 }
 0x107   : > { %v1605_v41 = vpop.permute.xlu0 %1604  ;;  %v1607_v42 = vpop.permute.xlu1 %1606 }
 0x108   : > { %v1609_v43 = vsel %vm1608_vm9, %v1603_v37, %v1605_v41  ;;  %v1610_v44 = vsel %vm1608_vm9, %v1605_v41, %v1607_v42 }
 0x109   : > { %v1615_v45 = vsel %vm242_vm0, %v1609_v43, 0  ;;  %2101 = vmatmul.mubr.msk.bf16.vlgmr.msra.gmra.mrb[40].mxu1 %vm238_vm1, %v2099_v40  ;;  %2103 = vmatprep.subr.msk.bf16.mxu0 %vm242_vm0, %v1610_v44 }
 0x10a   : > { %1621 = vmatpush1.bf16.msra.mxu0 %v1615_v45  ;;  %1715 = vmatprep.mubr.bf16.mxu1 %v2203_v11 }
 0x10b   : > { %v1666_v47 = vpop.permute.xlu0 %1665  ;;  %v1668_v48 = vpop.permute.xlu1 %1667 }
 0x10c   : > { %v1672_v49 = vsel %vm1671_vm10, %v1666_v47, %v1668_v48 }
 0x10d   : > { %2104 = vmatmul.mubr.msk.bf16.vlgmr.msra.gmra.mrb[44].mxu0 %vm238_vm1, %v2102_v46  ;;  %v1678_v53 = vsel %vm242_vm0, %v1672_v49, 0 }
 0x10e   : > { %1778 = vmatprep.mubr.bf16.mxu0 %v2203_v11 }
 0x10f   : > { %v1670_v50 = vpop.permute.xlu0 %1669  ;;  %v1729_v51 = vpop.permute.xlu1 %1728 }
 0x110   : > { %v1673_v52 = vsel %vm1671_vm10, %v1668_v48, %v1670_v50 }
 0x111   : > { %2106 = vmatprep.subr.msk.bf16.mxu1 %vm242_vm0, %v1673_v52 }
 0x112   : > { %1684 = vmatpush1.bf16.msra.mxu1 %v1678_v53 }
 0x113   : > { %v1731_v55 = vpop.permute.xlu0 %1730  ;;  %v1733_v56 = vpop.permute.xlu1 %1732 }
 0x114   : > { %v1735_v57 = vsel %vm1734_vm11, %v1729_v51, %v1731_v55  ;;  %v1736_v58 = vsel %vm1734_vm11, %v1731_v55, %v1733_v56 }
 0x115   : > { %v1741_v59 = vsel %vm242_vm0, %v1735_v57, 0  ;;  %2107 = vmatmul.mubr.msk.bf16.vlgmr.msra.gmra.mrb[44].mxu1 %vm238_vm1, %v2105_v54  ;;  %2109 = vmatprep.subr.msk.bf16.mxu0 %vm242_vm0, %v1736_v58 }
 0x116   : > { %1747 = vmatpush1.bf16.msra.mxu0 %v1741_v59  ;;  %1841 = vmatprep.mubr.bf16.mxu1 %v2203_v11 }
 0x117   : > { %v1792_v61 = vpop.permute.xlu0 %1791  ;;  %v1794_v62 = vpop.permute.xlu1 %1793 }
 0x118   : > { %v1798_v63 = vsel %vm1797_vm12, %v1792_v61, %v1794_v62 }
 0x119   : > { %2110 = vmatmul.mubr.msk.bf16.vlgmr.msra.gmra.mrb[48].mxu0 %vm238_vm1, %v2108_v60  ;;  %v1804_v3 = vsel %vm242_vm0, %v1798_v63, 0 }
 0x11a   : > { %1904 = vmatprep.mubr.bf16.mxu0 %v2203_v11  ;;  %v2114_v11 = vld [vmem:[%s2573_s1 + $0x1a] sm:$0x1] }
 0x11b   : > { %v1796_v0 = vpop.permute.xlu0 %1795  ;;  %v1855_v1 = vpop.permute.xlu1 %1854 }
 0x11c   : > { %v1799_v2 = vsel %vm1797_vm12, %v1794_v62, %v1796_v0 }
 0x11d   : > { %2112 = vmatprep.subr.msk.bf16.mxu1 %vm242_vm0, %v1799_v2 }
 0x11e   : > { %1810 = vmatpush1.bf16.msra.mxu1 %v1804_v3 }
 0x11f   : > { %v1857_v5 = vpop.permute.xlu0 %1856  ;;  %v1859_v6 = vpop.permute.xlu1 %1858 }
 0x120   : > { %v1861_v7 = vsel %vm1860_vm13, %v1855_v1, %v1857_v5  ;;  %v1862_v9 = vsel %vm1860_vm13, %v1857_v5, %v1859_v6 }
 0x121   : > { %v1867_v10 = vsel %vm242_vm0, %v1861_v7, 0  ;;  %2113 = vmatmul.mubr.msk.bf16.vlgmr.msra.gmra.mrb[48].mxu1 %vm238_vm1, %v2111_v4  ;;  %2115 = vmatprep.subr.msk.bf16.mxu0 %vm242_vm0, %v1862_v9 }
 0x122   : > { %1873 = vmatpush1.bf16.msra.mxu0 %v1867_v10 }
 0x125   : > { %2116 = vmatmul.mubr.msk.bf16.vlgmr.msra.gmra.mrb[52].mxu0 %vm238_vm1, %v2114_v11 }
 0x169   : > { %v283_v12 = vpop.f32.mrb[0].mxu0 }
 0x16a   : > { %v285_v13 = vpop.f32.mrb[1].mxu0  ;;  %v334_v15 = vadd.f32 %v2490_v8, %v283_v12 }
 0x16b   : > { %v287_v16 = vpop.f32.mrb[2].mxu0  ;;  %v336_v17 = vadd.f32 %v2492_v14, %v285_v13 }
 0x16c   : > { %v288_v18 = vpop.f32.mrb[3].mxu0 }
 0x171   : > { %v394_v19 = vpop.f32.mrb[4].mxu0 }
 0x172   : > { %v401_v20 = vadd.f32 %v394_v19, %v334_v15  ;;  %v396_v21 = vpop.f32.mrb[5].mxu0  ;;  %v457_v22 = vpop.f32.mrb[4].mxu1 }
 0x173   : > { %v402_v23 = vadd.f32 %v396_v21, %v336_v17  ;;  %v398_v24 = vpop.f32.mrb[6].mxu0  ;;  %v459_v25 = vpop.f32.mrb[5].mxu1 }
 0x174   : > { %v464_v26 = vadd.f32 %v457_v22, %v401_v20  ;;  %v399_v27 = vpop.f32.mrb[7].mxu0  ;;  %v461_v28 = vpop.f32.mrb[6].mxu1 }
 0x175   : > { %v465_v29 = vadd.f32 %v459_v25, %v402_v23  ;;  %v462_v30 = vpop.f32.mrb[7].mxu1 }
 0x179   : > { %v520_v31 = vpop.f32.mrb[8].mxu0 }
 0x17a   : > { %v527_v32 = vadd.f32 %v520_v31, %v464_v26  ;;  %v522_v33 = vpop.f32.mrb[9].mxu0 }
 0x17b   : > { %v528_v8 = vadd.f32 %v522_v33, %v465_v29  ;;  %v524_v34 = vpop.f32.mrb[10].mxu0 }
 0x17c   : > { %v525_v35 = vpop.f32.mrb[11].mxu0 }
 0x17d   : > { %v583_v14 = vpop.f32.mrb[8].mxu1 }
 0x17e   : > { %v590_v36 = vadd.f32 %v583_v14, %v527_v32  ;;  %v585_v37 = vpop.f32.mrb[9].mxu1 }
 0x17f   : > { %v591_v38 = vadd.f32 %v585_v37, %v528_v8  ;;  %v587_v39 = vpop.f32.mrb[10].mxu1 }
 0x180   : > { %v588_v40 = vpop.f32.mrb[11].mxu1 }
 0x181   : > { %v646_v41 = vpop.f32.mrb[12].mxu0 }
 0x182   : > { %v653_v42 = vadd.f32 %v646_v41, %v590_v36  ;;  %v648_v43 = vpop.f32.mrb[13].mxu0 }
 0x183   : > { %v654_v44 = vadd.f32 %v648_v43, %v591_v38  ;;  %v650_v45 = vpop.f32.mrb[14].mxu0 }
 0x184   : > { %v651_v46 = vpop.f32.mrb[15].mxu0 }
 0x188   : > { %v709_v47 = vpop.f32.mrb[12].mxu1 }
 0x189   : > { %v716_v48 = vadd.f32 %v709_v47, %v653_v42  ;;  %v711_v49 = vpop.f32.mrb[13].mxu1 }
 0x18a   : > { %v717_v50 = vadd.f32 %v711_v49, %v654_v44  ;;  %v713_v51 = vpop.f32.mrb[14].mxu1 }
 0x18b   : > { %v714_v52 = vpop.f32.mrb[15].mxu1 }
 0x18c   : > { %v772_v53 = vpop.f32.mrb[16].mxu0 }
 0x18d   : > { %v779_v54 = vadd.f32 %v772_v53, %v716_v48  ;;  %v774_v55 = vpop.f32.mrb[17].mxu0 }
 0x18e   : > { %v780_v56 = vadd.f32 %v774_v55, %v717_v50  ;;  %v776_v57 = vpop.f32.mrb[18].mxu0 }
 0x18f   : > { %v777_v58 = vpop.f32.mrb[19].mxu0 }
 0x194   : > { %v835_v59 = vpop.f32.mrb[16].mxu1 }
 0x195   : > { %v842_v60 = vadd.f32 %v835_v59, %v779_v54  ;;  %v837_v61 = vpop.f32.mrb[17].mxu1 }
 0x196   : > { %v843_v62 = vadd.f32 %v837_v61, %v780_v56  ;;  %v839_v63 = vpop.f32.mrb[18].mxu1 }
 0x197   : > { %v840_v0 = vpop.f32.mrb[19].mxu1 }
 0x198   : > { %v898_v1 = vpop.f32.mrb[20].mxu0 }
 0x199   : > { %v905_v2 = vadd.f32 %v898_v1, %v842_v60  ;;  %v900_v3 = vpop.f32.mrb[21].mxu0 }
 0x19a   : > { %v906_v4 = vadd.f32 %v900_v3, %v843_v62  ;;  %v902_v5 = vpop.f32.mrb[22].mxu0 }
 0x19b   : > { %v903_v6 = vpop.f32.mrb[23].mxu0 }
 0x1a0   : > { %v961_v7 = vpop.f32.mrb[20].mxu1 }
 0x1a1   : > { %v968_v9 = vadd.f32 %v961_v7, %v905_v2  ;;  %v963_v10 = vpop.f32.mrb[21].mxu1 }
 0x1a2   : > { %v969_v11 = vadd.f32 %v963_v10, %v906_v4  ;;  %v965_v12 = vpop.f32.mrb[22].mxu1 }
 0x1a3   : > { %v966_v13 = vpop.f32.mrb[23].mxu1 }
 0x1a4   : > { %v1024_v15 = vpop.f32.mrb[24].mxu0 }
 0x1a5   : > { %v1031_v16 = vadd.f32 %v1024_v15, %v968_v9  ;;  %v1026_v17 = vpop.f32.mrb[25].mxu0 }
 0x1a6   : > { %v1032_v18 = vadd.f32 %v1026_v17, %v969_v11  ;;  %v1028_v19 = vpop.f32.mrb[26].mxu0 }
 0x1a7   : > { %v1029_v20 = vpop.f32.mrb[27].mxu0 }
 0x1ac   : > { %v1087_v21 = vpop.f32.mrb[24].mxu1 }
 0x1ad   : > { %v1094_v22 = vadd.f32 %v1087_v21, %v1031_v16  ;;  %v1089_v23 = vpop.f32.mrb[25].mxu1 }
 0x1ae   : > { %v1095_v24 = vadd.f32 %v1089_v23, %v1032_v18  ;;  %v1091_v25 = vpop.f32.mrb[26].mxu1 }
 0x1af   : > { %v1092_v26 = vpop.f32.mrb[27].mxu1 }
 0x1b0   : > { %v1150_v27 = vpop.f32.mrb[28].mxu0 }
 0x1b1   : > { %v1157_v28 = vadd.f32 %v1150_v27, %v1094_v22  ;;  %v1152_v29 = vpop.f32.mrb[29].mxu0 }
 0x1b2   : > { %v1158_v30 = vadd.f32 %v1152_v29, %v1095_v24  ;;  %v1154_v31 = vpop.f32.mrb[30].mxu0 }
 0x1b3   : > { %v1155_v32 = vpop.f32.mrb[31].mxu0 }
 0x1b8   : > { %v1213_v33 = vpop.f32.mrb[28].mxu1 }
 0x1b9   : > { %v1220_v8 = vadd.f32 %v1213_v33, %v1157_v28  ;;  %v1215_v34 = vpop.f32.mrb[29].mxu1 }
 0x1ba   : > { %v1221_v35 = vadd.f32 %v1215_v34, %v1158_v30  ;;  %v1217_v14 = vpop.f32.mrb[30].mxu1 }
 0x1bb   : > { %v1218_v36 = vpop.f32.mrb[31].mxu1 }
 0x1bc   : > { %v1276_v37 = vpop.f32.mrb[32].mxu0 }
 0x1bd   : > { %v1283_v38 = vadd.f32 %v1276_v37, %v1220_v8  ;;  %v1278_v39 = vpop.f32.mrb[33].mxu0 }
 0x1be   : > { %v1284_v40 = vadd.f32 %v1278_v39, %v1221_v35  ;;  %v1280_v41 = vpop.f32.mrb[34].mxu0  ;;  %v1919_v35 = vpop.permute.xlu0 %1918 }
 0x1bf   : > { %v1281_v42 = vpop.f32.mrb[35].mxu0 }
 0x1c4   : > { %v1339_v43 = vpop.f32.mrb[32].mxu1 }
 0x1c5   : > { %v1346_v44 = vadd.f32 %v1339_v43, %v1283_v38  ;;  %v1341_v45 = vpop.f32.mrb[33].mxu1 }
 0x1c6   : > { %v1347_v46 = vadd.f32 %v1341_v45, %v1284_v40  ;;  %v1343_v47 = vpop.f32.mrb[34].mxu1 }
 0x1c7   : > { %v1344_v48 = vpop.f32.mrb[35].mxu1 }
 0x1c8   : > { %v1402_v49 = vpop.f32.mrb[36].mxu0 }
 0x1c9   : > { %v1409_v50 = vadd.f32 %v1402_v49, %v1346_v44  ;;  %v1404_v51 = vpop.f32.mrb[37].mxu0 }
 0x1ca   : > { %v1410_v52 = vadd.f32 %v1404_v51, %v1347_v46  ;;  %v1406_v53 = vpop.f32.mrb[38].mxu0 }
 0x1cb   : > { %v1407_v54 = vpop.f32.mrb[39].mxu0 }
 0x1d0   : > { %v1465_v55 = vpop.f32.mrb[36].mxu1 }
 0x1d1   : > { %v1472_v56 = vadd.f32 %v1465_v55, %v1409_v50  ;;  %v1467_v57 = vpop.f32.mrb[37].mxu1 }
 0x1d2   : > { %v1473_v58 = vadd.f32 %v1467_v57, %v1410_v52  ;;  %v1469_v59 = vpop.f32.mrb[38].mxu1 }
 0x1d3   : > { %v1470_v60 = vpop.f32.mrb[39].mxu1 }
 0x1d4   : > { %v1528_v61 = vpop.f32.mrb[40].mxu0 }
 0x1d5   : > { %v1535_v62 = vadd.f32 %v1528_v61, %v1472_v56  ;;  %v1530_v63 = vpop.f32.mrb[41].mxu0 }
 0x1d6   : > { %v1536_v0 = vadd.f32 %v1530_v63, %v1473_v58  ;;  %v1532_v1 = vpop.f32.mrb[42].mxu0 }
 0x1d7   : > { %v1533_v2 = vpop.f32.mrb[43].mxu0 }
 0x1dc   : > { %v1591_v3 = vpop.f32.mrb[40].mxu1 }
 0x1dd   : > { %v1598_v4 = vadd.f32 %v1591_v3, %v1535_v62  ;;  %v1593_v5 = vpop.f32.mrb[41].mxu1 }
 0x1de   : > { %v1599_v6 = vadd.f32 %v1593_v5, %v1536_v0  ;;  %v1595_v7 = vpop.f32.mrb[42].mxu1 }
 0x1df   : > { %v1596_v9 = vpop.f32.mrb[43].mxu1 }
 0x1e0   : > { %v1654_v10 = vpop.f32.mrb[44].mxu0 }
 0x1e1   : > { %v1661_v11 = vadd.f32 %v1654_v10, %v1598_v4  ;;  %v1656_v12 = vpop.f32.mrb[45].mxu0 }
 0x1e2   : > { %v1662_v13 = vadd.f32 %v1656_v12, %v1599_v6  ;;  %v1658_v15 = vpop.f32.mrb[46].mxu0 }
 0x1e3   : > { %v1659_v16 = vpop.f32.mrb[47].mxu0 }
 0x1e8   : > { %v1717_v17 = vpop.f32.mrb[44].mxu1 }
 0x1e9   : > { %v1724_v18 = vadd.f32 %v1717_v17, %v1661_v11  ;;  %v1719_v19 = vpop.f32.mrb[45].mxu1 }
 0x1ea   : > { %v1725_v20 = vadd.f32 %v1719_v19, %v1662_v13  ;;  %v1721_v21 = vpop.f32.mrb[46].mxu1 }
 0x1eb   : > { %v1722_v22 = vpop.f32.mrb[47].mxu1 }
 0x1ec   : > { %v1780_v23 = vpop.f32.mrb[48].mxu0 }
 0x1ed   : > { %v1787_v24 = vadd.f32 %v1780_v23, %v1724_v18  ;;  %v1782_v25 = vpop.f32.mrb[49].mxu0 }
 0x1ee   : > { %v1788_v26 = vadd.f32 %v1782_v25, %v1725_v20  ;;  %v1784_v27 = vpop.f32.mrb[50].mxu0 }
 0x1ef   : > { %v1785_v28 = vpop.f32.mrb[51].mxu0 }
 0x1f4   : > { %v1843_v29 = vpop.f32.mrb[48].mxu1 }
 0x1f5   : > { %v1850_v30 = vadd.f32 %v1843_v29, %v1787_v24  ;;  %v1845_v31 = vpop.f32.mrb[49].mxu1 }
 0x1f6   : > { %v1851_v32 = vadd.f32 %v1845_v31, %v1788_v26  ;;  %v1847_v33 = vpop.f32.mrb[50].mxu1 }
 0x1f7   : > { %v1848_v8 = vpop.f32.mrb[51].mxu1 }
 0x1f8   : > { %v1906_v34 = vpop.f32.mrb[52].mxu0 }
 0x1f9   : > { %v1913_v14 = vadd.f32 %v1906_v34, %v1850_v30  ;;  %v1908_v36 = vpop.f32.mrb[53].mxu0 }
 0x1fa   : > { %v1914_v37 = vadd.f32 %v1908_v36, %v1851_v32  ;;  %v1910_v38 = vpop.f32.mrb[54].mxu0 }
 0x1fb   : > { %v1921_v39 = vadd.f32 %v1919_v35, %v1913_v14  ;;  %v1911_v40 = vpop.f32.mrb[55].mxu0 }
 0x1fc   : > { %v1922_v41 = vadd.f32 %v1919_v35, %v1914_v37 }
 0x1fd   : > { %v1923_v42 = vmax.f32 %v1921_v39, 0.0 }
 0x1fe   : > { %v1924_v43 = vmax.f32 %v1922_v41, 0.0 }
 0x200   : > { %v1927_v44 = vcombine.low %v1923_v42, %v1924_v43 }
 0x202   : > { %2117 = vst.sshfl [vmem:[%s206_s9] sm:$0x33 pattern:$0x76325410] %v1927_v44 }
 0x203 PF: > { %s13_s14 = sadd.s32 1, %s2198_s14   ;;  %s2576_s12 = smov %s2194_s13 }
 0x204   : > { %p10_p5 = scmp.ge.s32.totalorder %s13_s14, 4   ;;  %s2577_s13 = smov %s2579_s15 }
 0x206   :  { %12 = sbr.rel (!%p10_p5) target bundleno = 2 (0x2), region = 88 }

// kernel: ppm_forward.4
= control target key start
LH: loop header
LB: loop body
LE: loop exit
PB: predicated region body
PF: predicated region fallthrough
CT: control target
= control target key end

     0   :  { %s2190_s12 = smov 0   ;;  %s2192_s13 = smov 0   ;;  %s2507_s0 = inlined_call_operand.vmem [shape: bf16[2,1,4,176], index: 0, kind: input, shape index: {}]   ;;  %s2508_s1 = inlined_call_operand.vmem [shape: bf16[27,4,4], index: 1, kind: input, shape index: {}]   ;;  %s2509_s2 = inlined_call_operand.vmem [shape: f32[4,1], index: 2, kind: input, shape index: {}]   ;;  %s2510_s3 = inlined_call_operand.vmem [shape: f32[2,1,4,128], index: 3, kind: output, shape index: {}]  }
   0x1   :  { %s2194_s14 = smov 0  }
   0x2 LB: > { %s25_s15 = sadd.s32 1, %s2134_s13  ;;  %p1785_p0 = scmp.ge.s32.totalorder %s2138_s14, 1  ;;  %s2138_s14 = sphi %s2194_s14, %s13_s14   ;;  %s2134_s13 = sphi %s2192_s13, %s2512_s13   ;;  %s2130_s12 = sphi %s2190_s12, %s2511_s12  }
   0x3   : > { %p27_p1 = scmp.ge.s32.totalorder %s25_s15, 2  ;;  %p157_p2 = scmp.lt.s32.totalorder %s2138_s14, 3 }
   0x5   : > { %s2514_s15 = smov (%p27_p1, %s25_s15), 0  ;;  %p158_p3 = pnand %p1785_p0, %p157_p2 }
   0x6   : > { %p187_p4 = scmp.lt.s32.totalorder (!%p158_p3), %s2130_s12, 1  ;;  %v212_v0 = vlaneseq (!%p158_p3)  ;;  %v2140_v1 = vmov (!%p158_p3), 1983009808   ;;  %v2141_v4 = vmov (!%p158_p3), 0.0   ;;  %vm2142_vm0 = vmmov (!%p158_p3), 0   ;;  %s2143_s22 = smov (!%p158_p3), 126  }
   0x7   : > { %161 = sbr.rel (%p158_p3) target bundleno = 467 (0x1d3), region = 32  ;;  %v210_v2 = vunpack.c.l.s4 (!%p158_p3), %v2140_v1  ;;  %1899 = vmatprep.subr.bf16.mxu0 (!%p158_p3), %v2141_v4  ;;  %1905 = vmatprep.subr.bf16.mxu1 (!%p158_p3), %v2141_v4  ;;  %vm227_vm1 = vcmask (!%p158_p3), 1041408   ;;  %vm223_vm2 = vcmask (!%p158_p3), 31744   ;;  %v205_v10 = vld [vmem:[%s2508_s1] sm:$0x3] (!%p158_p3)  ;;  %s2144_s23 = smov (!%p158_p3), 127  }
   0x8   : > { %v213_v3 = vshrl.u32 (!%p158_p3), %v212_v0, 7  ;;  %1901 = vmatprep.mubr.msk.bf16.mxu0 (!%p158_p3), %vm2142_vm0, %v2141_v4  ;;  %1907 = vmatprep.mubr.msk.bf16.mxu1 (!%p158_p3), %vm2142_vm0, %v2141_v4  ;;  %s2145_s24 = smov (!%p158_p3), 124   ;;  %s2146_s25 = smov (!%p158_p3), 123   ;;  %v2169_v12 = vmov (!%p158_p3), 0   ;;  %v1692_v13 = vld [vmem:[%s2509_s2] sm:$0xf] (!%p158_p3) }
   0x9   : > { %v211_v5 = vunpack.c.0.s8 (!%p158_p3), %v210_v2  ;;  %s2147_s26 = smov (!%p158_p3), 122   ;;  %s2148_s27 = smov (!%p158_p3), 120   ;;  %2115 = vset.pattern.permute.xlu0 (!%p158_p3), %v2169_v12  ;;  %vm323_vm3 = vcmask (!%p158_p3), 1031168   ;;  %vm221_vm4 = vcmask (!%p158_p3), 1039360   ;;  %vm378_vm5 = vcmask (!%p158_p3), 1014784  }
   0xa   : > { %s2149_s28 = smov (!%p158_p3), 119   ;;  %s2150_s29 = smov (!%p158_p3), 118   ;;  %v1789_v21 = vld [vmem:[%s2508_s1 + $0x2] sm:$0x3] (!%p158_p3)  ;;  %vm433_vm6 = vcmask (!%p158_p3), 1006592   ;;  %vm488_vm7 = vcmask (!%p158_p3), 998400  }
   0xb   : > { %v214_v6 = vsub.s32 (!%p158_p3), %v211_v5, %v213_v3  ;;  %s2151_s30 = smov (!%p158_p3), 112   ;;  %s2152_s4 = smov (!%p158_p3), 111   ;;  %v1794_v27 = vld [vmem:[%s2508_s1 + $0x6] sm:$0x3] (!%p158_p3)  ;;  %v1792_v31 = vld [vmem:[%s2508_s1 + $0x4] sm:$0x3] (!%p158_p3) }
   0xc   : > { %s2153_s5 = smov (!%p158_p3), 110   ;;  %s2154_s6 = smov (!%p158_p3), 108   ;;  %vm543_vm8 = vcmask (!%p158_p3), 982016   ;;  %v1798_v37 = vld [vmem:[%s2508_s1 + $0xa] sm:$0x3] (!%p158_p3)  ;;  %vm598_vm9 = vcmask (!%p158_p3), 973824  }
   0xd   : > { %s2155_s7 = smov (!%p158_p3), 107   ;;  %s2156_s8 = smov (!%p158_p3), 106   ;;  %v1796_v41 = vld [vmem:[%s2508_s1 + $0x8] sm:$0x3] (!%p158_p3)  ;;  %vm653_vm10 = vcmask (!%p158_p3), 965632   ;;  %vm708_vm11 = vcmask (!%p158_p3), 916480  }
   0xe   : > { %s2516_s12 = smov (!%p187_p4, %s2130_s12), 1  ;;  %s2157_s9 = smov 104   ;;  %v1802_v47 = vld [vmem:[%s2508_s1 + $0xe] sm:$0x3]  ;;  %v1800_v51 = vld [vmem:[%s2508_s1 + $0xc] sm:$0x3] }
   0xf   : > { %s1844_s16 = sshll.u32 %s2516_s12, 2  ;;  %s2158_s10 = smov 103   ;;  %vm763_vm12 = vcmask 908288   ;;  %v1806_v57 = vld [vmem:[%s2508_s1 + $0x12] sm:$0x3]  ;;  %vm818_vm13 = vcmask 900096  }
  0x10   : > { %s195_s19 = scalar_lea.vmem %s2507_s0, %s1844_s16  ;;  %s2159_s11 = smov 102   ;;  %v1804_v61 = vld [vmem:[%s2508_s1 + $0x10] sm:$0x3]  ;;  %vm873_vm14 = vcmask 883712   ;;  %v1810_v3 = vld [vmem:[%s2508_s1 + $0x16] sm:$0x3] }
  0x11   : > { %v204_v7 = vld [vmem:[%s195_s19] sm:$0xf]  ;;  %s2160_s17 = smov 96   ;;  %s2161_s18 = smov 95   ;;  %vm928_vm15 = vcmask 875520  }
  0x12   : > { %v2222_v8 = vrot.slane %v204_v7, %v214_v6  ;;  %v275_v9 = vsel %vm227_vm1, %v204_v7, 0  ;;  %s2162_s19 = smov 94   ;;  %s2163_s20 = smov 92  }
  0x13   : > { %1906 = vmatpush3.bf16.msra.mxu1 %v275_v9  ;;  %s2164_s21 = smov 91  }
  0x14   : > { %319 = vrot.lane.b32.xlu1 %v2222_v8, %s2143_s22  ;;  %217 = vrot.lane.b32.xlu0 %v2222_v8, %s2144_s23  ;;  %v2232_v11 = vcombine.high %v2222_v8, %v2222_v8 }
  0x15   : > { %1917 = vmatprep.subr.bf16.mxu1 %v2141_v4 }
  0x16   : > { %1908 = vmatmul.mubr.msk.bf16.vlgmr.msra.gmra.mrb[0].mxu1 %vm223_vm2, %v205_v10 }
  0x17   : > { %1919 = vmatprep.mubr.msk.bf16.mxu1 %vm2142_vm0, %v2141_v4 }
  0x18   : > { %321 = vrot.lane.b32.xlu1 %v2232_v11, %s2143_s22  ;;  %219 = vrot.lane.b32.xlu0 %v2232_v11, %s2144_s23  ;;  %s2165_s22 = smov 90   ;;  %s2166_s23 = smov 88  }
  0x1c   : > { %376 = vrot.lane.b32.xlu1 %v2232_v11, %s2145_s24  ;;  %374 = vrot.lane.b32.xlu0 %v2222_v8, %s2145_s24  ;;  %s2167_s24 = smov 87  }
  0x20   : > { %431 = vrot.lane.b32.xlu1 %v2232_v11, %s2146_s25  ;;  %429 = vrot.lane.b32.xlu0 %v2222_v8, %s2146_s25  ;;  %s2168_s25 = smov 86  }
  0x24   : > { %486 = vrot.lane.b32.xlu1 %v2232_v11, %s2147_s26  ;;  %484 = vrot.lane.b32.xlu0 %v2222_v8, %s2147_s26 }
  0x28   : > { %541 = vrot.lane.b32.xlu1 %v2232_v11, %s2148_s27  ;;  %539 = vrot.lane.b32.xlu0 %v2222_v8, %s2148_s27 }
  0x2c   : > { %596 = vrot.lane.b32.xlu1 %v2232_v11, %s2149_s28  ;;  %594 = vrot.lane.b32.xlu0 %v2222_v8, %s2149_s28 }
  0x30   : > { %651 = vrot.lane.b32.xlu1 %v2232_v11, %s2150_s29  ;;  %649 = vrot.lane.b32.xlu0 %v2222_v8, %s2150_s29 }
  0x34   : > { %706 = vrot.lane.b32.xlu1 %v2232_v11, %s2151_s30  ;;  %704 = vrot.lane.b32.xlu0 %v2222_v8, %s2151_s30 }
  0x38   : > { %761 = vrot.lane.b32.xlu1 %v2232_v11, %s2152_s4  ;;  %759 = vrot.lane.b32.xlu0 %v2222_v8, %s2152_s4 }
  0x3c   : > { %816 = vrot.lane.b32.xlu1 %v2232_v11, %s2153_s5  ;;  %814 = vrot.lane.b32.xlu0 %v2222_v8, %s2153_s5 }
  0x40   : > { %871 = vrot.lane.b32.xlu1 %v2232_v11, %s2154_s6  ;;  %869 = vrot.lane.b32.xlu0 %v2222_v8, %s2154_s6 }
  0x44   : > { %926 = vrot.lane.b32.xlu1 %v2232_v11, %s2155_s7  ;;  %924 = vrot.lane.b32.xlu0 %v2222_v8, %s2155_s7 }
  0x48   : > { %981 = vrot.lane.b32.xlu1 %v2232_v11, %s2156_s8  ;;  %979 = vrot.lane.b32.xlu0 %v2222_v8, %s2156_s8 }
  0x4c   : > { %1036 = vrot.lane.b32.xlu1 %v2232_v11, %s2157_s9  ;;  %1034 = vrot.lane.b32.xlu0 %v2222_v8, %s2157_s9 }
  0x50   : > { %1091 = vrot.lane.b32.xlu1 %v2232_v11, %s2158_s10  ;;  %1089 = vrot.lane.b32.xlu0 %v2222_v8, %s2158_s10 }
  0x54   : > { %1146 = vrot.lane.b32.xlu1 %v2232_v11, %s2159_s11  ;;  %1144 = vrot.lane.b32.xlu0 %v2222_v8, %s2159_s11  ;;  %s202_s11 = scalar_lea.vmem %s2510_s3, %s1844_s16 }
  0x58   : > { %1201 = vrot.lane.b32.xlu1 %v2232_v11, %s2160_s17  ;;  %1199 = vrot.lane.b32.xlu0 %v2222_v8, %s2160_s17 }
  0x5c   : > { %1256 = vrot.lane.b32.xlu1 %v2232_v11, %s2161_s18  ;;  %1254 = vrot.lane.b32.xlu0 %v2222_v8, %s2161_s18 }
  0x60   : > { %1311 = vrot.lane.b32.xlu1 %v2232_v11, %s2162_s19  ;;  %1309 = vrot.lane.b32.xlu0 %v2222_v8, %s2162_s19 }
  0x64   : > { %1366 = vrot.lane.b32.xlu1 %v2232_v11, %s2163_s20  ;;  %1364 = vrot.lane.b32.xlu0 %v2222_v8, %s2163_s20 }
  0x68   : > { %1421 = vrot.lane.b32.xlu1 %v2232_v11, %s2164_s21  ;;  %1419 = vrot.lane.b32.xlu0 %v2222_v8, %s2164_s21 }
  0x6c   : > { %1476 = vrot.lane.b32.xlu1 %v2232_v11, %s2165_s22  ;;  %1474 = vrot.lane.b32.xlu0 %v2222_v8, %s2165_s22 }
  0x70   : > { %1531 = vrot.lane.b32.xlu1 %v2232_v11, %s2166_s23  ;;  %1529 = vrot.lane.b32.xlu0 %v2222_v8, %s2166_s23 }
  0x74   : > { %1586 = vrot.lane.b32.xlu1 %v2232_v11, %s2167_s24  ;;  %1584 = vrot.lane.b32.xlu0 %v2222_v8, %s2167_s24 }
  0x78   : > { %1641 = vrot.lane.b32.xlu1 %v2232_v11, %s2168_s25  ;;  %1639 = vrot.lane.b32.xlu0 %v2222_v8, %s2168_s25  ;;  %v1808_v8 = vld [vmem:[%s2508_s1 + $0x14] sm:$0x3] }
  0x7c   : > { %1695 = vperm.xlu0 %2115, %v1692_v13  }
  0x86   : > { %v320_v14 = vpop.permute.xlu1 %319  ;;  %v218_v15 = vpop.permute.xlu0 %217 }
  0x8a   : > { %v322_v16 = vpop.permute.xlu1 %321  ;;  %v220_v17 = vpop.permute.xlu0 %219 }
  0x8b   : > { %v324_v18 = vsel %vm323_vm3, %v320_v14, %v322_v16  ;;  %v222_v19 = vsel %vm221_vm4, %v218_v15, %v220_v17  ;;  %vm983_vm3 = vcmask 867328   ;;  %v1814_v14 = vld [vmem:[%s2508_s1 + $0x1a] sm:$0x3]  ;;  %vm1038_vm4 = vcmask 850944  }
  0x8c   : > { %v229_v20 = vsel %vm227_vm1, %v222_v19, 0  ;;  %v329_v22 = vsel %vm227_vm1, %v324_v18, 0  ;;  %v1812_v18 = vld [vmem:[%s2508_s1 + $0x18] sm:$0x3] }
  0x8d   : > { %1900 = vmatpush3.bf16.msra.mxu0 %v229_v20 }
  0x8e   : > { %1911 = vmatprep.subr.bf16.mxu0 %v2141_v4  ;;  %v377_v23 = vpop.permute.xlu1 %376  ;;  %v375_v24 = vpop.permute.xlu0 %374 }
  0x8f   : > { %v379_v25 = vsel %vm378_vm5, %v375_v24, %v377_v23  ;;  %vm1093_vm5 = vcmask 842752   ;;  %v1818_v24 = vld [vmem:[%s2508_s1 + $0x1e] sm:$0x3] }
  0x90   : > { %1902 = vmatmul.mubr.msk.bf16.vlgmr.msra.gmra.mrb[0].mxu0 %vm223_vm2, %v1789_v21  ;;  %v384_v26 = vsel %vm227_vm1, %v379_v25, 0 }
  0x91   : > { %1912 = vmatpush3.bf16.msra.mxu0 %v329_v22  ;;  %1918 = vmatpush3.bf16.msra.mxu1 %v384_v26 }
  0x92   : > { %v432_v28 = vpop.permute.xlu1 %431  ;;  %v430_v29 = vpop.permute.xlu0 %429  ;;  %1913 = vmatprep.mubr.msk.bf16.mxu0 %vm2142_vm0, %v2141_v4  ;;  %1923 = vmatprep.subr.bf16.mxu0 %v2141_v4 }
  0x93   : > { %v434_v30 = vsel %vm433_vm6, %v430_v29, %v432_v28  ;;  %1929 = vmatprep.subr.bf16.mxu1 %v2141_v4  ;;  %vm1148_vm6 = vcmask 834560   ;;  %v1816_v28 = vld [vmem:[%s2508_s1 + $0x1c] sm:$0x3] }
  0x94   : > { %1920 = vmatmul.mubr.msk.bf16.vlgmr.msra.gmra.mrb[4].mxu1 %vm223_vm2, %v1794_v27  ;;  %v439_v32 = vsel %vm227_vm1, %v434_v30, 0 }
  0x95   : > { %1931 = vmatprep.mubr.msk.bf16.mxu1 %vm2142_vm0, %v2141_v4 }
  0x96   : > { %v487_v33 = vpop.permute.xlu1 %486  ;;  %v485_v34 = vpop.permute.xlu0 %484 }
  0x97   : > { %v489_v35 = vsel %vm488_vm7, %v485_v34, %v487_v33  ;;  %vm1203_vm7 = vcmask 785408   ;;  %v1822_v34 = vld [vmem:[%s2508_s1 + $0x22] sm:$0x3] }
  0x98   : > { %1914 = vmatmul.mubr.msk.bf16.vlgmr.msra.gmra.mrb[4].mxu0 %vm223_vm2, %v1792_v31  ;;  %v494_v36 = vsel %vm227_vm1, %v489_v35, 0 }
  0x99   : > { %1924 = vmatpush3.bf16.msra.mxu0 %v439_v32  ;;  %1930 = vmatpush3.bf16.msra.mxu1 %v494_v36 }
  0x9a   : > { %v542_v38 = vpop.permute.xlu1 %541  ;;  %v540_v39 = vpop.permute.xlu0 %539  ;;  %1925 = vmatprep.mubr.msk.bf16.mxu0 %vm2142_vm0, %v2141_v4  ;;  %1935 = vmatprep.subr.bf16.mxu0 %v2141_v4 }
  0x9b   : > { %v544_v40 = vsel %vm543_vm8, %v540_v39, %v542_v38  ;;  %1941 = vmatprep.subr.bf16.mxu1 %v2141_v4  ;;  %vm1258_vm8 = vcmask 777216   ;;  %v1820_v38 = vld [vmem:[%s2508_s1 + $0x20] sm:$0x3] }
  0x9c   : > { %1932 = vmatmul.mubr.msk.bf16.vlgmr.msra.gmra.mrb[8].mxu1 %vm223_vm2, %v1798_v37  ;;  %v549_v42 = vsel %vm227_vm1, %v544_v40, 0 }
  0x9d   : > { %1943 = vmatprep.mubr.msk.bf16.mxu1 %vm2142_vm0, %v2141_v4 }
  0x9e   : > { %v597_v43 = vpop.permute.xlu1 %596  ;;  %v595_v44 = vpop.permute.xlu0 %594 }
  0x9f   : > { %v599_v45 = vsel %vm598_vm9, %v595_v44, %v597_v43  ;;  %vm1313_vm9 = vcmask 769024   ;;  %v1826_v44 = vld [vmem:[%s2508_s1 + $0x26] sm:$0x3] }
  0xa0   : > { %1926 = vmatmul.mubr.msk.bf16.vlgmr.msra.gmra.mrb[8].mxu0 %vm223_vm2, %v1796_v41  ;;  %v604_v46 = vsel %vm227_vm1, %v599_v45, 0 }
  0xa1   : > { %1936 = vmatpush3.bf16.msra.mxu0 %v549_v42  ;;  %1942 = vmatpush3.bf16.msra.mxu1 %v604_v46 }
  0xa2   : > { %v652_v48 = vpop.permute.xlu1 %651  ;;  %v650_v49 = vpop.permute.xlu0 %649  ;;  %1937 = vmatprep.mubr.msk.bf16.mxu0 %vm2142_vm0, %v2141_v4  ;;  %1947 = vmatprep.subr.bf16.mxu0 %v2141_v4 }
  0xa3   : > { %v654_v50 = vsel %vm653_vm10, %v650_v49, %v652_v48  ;;  %1953 = vmatprep.subr.bf16.mxu1 %v2141_v4  ;;  %vm1368_vm10 = vcmask 752640   ;;  %v1824_v48 = vld [vmem:[%s2508_s1 + $0x24] sm:$0x3] }
  0xa4   : > { %1944 = vmatmul.mubr.msk.bf16.vlgmr.msra.gmra.mrb[12].mxu1 %vm223_vm2, %v1802_v47  ;;  %v659_v52 = vsel %vm227_vm1, %v654_v50, 0 }
  0xa5   : > { %1955 = vmatprep.mubr.msk.bf16.mxu1 %vm2142_vm0, %v2141_v4 }
  0xa6   : > { %v707_v53 = vpop.permute.xlu1 %706  ;;  %v705_v54 = vpop.permute.xlu0 %704 }
  0xa7   : > { %v709_v55 = vsel %vm708_vm11, %v705_v54, %v707_v53  ;;  %vm1423_vm11 = vcmask 744448   ;;  %v1830_v54 = vld [vmem:[%s2508_s1 + $0x2a] sm:$0x3] }
  0xa8   : > { %1938 = vmatmul.mubr.msk.bf16.vlgmr.msra.gmra.mrb[12].mxu0 %vm223_vm2, %v1800_v51  ;;  %v714_v56 = vsel %vm227_vm1, %v709_v55, 0 }
  0xa9   : > { %1948 = vmatpush3.bf16.msra.mxu0 %v659_v52  ;;  %1954 = vmatpush3.bf16.msra.mxu1 %v714_v56 }
  0xaa   : > { %v762_v58 = vpop.permute.xlu1 %761  ;;  %v760_v59 = vpop.permute.xlu0 %759  ;;  %1949 = vmatprep.mubr.msk.bf16.mxu0 %vm2142_vm0, %v2141_v4  ;;  %1959 = vmatprep.subr.bf16.mxu0 %v2141_v4 }
  0xab   : > { %v764_v60 = vsel %vm763_vm12, %v760_v59, %v762_v58  ;;  %1965 = vmatprep.subr.bf16.mxu1 %v2141_v4  ;;  %vm1478_vm12 = vcmask 736256   ;;  %v1828_v58 = vld [vmem:[%s2508_s1 + $0x28] sm:$0x3] }
  0xac   : > { %1956 = vmatmul.mubr.msk.bf16.vlgmr.msra.gmra.mrb[16].mxu1 %vm223_vm2, %v1806_v57  ;;  %v769_v62 = vsel %vm227_vm1, %v764_v60, 0 }
  0xad   : > { %1967 = vmatprep.mubr.msk.bf16.mxu1 %vm2142_vm0, %v2141_v4 }
  0xae   : > { %v817_v63 = vpop.permute.xlu1 %816  ;;  %v815_v0 = vpop.permute.xlu0 %814 }
  0xaf   : > { %v819_v1 = vsel %vm818_vm13, %v815_v0, %v817_v63  ;;  %vm1533_vm13 = vcmask 719872   ;;  %v1834_v0 = vld [vmem:[%s2508_s1 + $0x2e] sm:$0x3] }
  0xb0   : > { %1950 = vmatmul.mubr.msk.bf16.vlgmr.msra.gmra.mrb[16].mxu0 %vm223_vm2, %v1804_v61  ;;  %v824_v2 = vsel %vm227_vm1, %v819_v1, 0 }
  0xb1   : > { %1960 = vmatpush3.bf16.msra.mxu0 %v769_v62  ;;  %1966 = vmatpush3.bf16.msra.mxu1 %v824_v2 }
  0xb2   : > { %v872_v5 = vpop.permute.xlu1 %871  ;;  %v870_v6 = vpop.permute.xlu0 %869  ;;  %1961 = vmatprep.mubr.msk.bf16.mxu0 %vm2142_vm0, %v2141_v4  ;;  %1971 = vmatprep.subr.bf16.mxu0 %v2141_v4 }
  0xb3   : > { %v874_v7 = vsel %vm873_vm14, %v870_v6, %v872_v5  ;;  %1977 = vmatprep.subr.bf16.mxu1 %v2141_v4  ;;  %vm1588_vm14 = vcmask 711680   ;;  %v1832_v5 = vld [vmem:[%s2508_s1 + $0x2c] sm:$0x3] }
  0xb4   : > { %1968 = vmatmul.mubr.msk.bf16.vlgmr.msra.gmra.mrb[20].mxu1 %vm223_vm2, %v1810_v3  ;;  %v879_v9 = vsel %vm227_vm1, %v874_v7, 0 }
  0xb5   : > { %1979 = vmatprep.mubr.msk.bf16.mxu1 %vm2142_vm0, %v2141_v4 }
  0xb6   : > { %v927_v10 = vpop.permute.xlu1 %926  ;;  %v925_v11 = vpop.permute.xlu0 %924 }
  0xb7   : > { %v929_v12 = vsel %vm928_vm15, %v925_v11, %v927_v10  ;;  %vm1643_vm15 = vcmask 703488   ;;  %v1838_v11 = vld [vmem:[%s2508_s1 + $0x32] sm:$0x3] }
  0xb8   : > { %1962 = vmatmul.mubr.msk.bf16.vlgmr.msra.gmra.mrb[20].mxu0 %vm223_vm2, %v1808_v8  ;;  %v934_v13 = vsel %vm227_vm1, %v929_v12, 0 }
  0xb9   : > { %1972 = vmatpush3.bf16.msra.mxu0 %v879_v9  ;;  %1978 = vmatpush3.bf16.msra.mxu1 %v934_v13 }
  0xba   : > { %v982_v15 = vpop.permute.xlu1 %981  ;;  %v980_v16 = vpop.permute.xlu0 %979  ;;  %1973 = vmatprep.mubr.msk.bf16.mxu0 %vm2142_vm0, %v2141_v4  ;;  %1983 = vmatprep.subr.bf16.mxu0 %v2141_v4 }
  0xbb   : > { %v984_v17 = vsel %vm983_vm3, %v980_v16, %v982_v15  ;;  %1989 = vmatprep.subr.bf16.mxu1 %v2141_v4 }
  0xbc   : > { %1980 = vmatmul.mubr.msk.bf16.vlgmr.msra.gmra.mrb[24].mxu1 %vm223_vm2, %v1814_v14  ;;  %v989_v19 = vsel %vm227_vm1, %v984_v17, 0 }
  0xbd   : > { %1991 = vmatprep.mubr.msk.bf16.mxu1 %vm2142_vm0, %v2141_v4 }
  0xbe   : > { %v1037_v20 = vpop.permute.xlu1 %1036  ;;  %v1035_v21 = vpop.permute.xlu0 %1034 }
  0xbf   : > { %v1039_v22 = vsel %vm1038_vm4, %v1035_v21, %v1037_v20  ;;  %v1840_v21 = vld [vmem:[%s2508_s1 + $0x34] sm:$0x3] }
  0xc0   : > { %1974 = vmatmul.mubr.msk.bf16.vlgmr.msra.gmra.mrb[24].mxu0 %vm223_vm2, %v1812_v18  ;;  %v1044_v23 = vsel %vm227_vm1, %v1039_v22, 0  ;;  %v1836_v18 = vld [vmem:[%s2508_s1 + $0x30] sm:$0x3] }
  0xc1   : > { %1984 = vmatpush3.bf16.msra.mxu0 %v989_v19  ;;  %1990 = vmatpush3.bf16.msra.mxu1 %v1044_v23 }
  0xc2   : > { %v1092_v25 = vpop.permute.xlu1 %1091  ;;  %v1090_v26 = vpop.permute.xlu0 %1089  ;;  %1985 = vmatprep.mubr.msk.bf16.mxu0 %vm2142_vm0, %v2141_v4  ;;  %1995 = vmatprep.subr.bf16.mxu0 %v2141_v4 }
  0xc3   : > { %v1094_v27 = vsel %vm1093_vm5, %v1090_v26, %v1092_v25  ;;  %2001 = vmatprep.subr.bf16.mxu1 %v2141_v4 }
  0xc4   : > { %1992 = vmatmul.mubr.msk.bf16.vlgmr.msra.gmra.mrb[28].mxu1 %vm223_vm2, %v1818_v24  ;;  %v1099_v29 = vsel %vm227_vm1, %v1094_v27, 0 }
  0xc5   : > { %2003 = vmatprep.mubr.msk.bf16.mxu1 %vm2142_vm0, %v2141_v4 }
  0xc6   : > { %v1147_v30 = vpop.permute.xlu1 %1146  ;;  %v1145_v31 = vpop.permute.xlu0 %1144 }
  0xc7   : > { %v1149_v32 = vsel %vm1148_vm6, %v1145_v31, %v1147_v30 }
  0xc8   : > { %1986 = vmatmul.mubr.msk.bf16.vlgmr.msra.gmra.mrb[28].mxu0 %vm223_vm2, %v1816_v28  ;;  %v1154_v33 = vsel %vm227_vm1, %v1149_v32, 0 }
  0xc9   : > { %1996 = vmatpush3.bf16.msra.mxu0 %v1099_v29  ;;  %2002 = vmatpush3.bf16.msra.mxu1 %v1154_v33 }
  0xca   : > { %v1202_v35 = vpop.permute.xlu1 %1201  ;;  %v1200_v36 = vpop.permute.xlu0 %1199  ;;  %1997 = vmatprep.mubr.msk.bf16.mxu0 %vm2142_vm0, %v2141_v4  ;;  %2007 = vmatprep.subr.bf16.mxu0 %v2141_v4 }
  0xcb   : > { %v1204_v37 = vsel %vm1203_vm7, %v1200_v36, %v1202_v35  ;;  %2013 = vmatprep.subr.bf16.mxu1 %v2141_v4 }
  0xcc   : > { %2004 = vmatmul.mubr.msk.bf16.vlgmr.msra.gmra.mrb[32].mxu1 %vm223_vm2, %v1822_v34  ;;  %v1209_v39 = vsel %vm227_vm1, %v1204_v37, 0 }
  0xcd   : > { %2015 = vmatprep.mubr.msk.bf16.mxu1 %vm2142_vm0, %v2141_v4 }
  0xce   : > { %v1257_v40 = vpop.permute.xlu1 %1256  ;;  %v1255_v41 = vpop.permute.xlu0 %1254 }
  0xcf   : > { %v1259_v42 = vsel %vm1258_vm8, %v1255_v41, %v1257_v40 }
  0xd0   : > { %1998 = vmatmul.mubr.msk.bf16.vlgmr.msra.gmra.mrb[32].mxu0 %vm223_vm2, %v1820_v38  ;;  %v1264_v43 = vsel %vm227_vm1, %v1259_v42, 0 }
  0xd1   : > { %2008 = vmatpush3.bf16.msra.mxu0 %v1209_v39  ;;  %2014 = vmatpush3.bf16.msra.mxu1 %v1264_v43 }
  0xd2   : > { %v1312_v45 = vpop.permute.xlu1 %1311  ;;  %v1310_v46 = vpop.permute.xlu0 %1309  ;;  %2009 = vmatprep.mubr.msk.bf16.mxu0 %vm2142_vm0, %v2141_v4  ;;  %2019 = vmatprep.subr.bf16.mxu0 %v2141_v4 }
  0xd3   : > { %v1314_v47 = vsel %vm1313_vm9, %v1310_v46, %v1312_v45  ;;  %2025 = vmatprep.subr.bf16.mxu1 %v2141_v4 }
  0xd4   : > { %2016 = vmatmul.mubr.msk.bf16.vlgmr.msra.gmra.mrb[36].mxu1 %vm223_vm2, %v1826_v44  ;;  %v1319_v49 = vsel %vm227_vm1, %v1314_v47, 0 }
  0xd5   : > { %2027 = vmatprep.mubr.msk.bf16.mxu1 %vm2142_vm0, %v2141_v4 }
  0xd6   : > { %v1367_v50 = vpop.permute.xlu1 %1366  ;;  %v1365_v51 = vpop.permute.xlu0 %1364 }
  0xd7   : > { %v1369_v52 = vsel %vm1368_vm10, %v1365_v51, %v1367_v50 }
  0xd8   : > { %2010 = vmatmul.mubr.msk.bf16.vlgmr.msra.gmra.mrb[36].mxu0 %vm223_vm2, %v1824_v48  ;;  %v1374_v53 = vsel %vm227_vm1, %v1369_v52, 0 }
  0xd9   : > { %2020 = vmatpush3.bf16.msra.mxu0 %v1319_v49  ;;  %2026 = vmatpush3.bf16.msra.mxu1 %v1374_v53 }
  0xda   : > { %v1422_v55 = vpop.permute.xlu1 %1421  ;;  %v1420_v56 = vpop.permute.xlu0 %1419  ;;  %2021 = vmatprep.mubr.msk.bf16.mxu0 %vm2142_vm0, %v2141_v4  ;;  %2031 = vmatprep.subr.bf16.mxu0 %v2141_v4 }
  0xdb   : > { %v1424_v57 = vsel %vm1423_vm11, %v1420_v56, %v1422_v55  ;;  %2037 = vmatprep.subr.bf16.mxu1 %v2141_v4 }
  0xdc   : > { %2028 = vmatmul.mubr.msk.bf16.vlgmr.msra.gmra.mrb[40].mxu1 %vm223_vm2, %v1830_v54  ;;  %v1429_v59 = vsel %vm227_vm1, %v1424_v57, 0 }
  0xdd   : > { %2039 = vmatprep.mubr.msk.bf16.mxu1 %vm2142_vm0, %v2141_v4 }
  0xde   : > { %v1477_v60 = vpop.permute.xlu1 %1476  ;;  %v1475_v61 = vpop.permute.xlu0 %1474 }
  0xdf   : > { %v1479_v62 = vsel %vm1478_vm12, %v1475_v61, %v1477_v60 }
  0xe0   : > { %2022 = vmatmul.mubr.msk.bf16.vlgmr.msra.gmra.mrb[40].mxu0 %vm223_vm2, %v1828_v58  ;;  %v1484_v63 = vsel %vm227_vm1, %v1479_v62, 0 }
  0xe1   : > { %2032 = vmatpush3.bf16.msra.mxu0 %v1429_v59  ;;  %2038 = vmatpush3.bf16.msra.mxu1 %v1484_v63 }
  0xe2   : > { %v1532_v1 = vpop.permute.xlu1 %1531  ;;  %v1530_v2 = vpop.permute.xlu0 %1529  ;;  %2033 = vmatprep.mubr.msk.bf16.mxu0 %vm2142_vm0, %v2141_v4  ;;  %2043 = vmatprep.subr.bf16.mxu0 %v2141_v4 }
  0xe3   : > { %v1534_v3 = vsel %vm1533_vm13, %v1530_v2, %v1532_v1  ;;  %2049 = vmatprep.subr.bf16.mxu1 %v2141_v4 }
  0xe4   : > { %2040 = vmatmul.mubr.msk.bf16.vlgmr.msra.gmra.mrb[44].mxu1 %vm223_vm2, %v1834_v0  ;;  %v1539_v6 = vsel %vm227_vm1, %v1534_v3, 0 }
  0xe5   : > { %2051 = vmatprep.mubr.msk.bf16.mxu1 %vm2142_vm0, %v2141_v4 }
  0xe6   : > { %v1587_v7 = vpop.permute.xlu1 %1586  ;;  %v1585_v8 = vpop.permute.xlu0 %1584 }
  0xe7   : > { %v1589_v9 = vsel %vm1588_vm14, %v1585_v8, %v1587_v7 }
  0xe8   : > { %2034 = vmatmul.mubr.msk.bf16.vlgmr.msra.gmra.mrb[44].mxu0 %vm223_vm2, %v1832_v5  ;;  %v1594_v10 = vsel %vm227_vm1, %v1589_v9, 0 }
  0xe9   : > { %2044 = vmatpush3.bf16.msra.mxu0 %v1539_v6  ;;  %2050 = vmatpush3.bf16.msra.mxu1 %v1594_v10  ;;  %v311_v12 = vpop.f32.mrb[0].mxu1 }
  0xea   : > { %v1642_v13 = vpop.permute.xlu1 %1641  ;;  %v1640_v14 = vpop.permute.xlu0 %1639  ;;  %2045 = vmatprep.mubr.msk.bf16.mxu0 %vm2142_vm0, %v2141_v4  ;;  %2055 = vmatprep.subr.bf16.mxu0 %v2141_v4 }
  0xeb   : > { %v1644_v15 = vsel %vm1643_vm15, %v1640_v14, %v1642_v13  ;;  %v1909_v16 = vpop.f32.mrb[1].mxu1 }
  0xec   : > { %2052 = vmatmul.mubr.msk.bf16.vlgmr.msra.gmra.mrb[48].mxu1 %vm223_vm2, %v1838_v11  ;;  %v314_v17 = vpop.f32.mrb[2].mxu1  ;;  %v1649_v20 = vsel %vm227_vm1, %v1644_v15, 0 }
  0xed   : > { %v1910_v19 = vpop.f32.mrb[3].mxu1 }
  0xf0   : > { %2046 = vmatmul.mubr.msk.bf16.vlgmr.msra.gmra.mrb[48].mxu0 %vm223_vm2, %v1836_v18 }
  0xf1   : > { %2056 = vmatpush3.bf16.msra.mxu0 %v1649_v20  ;;  %2057 = vmatprep.mubr.msk.bf16.mxu0 %vm2142_vm0, %v2141_v4 }
  0xf8   : > { %2058 = vmatmul.mubr.msk.bf16.vlgmr.msra.gmra.mrb[52].mxu0 %vm223_vm2, %v1840_v21 }
 0x163   : > { %v265_v22 = vpop.f32.mrb[0].mxu0 }
 0x164   : > { %v1903_v23 = vpop.f32.mrb[1].mxu0  ;;  %v312_v24 = vadd.f32 %v311_v12, %v265_v22 }
 0x165   : > { %v268_v25 = vpop.f32.mrb[2].mxu0 }
 0x166   : > { %v1904_v26 = vpop.f32.mrb[3].mxu0 }
 0x167   : > { %v420_v27 = vpop.f32.mrb[4].mxu1 }
 0x168   : > { %v1921_v28 = vpop.f32.mrb[5].mxu1 }
 0x169   : > { %v423_v29 = vpop.f32.mrb[6].mxu1 }
 0x16a   : > { %v1922_v30 = vpop.f32.mrb[7].mxu1 }
 0x16b   : > { %v365_v31 = vpop.f32.mrb[4].mxu0 }
 0x16c   : > { %v371_v32 = vadd.f32 %v365_v31, %v312_v24  ;;  %v1915_v33 = vpop.f32.mrb[5].mxu0 }
 0x16d   : > { %v368_v34 = vpop.f32.mrb[6].mxu0 }
 0x16e   : > { %v426_v4 = vadd.f32 %v420_v27, %v371_v32  ;;  %v1916_v35 = vpop.f32.mrb[7].mxu0 }
 0x16f   : > { %v530_v36 = vpop.f32.mrb[8].mxu1 }
 0x170   : > { %v1933_v37 = vpop.f32.mrb[9].mxu1 }
 0x171   : > { %v533_v38 = vpop.f32.mrb[10].mxu1 }
 0x172   : > { %v1934_v39 = vpop.f32.mrb[11].mxu1 }
 0x173   : > { %v475_v40 = vpop.f32.mrb[8].mxu0 }
 0x174   : > { %v481_v41 = vadd.f32 %v475_v40, %v426_v4  ;;  %v1927_v42 = vpop.f32.mrb[9].mxu0 }
 0x175   : > { %v478_v43 = vpop.f32.mrb[10].mxu0 }
 0x176   : > { %v536_v44 = vadd.f32 %v530_v36, %v481_v41  ;;  %v1928_v45 = vpop.f32.mrb[11].mxu0 }
 0x177   : > { %v640_v46 = vpop.f32.mrb[12].mxu1 }
 0x178   : > { %v1945_v47 = vpop.f32.mrb[13].mxu1 }
 0x179   : > { %v643_v48 = vpop.f32.mrb[14].mxu1 }
 0x17a   : > { %v1946_v49 = vpop.f32.mrb[15].mxu1 }
 0x17b   : > { %v585_v50 = vpop.f32.mrb[12].mxu0 }
 0x17c   : > { %v591_v51 = vadd.f32 %v585_v50, %v536_v44  ;;  %v1939_v52 = vpop.f32.mrb[13].mxu0 }
 0x17d   : > { %v588_v53 = vpop.f32.mrb[14].mxu0 }
 0x17e   : > { %v646_v54 = vadd.f32 %v640_v46, %v591_v51  ;;  %v1940_v55 = vpop.f32.mrb[15].mxu0 }
 0x17f   : > { %v750_v56 = vpop.f32.mrb[16].mxu1 }
 0x180   : > { %v1957_v57 = vpop.f32.mrb[17].mxu1 }
 0x181   : > { %v753_v58 = vpop.f32.mrb[18].mxu1 }
 0x182   : > { %v1958_v59 = vpop.f32.mrb[19].mxu1 }
 0x183   : > { %v695_v60 = vpop.f32.mrb[16].mxu0 }
 0x184   : > { %v701_v61 = vadd.f32 %v695_v60, %v646_v54  ;;  %v1951_v62 = vpop.f32.mrb[17].mxu0 }
 0x185   : > { %v698_v63 = vpop.f32.mrb[18].mxu0 }
 0x186   : > { %v756_v0 = vadd.f32 %v750_v56, %v701_v61  ;;  %v1952_v1 = vpop.f32.mrb[19].mxu0 }
 0x187   : > { %v860_v2 = vpop.f32.mrb[20].mxu1 }
 0x188   : > { %v1969_v3 = vpop.f32.mrb[21].mxu1 }
 0x189   : > { %v863_v5 = vpop.f32.mrb[22].mxu1 }
 0x18a   : > { %v1970_v6 = vpop.f32.mrb[23].mxu1 }
 0x18b   : > { %v805_v7 = vpop.f32.mrb[20].mxu0 }
 0x18c   : > { %v811_v8 = vadd.f32 %v805_v7, %v756_v0  ;;  %v1963_v9 = vpop.f32.mrb[21].mxu0 }
 0x18d   : > { %v808_v10 = vpop.f32.mrb[22].mxu0 }
 0x18e   : > { %v866_v11 = vadd.f32 %v860_v2, %v811_v8  ;;  %v1964_v12 = vpop.f32.mrb[23].mxu0 }
 0x18f   : > { %v970_v13 = vpop.f32.mrb[24].mxu1 }
 0x190   : > { %v1981_v14 = vpop.f32.mrb[25].mxu1 }
 0x191   : > { %v973_v15 = vpop.f32.mrb[26].mxu1 }
 0x192   : > { %v1982_v16 = vpop.f32.mrb[27].mxu1 }
 0x193   : > { %v915_v17 = vpop.f32.mrb[24].mxu0 }
 0x194   : > { %v921_v18 = vadd.f32 %v915_v17, %v866_v11  ;;  %v1975_v19 = vpop.f32.mrb[25].mxu0 }
 0x195   : > { %v918_v20 = vpop.f32.mrb[26].mxu0 }
 0x196   : > { %v976_v21 = vadd.f32 %v970_v13, %v921_v18  ;;  %v1976_v22 = vpop.f32.mrb[27].mxu0  ;;  %v1696_v20 = vpop.permute.xlu0 %1695 }
 0x197   : > { %v1080_v23 = vpop.f32.mrb[28].mxu1 }
 0x198   : > { %v1993_v24 = vpop.f32.mrb[29].mxu1 }
 0x199   : > { %v1083_v25 = vpop.f32.mrb[30].mxu1 }
 0x19a   : > { %v1994_v26 = vpop.f32.mrb[31].mxu1 }
 0x19b   : > { %v1025_v27 = vpop.f32.mrb[28].mxu0 }
 0x19c   : > { %v1031_v28 = vadd.f32 %v1025_v27, %v976_v21  ;;  %v1987_v29 = vpop.f32.mrb[29].mxu0 }
 0x19d   : > { %v1028_v30 = vpop.f32.mrb[30].mxu0 }
 0x19e   : > { %v1086_v31 = vadd.f32 %v1080_v23, %v1031_v28  ;;  %v1988_v32 = vpop.f32.mrb[31].mxu0 }
 0x19f   : > { %v1190_v33 = vpop.f32.mrb[32].mxu1 }
 0x1a0   : > { %v2005_v34 = vpop.f32.mrb[33].mxu1 }
 0x1a1   : > { %v1193_v4 = vpop.f32.mrb[34].mxu1 }
 0x1a2   : > { %v2006_v35 = vpop.f32.mrb[35].mxu1 }
 0x1a3   : > { %v1135_v36 = vpop.f32.mrb[32].mxu0 }
 0x1a4   : > { %v1141_v37 = vadd.f32 %v1135_v36, %v1086_v31  ;;  %v1999_v38 = vpop.f32.mrb[33].mxu0 }
 0x1a5   : > { %v1138_v39 = vpop.f32.mrb[34].mxu0 }
 0x1a6   : > { %v1196_v40 = vadd.f32 %v1190_v33, %v1141_v37  ;;  %v2000_v41 = vpop.f32.mrb[35].mxu0 }
 0x1a7   : > { %v1300_v42 = vpop.f32.mrb[36].mxu1 }
 0x1a8   : > { %v2017_v43 = vpop.f32.mrb[37].mxu1 }
 0x1a9   : > { %v1303_v44 = vpop.f32.mrb[38].mxu1 }
 0x1aa   : > { %v2018_v45 = vpop.f32.mrb[39].mxu1 }
 0x1ab   : > { %v1245_v46 = vpop.f32.mrb[36].mxu0 }
 0x1ac   : > { %v1251_v47 = vadd.f32 %v1245_v46, %v1196_v40  ;;  %v2011_v48 = vpop.f32.mrb[37].mxu0 }
 0x1ad   : > { %v1248_v49 = vpop.f32.mrb[38].mxu0 }
 0x1ae   : > { %v1306_v50 = vadd.f32 %v1300_v42, %v1251_v47  ;;  %v2012_v51 = vpop.f32.mrb[39].mxu0 }
 0x1af   : > { %v1410_v52 = vpop.f32.mrb[40].mxu1 }
 0x1b0   : > { %v2029_v53 = vpop.f32.mrb[41].mxu1 }
 0x1b1   : > { %v1413_v54 = vpop.f32.mrb[42].mxu1 }
 0x1b2   : > { %v2030_v55 = vpop.f32.mrb[43].mxu1 }
 0x1b3   : > { %v1355_v56 = vpop.f32.mrb[40].mxu0 }
 0x1b4   : > { %v1361_v57 = vadd.f32 %v1355_v56, %v1306_v50  ;;  %v2023_v58 = vpop.f32.mrb[41].mxu0 }
 0x1b5   : > { %v1358_v59 = vpop.f32.mrb[42].mxu0 }
 0x1b6   : > { %v1416_v60 = vadd.f32 %v1410_v52, %v1361_v57  ;;  %v2024_v61 = vpop.f32.mrb[43].mxu0 }
 0x1b7   : > { %v1520_v62 = vpop.f32.mrb[44].mxu1 }
 0x1b8   : > { %v2041_v63 = vpop.f32.mrb[45].mxu1 }
 0x1b9   : > { %v1523_v0 = vpop.f32.mrb[46].mxu1 }
 0x1ba   : > { %v2042_v1 = vpop.f32.mrb[47].mxu1 }
 0x1bb   : > { %v1465_v2 = vpop.f32.mrb[44].mxu0 }
 0x1bc   : > { %v1471_v3 = vadd.f32 %v1465_v2, %v1416_v60  ;;  %v2035_v5 = vpop.f32.mrb[45].mxu0 }
 0x1bd   : > { %v1468_v6 = vpop.f32.mrb[46].mxu0 }
 0x1be   : > { %v1526_v7 = vadd.f32 %v1520_v62, %v1471_v3  ;;  %v2036_v8 = vpop.f32.mrb[47].mxu0 }
 0x1bf   : > { %v1630_v9 = vpop.f32.mrb[48].mxu1 }
 0x1c0   : > { %v2053_v10 = vpop.f32.mrb[49].mxu1 }
 0x1c1   : > { %v1633_v11 = vpop.f32.mrb[50].mxu1 }
 0x1c2   : > { %v2054_v12 = vpop.f32.mrb[51].mxu1 }
 0x1c3   : > { %v1575_v13 = vpop.f32.mrb[48].mxu0 }
 0x1c4   : > { %v1581_v14 = vadd.f32 %v1575_v13, %v1526_v7  ;;  %v2047_v15 = vpop.f32.mrb[49].mxu0 }
 0x1c5   : > { %v1578_v16 = vpop.f32.mrb[50].mxu0 }
 0x1c6   : > { %v1636_v17 = vadd.f32 %v1630_v9, %v1581_v14  ;;  %v2048_v18 = vpop.f32.mrb[51].mxu0 }
 0x1cb   : > { %v1685_v19 = vpop.f32.mrb[52].mxu0 }
 0x1cc   : > { %v1691_v21 = vadd.f32 %v1685_v19, %v1636_v17  ;;  %v2059_v22 = vpop.f32.mrb[53].mxu0 }
 0x1cd   : > { %v1688_v23 = vpop.f32.mrb[54].mxu0 }
 0x1ce   : > { %v1698_v24 = vadd.f32 %v1696_v20, %v1691_v21  ;;  %v2060_v25 = vpop.f32.mrb[55].mxu0 }
 0x1d0   : > { %v1699_v26 = vmax.f32 %v1698_v24, 0.0 }
 0x1d2   : > { %1700 = vst [vmem:[%s202_s11] sm:$0xf] %v1699_v26 }
 0x1d3 PF: > { %s13_s14 = sadd.s32 1, %s2138_s14   ;;  %s2511_s12 = smov %s2134_s13 }
 0x1d4   : > { %p10_p5 = scmp.ge.s32.totalorder %s13_s14, 4   ;;  %s2512_s13 = smov %s2514_s15 }
 0x1d6   :  { %12 = sbr.rel (!%p10_p5) target bundleno = 2 (0x2), region = 88 }

// kernel: ppm_forward.7
= control target key start
LH: loop header
LB: loop body
LE: loop exit
PB: predicated region body
PF: predicated region fallthrough
CT: control target
= control target key end

     0   :  { %s6838_s12 = smov 0   ;;  %s6840_s13 = smov 0   ;;  %s8134_s0 = inlined_call_operand.vmem [shape: bf16[2,1,8,1200], index: 0, kind: input, shape index: {}]   ;;  %s8135_s1 = inlined_call_operand.vmem [shape: bf16[27,8,8], index: 1, kind: input, shape index: {}]   ;;  %s8136_s2 = inlined_call_operand.vmem [shape: f32[8,1], index: 2, kind: input, shape index: {}]   ;;  %s8137_s3 = inlined_call_operand.vmem [shape: f32[2,1,8,896], index: 3, kind: output, shape index: {}]  }
   0x1   :  { %s6842_s14 = smov 0  }
   0x2 LB: > { %s25_s15 = sadd.s32 1, %s6783_s13  ;;  %p6255_p0 = scmp.ge.s32.totalorder %s6787_s14, 1  ;;  %s6787_s14 = sphi %s6842_s14, %s13_s14   ;;  %s6783_s13 = sphi %s6840_s13, %s8139_s13   ;;  %s6779_s12 = sphi %s6838_s12, %s8138_s12  }
   0x3   : > { %p27_p1 = scmp.ge.s32.totalorder %s25_s15, 2  ;;  %p157_p2 = scmp.lt.s32.totalorder %s6787_s14, 3 }
   0x5   : > { %s8141_s15 = smov (%p27_p1, %s25_s15), 0  ;;  %p158_p3 = pnand %p6255_p0, %p157_p2 }
   0x6   : > { %p189_p4 = scmp.lt.s32.totalorder (!%p158_p3), %s6779_s12, 1  ;;  %v6789_v0 = vmov (!%p158_p3), 0   ;;  %s6790_s20 = smov (!%p158_p3), 127   ;;  %vm252_vm0 = vcmask (!%p158_p3), 1039360   ;;  %vm264_vm1 = vcmask (!%p158_p3), 1043456   ;;  %vm260_vm2 = vcmask (!%p158_p3), 64512  }
   0x7   : > { %161 = sbr.rel (%p158_p3) target bundleno = 790 (0x316), region = 32  ;;  %318 = vmatprep.mubr.bf16.mxu0 (!%p158_p3), %v6789_v0  ;;  %359 = vmatprep.mubr.bf16.mxu1 (!%p158_p3), %v6789_v0  ;;  %s6791_s21 = smov (!%p158_p3), 126   ;;  %v6258_v20 = vld [vmem:[%s8135_s1 + $0x4] sm:$0xf] (!%p158_p3)  ;;  %v6798_v29 = vmov (!%p158_p3), 0.0   ;;  %vm6799_vm3 = vmmov (!%p158_p3), 0  }
   0x8   : > { %6755 = vset.pattern.permute.xlu0 (!%p158_p3), %v6789_v0  ;;  %s6792_s22 = smov (!%p158_p3), 118   ;;  %s6793_s23 = smov (!%p158_p3), 117   ;;  %vm654_vm4 = vcmask (!%p158_p3), 1031168   ;;  %v213_v40 = vld [vmem:[%s8135_s1] sm:$0xf] (!%p158_p3)  ;;  %vm874_vm5 = vcmask (!%p158_p3), 965632  }
   0x9   : > { %s6794_s24 = smov (!%p158_p3), 116   ;;  %s6795_s25 = smov (!%p158_p3), 108   ;;  %v6281_v59 = vld [vmem:[%s8135_s1 + $0x8] sm:$0xf] (!%p158_p3)  ;;  %vm1094_vm6 = vcmask (!%p158_p3), 957440   ;;  %vm1314_vm7 = vcmask (!%p158_p3), 949248  }
   0xa   : > { %s6796_s26 = smov (!%p158_p3), 107   ;;  %s6797_s27 = smov (!%p158_p3), 106   ;;  %vm1534_vm8 = vcmask (!%p158_p3), 883712   ;;  %vm1754_vm9 = vcmask (!%p158_p3), 875520   ;;  %vm1974_vm10 = vcmask (!%p158_p3), 867328   ;;  %vm2194_vm11 = vcmask (!%p158_p3), 228352  }
   0xb   : > { %s6800_s30 = smov (!%p158_p3), 28   ;;  %s6801_s6 = smov (!%p158_p3), 27   ;;  %vm2414_vm12 = vcmask (!%p158_p3), 220160   ;;  %vm2634_vm13 = vcmask (!%p158_p3), 211968   ;;  %vm2854_vm14 = vcmask (!%p158_p3), 146432   ;;  %vm3074_vm15 = vcmask (!%p158_p3), 138240  }
   0xc   : > { %s6802_s9 = smov (!%p158_p3), 26   ;;  %s6807_s29 = smov (!%p158_p3), 7  }
   0xd   : > { %s6808_s5 = smov (!%p158_p3), 6   ;;  %s6809_s8 = smov (!%p158_p3), 56  }
   0xe   : > { %s8143_s12 = smov (!%p189_p4, %s6779_s12), 1  ;;  %s6811_s17 = smov 54  }
   0xf   : > { %s6700_s16 = smul.u32 40, %s8143_s12 }
  0x10   : > { %s6701_s7 = smul.u32 56, %s8143_s12 }
  0x11   : > { %s6864_s19 = scalar_lea.vmem %s8134_s0, %s6700_s16  ;;  %s6803_s16 = smov 18  }
  0x12   : > { %v209_v1 = vld [vmem:[%s6864_s19 + $0x8] sm:$0xff]  ;;  %v208_v2 = vld [vmem:[%s6864_s19] sm:$0xff]  ;;  %v210_v7 = vld [vmem:[%s6864_s19 + $0x10] sm:$0xff]  ;;  %s8116_s10 = scalar_lea.vmem %s8137_s3, %s6701_s7 }
  0x13   : > { %v6869_v3 = vcombine.low %v209_v1, %v209_v1  ;;  %v6871_v4 = vcombine.low %v208_v2, %v208_v2  ;;  %v6874_v5 = vcombine.high %v208_v2, %v208_v2  ;;  %v6877_v6 = vcombine.high %v209_v1, %v209_v1  ;;  %v211_v10 = vld [vmem:[%s6864_s19 + $0x18] sm:$0xff] }
  0x14   : > { %v6882_v8 = vcombine.high %v210_v7, %v210_v7  ;;  %v6884_v9 = vcombine.low %v210_v7, %v210_v7  ;;  %v6889_v11 = vcombine.low %v211_v10, %v211_v10  ;;  %v6891_v12 = vcombine.high %v211_v10, %v211_v10 }
  0x15   : > { %240 = vrot.lane.b32.xlu1 %v6869_v3, %s6790_s20  ;;  %236 = vrot.lane.b32.xlu0 %v6871_v4, %s6790_s20  ;;  %v453_v34 = vsel %vm264_vm1, %v6871_v4, 0  ;;  %v459_v37 = vsel %vm264_vm1, %v6869_v3, 0 }
  0x16   : > { %v465_v41 = vsel %vm264_vm1, %v6884_v9, 0  ;;  %v471_v45 = vsel %vm264_vm1, %v6889_v11, 0 }
  0x19   : > { %242 = vrot.lane.b32.xlu1 %v6877_v6, %s6790_s20  ;;  %238 = vrot.lane.b32.xlu0 %v6874_v5, %s6790_s20 }
  0x1d   : > { %246 = vrot.lane.b32.xlu1 %v6882_v8, %s6790_s20  ;;  %244 = vrot.lane.b32.xlu0 %v6884_v9, %s6790_s20 }
  0x21   : > { %250 = vrot.lane.b32.xlu1 %v6891_v12, %s6790_s20  ;;  %248 = vrot.lane.b32.xlu0 %v6889_v11, %s6790_s20  ;;  %s6804_s20 = smov 17  }
  0x25   : > { %638 = vrot.lane.b32.xlu0 %v6871_v4, %s6791_s21  ;;  %640 = vrot.lane.b32.xlu1 %v6874_v5, %s6791_s21 }
  0x29   : > { %642 = vrot.lane.b32.xlu0 %v6869_v3, %s6791_s21  ;;  %644 = vrot.lane.b32.xlu1 %v6877_v6, %s6791_s21 }
  0x2d   : > { %646 = vrot.lane.b32.xlu0 %v6884_v9, %s6791_s21  ;;  %648 = vrot.lane.b32.xlu1 %v6882_v8, %s6791_s21 }
  0x31   : > { %650 = vrot.lane.b32.xlu0 %v6889_v11, %s6791_s21  ;;  %652 = vrot.lane.b32.xlu1 %v6891_v12, %s6791_s21  ;;  %s6812_s21 = smov 46  }
  0x35   : > { %858 = vrot.lane.b32.xlu0 %v6871_v4, %s6792_s22  ;;  %860 = vrot.lane.b32.xlu1 %v6874_v5, %s6792_s22 }
  0x39   : > { %862 = vrot.lane.b32.xlu0 %v6869_v3, %s6792_s22  ;;  %864 = vrot.lane.b32.xlu1 %v6877_v6, %s6792_s22 }
  0x3d   : > { %866 = vrot.lane.b32.xlu0 %v6884_v9, %s6792_s22  ;;  %868 = vrot.lane.b32.xlu1 %v6882_v8, %s6792_s22 }
  0x41   : > { %870 = vrot.lane.b32.xlu0 %v6889_v11, %s6792_s22  ;;  %872 = vrot.lane.b32.xlu1 %v6891_v12, %s6792_s22 }
  0x45   : > { %1078 = vrot.lane.b32.xlu0 %v6871_v4, %s6793_s23  ;;  %1080 = vrot.lane.b32.xlu1 %v6874_v5, %s6793_s23 }
  0x49   : > { %1082 = vrot.lane.b32.xlu0 %v6869_v3, %s6793_s23  ;;  %1084 = vrot.lane.b32.xlu1 %v6877_v6, %s6793_s23 }
  0x4d   : > { %1086 = vrot.lane.b32.xlu0 %v6884_v9, %s6793_s23  ;;  %1088 = vrot.lane.b32.xlu1 %v6882_v8, %s6793_s23 }
  0x51   : > { %1090 = vrot.lane.b32.xlu0 %v6889_v11, %s6793_s23  ;;  %1092 = vrot.lane.b32.xlu1 %v6891_v12, %s6793_s23  ;;  %s6805_s23 = smov 16  }
  0x55   : > { %1298 = vrot.lane.b32.xlu0 %v6871_v4, %s6794_s24  ;;  %1300 = vrot.lane.b32.xlu1 %v6874_v5, %s6794_s24 }
  0x59   : > { %1302 = vrot.lane.b32.xlu0 %v6869_v3, %s6794_s24  ;;  %1304 = vrot.lane.b32.xlu1 %v6877_v6, %s6794_s24 }
  0x5d   : > { %1306 = vrot.lane.b32.xlu0 %v6884_v9, %s6794_s24  ;;  %1308 = vrot.lane.b32.xlu1 %v6882_v8, %s6794_s24 }
  0x61   : > { %1310 = vrot.lane.b32.xlu0 %v6889_v11, %s6794_s24  ;;  %1312 = vrot.lane.b32.xlu1 %v6891_v12, %s6794_s24  ;;  %s6813_s24 = smov 45  }
  0x65   : > { %1518 = vrot.lane.b32.xlu0 %v6871_v4, %s6795_s25  ;;  %1520 = vrot.lane.b32.xlu1 %v6874_v5, %s6795_s25 }
  0x69   : > { %1522 = vrot.lane.b32.xlu0 %v6869_v3, %s6795_s25  ;;  %1524 = vrot.lane.b32.xlu1 %v6877_v6, %s6795_s25 }
  0x6d   : > { %1526 = vrot.lane.b32.xlu0 %v6884_v9, %s6795_s25  ;;  %1528 = vrot.lane.b32.xlu1 %v6882_v8, %s6795_s25 }
  0x71   : > { %1530 = vrot.lane.b32.xlu0 %v6889_v11, %s6795_s25  ;;  %1532 = vrot.lane.b32.xlu1 %v6891_v12, %s6795_s25 }
  0x75   : > { %1738 = vrot.lane.b32.xlu0 %v6871_v4, %s6796_s26  ;;  %1740 = vrot.lane.b32.xlu1 %v6874_v5, %s6796_s26 }
  0x79   : > { %1742 = vrot.lane.b32.xlu0 %v6869_v3, %s6796_s26  ;;  %1744 = vrot.lane.b32.xlu1 %v6877_v6, %s6796_s26 }
  0x7d   : > { %1746 = vrot.lane.b32.xlu0 %v6884_v9, %s6796_s26  ;;  %1748 = vrot.lane.b32.xlu1 %v6882_v8, %s6796_s26 }
  0x81   : > { %1750 = vrot.lane.b32.xlu0 %v6889_v11, %s6796_s26  ;;  %1752 = vrot.lane.b32.xlu1 %v6891_v12, %s6796_s26  ;;  %s6806_s26 = smov 8  }
  0x85   : > { %1958 = vrot.lane.b32.xlu0 %v6871_v4, %s6797_s27  ;;  %1960 = vrot.lane.b32.xlu1 %v6874_v5, %s6797_s27 }
  0x87   : > { %v241_v13 = vpop.permute.xlu1 %240  ;;  %v237_v14 = vpop.permute.xlu0 %236 }
  0x89   : > { %1962 = vrot.lane.b32.xlu0 %v6869_v3, %s6797_s27  ;;  %1964 = vrot.lane.b32.xlu1 %v6877_v6, %s6797_s27 }
  0x8b   : > { %v243_v15 = vpop.permute.xlu1 %242  ;;  %v239_v16 = vpop.permute.xlu0 %238 }
  0x8c   : > { %v254_v17 = vsel %vm252_vm0, %v239_v16, %v241_v13  ;;  %v253_v18 = vsel %vm252_vm0, %v237_v14, %v239_v16  ;;  %v255_v21 = vsel %vm252_vm0, %v241_v13, %v243_v15 }
  0x8d   : > { %6267 = vmatprep.subr.msk.bf16.mxu0 %vm264_vm1, %v254_v17  ;;  %v266_v19 = vsel %vm264_vm1, %v253_v18, 0  ;;  %1966 = vrot.lane.b32.xlu0 %v6884_v9, %s6797_s27  ;;  %v272_v25 = vsel %vm264_vm1, %v255_v21, 0 }
  0x8e   : > { %287 = vmatpush1.bf16.msra.mxu0 %v266_v19  ;;  %1968 = vrot.lane.b32.xlu1 %v6882_v8, %s6797_s27 }
  0x8f   : > { %v247_v22 = vpop.permute.xlu1 %246  ;;  %v245_v23 = vpop.permute.xlu0 %244 }
  0x90   : > { %v256_v24 = vsel %vm252_vm0, %v243_v15, %v245_v23  ;;  %v257_v26 = vsel %vm252_vm0, %v245_v23, %v247_v22 }
  0x91   : > { %6268 = vmatmul.mubr.msk.bf16.vlgmr.msra.gmra.mrb[0].mxu0 %vm260_vm2, %v6258_v20  ;;  %6269 = vmatprep.subr.msk.bf16.mxu1 %vm264_vm1, %v256_v24  ;;  %v278_v32 = vsel %vm264_vm1, %v257_v26, 0  ;;  %v6289_v24 = vld [vmem:[%s8135_s1 + $0xc] sm:$0xf] }
  0x92   : > { %328 = vmatpush1.bf16.msra.mxu1 %v272_v25  ;;  %400 = vmatprep.mubr.bf16.mxu0 %v6789_v0 }
  0x93   : > { %v251_v27 = vpop.permute.xlu1 %250  ;;  %v249_v28 = vpop.permute.xlu0 %248  ;;  %6538 = vmatprep.subr.bf16.mxu1 %v6798_v29  ;;  %1970 = vrot.lane.b32.xlu0 %v6889_v11, %s6797_s27 }
  0x94   : > { %v259_v30 = vsel %vm252_vm0, %v249_v28, %v251_v27  ;;  %v258_v31 = vsel %vm252_vm0, %v247_v22, %v249_v28  ;;  %1972 = vrot.lane.b32.xlu1 %v6891_v12, %s6797_s27  ;;  %vm3294_vm0 = vcmask 130048   ;;  %s6814_s27 = smov 44  }
  0x95   : > { %6270 = vmatmul.mubr.msk.bf16.vlgmr.msra.gmra.mrb[0].mxu1 %vm260_vm2, %v6258_v20  ;;  %6271 = vmatprep.subr.msk.bf16.mxu0 %vm264_vm1, %v258_v31  ;;  %v284_v33 = vsel %vm264_vm1, %v259_v30, 0 }
  0x96   : > { %369 = vmatpush1.bf16.msra.mxu0 %v278_v32  ;;  %6539 = vmatpush3.bf16.msra.mxu1 %v284_v33 }
  0x97   : > { %6540 = vmatprep.mubr.msk.bf16.mxu1 %vm6799_vm3, %v6798_v29  ;;  %6274 = vmatprep.subr.msk.bf16.mxu0 %vm264_vm1, %v6874_v5  ;;  %v639_v35 = vpop.permute.xlu0 %638  ;;  %v641_v36 = vpop.permute.xlu1 %640 }
  0x98   : > { %6276 = vmatprep.subr.msk.bf16.mxu1 %vm264_vm1, %v6877_v6  ;;  %2178 = vrot.lane.b32.xlu0 %v6871_v4, %s6800_s30  ;;  %v655_v48 = vsel %vm654_vm4, %v639_v35, %v641_v36 }
  0x99   : > { %6272 = vmatmul.mubr.msk.bf16.vlgmr.msra.gmra.mrb[4].mxu0 %vm260_vm2, %v6258_v20  ;;  %2180 = vrot.lane.b32.xlu1 %v6874_v5, %s6800_s30  ;;  %v666_v50 = vsel %vm264_vm1, %v655_v48, 0 }
  0x9a   : > { %474 = vmatpush1.bf16.msra.mxu0 %v453_v34  ;;  %505 = vmatprep.mubr.bf16.mxu0 %v6789_v0 }
  0x9b   : > { %6278 = vmatprep.subr.msk.bf16.mxu0 %vm264_vm1, %v6882_v8  ;;  %v643_v38 = vpop.permute.xlu0 %642  ;;  %v645_v39 = vpop.permute.xlu1 %644 }
  0x9c   : > { %2182 = vrot.lane.b32.xlu0 %v6869_v3, %s6800_s30  ;;  %v656_v44 = vsel %vm654_vm4, %v641_v36, %v643_v38  ;;  %v657_v53 = vsel %vm654_vm4, %v643_v38, %v645_v39 }
  0x9d   : > { %6541 = vmatmul.mubr.msk.bf16.vlgmr.msra.gmra.mrb[4].mxu1 %vm260_vm2, %v6258_v20  ;;  %2184 = vrot.lane.b32.xlu1 %v6877_v6, %s6800_s30  ;;  %v672_v55 = vsel %vm264_vm1, %v657_v53, 0 }
  0x9e   : > { %515 = vmatpush1.bf16.msra.mxu1 %v459_v37  ;;  %546 = vmatprep.mubr.bf16.mxu1 %v6789_v0 }
  0x9f   : > { %6544 = vmatprep.subr.bf16.mxu1 %v6798_v29  ;;  %v647_v42 = vpop.permute.xlu0 %646  ;;  %v649_v43 = vpop.permute.xlu1 %648 }
  0xa0   : > { %2186 = vrot.lane.b32.xlu0 %v6884_v9, %s6800_s30  ;;  %v658_v49 = vsel %vm654_vm4, %v645_v39, %v647_v42  ;;  %v659_v58 = vsel %vm654_vm4, %v647_v42, %v649_v43 }
  0xa1   : > { %6275 = vmatmul.mubr.msk.bf16.vlgmr.msra.gmra.mrb[8].mxu0 %vm260_vm2, %v213_v40  ;;  %2188 = vrot.lane.b32.xlu1 %v6882_v8, %s6800_s30  ;;  %v678_v60 = vsel %vm264_vm1, %v659_v58, 0 }
  0xa2   : > { %556 = vmatpush1.bf16.msra.mxu0 %v465_v41  ;;  %587 = vmatprep.mubr.bf16.mxu0 %v6789_v0 }
  0xa3   : > { %6282 = vmatprep.subr.msk.bf16.mxu0 %vm264_vm1, %v656_v44  ;;  %v651_v46 = vpop.permute.xlu0 %650  ;;  %v653_v47 = vpop.permute.xlu1 %652 }
  0xa4   : > { %2190 = vrot.lane.b32.xlu0 %v6889_v11, %s6800_s30  ;;  %v660_v54 = vsel %vm654_vm4, %v649_v43, %v651_v46  ;;  %v661_v63 = vsel %vm654_vm4, %v651_v46, %v653_v47  ;;  %vm3734_vm4 = vcmask 56320  }
  0xa5   : > { %6277 = vmatmul.mubr.msk.bf16.vlgmr.msra.gmra.mrb[8].mxu1 %vm260_vm2, %v213_v40  ;;  %2192 = vrot.lane.b32.xlu1 %v6891_v12, %s6800_s30  ;;  %v684_v2 = vsel %vm264_vm1, %v661_v63, 0  ;;  %s6815_s30 = smov 36  }
  0xa6   : > { %6545 = vmatpush3.bf16.msra.mxu1 %v471_v45  ;;  %6546 = vmatprep.mubr.msk.bf16.mxu1 %vm6799_vm3, %v6798_v29  ;;  %v6297_v45 = vld [vmem:[%s8135_s1 + $0x10] sm:$0xf] }
  0xa7   : > { %6284 = vmatprep.subr.msk.bf16.mxu1 %vm264_vm1, %v658_v49  ;;  %v859_v51 = vpop.permute.xlu0 %858  ;;  %v861_v52 = vpop.permute.xlu1 %860 }
  0xa8   : > { %2398 = vrot.lane.b32.xlu0 %v6871_v4, %s6801_s6  ;;  %v875_v13 = vsel %vm874_vm5, %v859_v51, %v861_v52 }
  0xa9   : > { %6279 = vmatmul.mubr.msk.bf16.vlgmr.msra.gmra.mrb[12].mxu0 %vm260_vm2, %v213_v40  ;;  %2400 = vrot.lane.b32.xlu1 %v6874_v5, %s6801_s6  ;;  %v886_v15 = vsel %vm264_vm1, %v875_v13, 0 }
  0xaa   : > { %687 = vmatpush1.bf16.msra.mxu0 %v666_v50  ;;  %718 = vmatprep.mubr.bf16.mxu0 %v6789_v0 }
  0xab   : > { %6286 = vmatprep.subr.msk.bf16.mxu0 %vm264_vm1, %v660_v54  ;;  %v863_v56 = vpop.permute.xlu0 %862  ;;  %v865_v57 = vpop.permute.xlu1 %864 }
  0xac   : > { %2402 = vrot.lane.b32.xlu0 %v6869_v3, %s6801_s6  ;;  %v876_v1 = vsel %vm874_vm5, %v861_v52, %v863_v56  ;;  %v877_v18 = vsel %vm874_vm5, %v863_v56, %v865_v57 }
  0xad   : > { %6547 = vmatmul.mubr.msk.bf16.vlgmr.msra.gmra.mrb[12].mxu1 %vm260_vm2, %v213_v40  ;;  %2404 = vrot.lane.b32.xlu1 %v6877_v6, %s6801_s6  ;;  %v892_v20 = vsel %vm264_vm1, %v877_v18, 0 }
  0xae   : > { %728 = vmatpush1.bf16.msra.mxu1 %v672_v55  ;;  %759 = vmatprep.mubr.bf16.mxu1 %v6789_v0 }
  0xaf   : > { %6550 = vmatprep.subr.bf16.mxu1 %v6798_v29  ;;  %v867_v61 = vpop.permute.xlu0 %866  ;;  %v869_v62 = vpop.permute.xlu1 %868 }
  0xb0   : > { %2406 = vrot.lane.b32.xlu0 %v6884_v9, %s6801_s6  ;;  %v878_v14 = vsel %vm874_vm5, %v865_v57, %v867_v61  ;;  %v879_v23 = vsel %vm874_vm5, %v867_v61, %v869_v62 }
  0xb1   : > { %6283 = vmatmul.mubr.msk.bf16.vlgmr.msra.gmra.mrb[16].mxu0 %vm260_vm2, %v6281_v59  ;;  %2408 = vrot.lane.b32.xlu1 %v6882_v8, %s6801_s6  ;;  %v898_v25 = vsel %vm264_vm1, %v879_v23, 0 }
  0xb2   : > { %769 = vmatpush1.bf16.msra.mxu0 %v678_v60  ;;  %800 = vmatprep.mubr.bf16.mxu0 %v6789_v0 }
  0xb3   : > { %6290 = vmatprep.subr.msk.bf16.mxu0 %vm264_vm1, %v876_v1  ;;  %v871_v7 = vpop.permute.xlu0 %870  ;;  %v873_v10 = vpop.permute.xlu1 %872 }
  0xb4   : > { %2410 = vrot.lane.b32.xlu0 %v6889_v11, %s6801_s6  ;;  %v880_v19 = vsel %vm874_vm5, %v869_v62, %v871_v7  ;;  %v881_v28 = vsel %vm874_vm5, %v871_v7, %v873_v10  ;;  %vm3954_vm5 = vcmask 48128  }
  0xb5   : > { %6285 = vmatmul.mubr.msk.bf16.vlgmr.msra.gmra.mrb[16].mxu1 %vm260_vm2, %v6281_v59  ;;  %2412 = vrot.lane.b32.xlu1 %v6891_v12, %s6801_s6  ;;  %v904_v31 = vsel %vm264_vm1, %v881_v28, 0  ;;  %s6816_s6 = smov 35  }
  0xb6   : > { %6551 = vmatpush3.bf16.msra.mxu1 %v684_v2  ;;  %6552 = vmatprep.mubr.msk.bf16.mxu1 %vm6799_vm3, %v6798_v29  ;;  %v6305_v2 = vld [vmem:[%s8135_s1 + $0x14] sm:$0xf] }
  0xb7   : > { %6292 = vmatprep.subr.msk.bf16.mxu1 %vm264_vm1, %v878_v14  ;;  %v1079_v16 = vpop.permute.xlu0 %1078  ;;  %v1081_v17 = vpop.permute.xlu1 %1080 }
  0xb8   : > { %2618 = vrot.lane.b32.xlu0 %v6871_v4, %s6802_s9  ;;  %v1095_v34 = vsel %vm1094_vm6, %v1079_v16, %v1081_v17 }
  0xb9   : > { %6287 = vmatmul.mubr.msk.bf16.vlgmr.msra.gmra.mrb[20].mxu0 %vm260_vm2, %v6281_v59  ;;  %2620 = vrot.lane.b32.xlu1 %v6874_v5, %s6802_s9  ;;  %v1106_v36 = vsel %vm264_vm1, %v1095_v34, 0 }
  0xba   : > { %907 = vmatpush1.bf16.msra.mxu0 %v886_v15  ;;  %938 = vmatprep.mubr.bf16.mxu0 %v6789_v0 }
  0xbb   : > { %6294 = vmatprep.subr.msk.bf16.mxu0 %vm264_vm1, %v880_v19  ;;  %v1083_v21 = vpop.permute.xlu0 %1082  ;;  %v1085_v22 = vpop.permute.xlu1 %1084 }
  0xbc   : > { %2622 = vrot.lane.b32.xlu0 %v6869_v3, %s6802_s9  ;;  %v1096_v30 = vsel %vm1094_vm6, %v1081_v17, %v1083_v21  ;;  %v1097_v39 = vsel %vm1094_vm6, %v1083_v21, %v1085_v22 }
  0xbd   : > { %6553 = vmatmul.mubr.msk.bf16.vlgmr.msra.gmra.mrb[20].mxu1 %vm260_vm2, %v6281_v59  ;;  %2624 = vrot.lane.b32.xlu1 %v6877_v6, %s6802_s9  ;;  %v1112_v41 = vsel %vm264_vm1, %v1097_v39, 0 }
  0xbe   : > { %948 = vmatpush1.bf16.msra.mxu1 %v892_v20  ;;  %979 = vmatprep.mubr.bf16.mxu1 %v6789_v0 }
  0xbf   : > { %6556 = vmatprep.subr.bf16.mxu1 %v6798_v29  ;;  %v1087_v26 = vpop.permute.xlu0 %1086  ;;  %v1089_v27 = vpop.permute.xlu1 %1088 }
  0xc0   : > { %2626 = vrot.lane.b32.xlu0 %v6884_v9, %s6802_s9  ;;  %v1098_v35 = vsel %vm1094_vm6, %v1085_v22, %v1087_v26  ;;  %v1099_v44 = vsel %vm1094_vm6, %v1087_v26, %v1089_v27 }
  0xc1   : > { %6291 = vmatmul.mubr.msk.bf16.vlgmr.msra.gmra.mrb[24].mxu0 %vm260_vm2, %v6289_v24  ;;  %2628 = vrot.lane.b32.xlu1 %v6882_v8, %s6802_s9  ;;  %v1118_v46 = vsel %vm264_vm1, %v1099_v44, 0 }
  0xc2   : > { %989 = vmatpush1.bf16.msra.mxu0 %v898_v25  ;;  %1020 = vmatprep.mubr.bf16.mxu0 %v6789_v0 }
  0xc3   : > { %6298 = vmatprep.subr.msk.bf16.mxu0 %vm264_vm1, %v1096_v30  ;;  %v1091_v32 = vpop.permute.xlu0 %1090  ;;  %v1093_v33 = vpop.permute.xlu1 %1092 }
  0xc4   : > { %2630 = vrot.lane.b32.xlu0 %v6889_v11, %s6802_s9  ;;  %v1100_v40 = vsel %vm1094_vm6, %v1089_v27, %v1091_v32  ;;  %v1101_v49 = vsel %vm1094_vm6, %v1091_v32, %v1093_v33  ;;  %vm4177_vm6 = vcmask 457728  }
  0xc5   : > { %6293 = vmatmul.mubr.msk.bf16.vlgmr.msra.gmra.mrb[24].mxu1 %vm260_vm2, %v6289_v24  ;;  %2632 = vrot.lane.b32.xlu1 %v6891_v12, %s6802_s9  ;;  %v1124_v51 = vsel %vm264_vm1, %v1101_v49, 0  ;;  %s6817_s9 = smov 34  }
  0xc6   : > { %6557 = vmatpush3.bf16.msra.mxu1 %v904_v31  ;;  %6558 = vmatprep.mubr.msk.bf16.mxu1 %vm6799_vm3, %v6798_v29  ;;  %v6313_v31 = vld [vmem:[%s8135_s1 + $0x18] sm:$0xf] }
  0xc7   : > { %6300 = vmatprep.subr.msk.bf16.mxu1 %vm264_vm1, %v1098_v35  ;;  %v1299_v37 = vpop.permute.xlu0 %1298  ;;  %v1301_v38 = vpop.permute.xlu1 %1300 }
  0xc8   : > { %2838 = vrot.lane.b32.xlu0 %v6871_v4, %s6803_s16  ;;  %v1315_v54 = vsel %vm1314_vm7, %v1299_v37, %v1301_v38 }
  0xc9   : > { %6295 = vmatmul.mubr.msk.bf16.vlgmr.msra.gmra.mrb[28].mxu0 %vm260_vm2, %v6289_v24  ;;  %2840 = vrot.lane.b32.xlu1 %v6874_v5, %s6803_s16  ;;  %v1326_v56 = vsel %vm264_vm1, %v1315_v54, 0 }
  0xca   : > { %1127 = vmatpush1.bf16.msra.mxu0 %v1106_v36  ;;  %1158 = vmatprep.mubr.bf16.mxu0 %v6789_v0 }
  0xcb   : > { %6302 = vmatprep.subr.msk.bf16.mxu0 %vm264_vm1, %v1100_v40  ;;  %v1303_v42 = vpop.permute.xlu0 %1302  ;;  %v1305_v43 = vpop.permute.xlu1 %1304 }
  0xcc   : > { %2842 = vrot.lane.b32.xlu0 %v6869_v3, %s6803_s16  ;;  %v1316_v50 = vsel %vm1314_vm7, %v1301_v38, %v1303_v42  ;;  %v1317_v59 = vsel %vm1314_vm7, %v1303_v42, %v1305_v43 }
  0xcd   : > { %6559 = vmatmul.mubr.msk.bf16.vlgmr.msra.gmra.mrb[28].mxu1 %vm260_vm2, %v6289_v24  ;;  %2844 = vrot.lane.b32.xlu1 %v6877_v6, %s6803_s16  ;;  %v1332_v61 = vsel %vm264_vm1, %v1317_v59, 0 }
  0xce   : > { %1168 = vmatpush1.bf16.msra.mxu1 %v1112_v41  ;;  %1199 = vmatprep.mubr.bf16.mxu1 %v6789_v0 }
  0xcf   : > { %6562 = vmatprep.subr.bf16.mxu1 %v6798_v29  ;;  %v1307_v47 = vpop.permute.xlu0 %1306  ;;  %v1309_v48 = vpop.permute.xlu1 %1308 }
  0xd0   : > { %2846 = vrot.lane.b32.xlu0 %v6884_v9, %s6803_s16  ;;  %v1318_v55 = vsel %vm1314_vm7, %v1305_v43, %v1307_v47  ;;  %v1319_v1 = vsel %vm1314_vm7, %v1307_v47, %v1309_v48 }
  0xd1   : > { %6299 = vmatmul.mubr.msk.bf16.vlgmr.msra.gmra.mrb[32].mxu0 %vm260_vm2, %v6297_v45  ;;  %2848 = vrot.lane.b32.xlu1 %v6882_v8, %s6803_s16  ;;  %v1338_v7 = vsel %vm264_vm1, %v1319_v1, 0 }
  0xd2   : > { %1209 = vmatpush1.bf16.msra.mxu0 %v1118_v46  ;;  %1240 = vmatprep.mubr.bf16.mxu0 %v6789_v0 }
  0xd3   : > { %6306 = vmatprep.subr.msk.bf16.mxu0 %vm264_vm1, %v1316_v50  ;;  %v1311_v52 = vpop.permute.xlu0 %1310  ;;  %v1313_v53 = vpop.permute.xlu1 %1312 }
  0xd4   : > { %2850 = vrot.lane.b32.xlu0 %v6889_v11, %s6803_s16  ;;  %v1320_v60 = vsel %vm1314_vm7, %v1309_v48, %v1311_v52  ;;  %v1321_v14 = vsel %vm1314_vm7, %v1311_v52, %v1313_v53  ;;  %vm4397_vm7 = vcmask 449536  }
  0xd5   : > { %6301 = vmatmul.mubr.msk.bf16.vlgmr.msra.gmra.mrb[32].mxu1 %vm260_vm2, %v6297_v45  ;;  %2852 = vrot.lane.b32.xlu1 %v6891_v12, %s6803_s16  ;;  %v1344_v16 = vsel %vm264_vm1, %v1321_v14, 0  ;;  %v6329_v14 = vld [vmem:[%s8135_s1 + $0x20] sm:$0xf] }
  0xd6   : > { %6563 = vmatpush3.bf16.msra.mxu1 %v1124_v51  ;;  %6564 = vmatprep.mubr.msk.bf16.mxu1 %vm6799_vm3, %v6798_v29  ;;  %v6321_v51 = vld [vmem:[%s8135_s1 + $0x1c] sm:$0xf] }
  0xd7   : > { %6308 = vmatprep.subr.msk.bf16.mxu1 %vm264_vm1, %v1318_v55  ;;  %v1519_v57 = vpop.permute.xlu0 %1518  ;;  %v1521_v58 = vpop.permute.xlu1 %1520 }
  0xd8   : > { %3058 = vrot.lane.b32.xlu0 %v6871_v4, %s6804_s20  ;;  %v1535_v19 = vsel %vm1534_vm8, %v1519_v57, %v1521_v58 }
  0xd9   : > { %6303 = vmatmul.mubr.msk.bf16.vlgmr.msra.gmra.mrb[36].mxu0 %vm260_vm2, %v6297_v45  ;;  %3060 = vrot.lane.b32.xlu1 %v6874_v5, %s6804_s20  ;;  %v1546_v21 = vsel %vm264_vm1, %v1535_v19, 0 }
  0xda   : > { %1347 = vmatpush1.bf16.msra.mxu0 %v1326_v56  ;;  %1378 = vmatprep.mubr.bf16.mxu0 %v6789_v0 }
  0xdb   : > { %6310 = vmatprep.subr.msk.bf16.mxu0 %vm264_vm1, %v1320_v60  ;;  %v1523_v62 = vpop.permute.xlu0 %1522  ;;  %v1525_v63 = vpop.permute.xlu1 %1524 }
  0xdc   : > { %3062 = vrot.lane.b32.xlu0 %v6869_v3, %s6804_s20  ;;  %v1536_v15 = vsel %vm1534_vm8, %v1521_v58, %v1523_v62  ;;  %v1537_v24 = vsel %vm1534_vm8, %v1523_v62, %v1525_v63 }
  0xdd   : > { %6565 = vmatmul.mubr.msk.bf16.vlgmr.msra.gmra.mrb[36].mxu1 %vm260_vm2, %v6297_v45  ;;  %3064 = vrot.lane.b32.xlu1 %v6877_v6, %s6804_s20  ;;  %v1552_v26 = vsel %vm264_vm1, %v1537_v24, 0 }
  0xde   : > { %1388 = vmatpush1.bf16.msra.mxu1 %v1332_v61  ;;  %1419 = vmatprep.mubr.bf16.mxu1 %v6789_v0 }
  0xdf   : > { %6568 = vmatprep.subr.bf16.mxu1 %v6798_v29  ;;  %v1527_v10 = vpop.permute.xlu0 %1526  ;;  %v1529_v13 = vpop.permute.xlu1 %1528 }
  0xe0   : > { %3066 = vrot.lane.b32.xlu0 %v6884_v9, %s6804_s20  ;;  %v1538_v20 = vsel %vm1534_vm8, %v1525_v63, %v1527_v10  ;;  %v1539_v30 = vsel %vm1534_vm8, %v1527_v10, %v1529_v13 }
  0xe1   : > { %6307 = vmatmul.mubr.msk.bf16.vlgmr.msra.gmra.mrb[40].mxu0 %vm260_vm2, %v6305_v2  ;;  %3068 = vrot.lane.b32.xlu1 %v6882_v8, %s6804_s20  ;;  %v1558_v32 = vsel %vm264_vm1, %v1539_v30, 0 }
  0xe2   : > { %1429 = vmatpush1.bf16.msra.mxu0 %v1338_v7  ;;  %1460 = vmatprep.mubr.bf16.mxu0 %v6789_v0 }
  0xe3   : > { %6314 = vmatprep.subr.msk.bf16.mxu0 %vm264_vm1, %v1536_v15  ;;  %v1531_v17 = vpop.permute.xlu0 %1530  ;;  %v1533_v18 = vpop.permute.xlu1 %1532 }
  0xe4   : > { %3070 = vrot.lane.b32.xlu0 %v6889_v11, %s6804_s20  ;;  %v1540_v25 = vsel %vm1534_vm8, %v1529_v13, %v1531_v17  ;;  %v1541_v35 = vsel %vm1534_vm8, %v1531_v17, %v1533_v18  ;;  %vm4617_vm8 = vcmask 441344  }
  0xe5   : > { %6309 = vmatmul.mubr.msk.bf16.vlgmr.msra.gmra.mrb[40].mxu1 %vm260_vm2, %v6305_v2  ;;  %3072 = vrot.lane.b32.xlu1 %v6891_v12, %s6804_s20  ;;  %v1564_v37 = vsel %vm264_vm1, %v1541_v35, 0 }
  0xe6   : > { %6569 = vmatpush3.bf16.msra.mxu1 %v1344_v16  ;;  %6570 = vmatprep.mubr.msk.bf16.mxu1 %vm6799_vm3, %v6798_v29 }
  0xe7   : > { %6316 = vmatprep.subr.msk.bf16.mxu1 %vm264_vm1, %v1538_v20  ;;  %v1739_v22 = vpop.permute.xlu0 %1738  ;;  %v1741_v23 = vpop.permute.xlu1 %1740 }
  0xe8   : > { %3278 = vrot.lane.b32.xlu0 %v6871_v4, %s6805_s23  ;;  %v1755_v40 = vsel %vm1754_vm9, %v1739_v22, %v1741_v23 }
  0xe9   : > { %6311 = vmatmul.mubr.msk.bf16.vlgmr.msra.gmra.mrb[44].mxu0 %vm260_vm2, %v6305_v2  ;;  %3280 = vrot.lane.b32.xlu1 %v6874_v5, %s6805_s23  ;;  %v1766_v42 = vsel %vm264_vm1, %v1755_v40, 0 }
  0xea   : > { %1567 = vmatpush1.bf16.msra.mxu0 %v1546_v21  ;;  %1598 = vmatprep.mubr.bf16.mxu0 %v6789_v0 }
  0xeb   : > { %6318 = vmatprep.subr.msk.bf16.mxu0 %vm264_vm1, %v1540_v25  ;;  %v1743_v27 = vpop.permute.xlu0 %1742  ;;  %v1745_v28 = vpop.permute.xlu1 %1744 }
  0xec   : > { %3282 = vrot.lane.b32.xlu0 %v6869_v3, %s6805_s23  ;;  %v1756_v36 = vsel %vm1754_vm9, %v1741_v23, %v1743_v27  ;;  %v1757_v45 = vsel %vm1754_vm9, %v1743_v27, %v1745_v28 }
  0xed   : > { %6571 = vmatmul.mubr.msk.bf16.vlgmr.msra.gmra.mrb[44].mxu1 %vm260_vm2, %v6305_v2  ;;  %3284 = vrot.lane.b32.xlu1 %v6877_v6, %s6805_s23  ;;  %v1772_v47 = vsel %vm264_vm1, %v1757_v45, 0 }
  0xee   : > { %1608 = vmatpush1.bf16.msra.mxu1 %v1552_v26  ;;  %1639 = vmatprep.mubr.bf16.mxu1 %v6789_v0 }
  0xef   : > { %6574 = vmatprep.subr.bf16.mxu1 %v6798_v29  ;;  %v1747_v33 = vpop.permute.xlu0 %1746  ;;  %v1749_v34 = vpop.permute.xlu1 %1748 }
  0xf0   : > { %3286 = vrot.lane.b32.xlu0 %v6884_v9, %s6805_s23  ;;  %v1758_v41 = vsel %vm1754_vm9, %v1745_v28, %v1747_v33  ;;  %v1759_v50 = vsel %vm1754_vm9, %v1747_v33, %v1749_v34 }
  0xf1   : > { %6315 = vmatmul.mubr.msk.bf16.vlgmr.msra.gmra.mrb[48].mxu0 %vm260_vm2, %v6313_v31  ;;  %3288 = vrot.lane.b32.xlu1 %v6882_v8, %s6805_s23  ;;  %v1778_v52 = vsel %vm264_vm1, %v1759_v50, 0 }
  0xf2   : > { %1649 = vmatpush1.bf16.msra.mxu0 %v1558_v32  ;;  %1680 = vmatprep.mubr.bf16.mxu0 %v6789_v0 }
  0xf3   : > { %6322 = vmatprep.subr.msk.bf16.mxu0 %vm264_vm1, %v1756_v36  ;;  %v1751_v38 = vpop.permute.xlu0 %1750  ;;  %v1753_v39 = vpop.permute.xlu1 %1752 }
  0xf4   : > { %3290 = vrot.lane.b32.xlu0 %v6889_v11, %s6805_s23  ;;  %v1760_v46 = vsel %vm1754_vm9, %v1749_v34, %v1751_v38  ;;  %v1761_v54 = vsel %vm1754_vm9, %v1751_v38, %v1753_v39  ;;  %vm4837_vm9 = vcmask 375808  }
  0xf5   : > { %6317 = vmatmul.mubr.msk.bf16.vlgmr.msra.gmra.mrb[48].mxu1 %vm260_vm2, %v6313_v31  ;;  %3292 = vrot.lane.b32.xlu1 %v6891_v12, %s6805_s23  ;;  %v1784_v57 = vsel %vm264_vm1, %v1761_v54, 0  ;;  %v6345_v54 = vld [vmem:[%s8135_s1 + $0x28] sm:$0xf] }
  0xf6   : > { %6575 = vmatpush3.bf16.msra.mxu1 %v1564_v37  ;;  %6576 = vmatprep.mubr.msk.bf16.mxu1 %vm6799_vm3, %v6798_v29 }
  0xf7   : > { %6324 = vmatprep.subr.msk.bf16.mxu1 %vm264_vm1, %v1758_v41  ;;  %v1959_v43 = vpop.permute.xlu0 %1958  ;;  %v1961_v44 = vpop.permute.xlu1 %1960 }
  0xf8   : > { %3498 = vrot.lane.b32.xlu0 %v6871_v4, %s6806_s26  ;;  %v1975_v58 = vsel %vm1974_vm10, %v1959_v43, %v1961_v44 }
  0xf9   : > { %6319 = vmatmul.mubr.msk.bf16.vlgmr.msra.gmra.mrb[52].mxu0 %vm260_vm2, %v6313_v31  ;;  %3500 = vrot.lane.b32.xlu1 %v6874_v5, %s6806_s26  ;;  %v1986_v62 = vsel %vm264_vm1, %v1975_v58, 0 }
  0xfa   : > { %1787 = vmatpush1.bf16.msra.mxu0 %v1766_v42  ;;  %1818 = vmatprep.mubr.bf16.mxu0 %v6789_v0 }
  0xfb   : > { %6326 = vmatprep.subr.msk.bf16.mxu0 %vm264_vm1, %v1760_v46  ;;  %v1963_v48 = vpop.permute.xlu0 %1962  ;;  %v1965_v49 = vpop.permute.xlu1 %1964 }
  0xfc   : > { %3502 = vrot.lane.b32.xlu0 %v6869_v3, %s6806_s26  ;;  %v1976_v55 = vsel %vm1974_vm10, %v1961_v44, %v1963_v48  ;;  %v1977_v63 = vsel %vm1974_vm10, %v1963_v48, %v1965_v49 }
  0xfd   : > { %6577 = vmatmul.mubr.msk.bf16.vlgmr.msra.gmra.mrb[52].mxu1 %vm260_vm2, %v6313_v31  ;;  %3504 = vrot.lane.b32.xlu1 %v6877_v6, %s6806_s26  ;;  %v1992_v7 = vsel %vm264_vm1, %v1977_v63, 0 }
  0xfe   : > { %1828 = vmatpush1.bf16.msra.mxu1 %v1772_v47  ;;  %1859 = vmatprep.mubr.bf16.mxu1 %v6789_v0 }
  0xff   : > { %6580 = vmatprep.subr.bf16.mxu1 %v6798_v29  ;;  %v1967_v53 = vpop.permute.xlu0 %1966 }
 0x100   : > { %3506 = vrot.lane.b32.xlu0 %v6884_v9, %s6806_s26  ;;  %v1969_v56 = vpop.permute.xlu1 %1968  ;;  %v1978_v59 = vsel %vm1974_vm10, %v1965_v49, %v1967_v53 }
 0x101   : > { %6323 = vmatmul.mubr.msk.bf16.vlgmr.msra.gmra.mrb[56].mxu0 %vm260_vm2, %v6321_v51  ;;  %3508 = vrot.lane.b32.xlu1 %v6882_v8, %s6806_s26  ;;  %v1979_v13 = vsel %vm1974_vm10, %v1967_v53, %v1969_v56 }
 0x102   : > { %1869 = vmatpush1.bf16.msra.mxu0 %v1778_v52  ;;  %1900 = vmatprep.mubr.bf16.mxu0 %v6789_v0  ;;  %v1998_v16 = vsel %vm264_vm1, %v1979_v13, 0 }
 0x103   : > { %6330 = vmatprep.subr.msk.bf16.mxu0 %vm264_vm1, %v1976_v55 }
 0x104   : > { %3510 = vrot.lane.b32.xlu0 %v6889_v11, %s6806_s26 }
 0x105   : > { %6325 = vmatmul.mubr.msk.bf16.vlgmr.msra.gmra.mrb[56].mxu1 %vm260_vm2, %v6321_v51  ;;  %3512 = vrot.lane.b32.xlu1 %v6891_v12, %s6806_s26  ;;  %v1971_v60 = vpop.permute.xlu0 %1970 }
 0x106   : > { %6581 = vmatpush3.bf16.msra.mxu1 %v1784_v57  ;;  %6582 = vmatprep.mubr.msk.bf16.mxu1 %vm6799_vm3, %v6798_v29  ;;  %v1973_v61 = vpop.permute.xlu1 %1972  ;;  %v1980_v1 = vsel %vm1974_vm10, %v1969_v56, %v1971_v60 }
 0x107   : > { %6332 = vmatprep.subr.msk.bf16.mxu1 %vm264_vm1, %v1978_v59  ;;  %v1981_v18 = vsel %vm1974_vm10, %v1971_v60, %v1973_v61  ;;  %v7405_v60 = vld [vmem:[%s6864_s19 + $0x20] ss:$0 sps:$4 sm:$0xff]   ;;  %s6810_s19 = smov 55   ;;  %vm5057_vm10 = vcmask 367616  }
 0x108   : > { %3718 = vrot.lane.b32.xlu0 %v6871_v4, %s6807_s29  ;;  %v2004_v21 = vsel %vm264_vm1, %v1981_v18, 0 }
 0x109   : > { %6327 = vmatmul.mubr.msk.bf16.vlgmr.msra.gmra.mrb[60].mxu0 %vm260_vm2, %v6321_v51  ;;  %3720 = vrot.lane.b32.xlu1 %v6874_v5, %s6807_s29 }
 0x10a   : > { %2007 = vmatpush1.bf16.msra.mxu0 %v1986_v62  ;;  %2038 = vmatprep.mubr.bf16.mxu0 %v6789_v0  ;;  %v2179_v2 = vpop.permute.xlu0 %2178 }
 0x10b   : > { %6334 = vmatprep.subr.msk.bf16.mxu0 %vm264_vm1, %v1980_v1  ;;  %v2181_v10 = vpop.permute.xlu1 %2180 }
 0x10c   : > { %3722 = vrot.lane.b32.xlu0 %v6869_v3, %s6807_s29  ;;  %v2195_v23 = vsel %vm2194_vm11, %v2179_v2, %v2181_v10 }
 0x10d   : > { %6583 = vmatmul.mubr.msk.bf16.vlgmr.msra.gmra.mrb[60].mxu1 %vm260_vm2, %v6321_v51  ;;  %3724 = vrot.lane.b32.xlu1 %v6877_v6, %s6807_s29  ;;  %v2206_v26 = vsel %vm264_vm1, %v2195_v23, 0 }
 0x10e   : > { %2048 = vmatpush1.bf16.msra.mxu1 %v1992_v7  ;;  %2079 = vmatprep.mubr.bf16.mxu1 %v6789_v0  ;;  %v2183_v15 = vpop.permute.xlu0 %2182 }
 0x10f   : > { %6586 = vmatprep.subr.bf16.mxu1 %v6798_v29  ;;  %v2185_v17 = vpop.permute.xlu1 %2184  ;;  %v2196_v19 = vsel %vm2194_vm11, %v2181_v10, %v2183_v15 }
 0x110   : > { %3726 = vrot.lane.b32.xlu0 %v6884_v9, %s6807_s29  ;;  %v2197_v28 = vsel %vm2194_vm11, %v2183_v15, %v2185_v17 }
 0x111   : > { %6331 = vmatmul.mubr.msk.bf16.vlgmr.msra.gmra.mrb[64].mxu0 %vm260_vm2, %v6329_v14  ;;  %3728 = vrot.lane.b32.xlu1 %v6882_v8, %s6807_s29  ;;  %v2212_v32 = vsel %vm264_vm1, %v2197_v28, 0 }
 0x112   : > { %2089 = vmatpush1.bf16.msra.mxu0 %v1998_v16  ;;  %2120 = vmatprep.mubr.bf16.mxu0 %v6789_v0  ;;  %v2187_v20 = vpop.permute.xlu0 %2186 }
 0x113   : > { %6338 = vmatprep.subr.msk.bf16.mxu0 %vm264_vm1, %v2196_v19  ;;  %v2189_v22 = vpop.permute.xlu1 %2188  ;;  %v2198_v24 = vsel %vm2194_vm11, %v2185_v17, %v2187_v20 }
 0x114   : > { %3730 = vrot.lane.b32.xlu0 %v6889_v11, %s6807_s29  ;;  %v2199_v34 = vsel %vm2194_vm11, %v2187_v20, %v2189_v22  ;;  %v6353_v20 = vld [vmem:[%s8135_s1 + $0x2c] sm:$0xf] }
 0x115   : > { %6333 = vmatmul.mubr.msk.bf16.vlgmr.msra.gmra.mrb[64].mxu1 %vm260_vm2, %v6329_v14  ;;  %3732 = vrot.lane.b32.xlu1 %v6891_v12, %s6807_s29  ;;  %v2218_v36 = vsel %vm264_vm1, %v2199_v34, 0 }
 0x116   : > { %6587 = vmatpush3.bf16.msra.mxu1 %v2004_v21  ;;  %6588 = vmatprep.mubr.msk.bf16.mxu1 %vm6799_vm3, %v6798_v29  ;;  %v2191_v25 = vpop.permute.xlu0 %2190 }
 0x117   : > { %6340 = vmatprep.subr.msk.bf16.mxu1 %vm264_vm1, %v2198_v24  ;;  %v2193_v27 = vpop.permute.xlu1 %2192  ;;  %v2200_v30 = vsel %vm2194_vm11, %v2189_v22, %v2191_v25 }
 0x118   : > { %3938 = vrot.lane.b32.xlu0 %v6871_v4, %s6808_s5  ;;  %v6337_v4 = vld [vmem:[%s8135_s1 + $0x24] sm:$0xf]  ;;  %v2201_v38 = vsel %vm2194_vm11, %v2191_v25, %v2193_v27  ;;  %vm5277_vm11 = vcmask 359424  }
 0x119   : > { %6335 = vmatmul.mubr.msk.bf16.vlgmr.msra.gmra.mrb[68].mxu0 %vm260_vm2, %v6329_v14  ;;  %3940 = vrot.lane.b32.xlu1 %v6874_v5, %s6808_s5  ;;  %v2224_v41 = vsel %vm264_vm1, %v2201_v38, 0 }
 0x11a   : > { %2227 = vmatpush1.bf16.msra.mxu0 %v2206_v26  ;;  %2258 = vmatprep.mubr.bf16.mxu0 %v6789_v0  ;;  %v2399_v31 = vpop.permute.xlu0 %2398 }
 0x11b   : > { %6342 = vmatprep.subr.msk.bf16.mxu0 %vm264_vm1, %v2200_v30  ;;  %v2401_v33 = vpop.permute.xlu1 %2400 }
 0x11c   : > { %3942 = vrot.lane.b32.xlu0 %v6869_v3, %s6808_s5  ;;  %v2415_v43 = vsel %vm2414_vm12, %v2399_v31, %v2401_v33 }
 0x11d   : > { %6589 = vmatmul.mubr.msk.bf16.vlgmr.msra.gmra.mrb[68].mxu1 %vm260_vm2, %v6329_v14  ;;  %3944 = vrot.lane.b32.xlu1 %v6877_v6, %s6808_s5  ;;  %v2426_v46 = vsel %vm264_vm1, %v2415_v43, 0 }
 0x11e   : > { %2268 = vmatpush1.bf16.msra.mxu1 %v2212_v32  ;;  %2299 = vmatprep.mubr.bf16.mxu1 %v6789_v0  ;;  %v2403_v35 = vpop.permute.xlu0 %2402 }
 0x11f   : > { %6592 = vmatprep.subr.bf16.mxu1 %v6798_v29  ;;  %v2405_v37 = vpop.permute.xlu1 %2404  ;;  %v2416_v39 = vsel %vm2414_vm12, %v2401_v33, %v2403_v35 }
 0x120   : > { %3946 = vrot.lane.b32.xlu0 %v6884_v9, %s6808_s5  ;;  %v2417_v48 = vsel %vm2414_vm12, %v2403_v35, %v2405_v37 }
 0x121   : > { %6339 = vmatmul.mubr.msk.bf16.vlgmr.msra.gmra.mrb[72].mxu0 %vm260_vm2, %v6337_v4  ;;  %3948 = vrot.lane.b32.xlu1 %v6882_v8, %s6808_s5  ;;  %v2432_v51 = vsel %vm264_vm1, %v2417_v48, 0 }
 0x122   : > { %2309 = vmatpush1.bf16.msra.mxu0 %v2218_v36  ;;  %2340 = vmatprep.mubr.bf16.mxu0 %v6789_v0  ;;  %v2407_v40 = vpop.permute.xlu0 %2406 }
 0x123   : > { %6346 = vmatprep.subr.msk.bf16.mxu0 %vm264_vm1, %v2416_v39  ;;  %v2409_v42 = vpop.permute.xlu1 %2408  ;;  %v2418_v44 = vsel %vm2414_vm12, %v2405_v37, %v2407_v40 }
 0x124   : > { %3950 = vrot.lane.b32.xlu0 %v6889_v11, %s6808_s5  ;;  %v2419_v53 = vsel %vm2414_vm12, %v2407_v40, %v2409_v42  ;;  %v6361_v40 = vld [vmem:[%s8135_s1 + $0x30] sm:$0xf] }
 0x125   : > { %6341 = vmatmul.mubr.msk.bf16.vlgmr.msra.gmra.mrb[72].mxu1 %vm260_vm2, %v6337_v4  ;;  %3952 = vrot.lane.b32.xlu1 %v6891_v12, %s6808_s5  ;;  %v2438_v56 = vsel %vm264_vm1, %v2419_v53, 0 }
 0x126   : > { %6593 = vmatpush3.bf16.msra.mxu1 %v2224_v41  ;;  %6594 = vmatprep.mubr.msk.bf16.mxu1 %vm6799_vm3, %v6798_v29  ;;  %v2411_v45 = vpop.permute.xlu0 %2410 }
 0x127   : > { %6348 = vmatprep.subr.msk.bf16.mxu1 %vm264_vm1, %v2418_v44  ;;  %v2413_v47 = vpop.permute.xlu1 %2412  ;;  %v2420_v49 = vsel %vm2414_vm12, %v2409_v42, %v2411_v45 }
 0x128   : > { %4161 = vrot.lane.b32.xlu0 %v6874_v5, %s6809_s8  ;;  %v2421_v58 = vsel %vm2414_vm12, %v2411_v45, %v2413_v47  ;;  %vm5497_vm12 = vcmask 293888  }
 0x129   : > { %6343 = vmatmul.mubr.msk.bf16.vlgmr.msra.gmra.mrb[76].mxu0 %vm260_vm2, %v6337_v4  ;;  %4163 = vrot.lane.b32.xlu1 %v6869_v3, %s6809_s8  ;;  %v2444_v62 = vsel %vm264_vm1, %v2421_v58, 0 }
 0x12a   : > { %2447 = vmatpush1.bf16.msra.mxu0 %v2426_v46  ;;  %2478 = vmatprep.mubr.bf16.mxu0 %v6789_v0  ;;  %v2619_v50 = vpop.permute.xlu0 %2618 }
 0x12b   : > { %6350 = vmatprep.subr.msk.bf16.mxu0 %vm264_vm1, %v2420_v49  ;;  %v2621_v52 = vpop.permute.xlu1 %2620 }
 0x12c   : > { %4165 = vrot.lane.b32.xlu0 %v6877_v6, %s6809_s8  ;;  %v2635_v1 = vsel %vm2634_vm13, %v2619_v50, %v2621_v52 }
 0x12d   : > { %6595 = vmatmul.mubr.msk.bf16.vlgmr.msra.gmra.mrb[76].mxu1 %vm260_vm2, %v6337_v4  ;;  %4167 = vrot.lane.b32.xlu1 %v6884_v9, %s6809_s8  ;;  %v2646_v10 = vsel %vm264_vm1, %v2635_v1, 0 }
 0x12e   : > { %2488 = vmatpush1.bf16.msra.mxu1 %v2432_v51  ;;  %2519 = vmatprep.mubr.bf16.mxu1 %v6789_v0  ;;  %v2623_v55 = vpop.permute.xlu0 %2622 }
 0x12f   : > { %6598 = vmatprep.subr.bf16.mxu1 %v6798_v29  ;;  %v2625_v57 = vpop.permute.xlu1 %2624  ;;  %v2636_v59 = vsel %vm2634_vm13, %v2621_v52, %v2623_v55 }
 0x130   : > { %4169 = vrot.lane.b32.xlu0 %v6882_v8, %s6809_s8  ;;  %v2637_v14 = vsel %vm2634_vm13, %v2623_v55, %v2625_v57 }
 0x131   : > { %6347 = vmatmul.mubr.msk.bf16.vlgmr.msra.gmra.mrb[80].mxu0 %vm260_vm2, %v6345_v54  ;;  %4171 = vrot.lane.b32.xlu1 %v6889_v11, %s6809_s8  ;;  %v2652_v17 = vsel %vm264_vm1, %v2637_v14, 0 }
 0x132   : > { %2529 = vmatpush1.bf16.msra.mxu0 %v2438_v56  ;;  %2560 = vmatprep.mubr.bf16.mxu0 %v6789_v0  ;;  %v2627_v61 = vpop.permute.xlu0 %2626 }
 0x133   : > { %6354 = vmatprep.subr.msk.bf16.mxu0 %vm264_vm1, %v2636_v59  ;;  %v2629_v63 = vpop.permute.xlu1 %2628  ;;  %v2638_v2 = vsel %vm2634_vm13, %v2625_v57, %v2627_v61 }
 0x134   : > { %4173 = vrot.lane.b32.xlu0 %v6891_v12, %s6809_s8  ;;  %v2639_v19 = vsel %vm2634_vm13, %v2627_v61, %v2629_v63  ;;  %v6369_v61 = vld [vmem:[%s8135_s1 + $0x34] sm:$0xf] }
 0x135   : > { %6349 = vmatmul.mubr.msk.bf16.vlgmr.msra.gmra.mrb[80].mxu1 %vm260_vm2, %v6345_v54  ;;  %4175 = vrot.lane.b32.xlu1 %v7405_v60, %s6809_s8  ;;  %v2658_v22 = vsel %vm264_vm1, %v2639_v19, 0 }
 0x136   : > { %6599 = vmatpush3.bf16.msra.mxu1 %v2444_v62  ;;  %6600 = vmatprep.mubr.msk.bf16.mxu1 %vm6799_vm3, %v6798_v29  ;;  %v2631_v7 = vpop.permute.xlu0 %2630 }
 0x137   : > { %6356 = vmatprep.subr.msk.bf16.mxu1 %vm264_vm1, %v2638_v2  ;;  %v2633_v13 = vpop.permute.xlu1 %2632  ;;  %v2640_v15 = vsel %vm2634_vm13, %v2629_v63, %v2631_v7 }
 0x138   : > { %4381 = vrot.lane.b32.xlu0 %v6874_v5, %s6810_s19  ;;  %v2641_v24 = vsel %vm2634_vm13, %v2631_v7, %v2633_v13  ;;  %vm5717_vm13 = vcmask 285696  }
 0x139   : > { %6351 = vmatmul.mubr.msk.bf16.vlgmr.msra.gmra.mrb[84].mxu0 %vm260_vm2, %v6345_v54  ;;  %4383 = vrot.lane.b32.xlu1 %v6869_v3, %s6810_s19  ;;  %v2664_v27 = vsel %vm264_vm1, %v2641_v24, 0 }
 0x13a   : > { %2667 = vmatpush1.bf16.msra.mxu0 %v2646_v10  ;;  %2698 = vmatprep.mubr.bf16.mxu0 %v6789_v0  ;;  %v2839_v16 = vpop.permute.xlu0 %2838 }
 0x13b   : > { %6358 = vmatprep.subr.msk.bf16.mxu0 %vm264_vm1, %v2640_v15  ;;  %v2841_v18 = vpop.permute.xlu1 %2840 }
 0x13c   : > { %4385 = vrot.lane.b32.xlu0 %v6877_v6, %s6810_s19  ;;  %v2855_v30 = vsel %vm2854_vm14, %v2839_v16, %v2841_v18 }
 0x13d   : > { %6601 = vmatmul.mubr.msk.bf16.vlgmr.msra.gmra.mrb[84].mxu1 %vm260_vm2, %v6345_v54  ;;  %4387 = vrot.lane.b32.xlu1 %v6884_v9, %s6810_s19  ;;  %v2866_v33 = vsel %vm264_vm1, %v2855_v30, 0 }
 0x13e   : > { %2708 = vmatpush1.bf16.msra.mxu1 %v2652_v17  ;;  %2739 = vmatprep.mubr.bf16.mxu1 %v6789_v0  ;;  %v2843_v21 = vpop.permute.xlu0 %2842 }
 0x13f   : > { %6604 = vmatprep.subr.bf16.mxu1 %v6798_v29  ;;  %v2845_v23 = vpop.permute.xlu1 %2844  ;;  %v2856_v25 = vsel %vm2854_vm14, %v2841_v18, %v2843_v21 }
 0x140   : > { %4389 = vrot.lane.b32.xlu0 %v6882_v8, %s6810_s19  ;;  %v2857_v4 = vsel %vm2854_vm14, %v2843_v21, %v2845_v23 }
 0x141   : > { %6355 = vmatmul.mubr.msk.bf16.vlgmr.msra.gmra.mrb[88].mxu0 %vm260_vm2, %v6353_v20  ;;  %4391 = vrot.lane.b32.xlu1 %v6889_v11, %s6810_s19  ;;  %v2872_v37 = vsel %vm264_vm1, %v2857_v4, 0 }
 0x142   : > { %2749 = vmatpush1.bf16.msra.mxu0 %v2658_v22  ;;  %2780 = vmatprep.mubr.bf16.mxu0 %v6789_v0  ;;  %v2847_v26 = vpop.permute.xlu0 %2846 }
 0x143   : > { %6362 = vmatprep.subr.msk.bf16.mxu0 %vm264_vm1, %v2856_v25  ;;  %v2849_v28 = vpop.permute.xlu1 %2848  ;;  %v2858_v31 = vsel %vm2854_vm14, %v2845_v23, %v2847_v26 }
 0x144   : > { %4393 = vrot.lane.b32.xlu0 %v6891_v12, %s6810_s19  ;;  %v2859_v39 = vsel %vm2854_vm14, %v2847_v26, %v2849_v28 }
 0x145   : > { %6357 = vmatmul.mubr.msk.bf16.vlgmr.msra.gmra.mrb[88].mxu1 %vm260_vm2, %v6353_v20  ;;  %4395 = vrot.lane.b32.xlu1 %v7405_v60, %s6810_s19  ;;  %v2878_v42 = vsel %vm264_vm1, %v2859_v39, 0 }
 0x146   : > { %6605 = vmatpush3.bf16.msra.mxu1 %v2664_v27  ;;  %6606 = vmatprep.mubr.msk.bf16.mxu1 %vm6799_vm3, %v6798_v29  ;;  %v2851_v32 = vpop.permute.xlu0 %2850 }
 0x147   : > { %6364 = vmatprep.subr.msk.bf16.mxu1 %vm264_vm1, %v2858_v31  ;;  %v2853_v34 = vpop.permute.xlu1 %2852  ;;  %v2860_v35 = vsel %vm2854_vm14, %v2849_v28, %v2851_v32 }
 0x148   : > { %4601 = vrot.lane.b32.xlu0 %v6874_v5, %s6811_s17  ;;  %v2861_v44 = vsel %vm2854_vm14, %v2851_v32, %v2853_v34  ;;  %vm5937_vm14 = vcmask 277504  }
 0x149   : > { %6359 = vmatmul.mubr.msk.bf16.vlgmr.msra.gmra.mrb[92].mxu0 %vm260_vm2, %v6353_v20  ;;  %4603 = vrot.lane.b32.xlu1 %v6869_v3, %s6811_s17  ;;  %v2884_v47 = vsel %vm264_vm1, %v2861_v44, 0 }
 0x14a   : > { %2887 = vmatpush1.bf16.msra.mxu0 %v2866_v33  ;;  %2918 = vmatprep.mubr.bf16.mxu0 %v6789_v0  ;;  %v3059_v36 = vpop.permute.xlu0 %3058 }
 0x14b   : > { %6366 = vmatprep.subr.msk.bf16.mxu0 %vm264_vm1, %v2860_v35  ;;  %v3061_v38 = vpop.permute.xlu1 %3060 }
 0x14c   : > { %4605 = vrot.lane.b32.xlu0 %v6877_v6, %s6811_s17  ;;  %v3075_v49 = vsel %vm3074_vm15, %v3059_v36, %v3061_v38 }
 0x14d   : > { %6607 = vmatmul.mubr.msk.bf16.vlgmr.msra.gmra.mrb[92].mxu1 %vm260_vm2, %v6353_v20  ;;  %4607 = vrot.lane.b32.xlu1 %v6884_v9, %s6811_s17  ;;  %v3086_v52 = vsel %vm264_vm1, %v3075_v49, 0 }
 0x14e   : > { %2928 = vmatpush1.bf16.msra.mxu1 %v2872_v37  ;;  %2959 = vmatprep.mubr.bf16.mxu1 %v6789_v0  ;;  %v3063_v41 = vpop.permute.xlu0 %3062  ;;  %v6377_v37 = vld [vmem:[%s8135_s1 + $0x38] sm:$0xf] }
 0x14f   : > { %6610 = vmatprep.subr.bf16.mxu1 %v6798_v29  ;;  %v3065_v43 = vpop.permute.xlu1 %3064  ;;  %v3076_v45 = vsel %vm3074_vm15, %v3061_v38, %v3063_v41 }
 0x150   : > { %4609 = vrot.lane.b32.xlu0 %v6882_v8, %s6811_s17  ;;  %v3077_v54 = vsel %vm3074_vm15, %v3063_v41, %v3065_v43 }
 0x151   : > { %6363 = vmatmul.mubr.msk.bf16.vlgmr.msra.gmra.mrb[96].mxu0 %vm260_vm2, %v6361_v40  ;;  %4611 = vrot.lane.b32.xlu1 %v6889_v11, %s6811_s17  ;;  %v3092_v57 = vsel %vm264_vm1, %v3077_v54, 0 }
 0x152   : > { %2969 = vmatpush1.bf16.msra.mxu0 %v2878_v42  ;;  %3000 = vmatprep.mubr.bf16.mxu0 %v6789_v0  ;;  %v3067_v46 = vpop.permute.xlu0 %3066 }
 0x153   : > { %6370 = vmatprep.subr.msk.bf16.mxu0 %vm264_vm1, %v3076_v45  ;;  %v3069_v48 = vpop.permute.xlu1 %3068  ;;  %v3078_v50 = vsel %vm3074_vm15, %v3065_v43, %v3067_v46 }
 0x154   : > { %4613 = vrot.lane.b32.xlu0 %v6891_v12, %s6811_s17  ;;  %v3079_v59 = vsel %vm3074_vm15, %v3067_v46, %v3069_v48 }
 0x155   : > { %6365 = vmatmul.mubr.msk.bf16.vlgmr.msra.gmra.mrb[96].mxu1 %vm260_vm2, %v6361_v40  ;;  %4615 = vrot.lane.b32.xlu1 %v7405_v60, %s6811_s17  ;;  %v3098_v63 = vsel %vm264_vm1, %v3079_v59, 0 }
 0x156   : > { %6611 = vmatpush3.bf16.msra.mxu1 %v2884_v47  ;;  %6612 = vmatprep.mubr.msk.bf16.mxu1 %vm6799_vm3, %v6798_v29  ;;  %v3071_v51 = vpop.permute.xlu0 %3070 }
 0x157   : > { %6372 = vmatprep.subr.msk.bf16.mxu1 %vm264_vm1, %v3078_v50  ;;  %v3073_v53 = vpop.permute.xlu1 %3072  ;;  %v3080_v55 = vsel %vm3074_vm15, %v3069_v48, %v3071_v51 }
 0x158   : > { %4821 = vrot.lane.b32.xlu0 %v6874_v5, %s6812_s21  ;;  %v3081_v2 = vsel %vm3074_vm15, %v3071_v51, %v3073_v53 }
 0x159   : > { %6367 = vmatmul.mubr.msk.bf16.vlgmr.msra.gmra.mrb[100].mxu0 %vm260_vm2, %v6361_v40  ;;  %4823 = vrot.lane.b32.xlu1 %v6869_v3, %s6812_s21  ;;  %v3104_v13 = vsel %vm264_vm1, %v3081_v2, 0 }
 0x15a   : > { %3107 = vmatpush1.bf16.msra.mxu0 %v3086_v52  ;;  %3138 = vmatprep.mubr.bf16.mxu0 %v6789_v0  ;;  %v3279_v56 = vpop.permute.xlu0 %3278 }
 0x15b   : > { %6374 = vmatprep.subr.msk.bf16.mxu0 %vm264_vm1, %v3080_v55  ;;  %v3281_v58 = vpop.permute.xlu1 %3280 }
 0x15c   : > { %4825 = vrot.lane.b32.xlu0 %v6877_v6, %s6812_s21  ;;  %v3295_v15 = vsel %vm3294_vm0, %v3279_v56, %v3281_v58 }
 0x15d   : > { %6613 = vmatmul.mubr.msk.bf16.vlgmr.msra.gmra.mrb[100].mxu1 %vm260_vm2, %v6361_v40  ;;  %4827 = vrot.lane.b32.xlu1 %v6884_v9, %s6812_s21  ;;  %v3306_v22 = vsel %vm264_vm1, %v3295_v15, 0 }
 0x15e   : > { %3148 = vmatpush1.bf16.msra.mxu1 %v3092_v57  ;;  %3179 = vmatprep.mubr.bf16.mxu1 %v6789_v0  ;;  %v3283_v62 = vpop.permute.xlu0 %3282 }
 0x15f   : > { %6616 = vmatprep.subr.bf16.mxu1 %v6798_v29  ;;  %v3285_v1 = vpop.permute.xlu1 %3284  ;;  %v3296_v7 = vsel %vm3294_vm0, %v3281_v58, %v3283_v62 }
 0x160   : > { %4829 = vrot.lane.b32.xlu0 %v6882_v8, %s6812_s21  ;;  %v3297_v24 = vsel %vm3294_vm0, %v3283_v62, %v3285_v1 }
 0x161   : > { %6371 = vmatmul.mubr.msk.bf16.vlgmr.msra.gmra.mrb[104].mxu0 %vm260_vm2, %v6369_v61  ;;  %4831 = vrot.lane.b32.xlu1 %v6889_v11, %s6812_s21  ;;  %v3312_v32 = vsel %vm264_vm1, %v3297_v24, 0 }
 0x162   : > { %3189 = vmatpush1.bf16.msra.mxu0 %v3098_v63  ;;  %3220 = vmatprep.mubr.bf16.mxu0 %v6789_v0  ;;  %v3287_v10 = vpop.permute.xlu0 %3286 }
 0x163   : > { %6378 = vmatprep.subr.msk.bf16.mxu0 %vm264_vm1, %v3296_v7  ;;  %v3289_v14 = vpop.permute.xlu1 %3288  ;;  %v3298_v17 = vsel %vm3294_vm0, %v3285_v1, %v3287_v10 }
 0x164   : > { %v7540_v16 = vpop.f32.mrb[0].mxu0  ;;  %4833 = vrot.lane.b32.xlu0 %v6891_v12, %s6812_s21  ;;  %v3299_v34 = vsel %vm3294_vm0, %v3287_v10, %v3289_v14 }
 0x165   : > { %6373 = vmatmul.mubr.msk.bf16.vlgmr.msra.gmra.mrb[104].mxu1 %vm260_vm2, %v6369_v61  ;;  %v7546_v18 = vpop.f32.mrb[1].mxu0  ;;  %4835 = vrot.lane.b32.xlu1 %v7405_v60, %s6812_s21  ;;  %v3318_v40 = vsel %vm264_vm1, %v3299_v34, 0 }
 0x166   : > { %6617 = vmatpush3.bf16.msra.mxu1 %v3104_v13  ;;  %v324_v19 = vpop.f32.mrb[2].mxu0  ;;  %6618 = vmatprep.mubr.msk.bf16.mxu1 %vm6799_vm3, %v6798_v29  ;;  %v3291_v20 = vpop.permute.xlu0 %3290 }
 0x167   : > { %v325_v21 = vpop.f32.mrb[3].mxu0  ;;  %6380 = vmatprep.subr.msk.bf16.mxu1 %vm264_vm1, %v3298_v17  ;;  %v3293_v23 = vpop.permute.xlu1 %3292  ;;  %v3300_v26 = vsel %vm3294_vm0, %v3289_v14, %v3291_v20 }
 0x168   : > { %v7555_v25 = vpop.f32.mrb[0].mxu1  ;;  %5041 = vrot.lane.b32.xlu0 %v6874_v5, %s6813_s24  ;;  %v3301_v42 = vsel %vm3294_vm0, %v3291_v20, %v3293_v23 }
 0x169   : > { %v7560_v27 = vpop.f32.mrb[1].mxu1  ;;  %6375 = vmatmul.mubr.msk.bf16.vlgmr.msra.gmra.mrb[108].mxu0 %vm260_vm2, %v6369_v61  ;;  %5043 = vrot.lane.b32.xlu1 %v6869_v3, %s6813_s24  ;;  %v3324_v48 = vsel %vm264_vm1, %v3301_v42, 0 }
 0x16a   : > { %3327 = vmatpush1.bf16.msra.mxu0 %v3306_v22  ;;  %v365_v28 = vpop.f32.mrb[2].mxu1  ;;  %3358 = vmatprep.mubr.bf16.mxu0 %v6789_v0  ;;  %v3499_v30 = vpop.permute.xlu0 %3498 }
 0x16b   : > { %v366_v31 = vpop.f32.mrb[3].mxu1  ;;  %6382 = vmatprep.subr.msk.bf16.mxu0 %vm264_vm1, %v3300_v26  ;;  %v3501_v33 = vpop.permute.xlu1 %3500 }
 0x16c   : > { %v7569_v4 = vpop.f32.mrb[4].mxu0  ;;  %5045 = vrot.lane.b32.xlu0 %v6877_v6, %s6813_s24  ;;  %v3515_v51 = vsel %vm260_vm2, %v3499_v30, %v3501_v33 }
 0x16d   : > { %6619 = vmatmul.mubr.msk.bf16.vlgmr.msra.gmra.mrb[108].mxu1 %vm260_vm2, %v6369_v61  ;;  %v7574_v35 = vpop.f32.mrb[5].mxu0  ;;  %5047 = vrot.lane.b32.xlu1 %v6884_v9, %s6813_s24  ;;  %v3526_v59 = vsel %vm264_vm1, %v3515_v51, 0 }
 0x16e   : > { %3368 = vmatpush1.bf16.msra.mxu1 %v3312_v32  ;;  %v406_v36 = vpop.f32.mrb[6].mxu0  ;;  %3399 = vmatprep.mubr.bf16.mxu1 %v6789_v0  ;;  %v3503_v38 = vpop.permute.xlu0 %3502 }
 0x16f   : > { %v407_v39 = vpop.f32.mrb[7].mxu0  ;;  %6622 = vmatprep.subr.bf16.mxu1 %v6798_v29  ;;  %v3505_v41 = vpop.permute.xlu1 %3504  ;;  %v3516_v44 = vsel %vm260_vm2, %v3501_v33, %v3503_v38 }
 0x170   : > { %v7585_v43 = vpop.f32.mrb[4].mxu1  ;;  %5049 = vrot.lane.b32.xlu0 %v6882_v8, %s6813_s24  ;;  %v3517_v63 = vsel %vm260_vm2, %v3503_v38, %v3505_v41 }
 0x171   : > { %v6542_v45 = vpop.f32.mrb[5].mxu1  ;;  %6379 = vmatmul.mubr.msk.bf16.vlgmr.msra.gmra.mrb[112].mxu0 %vm260_vm2, %v6377_v37  ;;  %5051 = vrot.lane.b32.xlu1 %v6889_v11, %s6813_s24 }
 0x172   : > { %3409 = vmatpush1.bf16.msra.mxu0 %v3318_v40  ;;  %v446_v46 = vpop.f32.mrb[6].mxu1  ;;  %3440 = vmatprep.mubr.bf16.mxu0 %v6789_v0  ;;  %v3507_v47 = vpop.permute.xlu0 %3506 }
 0x173   : > { %v6543_v49 = vpop.f32.mrb[7].mxu1  ;;  %6386 = vmatprep.subr.msk.bf16.mxu0 %vm264_vm1, %v3516_v44  ;;  %v3509_v50 = vpop.permute.xlu1 %3508  ;;  %v3518_v53 = vsel %vm260_vm2, %v3505_v41, %v3507_v47 }
 0x174   : > { %v507_v52 = vpop.f32.mrb[8].mxu0  ;;  %5053 = vrot.lane.b32.xlu0 %v6891_v12, %s6813_s24  ;;  %v3519_v19 = vsel %vm260_vm2, %v3507_v47, %v3509_v50 }
 0x175   : > { %v7601_v54 = vadd.f32 %v507_v52, %v7540_v16  ;;  %v509_v55 = vpop.f32.mrb[9].mxu0  ;;  %6381 = vmatmul.mubr.msk.bf16.vlgmr.msra.gmra.mrb[112].mxu1 %vm260_vm2, %v6377_v37  ;;  %5055 = vrot.lane.b32.xlu1 %v7405_v60, %s6813_s24  ;;  %v3532_v16 = vsel %vm264_vm1, %v3517_v63, 0 }
 0x176   : > { %v7607_v56 = vadd.f32 %v509_v55, %v7546_v18  ;;  %6623 = vmatpush3.bf16.msra.mxu1 %v3324_v48  ;;  %v511_v57 = vpop.f32.mrb[10].mxu0  ;;  %6624 = vmatprep.mubr.msk.bf16.mxu1 %vm6799_vm3, %v6798_v29  ;;  %v3511_v58 = vpop.permute.xlu0 %3510 }
 0x177   : > { %v512_v61 = vpop.f32.mrb[11].mxu0  ;;  %6388 = vmatprep.subr.msk.bf16.mxu1 %vm264_vm1, %v3518_v53  ;;  %v3513_v62 = vpop.permute.xlu1 %3512  ;;  %v3520_v2 = vsel %vm260_vm2, %v3509_v50, %v3511_v58 }
 0x178   : > { %v548_v1 = vpop.f32.mrb[8].mxu1  ;;  %5261 = vrot.lane.b32.xlu0 %v6874_v5, %s6814_s27  ;;  %v3521_v31 = vsel %vm260_vm2, %v3511_v58, %v3513_v62 }
 0x179   : > { %v7618_v7 = vadd.f32 %v548_v1, %v7555_v25  ;;  %v550_v10 = vpop.f32.mrb[9].mxu1  ;;  %6383 = vmatmul.mubr.msk.bf16.vlgmr.msra.gmra.mrb[116].mxu0 %vm260_vm2, %v6377_v37  ;;  %5263 = vrot.lane.b32.xlu1 %v6869_v3, %s6814_s27  ;;  %v7644_v25 = vld [vmem:[%s8135_s1 + $0x3c] sm:$0xf] }
 0x17a   : > { %v7624_v13 = vadd.f32 %v550_v10, %v7560_v27  ;;  %3547 = vmatpush1.bf16.msra.mxu0 %v3526_v59  ;;  %v552_v14 = vpop.f32.mrb[10].mxu1  ;;  %3578 = vmatprep.mubr.bf16.mxu0 %v6789_v0  ;;  %v3719_v15 = vpop.permute.xlu0 %3718  ;;  %v3538_v27 = vsel %vm264_vm1, %v3519_v19, 0 }
 0x17b   : > { %v553_v17 = vpop.f32.mrb[11].mxu1  ;;  %6390 = vmatprep.subr.msk.bf16.mxu0 %vm264_vm1, %v3520_v2  ;;  %v3721_v18 = vpop.permute.xlu1 %3720  ;;  %v7714_v14 = vld [vmem:[%s8135_s1 + $0x40] sm:$0xf] }
 0x17c   : > { %v589_v20 = vpop.f32.mrb[12].mxu0  ;;  %5265 = vrot.lane.b32.xlu0 %v6877_v6, %s6814_s27  ;;  %v3735_v40 = vsel %vm3734_vm4, %v3719_v15, %v3721_v18 }
 0x17d   : > { %v7633_v21 = vadd.f32 %v589_v20, %v7569_v4  ;;  %v591_v22 = vpop.f32.mrb[13].mxu0  ;;  %6625 = vmatmul.mubr.msk.bf16.vlgmr.msra.gmra.mrb[116].mxu1 %vm260_vm2, %v6377_v37  ;;  %5267 = vrot.lane.b32.xlu1 %v6884_v9, %s6814_s27  ;;  %v3544_v37 = vsel %vm264_vm1, %v3521_v31, 0  ;;  %v3746_v48 = vsel %vm264_vm1, %v3735_v40, 0 }
 0x17e   : > { %v7639_v23 = vadd.f32 %v591_v22, %v7574_v35  ;;  %3588 = vmatpush1.bf16.msra.mxu1 %v3532_v16  ;;  %v593_v24 = vpop.f32.mrb[14].mxu0  ;;  %3619 = vmatprep.mubr.bf16.mxu1 %v6789_v0  ;;  %v3723_v26 = vpop.permute.xlu0 %3722 }
 0x17f   : > { %v594_v28 = vpop.f32.mrb[15].mxu0  ;;  %6628 = vmatprep.subr.bf16.mxu1 %v6798_v29  ;;  %v3725_v30 = vpop.permute.xlu1 %3724  ;;  %v3736_v33 = vsel %vm3734_vm4, %v3721_v18, %v3723_v26 }
 0x180   : > { %v630_v32 = vpop.f32.mrb[12].mxu1  ;;  %5269 = vrot.lane.b32.xlu0 %v6882_v8, %s6814_s27  ;;  %v3737_v51 = vsel %vm3734_vm4, %v3723_v26, %v3725_v30 }
 0x181   : > { %v7654_v34 = vadd.f32 %v630_v32, %v7585_v43  ;;  %v6548_v4 = vpop.f32.mrb[13].mxu1  ;;  %6387 = vmatmul.mubr.msk.bf16.vlgmr.msra.gmra.mrb[120].mxu0 %vm260_vm2, %v7644_v25  ;;  %5271 = vrot.lane.b32.xlu1 %v6889_v11, %s6814_s27  ;;  %v3752_v59 = vsel %vm264_vm1, %v3737_v51, 0 }
 0x182   : > { %3629 = vmatpush1.bf16.msra.mxu0 %v3538_v27  ;;  %v633_v35 = vpop.f32.mrb[14].mxu1  ;;  %3660 = vmatprep.mubr.bf16.mxu0 %v6789_v0  ;;  %v3727_v36 = vpop.permute.xlu0 %3726 }
 0x183   : > { %v6549_v38 = vpop.f32.mrb[15].mxu1  ;;  %6394 = vmatprep.subr.msk.bf16.mxu0 %vm264_vm1, %v3736_v33  ;;  %v3729_v39 = vpop.permute.xlu1 %3728  ;;  %v3738_v42 = vsel %vm3734_vm4, %v3725_v30, %v3727_v36 }
 0x184   : > { %v720_v41 = vpop.f32.mrb[16].mxu0  ;;  %5273 = vrot.lane.b32.xlu0 %v6891_v12, %s6814_s27  ;;  %v3739_v63 = vsel %vm3734_vm4, %v3727_v36, %v3729_v39 }
 0x185   : > { %v7668_v43 = vadd.f32 %v720_v41, %v7601_v54  ;;  %v722_v44 = vpop.f32.mrb[17].mxu0  ;;  %6389 = vmatmul.mubr.msk.bf16.vlgmr.msra.gmra.mrb[120].mxu1 %vm260_vm2, %v7644_v25  ;;  %5275 = vrot.lane.b32.xlu1 %v7405_v60, %s6814_s27  ;;  %v3758_v16 = vsel %vm264_vm1, %v3739_v63, 0 }
 0x186   : > { %v7675_v45 = vadd.f32 %v722_v44, %v7607_v56  ;;  %6629 = vmatpush3.bf16.msra.mxu1 %v3544_v37  ;;  %v724_v46 = vpop.f32.mrb[18].mxu0  ;;  %6630 = vmatprep.mubr.msk.bf16.mxu1 %vm6799_vm3, %v6798_v29  ;;  %v3731_v47 = vpop.permute.xlu0 %3730 }
 0x187   : > { %v725_v49 = vpop.f32.mrb[19].mxu0  ;;  %6396 = vmatprep.subr.msk.bf16.mxu1 %vm264_vm1, %v3738_v42  ;;  %v3733_v50 = vpop.permute.xlu1 %3732  ;;  %v3740_v53 = vsel %vm3734_vm4, %v3729_v39, %v3731_v47 }
 0x188   : > { %v761_v52 = vpop.f32.mrb[16].mxu1  ;;  %5481 = vrot.lane.b32.xlu0 %v6874_v5, %s6815_s30  ;;  %v3741_v19 = vsel %vm3734_vm4, %v3731_v47, %v3733_v50 }
 0x189   : > { %v7686_v54 = vadd.f32 %v761_v52, %v7618_v7  ;;  %v763_v55 = vpop.f32.mrb[17].mxu1  ;;  %6391 = vmatmul.mubr.msk.bf16.vlgmr.msra.gmra.mrb[124].mxu0 %vm260_vm2, %v7644_v25  ;;  %5483 = vrot.lane.b32.xlu1 %v6869_v3, %s6815_s30  ;;  %v3764_v26 = vsel %vm264_vm1, %v3741_v19, 0 }
 0x18a   : > { %v7693_v56 = vadd.f32 %v763_v55, %v7624_v13  ;;  %3767 = vmatpush1.bf16.msra.mxu0 %v3746_v48  ;;  %v765_v57 = vpop.f32.mrb[18].mxu1  ;;  %3798 = vmatprep.mubr.bf16.mxu0 %v6789_v0  ;;  %v3939_v58 = vpop.permute.xlu0 %3938 }
 0x18b   : > { %v766_v61 = vpop.f32.mrb[19].mxu1  ;;  %6398 = vmatprep.subr.msk.bf16.mxu0 %vm264_vm1, %v3740_v53  ;;  %v3941_v62 = vpop.permute.xlu1 %3940  ;;  %v7784_v57 = vld [vmem:[%s8135_s1 + $0x44] sm:$0xf] }
 0x18c   : > { %v802_v1 = vpop.f32.mrb[20].mxu0  ;;  %5485 = vrot.lane.b32.xlu0 %v6877_v6, %s6815_s30  ;;  %v3955_v30 = vsel %vm3954_vm5, %v3939_v58, %v3941_v62 }
 0x18d   : > { %v7702_v2 = vadd.f32 %v802_v1, %v7633_v21  ;;  %v804_v7 = vpop.f32.mrb[21].mxu0  ;;  %6631 = vmatmul.mubr.msk.bf16.vlgmr.msra.gmra.mrb[124].mxu1 %vm260_vm2, %v7644_v25  ;;  %5487 = vrot.lane.b32.xlu1 %v6884_v9, %s6815_s30  ;;  %v3966_v37 = vsel %vm264_vm1, %v3955_v30, 0 }
 0x18e   : > { %v7709_v10 = vadd.f32 %v804_v7, %v7639_v23  ;;  %3808 = vmatpush1.bf16.msra.mxu1 %v3752_v59  ;;  %v806_v13 = vpop.f32.mrb[22].mxu0  ;;  %3839 = vmatprep.mubr.bf16.mxu1 %v6789_v0  ;;  %v3943_v15 = vpop.permute.xlu0 %3942 }
 0x18f   : > { %v807_v17 = vpop.f32.mrb[23].mxu0  ;;  %6634 = vmatprep.subr.bf16.mxu1 %v6798_v29  ;;  %v3945_v18 = vpop.permute.xlu1 %3944  ;;  %v3956_v21 = vsel %vm3954_vm5, %v3941_v62, %v3943_v15 }
 0x190   : > { %v843_v20 = vpop.f32.mrb[20].mxu1  ;;  %5489 = vrot.lane.b32.xlu0 %v6882_v8, %s6815_s30  ;;  %v3957_v40 = vsel %vm3954_vm5, %v3943_v15, %v3945_v18 }
 0x191   : > { %v7724_v22 = vadd.f32 %v843_v20, %v7654_v34  ;;  %v6554_v23 = vpop.f32.mrb[21].mxu1  ;;  %6395 = vmatmul.mubr.msk.bf16.vlgmr.msra.gmra.mrb[128].mxu0 %vm260_vm2, %v7714_v14  ;;  %5491 = vrot.lane.b32.xlu1 %v6889_v11, %s6815_s30  ;;  %v3972_v48 = vsel %vm264_vm1, %v3957_v40, 0 }
 0x192   : > { %3849 = vmatpush1.bf16.msra.mxu0 %v3758_v16  ;;  %v846_v24 = vpop.f32.mrb[22].mxu1  ;;  %3880 = vmatprep.mubr.bf16.mxu0 %v6789_v0  ;;  %v3947_v25 = vpop.permute.xlu0 %3946 }
 0x193   : > { %v6555_v27 = vpop.f32.mrb[23].mxu1  ;;  %6402 = vmatprep.subr.msk.bf16.mxu0 %vm264_vm1, %v3956_v21  ;;  %v3949_v28 = vpop.permute.xlu1 %3948  ;;  %v3958_v32 = vsel %vm3954_vm5, %v3945_v18, %v3947_v25 }
 0x194   : > { %v940_v31 = vpop.f32.mrb[24].mxu0  ;;  %5493 = vrot.lane.b32.xlu0 %v6891_v12, %s6815_s30  ;;  %v3959_v51 = vsel %vm3954_vm5, %v3947_v25, %v3949_v28 }
 0x195   : > { %v7738_v33 = vadd.f32 %v940_v31, %v7668_v43  ;;  %v942_v34 = vpop.f32.mrb[25].mxu0  ;;  %6397 = vmatmul.mubr.msk.bf16.vlgmr.msra.gmra.mrb[128].mxu1 %vm260_vm2, %v7714_v14  ;;  %5495 = vrot.lane.b32.xlu1 %v7405_v60, %s6815_s30  ;;  %v3978_v59 = vsel %vm264_vm1, %v3959_v51, 0 }
 0x196   : > { %v7745_v4 = vadd.f32 %v942_v34, %v7675_v45  ;;  %6635 = vmatpush3.bf16.msra.mxu1 %v3764_v26  ;;  %v944_v35 = vpop.f32.mrb[26].mxu0  ;;  %6636 = vmatprep.mubr.msk.bf16.mxu1 %vm6799_vm3, %v6798_v29  ;;  %v3951_v36 = vpop.permute.xlu0 %3950 }
 0x197   : > { %v945_v38 = vpop.f32.mrb[27].mxu0  ;;  %6404 = vmatprep.subr.msk.bf16.mxu1 %vm264_vm1, %v3958_v32  ;;  %v3953_v39 = vpop.permute.xlu1 %3952  ;;  %v3960_v42 = vsel %vm3954_vm5, %v3949_v28, %v3951_v36 }
 0x198   : > { %v981_v41 = vpop.f32.mrb[24].mxu1  ;;  %5701 = vrot.lane.b32.xlu0 %v6874_v5, %s6816_s6  ;;  %v3961_v63 = vsel %vm3954_vm5, %v3951_v36, %v3953_v39 }
 0x199   : > { %v7756_v43 = vadd.f32 %v981_v41, %v7686_v54  ;;  %v983_v44 = vpop.f32.mrb[25].mxu1  ;;  %6399 = vmatmul.mubr.msk.bf16.vlgmr.msra.gmra.mrb[132].mxu0 %vm260_vm2, %v7714_v14  ;;  %5703 = vrot.lane.b32.xlu1 %v6869_v3, %s6816_s6  ;;  %v3984_v15 = vsel %vm264_vm1, %v3961_v63, 0 }
 0x19a   : > { %v7763_v45 = vadd.f32 %v983_v44, %v7693_v56  ;;  %3987 = vmatpush1.bf16.msra.mxu0 %v3966_v37  ;;  %v985_v46 = vpop.f32.mrb[26].mxu1  ;;  %4018 = vmatprep.mubr.bf16.mxu0 %v6789_v0  ;;  %v4162_v47 = vpop.permute.xlu0 %4161 }
 0x19b   : > { %v986_v49 = vpop.f32.mrb[27].mxu1  ;;  %6406 = vmatprep.subr.msk.bf16.mxu0 %vm264_vm1, %v3960_v42  ;;  %v4164_v50 = vpop.permute.xlu1 %4163 }
 0x19c   : > { %v1022_v52 = vpop.f32.mrb[28].mxu0  ;;  %5705 = vrot.lane.b32.xlu0 %v6877_v6, %s6816_s6  ;;  %v4178_v18 = vsel %vm4177_vm6, %v4162_v47, %v4164_v50 }
 0x19d   : > { %v7772_v53 = vadd.f32 %v1022_v52, %v7702_v2  ;;  %v1024_v54 = vpop.f32.mrb[29].mxu0  ;;  %6637 = vmatmul.mubr.msk.bf16.vlgmr.msra.gmra.mrb[132].mxu1 %vm260_vm2, %v7714_v14  ;;  %5707 = vrot.lane.b32.xlu1 %v6884_v9, %s6816_s6  ;;  %v4189_v26 = vsel %vm264_vm1, %v4178_v18, 0 }
 0x19e   : > { %v7779_v55 = vadd.f32 %v1024_v54, %v7709_v10  ;;  %4028 = vmatpush1.bf16.msra.mxu1 %v3972_v48  ;;  %v1026_v56 = vpop.f32.mrb[30].mxu0  ;;  %4059 = vmatprep.mubr.bf16.mxu1 %v6789_v0  ;;  %v4166_v58 = vpop.permute.xlu0 %4165 }
 0x19f   : > { %v1027_v61 = vpop.f32.mrb[31].mxu0  ;;  %6640 = vmatprep.subr.bf16.mxu1 %v6798_v29  ;;  %v4168_v62 = vpop.permute.xlu1 %4167  ;;  %v4179_v2 = vsel %vm4177_vm6, %v4164_v50, %v4166_v58 }
 0x1a0   : > { %v1063_v1 = vpop.f32.mrb[28].mxu1  ;;  %5709 = vrot.lane.b32.xlu0 %v6882_v8, %s6816_s6  ;;  %v4180_v30 = vsel %vm4177_vm6, %v4166_v58, %v4168_v62 }
 0x1a1   : > { %v7794_v7 = vadd.f32 %v1063_v1, %v7724_v22  ;;  %v6560_v10 = vpop.f32.mrb[29].mxu1  ;;  %6403 = vmatmul.mubr.msk.bf16.vlgmr.msra.gmra.mrb[136].mxu0 %vm260_vm2, %v7784_v57  ;;  %5711 = vrot.lane.b32.xlu1 %v6889_v11, %s6816_s6 }
 0x1a2   : > { %4069 = vmatpush1.bf16.msra.mxu0 %v3978_v59  ;;  %v1066_v13 = vpop.f32.mrb[30].mxu1  ;;  %4100 = vmatprep.mubr.bf16.mxu0 %v6789_v0  ;;  %v4170_v14 = vpop.permute.xlu0 %4169 }
 0x1a3   : > { %v6561_v16 = vpop.f32.mrb[31].mxu1  ;;  %6411 = vmatprep.subr.msk.bf16.mxu0 %vm264_vm1, %v4179_v2  ;;  %v4172_v17 = vpop.permute.xlu1 %4171  ;;  %v4181_v20 = vsel %vm4177_vm6, %v4168_v62, %v4170_v14 }
 0x1a4   : > { %v1160_v19 = vpop.f32.mrb[32].mxu0  ;;  %5713 = vrot.lane.b32.xlu0 %v6891_v12, %s6816_s6  ;;  %v4182_v39 = vsel %vm4177_vm6, %v4170_v14, %v4172_v17 }
 0x1a5   : > { %v7808_v21 = vadd.f32 %v1160_v19, %v7738_v33  ;;  %v1162_v22 = vpop.f32.mrb[33].mxu0  ;;  %6405 = vmatmul.mubr.msk.bf16.vlgmr.msra.gmra.mrb[136].mxu1 %vm260_vm2, %v7784_v57  ;;  %5715 = vrot.lane.b32.xlu1 %v7405_v60, %s6816_s6 }
 0x1a6   : > { %v7815_v23 = vadd.f32 %v1162_v22, %v7745_v4  ;;  %6641 = vmatpush3.bf16.msra.mxu1 %v3984_v15  ;;  %v1164_v24 = vpop.f32.mrb[34].mxu0  ;;  %6642 = vmatprep.mubr.msk.bf16.mxu1 %vm6799_vm3, %v6798_v29  ;;  %v4174_v25 = vpop.permute.xlu0 %4173 }
 0x1a7   : > { %v1165_v27 = vpop.f32.mrb[35].mxu0  ;;  %6413 = vmatprep.subr.msk.bf16.mxu1 %vm264_vm1, %v4181_v20  ;;  %v4176_v28 = vpop.permute.xlu1 %4175  ;;  %v4183_v32 = vsel %vm4177_vm6, %v4172_v17, %v4174_v25 }
 0x1a8   : > { %v1201_v31 = vpop.f32.mrb[32].mxu1  ;;  %5921 = vrot.lane.b32.xlu0 %v6874_v5, %s6817_s9  ;;  %v4195_v5 = vsel %vm264_vm1, %v4180_v30, 0  ;;  %v6418_v27 = vld [vmem:[%s8135_s1 + $0x4c] sm:$0xf] }
 0x1a9   : > { %v7826_v33 = vadd.f32 %v1201_v31, %v7756_v43  ;;  %v1203_v34 = vpop.f32.mrb[33].mxu1  ;;  %6407 = vmatmul.mubr.msk.bf16.vlgmr.msra.gmra.mrb[140].mxu0 %vm260_vm2, %v7784_v57  ;;  %5923 = vrot.lane.b32.xlu1 %v6869_v3, %s6817_s9 }
 0x1aa   : > { %v7833_v4 = vadd.f32 %v1203_v34, %v7763_v45  ;;  %4210 = vmatpush1.bf16.msra.mxu0 %v4189_v26  ;;  %v1205_v35 = vpop.f32.mrb[34].mxu1  ;;  %4241 = vmatprep.mubr.bf16.mxu0 %v6789_v0  ;;  %v4382_v36 = vpop.permute.xlu0 %4381  ;;  %v4201_v45 = vsel %vm264_vm1, %v4182_v39, 0 }
 0x1ab   : > { %v1206_v37 = vpop.f32.mrb[35].mxu1  ;;  %6415 = vmatprep.subr.msk.bf16.mxu0 %vm264_vm1, %v4183_v32  ;;  %v4384_v38 = vpop.permute.xlu1 %4383 }
 0x1ac   : > { %v1242_v40 = vpop.f32.mrb[36].mxu0  ;;  %5925 = vrot.lane.b32.xlu0 %v6877_v6, %s6817_s9  ;;  %v6409_v6 = vld [vmem:[%s8135_s1 + $0x48] sm:$0xf]  ;;  %v4398_v56 = vsel %vm4397_vm7, %v4382_v36, %v4384_v38 }
 0x1ad   : > { %v7842_v3 = vadd.f32 %v1242_v40, %v7772_v53  ;;  %v1244_v41 = vpop.f32.mrb[37].mxu0  ;;  %6643 = vmatmul.mubr.msk.bf16.vlgmr.msra.gmra.mrb[140].mxu1 %vm260_vm2, %v7784_v57  ;;  %5927 = vrot.lane.b32.xlu1 %v6884_v9, %s6817_s9  ;;  %v4184_v9 = vsel %vm4177_vm6, %v4174_v25, %v4176_v28  ;;  %v4409_v1 = vsel %vm264_vm1, %v4398_v56, 0 }
 0x1ae   : > { %v7849_v42 = vadd.f32 %v1244_v41, %v7779_v55  ;;  %4251 = vmatpush1.bf16.msra.mxu1 %v4195_v5  ;;  %v1246_v43 = vpop.f32.mrb[38].mxu0  ;;  %4282 = vmatprep.mubr.bf16.mxu1 %v6789_v0  ;;  %v4386_v44 = vpop.permute.xlu0 %4385  ;;  %v4207_v54 = vsel %vm264_vm1, %v4184_v9, 0 }
 0x1af   : > { %v1247_v46 = vpop.f32.mrb[39].mxu0  ;;  %6646 = vmatprep.subr.bf16.mxu1 %v6798_v29  ;;  %v4388_v47 = vpop.permute.xlu1 %4387  ;;  %v4399_v49 = vsel %vm4397_vm7, %v4384_v38, %v4386_v44 }
 0x1b0   : > { %v1283_v48 = vpop.f32.mrb[36].mxu1  ;;  %5929 = vrot.lane.b32.xlu0 %v6882_v8, %s6817_s9 }
 0x1b1   : > { %v7862_v50 = vadd.f32 %v1283_v48, %v7794_v7  ;;  %v6566_v51 = vpop.f32.mrb[37].mxu1  ;;  %6412 = vmatmul.mubr.msk.bf16.vlgmr.msra.gmra.mrb[144].mxu0 %vm260_vm2, %v6409_v6  ;;  %5931 = vrot.lane.b32.xlu1 %v6889_v11, %s6817_s9  ;;  %v4400_v7 = vsel %vm4397_vm7, %v4386_v44, %v4388_v47 }
 0x1b2   : > { %4292 = vmatpush1.bf16.msra.mxu0 %v4201_v45  ;;  %v1286_v52 = vpop.f32.mrb[38].mxu1  ;;  %4323 = vmatprep.mubr.bf16.mxu0 %v6789_v0  ;;  %v4390_v53 = vpop.permute.xlu0 %4389  ;;  %v4415_v18 = vsel %vm264_vm1, %v4400_v7, 0 }
 0x1b3   : > { %v6567_v55 = vpop.f32.mrb[39].mxu1  ;;  %6419 = vmatprep.subr.msk.bf16.mxu0 %vm264_vm1, %v4399_v49  ;;  %v4392_v8 = vpop.permute.xlu1 %4391  ;;  %v4401_v58 = vsel %vm4397_vm7, %v4388_v47, %v4390_v53 }
 0x1b4   : > { %v1380_v57 = vpop.f32.mrb[40].mxu0  ;;  %5933 = vrot.lane.b32.xlu0 %v6891_v12, %s6817_s9 }
 0x1b5   : > { %v1509_v11 = vadd.f32 %v1380_v57, %v7808_v21  ;;  %v1382_v59 = vpop.f32.mrb[41].mxu0  ;;  %6414 = vmatmul.mubr.msk.bf16.vlgmr.msra.gmra.mrb[144].mxu1 %vm260_vm2, %v6409_v6  ;;  %5935 = vrot.lane.b32.xlu1 %v7405_v60, %s6817_s9  ;;  %v4402_v21 = vsel %vm4397_vm7, %v4390_v53, %v4392_v8 }
 0x1b6   : > { %v1510_v61 = vadd.f32 %v1382_v59, %v7815_v23  ;;  %6647 = vmatpush3.bf16.msra.mxu1 %v4207_v54  ;;  %v1384_v62 = vpop.f32.mrb[42].mxu0  ;;  %6648 = vmatprep.mubr.msk.bf16.mxu1 %vm6799_vm3, %v6798_v29  ;;  %v4394_v63 = vpop.permute.xlu0 %4393  ;;  %v4421_v30 = vsel %vm264_vm1, %v4402_v21, 0 }
 0x1b7   : > { %v1385_v2 = vpop.f32.mrb[43].mxu0  ;;  %6421 = vmatprep.subr.msk.bf16.mxu1 %vm264_vm1, %v4401_v58  ;;  %v4396_v12 = vpop.permute.xlu1 %4395  ;;  %v4403_v13 = vsel %vm4397_vm7, %v4392_v8, %v4394_v63 }
 0x1b8   : > { %v1421_v10 = vpop.f32.mrb[40].mxu1  ;;  %v6426_v2 = vld [vmem:[%s8135_s1 + $0x50] sm:$0xf] }
 0x1b9   : > { %v1511_v60 = vadd.f32 %v1421_v10, %v7826_v33  ;;  %v1423_v14 = vpop.f32.mrb[41].mxu1  ;;  %6416 = vmatmul.mubr.msk.bf16.vlgmr.msra.gmra.mrb[148].mxu0 %vm260_vm2, %v6409_v6  ;;  %v4404_v33 = vsel %vm4397_vm7, %v4394_v63, %v4396_v12 }
 0x1ba   : > { %v1512_v15 = vadd.f32 %v1423_v14, %v7833_v4  ;;  %4430 = vmatpush1.bf16.msra.mxu0 %v4409_v1  ;;  %v1425_v16 = vpop.f32.mrb[42].mxu1  ;;  %4461 = vmatprep.mubr.bf16.mxu0 %v6789_v0  ;;  %v4602_v17 = vpop.permute.xlu0 %4601  ;;  %v4427_v38 = vsel %vm264_vm1, %v4404_v33, 0 }
 0x1bb   : > { %v1426_v19 = vpop.f32.mrb[43].mxu1  ;;  %6423 = vmatprep.subr.msk.bf16.mxu0 %vm264_vm1, %v4403_v13  ;;  %v4604_v20 = vpop.permute.xlu1 %4603 }
 0x1bc   : > { %v1462_v22 = vpop.f32.mrb[44].mxu0 }
 0x1bd   : > { %v1513_v23 = vadd.f32 %v1462_v22, %v7842_v3  ;;  %v1464_v24 = vpop.f32.mrb[45].mxu0  ;;  %6649 = vmatmul.mubr.msk.bf16.vlgmr.msra.gmra.mrb[148].mxu1 %vm260_vm2, %v6409_v6  ;;  %v4618_v3 = vsel %vm4617_vm8, %v4602_v17, %v4604_v20 }
 0x1be   : > { %v1514_v25 = vadd.f32 %v1464_v24, %v7849_v42  ;;  %4471 = vmatpush1.bf16.msra.mxu1 %v4415_v18  ;;  %v1466_v26 = vpop.f32.mrb[46].mxu0  ;;  %4502 = vmatprep.mubr.bf16.mxu1 %v6789_v0  ;;  %v4606_v28 = vpop.permute.xlu0 %4605  ;;  %v4629_v47 = vsel %vm264_vm1, %v4618_v3, 0 }
 0x1bf   : > { %v1467_v31 = vpop.f32.mrb[47].mxu0  ;;  %6652 = vmatprep.subr.bf16.mxu1 %v6798_v29  ;;  %v4608_v32 = vpop.permute.xlu1 %4607  ;;  %v4619_v4 = vsel %vm4617_vm8, %v4604_v20, %v4606_v28 }
 0x1c0   : > { %v1503_v34 = vpop.f32.mrb[44].mxu1  ;;  %v4620_v49 = vsel %vm4617_vm8, %v4606_v28, %v4608_v32 }
 0x1c1   : > { %v1515_v35 = vadd.f32 %v1503_v34, %v7862_v50  ;;  %v6572_v36 = vpop.f32.mrb[45].mxu1  ;;  %6420 = vmatmul.mubr.msk.bf16.vlgmr.msra.gmra.mrb[152].mxu0 %vm260_vm2, %v6418_v27  ;;  %v4635_v56 = vsel %vm264_vm1, %v4620_v49, 0 }
 0x1c2   : > { %4512 = vmatpush1.bf16.msra.mxu0 %v4421_v30  ;;  %v1506_v5 = vpop.f32.mrb[46].mxu1  ;;  %4543 = vmatprep.mubr.bf16.mxu0 %v6789_v0  ;;  %v4610_v37 = vpop.permute.xlu0 %4609 }
 0x1c3   : > { %v6573_v39 = vpop.f32.mrb[47].mxu1  ;;  %6427 = vmatprep.subr.msk.bf16.mxu0 %vm264_vm1, %v4619_v4  ;;  %v4612_v40 = vpop.permute.xlu1 %4611  ;;  %v4621_v42 = vsel %vm4617_vm8, %v4608_v32, %v4610_v37 }
 0x1c4   : > { %v1600_v41 = vpop.f32.mrb[48].mxu0 }
 0x1c5   : > { %v1729_v43 = vadd.f32 %v1600_v41, %v1509_v11  ;;  %v1602_v6 = vpop.f32.mrb[49].mxu0  ;;  %6422 = vmatmul.mubr.msk.bf16.vlgmr.msra.gmra.mrb[152].mxu1 %vm260_vm2, %v6418_v27  ;;  %v4622_v11 = vsel %vm4617_vm8, %v4610_v37, %v4612_v40 }
 0x1c6   : > { %v1730_v44 = vadd.f32 %v1602_v6, %v1510_v61  ;;  %6653 = vmatpush3.bf16.msra.mxu1 %v4427_v38  ;;  %v1604_v45 = vpop.f32.mrb[50].mxu0  ;;  %6654 = vmatprep.mubr.msk.bf16.mxu1 %vm6799_vm3, %v6798_v29  ;;  %v4614_v46 = vpop.permute.xlu0 %4613  ;;  %v4641_v7 = vsel %vm264_vm1, %v4622_v11, 0 }
 0x1c7   : > { %v1605_v9 = vpop.f32.mrb[51].mxu0  ;;  %6429 = vmatprep.subr.msk.bf16.mxu1 %vm264_vm1, %v4621_v42  ;;  %v4616_v48 = vpop.permute.xlu1 %4615  ;;  %v4623_v51 = vsel %vm4617_vm8, %v4612_v40, %v4614_v46 }
 0x1c8   : > { %v1641_v50 = vpop.f32.mrb[48].mxu1  ;;  %v6434_v9 = vld [vmem:[%s8135_s1 + $0x54] sm:$0xf] }
 0x1c9   : > { %v1731_v52 = vadd.f32 %v1641_v50, %v1511_v60  ;;  %v1643_v53 = vpop.f32.mrb[49].mxu1  ;;  %6424 = vmatmul.mubr.msk.bf16.vlgmr.msra.gmra.mrb[156].mxu0 %vm260_vm2, %v6418_v27  ;;  %v4624_v60 = vsel %vm4617_vm8, %v4614_v46, %v4616_v48 }
 0x1ca   : > { %v1732_v54 = vadd.f32 %v1643_v53, %v1512_v15  ;;  %4650 = vmatpush1.bf16.msra.mxu0 %v4629_v47  ;;  %v1645_v55 = vpop.f32.mrb[50].mxu1  ;;  %4681 = vmatprep.mubr.bf16.mxu0 %v6789_v0  ;;  %v4822_v8 = vpop.permute.xlu0 %4821  ;;  %v4647_v20 = vsel %vm264_vm1, %v4624_v60, 0 }
 0x1cb   : > { %v1646_v57 = vpop.f32.mrb[51].mxu1  ;;  %6431 = vmatprep.subr.msk.bf16.mxu0 %vm264_vm1, %v4623_v51  ;;  %v4824_v58 = vpop.permute.xlu1 %4823 }
 0x1cc   : > { %v1682_v59 = vpop.f32.mrb[52].mxu0 }
 0x1cd   : > { %v1733_v61 = vadd.f32 %v1682_v59, %v1513_v23  ;;  %v1684_v62 = vpop.f32.mrb[53].mxu0  ;;  %6655 = vmatmul.mubr.msk.bf16.vlgmr.msra.gmra.mrb[156].mxu1 %vm260_vm2, %v6418_v27  ;;  %v4838_v23 = vsel %vm4837_vm9, %v4822_v8, %v4824_v58 }
 0x1ce   : > { %v1734_v63 = vadd.f32 %v1684_v62, %v1514_v25  ;;  %4691 = vmatpush1.bf16.msra.mxu1 %v4635_v56  ;;  %v1686_v1 = vpop.f32.mrb[54].mxu0  ;;  %4722 = vmatprep.mubr.bf16.mxu1 %v6789_v0  ;;  %v4826_v12 = vpop.permute.xlu0 %4825  ;;  %v4849_v32 = vsel %vm264_vm1, %v4838_v23, 0 }
 0x1cf   : > { %v1687_v10 = vpop.f32.mrb[55].mxu0  ;;  %6658 = vmatprep.subr.bf16.mxu1 %v6798_v29  ;;  %v4828_v13 = vpop.permute.xlu1 %4827  ;;  %v4839_v15 = vsel %vm4837_vm9, %v4824_v58, %v4826_v12 }
 0x1d0   : > { %v1723_v14 = vpop.f32.mrb[52].mxu1  ;;  %v4840_v4 = vsel %vm4837_vm9, %v4826_v12, %v4828_v13 }
 0x1d1   : > { %v1735_v16 = vadd.f32 %v1723_v14, %v1515_v35  ;;  %v6578_v17 = vpop.f32.mrb[53].mxu1  ;;  %6428 = vmatmul.mubr.msk.bf16.vlgmr.msra.gmra.mrb[160].mxu0 %vm260_vm2, %v6426_v2  ;;  %v4855_v3 = vsel %vm264_vm1, %v4840_v4, 0 }
 0x1d2   : > { %4732 = vmatpush1.bf16.msra.mxu0 %v4641_v7  ;;  %v1726_v18 = vpop.f32.mrb[54].mxu1  ;;  %4763 = vmatprep.mubr.bf16.mxu0 %v6789_v0  ;;  %v4830_v19 = vpop.permute.xlu0 %4829 }
 0x1d3   : > { %v6579_v21 = vpop.f32.mrb[55].mxu1  ;;  %6435 = vmatprep.subr.msk.bf16.mxu0 %vm264_vm1, %v4839_v15  ;;  %v4832_v22 = vpop.permute.xlu1 %4831  ;;  %v4841_v25 = vsel %vm4837_vm9, %v4828_v13, %v4830_v19 }
 0x1d4   : > { %v1820_v24 = vpop.f32.mrb[56].mxu0 }
 0x1d5   : > { %v1949_v26 = vadd.f32 %v1820_v24, %v1729_v43  ;;  %v1822_v27 = vpop.f32.mrb[57].mxu0  ;;  %6430 = vmatmul.mubr.msk.bf16.vlgmr.msra.gmra.mrb[160].mxu1 %vm260_vm2, %v6426_v2  ;;  %v4842_v43 = vsel %vm4837_vm9, %v4830_v19, %v4832_v22 }
 0x1d6   : > { %v1950_v28 = vadd.f32 %v1822_v27, %v1730_v44  ;;  %6659 = vmatpush3.bf16.msra.mxu1 %v4647_v20  ;;  %v1824_v30 = vpop.f32.mrb[58].mxu0  ;;  %6660 = vmatprep.mubr.msk.bf16.mxu1 %vm6799_vm3, %v6798_v29  ;;  %v4834_v31 = vpop.permute.xlu0 %4833  ;;  %v4861_v49 = vsel %vm264_vm1, %v4842_v43, 0 }
 0x1d7   : > { %v1825_v33 = vpop.f32.mrb[59].mxu0  ;;  %6437 = vmatprep.subr.msk.bf16.mxu1 %vm264_vm1, %v4841_v25  ;;  %v4836_v34 = vpop.permute.xlu1 %4835  ;;  %v4843_v36 = vsel %vm4837_vm9, %v4832_v22, %v4834_v31 }
 0x1d8   : > { %v1861_v35 = vpop.f32.mrb[56].mxu1  ;;  %v6442_v33 = vld [vmem:[%s8135_s1 + $0x58] sm:$0xf] }
 0x1d9   : > { %v1951_v5 = vadd.f32 %v1861_v35, %v1731_v52  ;;  %v1863_v37 = vpop.f32.mrb[57].mxu1  ;;  %6432 = vmatmul.mubr.msk.bf16.vlgmr.msra.gmra.mrb[164].mxu0 %vm260_vm2, %v6426_v2  ;;  %v4844_v52 = vsel %vm4837_vm9, %v4834_v31, %v4836_v34 }
 0x1da   : > { %v1952_v38 = vadd.f32 %v1863_v37, %v1732_v54  ;;  %4870 = vmatpush1.bf16.msra.mxu0 %v4849_v32  ;;  %v1865_v39 = vpop.f32.mrb[58].mxu1  ;;  %4901 = vmatprep.mubr.bf16.mxu0 %v6789_v0  ;;  %v5042_v40 = vpop.permute.xlu0 %5041  ;;  %v4867_v58 = vsel %vm264_vm1, %v4844_v52, 0 }
 0x1db   : > { %v1866_v41 = vpop.f32.mrb[59].mxu1  ;;  %6439 = vmatprep.subr.msk.bf16.mxu0 %vm264_vm1, %v4843_v36  ;;  %v5044_v42 = vpop.permute.xlu1 %5043 }
 0x1dc   : > { %v1902_v6 = vpop.f32.mrb[60].mxu0 }
 0x1dd   : > { %v1953_v44 = vadd.f32 %v1902_v6, %v1733_v61  ;;  %v1904_v45 = vpop.f32.mrb[61].mxu0  ;;  %6661 = vmatmul.mubr.msk.bf16.vlgmr.msra.gmra.mrb[164].mxu1 %vm260_vm2, %v6426_v2  ;;  %v5058_v61 = vsel %vm5057_vm10, %v5042_v40, %v5044_v42 }
 0x1de   : > { %v1954_v46 = vadd.f32 %v1904_v45, %v1734_v63  ;;  %4911 = vmatpush1.bf16.msra.mxu1 %v4855_v3  ;;  %v1906_v47 = vpop.f32.mrb[62].mxu0  ;;  %4942 = vmatprep.mubr.bf16.mxu1 %v6789_v0  ;;  %v5046_v48 = vpop.permute.xlu0 %5045  ;;  %v5069_v13 = vsel %vm264_vm1, %v5058_v61, 0 }
 0x1df   : > { %v1907_v50 = vpop.f32.mrb[63].mxu0  ;;  %6664 = vmatprep.subr.bf16.mxu1 %v6798_v29  ;;  %v5048_v51 = vpop.permute.xlu1 %5047  ;;  %v5059_v54 = vsel %vm5057_vm10, %v5044_v42, %v5046_v48 }
 0x1e0   : > { %v1943_v53 = vpop.f32.mrb[60].mxu1  ;;  %v5060_v15 = vsel %vm5057_vm10, %v5046_v48, %v5048_v51 }
 0x1e1   : > { %v1955_v55 = vadd.f32 %v1943_v53, %v1735_v16  ;;  %v6584_v8 = vpop.f32.mrb[61].mxu1  ;;  %6436 = vmatmul.mubr.msk.bf16.vlgmr.msra.gmra.mrb[168].mxu0 %vm260_vm2, %v6434_v9  ;;  %v5075_v23 = vsel %vm264_vm1, %v5060_v15, 0 }
 0x1e2   : > { %4952 = vmatpush1.bf16.msra.mxu0 %v4861_v49  ;;  %v1946_v56 = vpop.f32.mrb[62].mxu1  ;;  %4983 = vmatprep.mubr.bf16.mxu0 %v6789_v0  ;;  %v5050_v57 = vpop.permute.xlu0 %5049 }
 0x1e3   : > { %v6585_v11 = vpop.f32.mrb[63].mxu1  ;;  %6443 = vmatprep.subr.msk.bf16.mxu0 %vm264_vm1, %v5059_v54  ;;  %v5052_v59 = vpop.permute.xlu1 %5051  ;;  %v5061_v63 = vsel %vm5057_vm10, %v5048_v51, %v5050_v57 }
 0x1e4   : > { %v2040_v62 = vpop.f32.mrb[64].mxu0 }
 0x1e5   : > { %v2169_v1 = vadd.f32 %v2040_v62, %v1949_v26  ;;  %v2042_v2 = vpop.f32.mrb[65].mxu0  ;;  %6438 = vmatmul.mubr.msk.bf16.vlgmr.msra.gmra.mrb[168].mxu1 %vm260_vm2, %v6434_v9  ;;  %v5062_v26 = vsel %vm5057_vm10, %v5050_v57, %v5052_v59 }
 0x1e6   : > { %v2170_v12 = vadd.f32 %v2042_v2, %v1950_v28  ;;  %6665 = vmatpush3.bf16.msra.mxu1 %v4867_v58  ;;  %v2044_v7 = vpop.f32.mrb[66].mxu0  ;;  %6666 = vmatprep.mubr.msk.bf16.mxu1 %vm6799_vm3, %v6798_v29  ;;  %v5054_v10 = vpop.permute.xlu0 %5053  ;;  %v5081_v4 = vsel %vm264_vm1, %v5062_v26, 0 }
 0x1e7   : > { %v2045_v60 = vpop.f32.mrb[67].mxu0  ;;  %6445 = vmatprep.subr.msk.bf16.mxu1 %vm264_vm1, %v5061_v63  ;;  %v5056_v14 = vpop.permute.xlu1 %5055  ;;  %v5063_v17 = vsel %vm5057_vm10, %v5052_v59, %v5054_v10 }
 0x1e8   : > { %v2081_v16 = vpop.f32.mrb[64].mxu1  ;;  %v6450_v60 = vld [vmem:[%s8135_s1 + $0x5c] sm:$0xf] }
 0x1e9   : > { %v2171_v18 = vadd.f32 %v2081_v16, %v1951_v5  ;;  %v2083_v19 = vpop.f32.mrb[65].mxu1  ;;  %6440 = vmatmul.mubr.msk.bf16.vlgmr.msra.gmra.mrb[172].mxu0 %vm260_vm2, %v6434_v9  ;;  %v5064_v5 = vsel %vm5057_vm10, %v5054_v10, %v5056_v14 }
 0x1ea   : > { %v2172_v20 = vadd.f32 %v2083_v19, %v1952_v38  ;;  %5090 = vmatpush1.bf16.msra.mxu0 %v5069_v13  ;;  %v2085_v21 = vpop.f32.mrb[66].mxu1  ;;  %5121 = vmatprep.mubr.bf16.mxu0 %v6789_v0  ;;  %v5262_v22 = vpop.permute.xlu0 %5261  ;;  %v5087_v42 = vsel %vm264_vm1, %v5064_v5, 0 }
 0x1eb   : > { %v2086_v24 = vpop.f32.mrb[67].mxu1  ;;  %6447 = vmatprep.subr.msk.bf16.mxu0 %vm264_vm1, %v5063_v17  ;;  %v5264_v25 = vpop.permute.xlu1 %5263 }
 0x1ec   : > { %v2122_v27 = vpop.f32.mrb[68].mxu0 }
 0x1ed   : > { %v2173_v28 = vadd.f32 %v2122_v27, %v1953_v44  ;;  %v2124_v30 = vpop.f32.mrb[69].mxu0  ;;  %6667 = vmatmul.mubr.msk.bf16.vlgmr.msra.gmra.mrb[172].mxu1 %vm260_vm2, %v6434_v9  ;;  %v5278_v44 = vsel %vm5277_vm11, %v5262_v22, %v5264_v25 }
 0x1ee   : > { %v2174_v31 = vadd.f32 %v2124_v30, %v1954_v46  ;;  %5131 = vmatpush1.bf16.msra.mxu1 %v5075_v23  ;;  %v2126_v32 = vpop.f32.mrb[70].mxu0  ;;  %5162 = vmatprep.mubr.bf16.mxu1 %v6789_v0  ;;  %v5266_v34 = vpop.permute.xlu0 %5265  ;;  %v5289_v51 = vsel %vm264_vm1, %v5278_v44, 0 }
 0x1ef   : > { %v2127_v35 = vpop.f32.mrb[71].mxu0  ;;  %6670 = vmatprep.subr.bf16.mxu1 %v6798_v29  ;;  %v5268_v36 = vpop.permute.xlu1 %5267  ;;  %v5279_v38 = vsel %vm5277_vm11, %v5264_v25, %v5266_v34 }
 0x1f0   : > { %v2163_v37 = vpop.f32.mrb[68].mxu1  ;;  %v5280_v54 = vsel %vm5277_vm11, %v5266_v34, %v5268_v36 }
 0x1f1   : > { %v2175_v39 = vadd.f32 %v2163_v37, %v1955_v55  ;;  %v6590_v40 = vpop.f32.mrb[69].mxu1  ;;  %6444 = vmatmul.mubr.msk.bf16.vlgmr.msra.gmra.mrb[176].mxu0 %vm260_vm2, %v6442_v33  ;;  %v5295_v61 = vsel %vm264_vm1, %v5280_v54, 0 }
 0x1f2   : > { %5172 = vmatpush1.bf16.msra.mxu0 %v5081_v4  ;;  %v2166_v3 = vpop.f32.mrb[70].mxu1  ;;  %5203 = vmatprep.mubr.bf16.mxu0 %v6789_v0  ;;  %v5270_v41 = vpop.permute.xlu0 %5269 }
 0x1f3   : > { %v6591_v43 = vpop.f32.mrb[71].mxu1  ;;  %6451 = vmatprep.subr.msk.bf16.mxu0 %vm264_vm1, %v5279_v38  ;;  %v5272_v6 = vpop.permute.xlu1 %5271  ;;  %v5281_v46 = vsel %vm5277_vm11, %v5268_v36, %v5270_v41  ;;  %v6139_v36 = vld [vmem:[%s8136_s2] sm:$0xff] }
 0x1f4   : > { %v2260_v45 = vpop.f32.mrb[72].mxu0  ;;  %6142 = vperm.xlu0 %6755, %v6139_v36  }
 0x1f5   : > { %v2389_v47 = vadd.f32 %v2260_v45, %v2169_v1  ;;  %v2262_v9 = vpop.f32.mrb[73].mxu0  ;;  %6446 = vmatmul.mubr.msk.bf16.vlgmr.msra.gmra.mrb[176].mxu1 %vm260_vm2, %v6442_v33  ;;  %v5282_v1 = vsel %vm5277_vm11, %v5270_v41, %v5272_v6 }
 0x1f6   : > { %v2390_v48 = vadd.f32 %v2262_v9, %v2170_v12  ;;  %6671 = vmatpush3.bf16.msra.mxu1 %v5087_v42  ;;  %v2264_v49 = vpop.f32.mrb[74].mxu0  ;;  %6672 = vmatprep.mubr.msk.bf16.mxu1 %vm6799_vm3, %v6798_v29  ;;  %v5274_v50 = vpop.permute.xlu0 %5273  ;;  %v5301_v15 = vsel %vm264_vm1, %v5282_v1, 0 }
 0x1f7   : > { %v2265_v52 = vpop.f32.mrb[75].mxu0  ;;  %6453 = vmatprep.subr.msk.bf16.mxu1 %vm264_vm1, %v5281_v46  ;;  %v5276_v53 = vpop.permute.xlu1 %5275  ;;  %v5283_v8 = vsel %vm5277_vm11, %v5272_v6, %v5274_v50 }
 0x1f8   : > { %v2301_v55 = vpop.f32.mrb[72].mxu1 }
 0x1f9   : > { %v7998_v56 = vadd.f32 %v2301_v55, %v2171_v18  ;;  %v2303_v57 = vpop.f32.mrb[73].mxu1  ;;  %6448 = vmatmul.mubr.msk.bf16.vlgmr.msra.gmra.mrb[180].mxu0 %vm260_vm2, %v6442_v33  ;;  %v5284_v18 = vsel %vm5277_vm11, %v5274_v50, %v5276_v53  ;;  %v6458_v53 = vld [vmem:[%s8135_s1 + $0x60] sm:$0xf] }
 0x1fa   : > { %v2392_v58 = vadd.f32 %v2303_v57, %v2172_v20  ;;  %5310 = vmatpush1.bf16.msra.mxu0 %v5289_v51  ;;  %v2305_v11 = vpop.f32.mrb[74].mxu1  ;;  %5341 = vmatprep.mubr.bf16.mxu0 %v6789_v0  ;;  %v5482_v59 = vpop.permute.xlu0 %5481  ;;  %v5307_v25 = vsel %vm264_vm1, %v5284_v18, 0 }
 0x1fb   : > { %v2306_v62 = vpop.f32.mrb[75].mxu1  ;;  %6455 = vmatprep.subr.msk.bf16.mxu0 %vm264_vm1, %v5283_v8  ;;  %v5484_v63 = vpop.permute.xlu1 %5483 }
 0x1fc   : > { %v2342_v2 = vpop.f32.mrb[76].mxu0 }
 0x1fd   : > { %v2393_v12 = vadd.f32 %v2342_v2, %v2173_v28  ;;  %v2344_v7 = vpop.f32.mrb[77].mxu0  ;;  %6673 = vmatmul.mubr.msk.bf16.vlgmr.msra.gmra.mrb[180].mxu1 %vm260_vm2, %v6442_v33  ;;  %v5498_v28 = vsel %vm5497_vm12, %v5482_v59, %v5484_v63 }
 0x1fe   : > { %v2394_v10 = vadd.f32 %v2344_v7, %v2174_v31  ;;  %5351 = vmatpush1.bf16.msra.mxu1 %v5295_v61  ;;  %v2346_v13 = vpop.f32.mrb[78].mxu0  ;;  %5382 = vmatprep.mubr.bf16.mxu1 %v6789_v0  ;;  %v5486_v14 = vpop.permute.xlu0 %5485  ;;  %v5509_v5 = vsel %vm264_vm1, %v5498_v28, 0 }
 0x1ff   : > { %v2347_v16 = vpop.f32.mrb[79].mxu0  ;;  %6676 = vmatprep.subr.bf16.mxu1 %v6798_v29  ;;  %v5488_v17 = vpop.permute.xlu1 %5487  ;;  %v5499_v20 = vsel %vm5497_vm12, %v5484_v63, %v5486_v14 }
 0x200   : > { %v2383_v19 = vpop.f32.mrb[76].mxu1 }
 0x201   : > { %v8014_v21 = vadd.f32 %v2383_v19, %v2175_v39  ;;  %v6596_v22 = vpop.f32.mrb[77].mxu1  ;;  %6452 = vmatmul.mubr.msk.bf16.vlgmr.msra.gmra.mrb[184].mxu0 %vm260_vm2, %v6450_v60  ;;  %v5500_v39 = vsel %vm5497_vm12, %v5486_v14, %v5488_v17 }
 0x202   : > { %5392 = vmatpush1.bf16.msra.mxu0 %v5301_v15  ;;  %v2386_v23 = vpop.f32.mrb[78].mxu1  ;;  %5423 = vmatprep.mubr.bf16.mxu0 %v6789_v0  ;;  %v5490_v24 = vpop.permute.xlu0 %5489  ;;  %v5515_v45 = vsel %vm264_vm1, %v5500_v39, 0 }
 0x203   : > { %v6597_v26 = vpop.f32.mrb[79].mxu1  ;;  %6459 = vmatprep.subr.msk.bf16.mxu0 %vm264_vm1, %v5499_v20  ;;  %v5492_v27 = vpop.permute.xlu1 %5491  ;;  %v5501_v31 = vsel %vm5497_vm12, %v5488_v17, %v5490_v24 }
 0x204   : > { %v2480_v30 = vpop.f32.mrb[80].mxu0  ;;  %v5502_v9 = vsel %vm5497_vm12, %v5490_v24, %v5492_v27 }
 0x205   : > { %v8022_v32 = vadd.f32 %v2480_v30, %v2389_v47  ;;  %v2482_v33 = vpop.f32.mrb[81].mxu0  ;;  %6454 = vmatmul.mubr.msk.bf16.vlgmr.msra.gmra.mrb[184].mxu1 %vm260_vm2, %v6450_v60  ;;  %v5521_v55 = vsel %vm264_vm1, %v5502_v9, 0 }
 0x206   : > { %v2610_v34 = vadd.f32 %v2482_v33, %v2390_v48  ;;  %6677 = vmatpush3.bf16.msra.mxu1 %v5307_v25  ;;  %v2484_v4 = vpop.f32.mrb[82].mxu0  ;;  %6678 = vmatprep.mubr.msk.bf16.mxu1 %vm6799_vm3, %v6798_v29  ;;  %v5494_v35 = vpop.permute.xlu0 %5493 }
 0x207   : > { %v2485_v37 = vpop.f32.mrb[83].mxu0  ;;  %6461 = vmatprep.subr.msk.bf16.mxu1 %vm264_vm1, %v5501_v31  ;;  %v5496_v38 = vpop.permute.xlu1 %5495  ;;  %v5503_v3 = vsel %vm5497_vm12, %v5492_v27, %v5494_v35 }
 0x208   : > { %v2521_v40 = vpop.f32.mrb[80].mxu1  ;;  %v5504_v57 = vsel %vm5497_vm12, %v5494_v35, %v5496_v38  ;;  %v6466_v37 = vld [vmem:[%s8135_s1 + $0x64] sm:$0xf] }
 0x209   : > { %v2611_v41 = vadd.f32 %v2521_v40, %v7998_v56  ;;  %v2523_v42 = vpop.f32.mrb[81].mxu1  ;;  %6456 = vmatmul.mubr.msk.bf16.vlgmr.msra.gmra.mrb[188].mxu0 %vm260_vm2, %v6450_v60  ;;  %v5527_v1 = vsel %vm264_vm1, %v5504_v57, 0 }
 0x20a   : > { %v2612_v43 = vadd.f32 %v2523_v42, %v2392_v58  ;;  %5530 = vmatpush1.bf16.msra.mxu0 %v5509_v5  ;;  %v2525_v6 = vpop.f32.mrb[82].mxu1  ;;  %5561 = vmatprep.mubr.bf16.mxu0 %v6789_v0  ;;  %v5702_v44 = vpop.permute.xlu0 %5701 }
 0x20b   : > { %v2526_v46 = vpop.f32.mrb[83].mxu1  ;;  %6463 = vmatprep.subr.msk.bf16.mxu0 %vm264_vm1, %v5503_v3  ;;  %v5704_v47 = vpop.permute.xlu1 %5703 }
 0x20c   : > { %v2562_v48 = vpop.f32.mrb[84].mxu0  ;;  %v5718_v7 = vsel %vm5717_vm13, %v5702_v44, %v5704_v47 }
 0x20d   : > { %v2613_v49 = vadd.f32 %v2562_v48, %v2393_v12  ;;  %v2564_v50 = vpop.f32.mrb[85].mxu0  ;;  %6679 = vmatmul.mubr.msk.bf16.vlgmr.msra.gmra.mrb[188].mxu1 %vm260_vm2, %v6450_v60  ;;  %v5729_v18 = vsel %vm264_vm1, %v5718_v7, 0 }
 0x20e   : > { %v2614_v51 = vadd.f32 %v2564_v50, %v2394_v10  ;;  %5571 = vmatpush1.bf16.msra.mxu1 %v5515_v45  ;;  %v2566_v52 = vpop.f32.mrb[86].mxu0  ;;  %5602 = vmatprep.mubr.bf16.mxu1 %v6789_v0  ;;  %v5706_v54 = vpop.permute.xlu0 %5705 }
 0x20f   : > { %v2567_v8 = vpop.f32.mrb[87].mxu0  ;;  %6682 = vmatprep.subr.bf16.mxu1 %v6798_v29  ;;  %v5708_v56 = vpop.permute.xlu1 %5707  ;;  %v5719_v11 = vsel %vm5717_vm13, %v5704_v47, %v5706_v54 }
 0x210   : > { %v2603_v58 = vpop.f32.mrb[84].mxu1 }
 0x211   : > { %v2615_v59 = vadd.f32 %v2603_v58, %v8014_v21  ;;  %v6602_v61 = vpop.f32.mrb[85].mxu1  ;;  %6460 = vmatmul.mubr.msk.bf16.vlgmr.msra.gmra.mrb[192].mxu0 %vm260_vm2, %v6458_v53  ;;  %v5720_v21 = vsel %vm5717_vm13, %v5706_v54, %v5708_v56 }
 0x212   : > { %5612 = vmatpush1.bf16.msra.mxu0 %v5521_v55  ;;  %v2606_v62 = vpop.f32.mrb[86].mxu1  ;;  %5643 = vmatprep.mubr.bf16.mxu0 %v6789_v0  ;;  %v5710_v63 = vpop.permute.xlu0 %5709  ;;  %v5735_v30 = vsel %vm264_vm1, %v5720_v21, 0 }
 0x213   : > { %v6603_v2 = vpop.f32.mrb[87].mxu1  ;;  %6467 = vmatprep.subr.msk.bf16.mxu0 %vm264_vm1, %v5719_v11  ;;  %v5712_v12 = vpop.permute.xlu1 %5711  ;;  %v5721_v13 = vsel %vm5717_vm13, %v5708_v56, %v5710_v63 }
 0x214   : > { %v2700_v10 = vpop.f32.mrb[88].mxu0  ;;  %v5722_v33 = vsel %vm5717_vm13, %v5710_v63, %v5712_v12 }
 0x215   : > { %v2829_v60 = vadd.f32 %v2700_v10, %v8022_v32  ;;  %v2702_v14 = vpop.f32.mrb[89].mxu0  ;;  %6462 = vmatmul.mubr.msk.bf16.vlgmr.msra.gmra.mrb[192].mxu1 %vm260_vm2, %v6458_v53  ;;  %v5741_v39 = vsel %vm264_vm1, %v5722_v33, 0 }
 0x216   : > { %v2830_v15 = vadd.f32 %v2702_v14, %v2610_v34  ;;  %6683 = vmatpush3.bf16.msra.mxu1 %v5527_v1  ;;  %v2704_v16 = vpop.f32.mrb[90].mxu0  ;;  %6684 = vmatprep.mubr.msk.bf16.mxu1 %vm6799_vm3, %v6798_v29  ;;  %v5714_v17 = vpop.permute.xlu0 %5713 }
 0x217   : > { %v2705_v19 = vpop.f32.mrb[91].mxu0  ;;  %6469 = vmatprep.subr.msk.bf16.mxu1 %vm264_vm1, %v5721_v13  ;;  %v5716_v20 = vpop.permute.xlu1 %5715  ;;  %v5723_v23 = vsel %vm5717_vm13, %v5712_v12, %v5714_v17 }
 0x218   : > { %v2741_v22 = vpop.f32.mrb[88].mxu1 }
 0x219   : > { %v2831_v24 = vadd.f32 %v2741_v22, %v2611_v41  ;;  %v2743_v25 = vpop.f32.mrb[89].mxu1  ;;  %6464 = vmatmul.mubr.msk.bf16.vlgmr.msra.gmra.mrb[196].mxu0 %vm260_vm2, %v6458_v53  ;;  %v5724_v41 = vsel %vm5717_vm13, %v5714_v17, %v5716_v20  ;;  %v6474_v17 = vld [vmem:[%s8135_s1 + $0x68] sm:$0xf] }
 0x21a   : > { %v2832_v26 = vadd.f32 %v2743_v25, %v2612_v43  ;;  %5750 = vmatpush1.bf16.msra.mxu0 %v5729_v18  ;;  %v2745_v27 = vpop.f32.mrb[90].mxu1  ;;  %5781 = vmatprep.mubr.bf16.mxu0 %v6789_v0  ;;  %v5922_v28 = vpop.permute.xlu0 %5921  ;;  %v5747_v47 = vsel %vm264_vm1, %v5724_v41, 0 }
 0x21b   : > { %v2746_v31 = vpop.f32.mrb[91].mxu1  ;;  %6471 = vmatprep.subr.msk.bf16.mxu0 %vm264_vm1, %v5723_v23  ;;  %v5924_v32 = vpop.permute.xlu1 %5923 }
 0x21c   : > { %v2782_v34 = vpop.f32.mrb[92].mxu0  ;;  %v5938_v48 = vsel %vm5937_vm14, %v5922_v28, %v5924_v32 }
 0x21d   : > { %v2833_v4 = vadd.f32 %v2782_v34, %v2613_v49  ;;  %v2784_v35 = vpop.f32.mrb[93].mxu0  ;;  %6685 = vmatmul.mubr.msk.bf16.vlgmr.msra.gmra.mrb[196].mxu1 %vm260_vm2, %v6458_v53  ;;  %v5949_v56 = vsel %vm264_vm1, %v5938_v48, 0 }
 0x21e   : > { %v2834_v36 = vadd.f32 %v2784_v35, %v2614_v51  ;;  %5791 = vmatpush1.bf16.msra.mxu1 %v5735_v30  ;;  %v2786_v5 = vpop.f32.mrb[94].mxu0  ;;  %5822 = vmatprep.mubr.bf16.mxu1 %v6789_v0  ;;  %v5926_v38 = vpop.permute.xlu0 %5925 }
 0x21f   : > { %v2787_v40 = vpop.f32.mrb[95].mxu0  ;;  %6688 = vmatprep.subr.bf16.mxu1 %v6798_v29  ;;  %v5928_v3 = vpop.permute.xlu1 %5927  ;;  %v5939_v43 = vsel %vm5937_vm14, %v5924_v32, %v5926_v38 }
 0x220   : > { %v2823_v42 = vpop.f32.mrb[92].mxu1  ;;  %v5940_v58 = vsel %vm5937_vm14, %v5926_v38, %v5928_v3 }
 0x221   : > { %v2835_v6 = vadd.f32 %v2823_v42, %v2615_v59  ;;  %v6608_v44 = vpop.f32.mrb[93].mxu1  ;;  %6468 = vmatmul.mubr.msk.bf16.vlgmr.msra.gmra.mrb[200].mxu0 %vm260_vm2, %v6466_v37  ;;  %v5955_v2 = vsel %vm264_vm1, %v5940_v58, 0 }
 0x222   : > { %5832 = vmatpush1.bf16.msra.mxu0 %v5741_v39  ;;  %v2826_v45 = vpop.f32.mrb[94].mxu1  ;;  %5863 = vmatprep.mubr.bf16.mxu0 %v6789_v0  ;;  %v5930_v46 = vpop.permute.xlu0 %5929 }
 0x223   : > { %v6609_v9 = vpop.f32.mrb[95].mxu1  ;;  %6475 = vmatprep.subr.msk.bf16.mxu0 %vm264_vm1, %v5939_v43  ;;  %v5941_v50 = vsel %vm5937_vm14, %v5928_v3, %v5930_v46  ;;  %v5932_v53 = vpop.permute.xlu1 %5931 }
 0x224   : > { %v2920_v49 = vpop.f32.mrb[96].mxu0  ;;  %v5942_v7 = vsel %vm5937_vm14, %v5930_v46, %v5932_v53 }
 0x225   : > { %v3049_v51 = vadd.f32 %v2920_v49, %v2829_v60  ;;  %v2922_v52 = vpop.f32.mrb[97].mxu0  ;;  %6470 = vmatmul.mubr.msk.bf16.vlgmr.msra.gmra.mrb[200].mxu1 %vm260_vm2, %v6466_v37  ;;  %v5961_v18 = vsel %vm264_vm1, %v5942_v7, 0 }
 0x226   : > { %v3050_v54 = vadd.f32 %v2922_v52, %v2830_v15  ;;  %6689 = vmatpush3.bf16.msra.mxu1 %v5747_v47  ;;  %v2924_v55 = vpop.f32.mrb[98].mxu0  ;;  %6690 = vmatprep.mubr.msk.bf16.mxu1 %vm6799_vm3, %v6798_v29  ;;  %v5934_v8 = vpop.permute.xlu0 %5933 }
 0x227   : > { %v2925_v57 = vpop.f32.mrb[99].mxu0  ;;  %6477 = vmatprep.subr.msk.bf16.mxu1 %vm264_vm1, %v5941_v50  ;;  %v5943_v59 = vsel %vm5937_vm14, %v5932_v53, %v5934_v8  ;;  %v5936_v14 = vpop.permute.xlu1 %5935 }
 0x228   : > { %v2961_v11 = vpop.f32.mrb[96].mxu1  ;;  %v5944_v21 = vsel %vm5937_vm14, %v5934_v8, %v5936_v14 }
 0x229   : > { %v3051_v61 = vadd.f32 %v2961_v11, %v2831_v24  ;;  %v2963_v62 = vpop.f32.mrb[97].mxu1  ;;  %6472 = vmatmul.mubr.msk.bf16.vlgmr.msra.gmra.mrb[204].mxu0 %vm260_vm2, %v6466_v37  ;;  %v5967_v25 = vsel %vm264_vm1, %v5944_v21, 0 }
 0x22a   : > { %v3052_v63 = vadd.f32 %v2963_v62, %v2832_v26  ;;  %5970 = vmatpush1.bf16.msra.mxu0 %v5949_v56  ;;  %v2965_v1 = vpop.f32.mrb[98].mxu1  ;;  %6001 = vmatprep.mubr.bf16.mxu0 %v6789_v0 }
 0x22b   : > { %v2966_v12 = vpop.f32.mrb[99].mxu1  ;;  %6479 = vmatprep.subr.msk.bf16.mxu0 %vm264_vm1, %v5943_v59 }
 0x22c   : > { %v3002_v10 = vpop.f32.mrb[100].mxu0 }
 0x22d   : > { %v3053_v13 = vadd.f32 %v3002_v10, %v2833_v4  ;;  %v3004_v60 = vpop.f32.mrb[101].mxu0  ;;  %6691 = vmatmul.mubr.msk.bf16.vlgmr.msra.gmra.mrb[204].mxu1 %vm260_vm2, %v6466_v37 }
 0x22e   : > { %v3054_v15 = vadd.f32 %v3004_v60, %v2834_v36  ;;  %6011 = vmatpush1.bf16.msra.mxu1 %v5955_v2  ;;  %v3006_v16 = vpop.f32.mrb[102].mxu0  ;;  %6042 = vmatprep.mubr.bf16.mxu1 %v6789_v0 }
 0x22f   : > { %v3007_v19 = vpop.f32.mrb[103].mxu0  ;;  %6694 = vmatprep.subr.bf16.mxu1 %v6798_v29 }
 0x230   : > { %v3043_v20 = vpop.f32.mrb[100].mxu1 }
 0x231   : > { %v3055_v22 = vadd.f32 %v3043_v20, %v2835_v6  ;;  %v6614_v23 = vpop.f32.mrb[101].mxu1  ;;  %6476 = vmatmul.mubr.msk.bf16.vlgmr.msra.gmra.mrb[208].mxu0 %vm260_vm2, %v6474_v17 }
 0x232   : > { %6052 = vmatpush1.bf16.msra.mxu0 %v5961_v18  ;;  %v3046_v24 = vpop.f32.mrb[102].mxu1  ;;  %6083 = vmatprep.mubr.bf16.mxu0 %v6789_v0 }
 0x233   : > { %v6615_v26 = vpop.f32.mrb[103].mxu1 }
 0x234   : > { %v3140_v27 = vpop.f32.mrb[104].mxu0 }
 0x235   : > { %v3269_v28 = vadd.f32 %v3140_v27, %v3049_v51  ;;  %v3142_v30 = vpop.f32.mrb[105].mxu0  ;;  %6478 = vmatmul.mubr.msk.bf16.vlgmr.msra.gmra.mrb[208].mxu1 %vm260_vm2, %v6474_v17 }
 0x236   : > { %v3270_v31 = vadd.f32 %v3142_v30, %v3050_v54  ;;  %6695 = vmatpush3.bf16.msra.mxu1 %v5967_v25  ;;  %v3144_v32 = vpop.f32.mrb[106].mxu0  ;;  %6696 = vmatprep.mubr.msk.bf16.mxu1 %vm6799_vm3, %v6798_v29 }
 0x237   : > { %v3145_v33 = vpop.f32.mrb[107].mxu0 }
 0x238   : > { %v3181_v34 = vpop.f32.mrb[104].mxu1 }
 0x239   : > { %v3271_v4 = vadd.f32 %v3181_v34, %v3051_v61  ;;  %v3183_v35 = vpop.f32.mrb[105].mxu1  ;;  %6480 = vmatmul.mubr.msk.bf16.vlgmr.msra.gmra.mrb[212].mxu0 %vm260_vm2, %v6474_v17 }
 0x23a   : > { %v3272_v0 = vadd.f32 %v3183_v35, %v3052_v63  ;;  %v3185_v36 = vpop.f32.mrb[106].mxu1 }
 0x23b   : > { %v3186_v5 = vpop.f32.mrb[107].mxu1 }
 0x23c   : > { %v3222_v37 = vpop.f32.mrb[108].mxu0 }
 0x23d   : > { %v3273_v38 = vadd.f32 %v3222_v37, %v3053_v13  ;;  %v3224_v39 = vpop.f32.mrb[109].mxu0  ;;  %6697 = vmatmul.mubr.msk.bf16.vlgmr.msra.gmra.mrb[212].mxu1 %vm260_vm2, %v6474_v17 }
 0x23e   : > { %v3274_v40 = vadd.f32 %v3224_v39, %v3054_v15  ;;  %v3226_v3 = vpop.f32.mrb[110].mxu0 }
 0x23f   : > { %v3227_v41 = vpop.f32.mrb[111].mxu0 }
 0x240   : > { %v3263_v42 = vpop.f32.mrb[108].mxu1 }
 0x241   : > { %v3275_v43 = vadd.f32 %v3263_v42, %v3055_v22  ;;  %v6620_v29 = vpop.f32.mrb[109].mxu1 }
 0x242   : > { %v3266_v6 = vpop.f32.mrb[110].mxu1 }
 0x243   : > { %v6621_v44 = vpop.f32.mrb[111].mxu1 }
 0x244   : > { %v3360_v45 = vpop.f32.mrb[112].mxu0 }
 0x245   : > { %v3489_v46 = vadd.f32 %v3360_v45, %v3269_v28  ;;  %v3362_v47 = vpop.f32.mrb[113].mxu0 }
 0x246   : > { %v3490_v9 = vadd.f32 %v3362_v47, %v3270_v31  ;;  %v3364_v48 = vpop.f32.mrb[114].mxu0 }
 0x247   : > { %v3365_v49 = vpop.f32.mrb[115].mxu0 }
 0x248   : > { %v3401_v50 = vpop.f32.mrb[112].mxu1 }
 0x249   : > { %v3491_v51 = vadd.f32 %v3401_v50, %v3271_v4  ;;  %v3403_v52 = vpop.f32.mrb[113].mxu1 }
 0x24a   : > { %v3492_v53 = vadd.f32 %v3403_v52, %v3272_v0  ;;  %v3405_v54 = vpop.f32.mrb[114].mxu1 }
 0x24b   : > { %v3406_v55 = vpop.f32.mrb[115].mxu1 }
 0x24c   : > { %v3442_v8 = vpop.f32.mrb[116].mxu0 }
 0x24d   : > { %v3493_v56 = vadd.f32 %v3442_v8, %v3273_v38  ;;  %v3444_v57 = vpop.f32.mrb[117].mxu0 }
 0x24e   : > { %v3494_v58 = vadd.f32 %v3444_v57, %v3274_v40  ;;  %v3446_v11 = vpop.f32.mrb[118].mxu0 }
 0x24f   : > { %v3447_v59 = vpop.f32.mrb[119].mxu0 }
 0x250   : > { %v3483_v61 = vpop.f32.mrb[116].mxu1 }
 0x251   : > { %v3495_v62 = vadd.f32 %v3483_v61, %v3275_v43  ;;  %v6626_v63 = vpop.f32.mrb[117].mxu1 }
 0x252   : > { %v3486_v1 = vpop.f32.mrb[118].mxu1 }
 0x253   : > { %v6627_v2 = vpop.f32.mrb[119].mxu1 }
 0x254   : > { %v3580_v12 = vpop.f32.mrb[120].mxu0 }
 0x255   : > { %v3709_v7 = vadd.f32 %v3580_v12, %v3489_v46  ;;  %v3582_v10 = vpop.f32.mrb[121].mxu0 }
 0x256   : > { %v3710_v13 = vadd.f32 %v3582_v10, %v3490_v9  ;;  %v3584_v60 = vpop.f32.mrb[122].mxu0 }
 0x257   : > { %v3585_v14 = vpop.f32.mrb[123].mxu0 }
 0x258   : > { %v3621_v15 = vpop.f32.mrb[120].mxu1 }
 0x259   : > { %v3711_v16 = vadd.f32 %v3621_v15, %v3491_v51  ;;  %v3623_v17 = vpop.f32.mrb[121].mxu1 }
 0x25a   : > { %v3712_v18 = vadd.f32 %v3623_v17, %v3492_v53  ;;  %v3625_v19 = vpop.f32.mrb[122].mxu1 }
 0x25b   : > { %v3626_v20 = vpop.f32.mrb[123].mxu1 }
 0x25c   : > { %v3662_v21 = vpop.f32.mrb[124].mxu0 }
 0x25d   : > { %v3713_v22 = vadd.f32 %v3662_v21, %v3493_v56  ;;  %v3664_v23 = vpop.f32.mrb[125].mxu0 }
 0x25e   : > { %v3714_v24 = vadd.f32 %v3664_v23, %v3494_v58  ;;  %v3666_v25 = vpop.f32.mrb[126].mxu0 }
 0x25f   : > { %v3667_v26 = vpop.f32.mrb[127].mxu0 }
 0x260   : > { %v3703_v27 = vpop.f32.mrb[124].mxu1 }
 0x261   : > { %v3715_v28 = vadd.f32 %v3703_v27, %v3495_v62  ;;  %v6632_v30 = vpop.f32.mrb[125].mxu1 }
 0x262   : > { %v3706_v31 = vpop.f32.mrb[126].mxu1 }
 0x263   : > { %v6633_v32 = vpop.f32.mrb[127].mxu1 }
 0x264   : > { %v3800_v33 = vpop.f32.mrb[128].mxu0 }
 0x265   : > { %v3929_v34 = vadd.f32 %v3800_v33, %v3709_v7  ;;  %v3802_v4 = vpop.f32.mrb[129].mxu0 }
 0x266   : > { %v3930_v35 = vadd.f32 %v3802_v4, %v3710_v13  ;;  %v3804_v0 = vpop.f32.mrb[130].mxu0 }
 0x267   : > { %v3805_v36 = vpop.f32.mrb[131].mxu0 }
 0x268   : > { %v3841_v5 = vpop.f32.mrb[128].mxu1 }
 0x269   : > { %v3931_v37 = vadd.f32 %v3841_v5, %v3711_v16  ;;  %v3843_v38 = vpop.f32.mrb[129].mxu1 }
 0x26a   : > { %v3932_v39 = vadd.f32 %v3843_v38, %v3712_v18  ;;  %v3845_v40 = vpop.f32.mrb[130].mxu1 }
 0x26b   : > { %v3846_v3 = vpop.f32.mrb[131].mxu1 }
 0x26c   : > { %v3882_v41 = vpop.f32.mrb[132].mxu0 }
 0x26d   : > { %v3933_v42 = vadd.f32 %v3882_v41, %v3713_v22  ;;  %v3884_v43 = vpop.f32.mrb[133].mxu0 }
 0x26e   : > { %v3934_v29 = vadd.f32 %v3884_v43, %v3714_v24  ;;  %v3886_v6 = vpop.f32.mrb[134].mxu0 }
 0x26f   : > { %v3887_v44 = vpop.f32.mrb[135].mxu0 }
 0x270   : > { %v3923_v45 = vpop.f32.mrb[132].mxu1 }
 0x271   : > { %v3935_v46 = vadd.f32 %v3923_v45, %v3715_v28  ;;  %v6638_v47 = vpop.f32.mrb[133].mxu1 }
 0x272   : > { %v3926_v9 = vpop.f32.mrb[134].mxu1 }
 0x273   : > { %v6639_v48 = vpop.f32.mrb[135].mxu1 }
 0x274   : > { %v4020_v49 = vpop.f32.mrb[136].mxu0 }
 0x275   : > { %v4149_v50 = vadd.f32 %v4020_v49, %v3929_v34  ;;  %v4022_v51 = vpop.f32.mrb[137].mxu0 }
 0x276   : > { %v4150_v52 = vadd.f32 %v4022_v51, %v3930_v35  ;;  %v4024_v53 = vpop.f32.mrb[138].mxu0 }
 0x277   : > { %v4025_v54 = vpop.f32.mrb[139].mxu0 }
 0x278   : > { %v4061_v55 = vpop.f32.mrb[136].mxu1 }
 0x279   : > { %v4151_v8 = vadd.f32 %v4061_v55, %v3931_v37  ;;  %v4063_v56 = vpop.f32.mrb[137].mxu1 }
 0x27a   : > { %v4152_v57 = vadd.f32 %v4063_v56, %v3932_v39  ;;  %v4065_v58 = vpop.f32.mrb[138].mxu1 }
 0x27b   : > { %v4066_v11 = vpop.f32.mrb[139].mxu1 }
 0x27c   : > { %v4102_v59 = vpop.f32.mrb[140].mxu0 }
 0x27d   : > { %v4153_v61 = vadd.f32 %v4102_v59, %v3933_v42  ;;  %v4104_v62 = vpop.f32.mrb[141].mxu0 }
 0x27e   : > { %v4154_v63 = vadd.f32 %v4104_v62, %v3934_v29  ;;  %v4106_v1 = vpop.f32.mrb[142].mxu0 }
 0x27f   : > { %v4107_v2 = vpop.f32.mrb[143].mxu0 }
 0x280   : > { %v4143_v12 = vpop.f32.mrb[140].mxu1 }
 0x281   : > { %v4155_v7 = vadd.f32 %v4143_v12, %v3935_v46  ;;  %v6644_v10 = vpop.f32.mrb[141].mxu1 }
 0x282   : > { %v4146_v13 = vpop.f32.mrb[142].mxu1 }
 0x283   : > { %v6645_v60 = vpop.f32.mrb[143].mxu1 }
 0x284   : > { %v4243_v14 = vpop.f32.mrb[144].mxu0 }
 0x285   : > { %v4372_v15 = vadd.f32 %v4243_v14, %v4149_v50  ;;  %v4245_v16 = vpop.f32.mrb[145].mxu0 }
 0x286   : > { %v4373_v17 = vadd.f32 %v4245_v16, %v4150_v52  ;;  %v4247_v18 = vpop.f32.mrb[146].mxu0 }
 0x287   : > { %v4248_v19 = vpop.f32.mrb[147].mxu0 }
 0x288   : > { %v4284_v20 = vpop.f32.mrb[144].mxu1 }
 0x289   : > { %v4374_v21 = vadd.f32 %v4284_v20, %v4151_v8  ;;  %v4286_v22 = vpop.f32.mrb[145].mxu1 }
 0x28a   : > { %v4375_v23 = vadd.f32 %v4286_v22, %v4152_v57  ;;  %v4288_v24 = vpop.f32.mrb[146].mxu1 }
 0x28b   : > { %v4289_v25 = vpop.f32.mrb[147].mxu1 }
 0x28c   : > { %v4325_v26 = vpop.f32.mrb[148].mxu0 }
 0x28d   : > { %v4376_v27 = vadd.f32 %v4325_v26, %v4153_v61  ;;  %v4327_v28 = vpop.f32.mrb[149].mxu0 }
 0x28e   : > { %v4377_v30 = vadd.f32 %v4327_v28, %v4154_v63  ;;  %v4329_v31 = vpop.f32.mrb[150].mxu0 }
 0x28f   : > { %v4330_v32 = vpop.f32.mrb[151].mxu0 }
 0x290   : > { %v4366_v33 = vpop.f32.mrb[148].mxu1 }
 0x291   : > { %v4378_v34 = vadd.f32 %v4366_v33, %v4155_v7  ;;  %v6650_v4 = vpop.f32.mrb[149].mxu1 }
 0x292   : > { %v4369_v35 = vpop.f32.mrb[150].mxu1 }
 0x293   : > { %v6651_v0 = vpop.f32.mrb[151].mxu1 }
 0x294   : > { %v4463_v36 = vpop.f32.mrb[152].mxu0 }
 0x295   : > { %v4592_v5 = vadd.f32 %v4463_v36, %v4372_v15  ;;  %v4465_v37 = vpop.f32.mrb[153].mxu0 }
 0x296   : > { %v4593_v38 = vadd.f32 %v4465_v37, %v4373_v17  ;;  %v4467_v39 = vpop.f32.mrb[154].mxu0 }
 0x297   : > { %v4468_v40 = vpop.f32.mrb[155].mxu0 }
 0x298   : > { %v4504_v3 = vpop.f32.mrb[152].mxu1 }
 0x299   : > { %v4594_v41 = vadd.f32 %v4504_v3, %v4374_v21  ;;  %v4506_v42 = vpop.f32.mrb[153].mxu1 }
 0x29a   : > { %v4595_v43 = vadd.f32 %v4506_v42, %v4375_v23  ;;  %v4508_v29 = vpop.f32.mrb[154].mxu1 }
 0x29b   : > { %v4509_v6 = vpop.f32.mrb[155].mxu1 }
 0x29c   : > { %v4545_v44 = vpop.f32.mrb[156].mxu0 }
 0x29d   : > { %v4596_v45 = vadd.f32 %v4545_v44, %v4376_v27  ;;  %v4547_v46 = vpop.f32.mrb[157].mxu0 }
 0x29e   : > { %v4597_v47 = vadd.f32 %v4547_v46, %v4377_v30  ;;  %v4549_v9 = vpop.f32.mrb[158].mxu0 }
 0x29f   : > { %v4550_v48 = vpop.f32.mrb[159].mxu0 }
 0x2a0   : > { %v4586_v49 = vpop.f32.mrb[156].mxu1 }
 0x2a1   : > { %v4598_v50 = vadd.f32 %v4586_v49, %v4378_v34  ;;  %v6656_v51 = vpop.f32.mrb[157].mxu1 }
 0x2a2   : > { %v4589_v52 = vpop.f32.mrb[158].mxu1 }
 0x2a3   : > { %v6657_v53 = vpop.f32.mrb[159].mxu1 }
 0x2a4   : > { %v4683_v54 = vpop.f32.mrb[160].mxu0 }
 0x2a5   : > { %v4812_v55 = vadd.f32 %v4683_v54, %v4592_v5  ;;  %v4685_v8 = vpop.f32.mrb[161].mxu0 }
 0x2a6   : > { %v4813_v56 = vadd.f32 %v4685_v8, %v4593_v38  ;;  %v4687_v57 = vpop.f32.mrb[162].mxu0 }
 0x2a7   : > { %v4688_v58 = vpop.f32.mrb[163].mxu0 }
 0x2a8   : > { %v4724_v11 = vpop.f32.mrb[160].mxu1 }
 0x2a9   : > { %v4814_v59 = vadd.f32 %v4724_v11, %v4594_v41  ;;  %v4726_v61 = vpop.f32.mrb[161].mxu1 }
 0x2aa   : > { %v4815_v62 = vadd.f32 %v4726_v61, %v4595_v43  ;;  %v4728_v63 = vpop.f32.mrb[162].mxu1 }
 0x2ab   : > { %v4729_v1 = vpop.f32.mrb[163].mxu1 }
 0x2ac   : > { %v4765_v2 = vpop.f32.mrb[164].mxu0 }
 0x2ad   : > { %v4816_v12 = vadd.f32 %v4765_v2, %v4596_v45  ;;  %v4767_v7 = vpop.f32.mrb[165].mxu0 }
 0x2ae   : > { %v4817_v10 = vadd.f32 %v4767_v7, %v4597_v47  ;;  %v4769_v13 = vpop.f32.mrb[166].mxu0 }
 0x2af   : > { %v4770_v60 = vpop.f32.mrb[167].mxu0 }
 0x2b0   : > { %v4806_v14 = vpop.f32.mrb[164].mxu1 }
 0x2b1   : > { %v4818_v15 = vadd.f32 %v4806_v14, %v4598_v50  ;;  %v6662_v16 = vpop.f32.mrb[165].mxu1 }
 0x2b2   : > { %v4809_v17 = vpop.f32.mrb[166].mxu1 }
 0x2b3   : > { %v6663_v18 = vpop.f32.mrb[167].mxu1 }
 0x2b4   : > { %v4903_v19 = vpop.f32.mrb[168].mxu0 }
 0x2b5   : > { %v5032_v20 = vadd.f32 %v4903_v19, %v4812_v55  ;;  %v4905_v21 = vpop.f32.mrb[169].mxu0 }
 0x2b6   : > { %v5033_v22 = vadd.f32 %v4905_v21, %v4813_v56  ;;  %v4907_v23 = vpop.f32.mrb[170].mxu0 }
 0x2b7   : > { %v4908_v24 = vpop.f32.mrb[171].mxu0 }
 0x2b8   : > { %v4944_v25 = vpop.f32.mrb[168].mxu1 }
 0x2b9   : > { %v5034_v26 = vadd.f32 %v4944_v25, %v4814_v59  ;;  %v4946_v27 = vpop.f32.mrb[169].mxu1 }
 0x2ba   : > { %v5035_v28 = vadd.f32 %v4946_v27, %v4815_v62  ;;  %v4948_v30 = vpop.f32.mrb[170].mxu1 }
 0x2bb   : > { %v4949_v31 = vpop.f32.mrb[171].mxu1 }
 0x2bc   : > { %v4985_v32 = vpop.f32.mrb[172].mxu0 }
 0x2bd   : > { %v5036_v33 = vadd.f32 %v4985_v32, %v4816_v12  ;;  %v4987_v34 = vpop.f32.mrb[173].mxu0 }
 0x2be   : > { %v5037_v4 = vadd.f32 %v4987_v34, %v4817_v10  ;;  %v4989_v35 = vpop.f32.mrb[174].mxu0 }
 0x2bf   : > { %v4990_v0 = vpop.f32.mrb[175].mxu0 }
 0x2c0   : > { %v5026_v36 = vpop.f32.mrb[172].mxu1 }
 0x2c1   : > { %v5038_v5 = vadd.f32 %v5026_v36, %v4818_v15  ;;  %v6668_v37 = vpop.f32.mrb[173].mxu1 }
 0x2c2   : > { %v5029_v38 = vpop.f32.mrb[174].mxu1 }
 0x2c3   : > { %v6669_v39 = vpop.f32.mrb[175].mxu1 }
 0x2c4   : > { %v5123_v40 = vpop.f32.mrb[176].mxu0 }
 0x2c5   : > { %v5252_v3 = vadd.f32 %v5123_v40, %v5032_v20  ;;  %v5125_v41 = vpop.f32.mrb[177].mxu0 }
 0x2c6   : > { %v5253_v42 = vadd.f32 %v5125_v41, %v5033_v22  ;;  %v5127_v43 = vpop.f32.mrb[178].mxu0 }
 0x2c7   : > { %v5128_v29 = vpop.f32.mrb[179].mxu0 }
 0x2c8   : > { %v5164_v6 = vpop.f32.mrb[176].mxu1 }
 0x2c9   : > { %v5254_v44 = vadd.f32 %v5164_v6, %v5034_v26  ;;  %v5166_v45 = vpop.f32.mrb[177].mxu1 }
 0x2ca   : > { %v5255_v46 = vadd.f32 %v5166_v45, %v5035_v28  ;;  %v5168_v47 = vpop.f32.mrb[178].mxu1 }
 0x2cb   : > { %v5169_v9 = vpop.f32.mrb[179].mxu1 }
 0x2cc   : > { %v5205_v48 = vpop.f32.mrb[180].mxu0 }
 0x2cd   : > { %v5256_v49 = vadd.f32 %v5205_v48, %v5036_v33  ;;  %v5207_v50 = vpop.f32.mrb[181].mxu0 }
 0x2ce   : > { %v5257_v51 = vadd.f32 %v5207_v50, %v5037_v4  ;;  %v5209_v52 = vpop.f32.mrb[182].mxu0 }
 0x2cf   : > { %v5210_v53 = vpop.f32.mrb[183].mxu0 }
 0x2d0   : > { %v5246_v54 = vpop.f32.mrb[180].mxu1 }
 0x2d1   : > { %v5258_v55 = vadd.f32 %v5246_v54, %v5038_v5  ;;  %v6674_v8 = vpop.f32.mrb[181].mxu1 }
 0x2d2   : > { %v5249_v56 = vpop.f32.mrb[182].mxu1 }
 0x2d3   : > { %v6675_v57 = vpop.f32.mrb[183].mxu1 }
 0x2d4   : > { %v5343_v58 = vpop.f32.mrb[184].mxu0 }
 0x2d5   : > { %v5472_v11 = vadd.f32 %v5343_v58, %v5252_v3  ;;  %v5345_v59 = vpop.f32.mrb[185].mxu0 }
 0x2d6   : > { %v5473_v61 = vadd.f32 %v5345_v59, %v5253_v42  ;;  %v5347_v62 = vpop.f32.mrb[186].mxu0 }
 0x2d7   : > { %v5348_v63 = vpop.f32.mrb[187].mxu0 }
 0x2d8   : > { %v5384_v1 = vpop.f32.mrb[184].mxu1 }
 0x2d9   : > { %v5474_v2 = vadd.f32 %v5384_v1, %v5254_v44  ;;  %v5386_v12 = vpop.f32.mrb[185].mxu1  ;;  %v6143_v1 = vpop.permute.xlu0 %6142 }
 0x2da   : > { %v5475_v7 = vadd.f32 %v5386_v12, %v5255_v46  ;;  %v5388_v10 = vpop.f32.mrb[186].mxu1 }
 0x2db   : > { %v5389_v13 = vpop.f32.mrb[187].mxu1 }
 0x2dc   : > { %v5425_v60 = vpop.f32.mrb[188].mxu0 }
 0x2dd   : > { %v5476_v14 = vadd.f32 %v5425_v60, %v5256_v49  ;;  %v5427_v15 = vpop.f32.mrb[189].mxu0 }
 0x2de   : > { %v5477_v16 = vadd.f32 %v5427_v15, %v5257_v51  ;;  %v5429_v17 = vpop.f32.mrb[190].mxu0 }
 0x2df   : > { %v5430_v18 = vpop.f32.mrb[191].mxu0 }
 0x2e0   : > { %v5466_v19 = vpop.f32.mrb[188].mxu1 }
 0x2e1   : > { %v5478_v20 = vadd.f32 %v5466_v19, %v5258_v55  ;;  %v6680_v21 = vpop.f32.mrb[189].mxu1 }
 0x2e2   : > { %v5469_v22 = vpop.f32.mrb[190].mxu1 }
 0x2e3   : > { %v6681_v23 = vpop.f32.mrb[191].mxu1 }
 0x2e4   : > { %v5563_v24 = vpop.f32.mrb[192].mxu0 }
 0x2e5   : > { %v5692_v25 = vadd.f32 %v5563_v24, %v5472_v11  ;;  %v5565_v26 = vpop.f32.mrb[193].mxu0 }
 0x2e6   : > { %v5693_v27 = vadd.f32 %v5565_v26, %v5473_v61  ;;  %v5567_v28 = vpop.f32.mrb[194].mxu0 }
 0x2e7   : > { %v5568_v30 = vpop.f32.mrb[195].mxu0 }
 0x2e8   : > { %v5604_v31 = vpop.f32.mrb[192].mxu1 }
 0x2e9   : > { %v5694_v32 = vadd.f32 %v5604_v31, %v5474_v2  ;;  %v5606_v33 = vpop.f32.mrb[193].mxu1 }
 0x2ea   : > { %v5695_v34 = vadd.f32 %v5606_v33, %v5475_v7  ;;  %v5608_v4 = vpop.f32.mrb[194].mxu1 }
 0x2eb   : > { %v5609_v35 = vpop.f32.mrb[195].mxu1 }
 0x2ec   : > { %v5645_v0 = vpop.f32.mrb[196].mxu0 }
 0x2ed   : > { %v5696_v36 = vadd.f32 %v5645_v0, %v5476_v14  ;;  %v5647_v5 = vpop.f32.mrb[197].mxu0 }
 0x2ee   : > { %v5697_v37 = vadd.f32 %v5647_v5, %v5477_v16  ;;  %v5649_v38 = vpop.f32.mrb[198].mxu0 }
 0x2ef   : > { %v5650_v39 = vpop.f32.mrb[199].mxu0 }
 0x2f0   : > { %v5686_v40 = vpop.f32.mrb[196].mxu1 }
 0x2f1   : > { %v5698_v3 = vadd.f32 %v5686_v40, %v5478_v20  ;;  %v6686_v41 = vpop.f32.mrb[197].mxu1 }
 0x2f2   : > { %v5689_v42 = vpop.f32.mrb[198].mxu1 }
 0x2f3   : > { %v6687_v43 = vpop.f32.mrb[199].mxu1 }
 0x2f4   : > { %v5783_v29 = vpop.f32.mrb[200].mxu0 }
 0x2f5   : > { %v5912_v6 = vadd.f32 %v5783_v29, %v5692_v25  ;;  %v5785_v44 = vpop.f32.mrb[201].mxu0 }
 0x2f6   : > { %v5913_v45 = vadd.f32 %v5785_v44, %v5693_v27  ;;  %v5787_v46 = vpop.f32.mrb[202].mxu0 }
 0x2f7   : > { %v5788_v47 = vpop.f32.mrb[203].mxu0 }
 0x2f8   : > { %v5824_v9 = vpop.f32.mrb[200].mxu1 }
 0x2f9   : > { %v5914_v48 = vadd.f32 %v5824_v9, %v5694_v32  ;;  %v5826_v49 = vpop.f32.mrb[201].mxu1 }
 0x2fa   : > { %v5915_v50 = vadd.f32 %v5826_v49, %v5695_v34  ;;  %v5828_v51 = vpop.f32.mrb[202].mxu1 }
 0x2fb   : > { %v5829_v52 = vpop.f32.mrb[203].mxu1 }
 0x2fc   : > { %v5865_v53 = vpop.f32.mrb[204].mxu0 }
 0x2fd   : > { %v5916_v54 = vadd.f32 %v5865_v53, %v5696_v36  ;;  %v5867_v55 = vpop.f32.mrb[205].mxu0 }
 0x2fe   : > { %v5917_v8 = vadd.f32 %v5867_v55, %v5697_v37  ;;  %v5869_v56 = vpop.f32.mrb[206].mxu0 }
 0x2ff   : > { %v5870_v57 = vpop.f32.mrb[207].mxu0 }
 0x300   : > { %v5906_v58 = vpop.f32.mrb[204].mxu1 }
 0x301   : > { %v5918_v11 = vadd.f32 %v5906_v58, %v5698_v3  ;;  %v6692_v59 = vpop.f32.mrb[205].mxu1 }
 0x302   : > { %v5909_v61 = vpop.f32.mrb[206].mxu1 }
 0x303   : > { %v6693_v62 = vpop.f32.mrb[207].mxu1 }
 0x304   : > { %v6003_v63 = vpop.f32.mrb[208].mxu0 }
 0x305   : > { %v6132_v2 = vadd.f32 %v6003_v63, %v5912_v6  ;;  %v6005_v12 = vpop.f32.mrb[209].mxu0 }
 0x306   : > { %v6133_v7 = vadd.f32 %v6005_v12, %v5913_v45  ;;  %v6007_v10 = vpop.f32.mrb[210].mxu0 }
 0x307   : > { %v6145_v13 = vadd.f32 %v6143_v1, %v6132_v2  ;;  %v6008_v60 = vpop.f32.mrb[211].mxu0 }
 0x308   : > { %v6146_v14 = vadd.f32 %v6143_v1, %v6133_v7  ;;  %v6044_v15 = vpop.f32.mrb[208].mxu1 }
 0x309   : > { %6152 = vst [vmem:[%s8116_s10] sm:$0xff] %v6145_v13  ;;  %v6134_v16 = vadd.f32 %v6044_v15, %v5914_v48  ;;  %v6046_v17 = vpop.f32.mrb[209].mxu1 }
 0x30a   : > { %6153 = vst [vmem:[%s8116_s10 + $0x8] sm:$0xff] %v6146_v14  ;;  %v6135_v18 = vadd.f32 %v6046_v17, %v5915_v50  ;;  %v6048_v19 = vpop.f32.mrb[210].mxu1 }
 0x30b   : > { %v6147_v20 = vadd.f32 %v6143_v1, %v6134_v16  ;;  %v6049_v21 = vpop.f32.mrb[211].mxu1 }
 0x30c   : > { %v6148_v22 = vadd.f32 %v6143_v1, %v6135_v18  ;;  %v6085_v23 = vpop.f32.mrb[212].mxu0 }
 0x30d   : > { %6154 = vst [vmem:[%s8116_s10 + $0x10] sm:$0xff] %v6147_v20  ;;  %v6136_v24 = vadd.f32 %v6085_v23, %v5916_v54  ;;  %v6087_v25 = vpop.f32.mrb[213].mxu0 }
 0x30e   : > { %6155 = vst [vmem:[%s8116_s10 + $0x18] sm:$0xff] %v6148_v22  ;;  %v6137_v26 = vadd.f32 %v6087_v25, %v5917_v8  ;;  %v6089_v27 = vpop.f32.mrb[214].mxu0 }
 0x30f   : > { %v6149_v28 = vadd.f32 %v6143_v1, %v6136_v24  ;;  %v6090_v30 = vpop.f32.mrb[215].mxu0 }
 0x310   : > { %v6150_v31 = vadd.f32 %v6143_v1, %v6137_v26  ;;  %v6126_v32 = vpop.f32.mrb[212].mxu1 }
 0x311   : > { %6156 = vst [vmem:[%s8116_s10 + $0x20] sm:$0xff] %v6149_v28  ;;  %v6138_v33 = vadd.f32 %v6126_v32, %v5918_v11  ;;  %v6698_v34 = vpop.f32.mrb[213].mxu1 }
 0x312   : > { %6157 = vst [vmem:[%s8116_s10 + $0x28] sm:$0xff] %v6150_v31  ;;  %v6129_v4 = vpop.f32.mrb[214].mxu1 }
 0x313   : > { %v6151_v35 = vadd.f32 %v6143_v1, %v6138_v33  ;;  %v6699_v0 = vpop.f32.mrb[215].mxu1 }
 0x315   : > { %6158 = vst [vmem:[%s8116_s10 + $0x30] sm:$0xff] %v6151_v35 }
 0x316 PF: > { %s13_s14 = sadd.s32 1, %s6787_s14   ;;  %s8138_s12 = smov %s6783_s13 }
 0x317   : > { %p10_p5 = scmp.ge.s32.totalorder %s13_s14, 4   ;;  %s8139_s13 = smov %s8141_s15 }
 0x319   :  { %12 = sbr.rel (!%p10_p5) target bundleno = 2 (0x2), region = 88 }

</bundles_post_ra>
